<compile_context>
chip_gen: v6e
topology: v6e:2x2x1
jax: 0.10.0
libtpu: 0.0.40
codegen_flags: <defaults>
</compile_context>

<pallas_src>
import functools

import jax
import jax.numpy as jnp
from jax.experimental import pallas as pl
from jax.experimental.pallas import tpu as pltpu

_LANE = 128
# v5e/v6e have 128 MiB physical VMEM, v7x only 64 MiB: a 32 MiB scoped limit is
# safe on every generation and far above this kernel's <1 MiB footprint.
_VMEM_LIMIT_BYTES = 32 * 1024 * 1024

# 3x3 conv tap offsets (dh, dw), row-major.
_TAPS = tuple((dh, dw) for dh in range(3) for dw in range(3))


def _round_up(n, m):
    return ((n + m - 1) // m) * m


# ------------------------------ Pallas kernel -------------------------------


def _dual_resnet_kernel(xp_ref, w1_ref, b1_ref, w2_ref, b2_ref, wd_ref, bd_ref,
                        feat_ref, rec_ref, h1pad_ref, *, H, W):
    """Full DualResNet forward for one batch element, entirely VMEM-resident.

    conv1 -> ReLU -> conv2 (+residual) -> ReLU -> global-average-pool ->
    linear -> sigmoid.  Each 3x3 conv is 9 shifted matmuls against a spatially
    zero-padded buffer, so no im2col patch matrix ever touches HBM.
    """
    HW = H * W
    c_in = xp_ref.shape[-1]
    c_pad = h1pad_ref.shape[-1]

    # ---- conv1: 9 shifted taps, bf16 MXU operands, f32 accumulation ----
    acc1 = jnp.zeros((HW, c_pad), jnp.float32)
    for t, (dh, dw) in enumerate(_TAPS):
        win = xp_ref[dh:dh + H, dw:dw + W, :].reshape(HW, c_in)   # (HW, Cin) bf16
        acc1 += jnp.dot(win, w1_ref[t], preferred_element_type=jnp.float32)
    h1 = jnp.maximum(acc1 + b1_ref[...], 0.0)                     # (HW, c_pad) f32

    # ---- stage h1 into a zero-padded VMEM scratch (halo for conv2) ----
    h1pad_ref[...] = jnp.zeros_like(h1pad_ref)
    h1pad_ref[1:H + 1, 1:W + 1, :] = (
        h1.reshape(H, W, c_pad).astype(h1pad_ref.dtype))

    # ---- conv2 + bias + residual + ReLU (residual stays f32) ----
    acc2 = jnp.zeros((HW, c_pad), jnp.float32)
    for t, (dh, dw) in enumerate(_TAPS):
        win = h1pad_ref[dh:dh + H, dw:dw + W, :].reshape(HW, c_pad)
        acc2 += jnp.dot(win, w2_ref[t], preferred_element_type=jnp.float32)
    h2 = jnp.maximum(acc2 + b2_ref[...] + h1, 0.0)                # (HW, c_pad) f32

    # ---- fused global average pool ----
    feat = jnp.sum(h2, axis=0, keepdims=True) * (1.0 / HW)        # (1, c_pad) f32
    feat_ref[...] = feat

    # ---- fused decoder: linear + sigmoid (wd stays VMEM-resident) ----
    logits = jnp.dot(feat.astype(jnp.bfloat16), wd_ref[...],
                     preferred_element_type=jnp.float32) + bd_ref[...]
    rec_ref[...] = jax.nn.sigmoid(logits)                         # (1, n_dec) f32


# ---------------------------- pallas_call wrapper ----------------------------


def _dual_resnet_pallas(xp, w1, b1, w2, b2, wd, bd, *, H, W):
    """xp: (B, H+2, W+2, C_in) bf16 spatially pre-padded NHWC input."""
    B = xp.shape[0]
    c_in = xp.shape[-1]
    c_pad = w1.shape[-1]
    n_dec = wd.shape[-1]

    kernel = functools.partial(_dual_resnet_kernel, H=H, W=W)
    feat, rec = pl.pallas_call(
        kernel,
        out_shape=(
            jax.ShapeDtypeStruct((B, 1, c_pad), jnp.float32),
            jax.ShapeDtypeStruct((B, 1, n_dec), jnp.float32),
        ),
        grid=(B,),
        in_specs=[
            # per-image padded input block (leading batch dim squeezed away)
            pl.BlockSpec((None, H + 2, W + 2, c_in), lambda b: (b, 0, 0, 0)),
            # weights / biases: constant index maps -> VMEM-resident across grid
            pl.BlockSpec((9, c_in, c_pad), lambda b: (0, 0, 0)),
            pl.BlockSpec((1, c_pad), lambda b: (0, 0)),
            pl.BlockSpec((9, c_pad, c_pad), lambda b: (0, 0, 0)),
            pl.BlockSpec((1, c_pad), lambda b: (0, 0)),
            pl.BlockSpec((c_pad, n_dec), lambda b: (0, 0)),
            pl.BlockSpec((1, n_dec), lambda b: (0, 0)),
        ],
        out_specs=(
            # disjoint per-image output blocks, lane-dense last dims
            pl.BlockSpec((None, 1, c_pad), lambda b: (b, 0, 0)),
            pl.BlockSpec((None, 1, n_dec), lambda b: (b, 0, 0)),
        ),
        scratch_shapes=[pltpu.VMEM((H + 2, W + 2, c_pad), jnp.bfloat16)],
        compiler_params=pltpu.CompilerParams(
            dimension_semantics=("parallel",),       # images are independent
            vmem_limit_bytes=_VMEM_LIMIT_BYTES),
    )(xp, w1, b1, w2, b2, wd, bd)
    return feat.reshape(B, c_pad), rec.reshape(B, n_dec)


# -------------------------------- parameters --------------------------------


def init_params(key, c_in, c_hid, h, w):
    """Logical weights at c_hid channels; stored zero-padded to 128 lanes and
    cast to bf16 for the MXU.  Padded bias/weight entries are zero, so padded
    channels stay exactly zero through relu/GAP/decoder."""
    ks = jax.random.split(key, 6)
    c_pad = _round_up(c_hid, _LANE)
    n_dec = c_in * h * w

    def _w(k, shape, fan_in):
        return jax.random.normal(k, shape, jnp.float32) / jnp.sqrt(fan_in)

    w1 = _w(ks[0], (9, c_in, c_hid), 9 * c_in)      # conv1: 3x3, c_in  -> c_hid
    w2 = _w(ks[1], (9, c_hid, c_hid), 9 * c_hid)    # conv2: 3x3, c_hid -> c_hid
    wd = _w(ks[2], (c_hid, n_dec), c_hid)           # decoder: c_hid -> c_in*h*w
    b1 = 0.1 * jax.random.normal(ks[3], (c_hid,), jnp.float32)
    b2 = 0.1 * jax.random.normal(ks[4], (c_hid,), jnp.float32)
    bd = 0.1 * jax.random.normal(ks[5], (n_dec,), jnp.float32)

    w1_p = jnp.zeros((9, c_in, c_pad), jnp.float32).at[:, :, :c_hid].set(w1)
    w2_p = jnp.zeros((9, c_pad, c_pad), jnp.float32).at[:, :c_hid, :c_hid].set(w2)
    wd_p = jnp.zeros((c_pad, n_dec), jnp.float32).at[:c_hid, :].set(wd)
    b1_p = jnp.zeros((1, c_pad), jnp.float32).at[0, :c_hid].set(b1)
    b2_p = jnp.zeros((1, c_pad), jnp.float32).at[0, :c_hid].set(b2)

    return {
        "w1": w1_p.astype(jnp.bfloat16),
        "b1": b1_p,
        "w2": w2_p.astype(jnp.bfloat16),
        "b2": b2_p,
        "wd": wd_p.astype(jnp.bfloat16),
        "bd": bd.reshape(1, n_dec),
        # AdaptiveWeightLoss(3) parameter: present in the module, unused by forward().
        "adaptive_weights": jnp.zeros((3,), jnp.float32),
    }


# --------------------------------- forward ----------------------------------


@functools.partial(jax.jit, static_argnames=("c_hid",))
def dual_resnet_forward(params, x_nchw, *, c_hid):
    """Mirrors DualResNet.forward: returns (features, features, reconstructed)."""
    B, C, H, W = x_nchw.shape

    # NCHW -> NHWC + spatial zero-pad + bf16 cast: one tiny (~8 KiB) fused XLA
    # pass; everything downstream runs inside a single Pallas kernel.
    # TODO(synk): fold this transpose/pad into the kernel's input DMA if the
    # input ever grows large enough for it to matter.
    xp = jnp.pad(jnp.transpose(x_nchw, (0, 2, 3, 1)),
                 ((0, 0), (1, 1), (1, 1), (0, 0))).astype(jnp.bfloat16)

    feat_pad, rec_flat = _dual_resnet_pallas(
        xp, params["w1"], params["b1"], params["w2"], params["b2"],
        params["wd"], params["bd"], H=H, W=W)

    features = feat_pad[:, :c_hid]                   # drop lane padding
    reconstructed = rec_flat.reshape(B, C, H, W)     # decoder emits (C,H,W) order
    # DualResNet.forward returns (features, features, reconstructed).
    return features, features, reconstructed


# --------------------------- pure-JAX reference ------------------------------


def _reference_forward(params, x_nchw, c_hid):
    """f32 reference using the same (bf16-stored) padded weights."""
    B, C, H, W = x_nchw.shape
    c_pad = params["w1"].shape[-1]
    w1 = params["w1"].astype(jnp.float32)
    w2 = params["w2"].astype(jnp.float32)
    wd = params["wd"].astype(jnp.float32)

    x = jnp.transpose(x_nchw, (0, 2, 3, 1)).astype(jnp.float32)
    xp = jnp.pad(x, ((0, 0), (1, 1), (1, 1), (0, 0)))
    h1 = jnp.zeros((B, H, W, c_pad), jnp.float32)
    for t, (dh, dw) in enumerate(_TAPS):
        h1 += jnp.einsum("bhwc,cd->bhwd", xp[:, dh:dh + H, dw:dw + W, :], w1[t])
    h1 = jnp.maximum(h1 + params["b1"][0], 0.0)

    h1p = jnp.pad(h1, ((0, 0), (1, 1), (1, 1), (0, 0)))
    h2 = jnp.zeros((B, H, W, c_pad), jnp.float32)
    for t, (dh, dw) in enumerate(_TAPS):
        h2 += jnp.einsum("bhwc,cd->bhwd", h1p[:, dh:dh + H, dw:dw + W, :], w2[t])
    h2 = jnp.maximum(h2 + params["b2"][0] + h1, 0.0)

    feat = jnp.mean(h2, axis=(1, 2))                 # global average pool
    rec = jax.nn.sigmoid(feat @ wd + params["bd"][0]).reshape(B, C, H, W)
    return feat[:, :c_hid], rec


if __name__ == "__main__":
    B, C, H, W = 2, 4, 16, 16
    C_HID = 32

    key = jax.random.PRNGKey(0)
    k_params, k_x = jax.random.split(key)
    params = init_params(k_params, C, C_HID, H, W)
    x = jax.random.normal(k_x, (B, C, H, W), jnp.float32)

    feats, feats2, rec = dual_resnet_forward(params, x, c_hid=C_HID)
    jax.block_until_ready((feats, feats2, rec))

    assert feats.shape == (B, C_HID)
    assert feats2.shape == (B, C_HID)
    assert rec.shape == (B, C, H, W)

    # loose check vs pure-JAX f32 reference (kernel matmul operands are bf16)
    ref_feats, ref_rec = _reference_forward(params, x, C_HID)
    assert float(jnp.max(jnp.abs(feats - ref_feats))) < 5e-2
    assert float(jnp.max(jnp.abs(rec - ref_rec))) < 5e-2

    print("KERNEL_OK")
</pallas_src>

<mosaic_0001>
module attributes {stable_mosaic.version = 11 : i64} {
  func.func @_dual_resnet_kernel(%arg0: i32, %arg1: memref<1x18x18x4xbf16, #tpu.memory_space<vmem>>, %arg2: memref<9x4x128xbf16, #tpu.memory_space<vmem>>, %arg3: memref<1x128xf32, #tpu.memory_space<vmem>>, %arg4: memref<9x128x128xbf16, #tpu.memory_space<vmem>>, %arg5: memref<1x128xf32, #tpu.memory_space<vmem>>, %arg6: memref<128x1024xbf16, #tpu.memory_space<vmem>>, %arg7: memref<1x1024xf32, #tpu.memory_space<vmem>>, %arg8: memref<1x1x128xf32, #tpu.memory_space<vmem>>, %arg9: memref<1x1x1024xf32, #tpu.memory_space<vmem>>, %arg10: memref<18x18x128xbf16, #tpu.memory_space<vmem>>) attributes {dimension_semantics = [#tpu.dimension_semantics<parallel>], iteration_bounds = array<i64: 2>, scalar_prefetch = 0 : i64, scratch_operands = 1 : i64, tpu.core_type = #tpu.core_type<tc>, window_params = [{transform_indices = @transform_0, window_bounds = array<i64: 1, 18, 18, 4>}, {pipeline_mode = #tpu.pipeline_mode<synchronous>, transform_indices = @transform_1, window_bounds = array<i64: 9, 4, 128>}, {pipeline_mode = #tpu.pipeline_mode<synchronous>, transform_indices = @transform_2, window_bounds = array<i64: 1, 128>}, {pipeline_mode = #tpu.pipeline_mode<synchronous>, transform_indices = @transform_3, window_bounds = array<i64: 9, 128, 128>}, {pipeline_mode = #tpu.pipeline_mode<synchronous>, transform_indices = @transform_4, window_bounds = array<i64: 1, 128>}, {pipeline_mode = #tpu.pipeline_mode<synchronous>, transform_indices = @transform_5, window_bounds = array<i64: 128, 1024>}, {pipeline_mode = #tpu.pipeline_mode<synchronous>, transform_indices = @transform_6, window_bounds = array<i64: 1, 1024>}, {transform_indices = @transform_7, window_bounds = array<i64: 1, 1, 128>}, {transform_indices = @transform_8, window_bounds = array<i64: 1, 1, 1024>}]} {
    %cst = arith.constant 0.000000e+00 : f32
    %0 = vector.broadcast %cst : f32 to vector<256x128xf32>
    %c0 = arith.constant 0 : index
    %c0_0 = arith.constant 0 : index
    %c0_1 = arith.constant 0 : index
    %c0_2 = arith.constant 0 : index
    %1 = vector.load %arg1[%c0, %c0_0, %c0_1, %c0_2] : memref<1x18x18x4xbf16, #tpu.memory_space<vmem>>, vector<1x16x16x4xbf16>
    %2 = vector.shape_cast %1 : vector<1x16x16x4xbf16> to vector<16x16x4xbf16>
    %3 = vector.shape_cast %2 : vector<16x16x4xbf16> to vector<256x4xbf16>
    %c0_3 = arith.constant 0 : index
    %c0_4 = arith.constant 0 : index
    %c0_5 = arith.constant 0 : index
    %4 = vector.load %arg2[%c0_3, %c0_4, %c0_5] : memref<9x4x128xbf16, #tpu.memory_space<vmem>>, vector<1x4x128xbf16>
    %5 = vector.shape_cast %4 : vector<1x4x128xbf16> to vector<4x128xbf16>
    %cst_6 = arith.constant dense<0.000000e+00> : vector<256x128xf32>
    %6 = tpu.matmul %3, %5, %cst_6 {dimension_numbers = #tpu.dot_dimension_numbers<[1], [0], [0], [1], [0, 0, 1, 1], [], []>} : vector<256x4xbf16>, vector<4x128xbf16>, vector<256x128xf32> -> vector<256x128xf32>
    %7 = arith.addf %0, %6 : vector<256x128xf32>
    %c0_7 = arith.constant 0 : index
    %c0_8 = arith.constant 0 : index
    %c1 = arith.constant 1 : index
    %c0_9 = arith.constant 0 : index
    %8 = vector.load %arg1[%c0_7, %c0_8, %c1, %c0_9] : memref<1x18x18x4xbf16, #tpu.memory_space<vmem>>, vector<1x16x16x4xbf16>
    %9 = vector.shape_cast %8 : vector<1x16x16x4xbf16> to vector<16x16x4xbf16>
    %10 = vector.shape_cast %9 : vector<16x16x4xbf16> to vector<256x4xbf16>
    %c1_10 = arith.constant 1 : index
    %c0_11 = arith.constant 0 : index
    %c0_12 = arith.constant 0 : index
    %11 = vector.load %arg2[%c1_10, %c0_11, %c0_12] : memref<9x4x128xbf16, #tpu.memory_space<vmem>>, vector<1x4x128xbf16>
    %12 = vector.shape_cast %11 : vector<1x4x128xbf16> to vector<4x128xbf16>
    %cst_13 = arith.constant dense<0.000000e+00> : vector<256x128xf32>
    %13 = tpu.matmul %10, %12, %cst_13 {dimension_numbers = #tpu.dot_dimension_numbers<[1], [0], [0], [1], [0, 0, 1, 1], [], []>} : vector<256x4xbf16>, vector<4x128xbf16>, vector<256x128xf32> -> vector<256x128xf32>
    %14 = arith.addf %7, %13 : vector<256x128xf32>
    %c0_14 = arith.constant 0 : index
    %c0_15 = arith.constant 0 : index
    %c2 = arith.constant 2 : index
    %c0_16 = arith.constant 0 : index
    %15 = vector.load %arg1[%c0_14, %c0_15, %c2, %c0_16] : memref<1x18x18x4xbf16, #tpu.memory_space<vmem>>, vector<1x16x16x4xbf16>
    %16 = vector.shape_cast %15 : vector<1x16x16x4xbf16> to vector<16x16x4xbf16>
    %17 = vector.shape_cast %16 : vector<16x16x4xbf16> to vector<256x4xbf16>
    %c2_17 = arith.constant 2 : index
    %c0_18 = arith.constant 0 : index
    %c0_19 = arith.constant 0 : index
    %18 = vector.load %arg2[%c2_17, %c0_18, %c0_19] : memref<9x4x128xbf16, #tpu.memory_space<vmem>>, vector<1x4x128xbf16>
    %19 = vector.shape_cast %18 : vector<1x4x128xbf16> to vector<4x128xbf16>
    %cst_20 = arith.constant dense<0.000000e+00> : vector<256x128xf32>
    %20 = tpu.matmul %17, %19, %cst_20 {dimension_numbers = #tpu.dot_dimension_numbers<[1], [0], [0], [1], [0, 0, 1, 1], [], []>} : vector<256x4xbf16>, vector<4x128xbf16>, vector<256x128xf32> -> vector<256x128xf32>
    %21 = arith.addf %14, %20 : vector<256x128xf32>
    %c0_21 = arith.constant 0 : index
    %c1_22 = arith.constant 1 : index
    %c0_23 = arith.constant 0 : index
    %c0_24 = arith.constant 0 : index
    %22 = vector.load %arg1[%c0_21, %c1_22, %c0_23, %c0_24] : memref<1x18x18x4xbf16, #tpu.memory_space<vmem>>, vector<1x16x16x4xbf16>
    %23 = vector.shape_cast %22 : vector<1x16x16x4xbf16> to vector<16x16x4xbf16>
    %24 = vector.shape_cast %23 : vector<16x16x4xbf16> to vector<256x4xbf16>
    %c3 = arith.constant 3 : index
    %c0_25 = arith.constant 0 : index
    %c0_26 = arith.constant 0 : index
    %25 = vector.load %arg2[%c3, %c0_25, %c0_26] : memref<9x4x128xbf16, #tpu.memory_space<vmem>>, vector<1x4x128xbf16>
    %26 = vector.shape_cast %25 : vector<1x4x128xbf16> to vector<4x128xbf16>
    %cst_27 = arith.constant dense<0.000000e+00> : vector<256x128xf32>
    %27 = tpu.matmul %24, %26, %cst_27 {dimension_numbers = #tpu.dot_dimension_numbers<[1], [0], [0], [1], [0, 0, 1, 1], [], []>} : vector<256x4xbf16>, vector<4x128xbf16>, vector<256x128xf32> -> vector<256x128xf32>
    %28 = arith.addf %21, %27 : vector<256x128xf32>
    %c0_28 = arith.constant 0 : index
    %c1_29 = arith.constant 1 : index
    %c1_30 = arith.constant 1 : index
    %c0_31 = arith.constant 0 : index
    %29 = vector.load %arg1[%c0_28, %c1_29, %c1_30, %c0_31] : memref<1x18x18x4xbf16, #tpu.memory_space<vmem>>, vector<1x16x16x4xbf16>
    %30 = vector.shape_cast %29 : vector<1x16x16x4xbf16> to vector<16x16x4xbf16>
    %31 = vector.shape_cast %30 : vector<16x16x4xbf16> to vector<256x4xbf16>
    %c4 = arith.constant 4 : index
    %c0_32 = arith.constant 0 : index
    %c0_33 = arith.constant 0 : index
    %32 = vector.load %arg2[%c4, %c0_32, %c0_33] : memref<9x4x128xbf16, #tpu.memory_space<vmem>>, vector<1x4x128xbf16>
    %33 = vector.shape_cast %32 : vector<1x4x128xbf16> to vector<4x128xbf16>
    %cst_34 = arith.constant dense<0.000000e+00> : vector<256x128xf32>
    %34 = tpu.matmul %31, %33, %cst_34 {dimension_numbers = #tpu.dot_dimension_numbers<[1], [0], [0], [1], [0, 0, 1, 1], [], []>} : vector<256x4xbf16>, vector<4x128xbf16>, vector<256x128xf32> -> vector<256x128xf32>
    %35 = arith.addf %28, %34 : vector<256x128xf32>
    %c0_35 = arith.constant 0 : index
    %c1_36 = arith.constant 1 : index
    %c2_37 = arith.constant 2 : index
    %c0_38 = arith.constant 0 : index
    %36 = vector.load %arg1[%c0_35, %c1_36, %c2_37, %c0_38] : memref<1x18x18x4xbf16, #tpu.memory_space<vmem>>, vector<1x16x16x4xbf16>
    %37 = vector.shape_cast %36 : vector<1x16x16x4xbf16> to vector<16x16x4xbf16>
    %38 = vector.shape_cast %37 : vector<16x16x4xbf16> to vector<256x4xbf16>
    %c5 = arith.constant 5 : index
    %c0_39 = arith.constant 0 : index
    %c0_40 = arith.constant 0 : index
    %39 = vector.load %arg2[%c5, %c0_39, %c0_40] : memref<9x4x128xbf16, #tpu.memory_space<vmem>>, vector<1x4x128xbf16>
    %40 = vector.shape_cast %39 : vector<1x4x128xbf16> to vector<4x128xbf16>
    %cst_41 = arith.constant dense<0.000000e+00> : vector<256x128xf32>
    %41 = tpu.matmul %38, %40, %cst_41 {dimension_numbers = #tpu.dot_dimension_numbers<[1], [0], [0], [1], [0, 0, 1, 1], [], []>} : vector<256x4xbf16>, vector<4x128xbf16>, vector<256x128xf32> -> vector<256x128xf32>
    %42 = arith.addf %35, %41 : vector<256x128xf32>
    %c0_42 = arith.constant 0 : index
    %c2_43 = arith.constant 2 : index
    %c0_44 = arith.constant 0 : index
    %c0_45 = arith.constant 0 : index
    %43 = vector.load %arg1[%c0_42, %c2_43, %c0_44, %c0_45] : memref<1x18x18x4xbf16, #tpu.memory_space<vmem>>, vector<1x16x16x4xbf16>
    %44 = vector.shape_cast %43 : vector<1x16x16x4xbf16> to vector<16x16x4xbf16>
    %45 = vector.shape_cast %44 : vector<16x16x4xbf16> to vector<256x4xbf16>
    %c6 = arith.constant 6 : index
    %c0_46 = arith.constant 0 : index
    %c0_47 = arith.constant 0 : index
    %46 = vector.load %arg2[%c6, %c0_46, %c0_47] : memref<9x4x128xbf16, #tpu.memory_space<vmem>>, vector<1x4x128xbf16>
    %47 = vector.shape_cast %46 : vector<1x4x128xbf16> to vector<4x128xbf16>
    %cst_48 = arith.constant dense<0.000000e+00> : vector<256x128xf32>
    %48 = tpu.matmul %45, %47, %cst_48 {dimension_numbers = #tpu.dot_dimension_numbers<[1], [0], [0], [1], [0, 0, 1, 1], [], []>} : vector<256x4xbf16>, vector<4x128xbf16>, vector<256x128xf32> -> vector<256x128xf32>
    %49 = arith.addf %42, %48 : vector<256x128xf32>
    %c0_49 = arith.constant 0 : index
    %c2_50 = arith.constant 2 : index
    %c1_51 = arith.constant 1 : index
    %c0_52 = arith.constant 0 : index
    %50 = vector.load %arg1[%c0_49, %c2_50, %c1_51, %c0_52] : memref<1x18x18x4xbf16, #tpu.memory_space<vmem>>, vector<1x16x16x4xbf16>
    %51 = vector.shape_cast %50 : vector<1x16x16x4xbf16> to vector<16x16x4xbf16>
    %52 = vector.shape_cast %51 : vector<16x16x4xbf16> to vector<256x4xbf16>
    %c7 = arith.constant 7 : index
    %c0_53 = arith.constant 0 : index
    %c0_54 = arith.constant 0 : index
    %53 = vector.load %arg2[%c7, %c0_53, %c0_54] : memref<9x4x128xbf16, #tpu.memory_space<vmem>>, vector<1x4x128xbf16>
    %54 = vector.shape_cast %53 : vector<1x4x128xbf16> to vector<4x128xbf16>
    %cst_55 = arith.constant dense<0.000000e+00> : vector<256x128xf32>
    %55 = tpu.matmul %52, %54, %cst_55 {dimension_numbers = #tpu.dot_dimension_numbers<[1], [0], [0], [1], [0, 0, 1, 1], [], []>} : vector<256x4xbf16>, vector<4x128xbf16>, vector<256x128xf32> -> vector<256x128xf32>
    %56 = arith.addf %49, %55 : vector<256x128xf32>
    %c0_56 = arith.constant 0 : index
    %c2_57 = arith.constant 2 : index
    %c2_58 = arith.constant 2 : index
    %c0_59 = arith.constant 0 : index
    %57 = vector.load %arg1[%c0_56, %c2_57, %c2_58, %c0_59] : memref<1x18x18x4xbf16, #tpu.memory_space<vmem>>, vector<1x16x16x4xbf16>
    %58 = vector.shape_cast %57 : vector<1x16x16x4xbf16> to vector<16x16x4xbf16>
    %59 = vector.shape_cast %58 : vector<16x16x4xbf16> to vector<256x4xbf16>
    %c8 = arith.constant 8 : index
    %c0_60 = arith.constant 0 : index
    %c0_61 = arith.constant 0 : index
    %60 = vector.load %arg2[%c8, %c0_60, %c0_61] : memref<9x4x128xbf16, #tpu.memory_space<vmem>>, vector<1x4x128xbf16>
    %61 = vector.shape_cast %60 : vector<1x4x128xbf16> to vector<4x128xbf16>
    %cst_62 = arith.constant dense<0.000000e+00> : vector<256x128xf32>
    %62 = tpu.matmul %59, %61, %cst_62 {dimension_numbers = #tpu.dot_dimension_numbers<[1], [0], [0], [1], [0, 0, 1, 1], [], []>} : vector<256x4xbf16>, vector<4x128xbf16>, vector<256x128xf32> -> vector<256x128xf32>
    %63 = arith.addf %56, %62 : vector<256x128xf32>
    %c0_63 = arith.constant 0 : index
    %c0_64 = arith.constant 0 : index
    %64 = vector.load %arg3[%c0_63, %c0_64] : memref<1x128xf32, #tpu.memory_space<vmem>>, vector<1x128xf32>
    %65 = vector.broadcast %64 : vector<1x128xf32> to vector<256x128xf32>
    %66 = arith.addf %63, %65 : vector<256x128xf32>
    %cst_65 = arith.constant 0.000000e+00 : f32
    %67 = vector.broadcast %cst_65 : f32 to vector<256x128xf32>
    %68 = arith.maximumf %66, %67 : vector<256x128xf32>
    %cst_66 = arith.constant 0.000000e+00 : bf16
    %69 = vector.broadcast %cst_66 : bf16 to vector<18x18x128xbf16>
    %c0_67 = arith.constant 0 : index
    %c0_68 = arith.constant 0 : index
    %c0_69 = arith.constant 0 : index
    %70 = vector.load %arg10[%c0_67, %c0_68, %c0_69] : memref<18x18x128xbf16, #tpu.memory_space<vmem>>, vector<18x18x128xbf16>
    tpu.vector_store %arg10[%c0_67, %c0_68, %c0_69], %69 {strides = array<i32>} : memref<18x18x128xbf16, #tpu.memory_space<vmem>>, vector<18x18x128xbf16>,
    %71 = vector.shape_cast %68 : vector<256x128xf32> to vector<16x16x128xf32>
    %72 = arith.truncf %71 : vector<16x16x128xf32> to vector<16x16x128xbf16>
    %c1_70 = arith.constant 1 : index
    %c1_71 = arith.constant 1 : index
    %c0_72 = arith.constant 0 : index
    %73 = vector.load %arg10[%c1_70, %c1_71, %c0_72] : memref<18x18x128xbf16, #tpu.memory_space<vmem>>, vector<16x16x128xbf16>
    tpu.vector_store %arg10[%c1_70, %c1_71, %c0_72], %72 {strides = array<i32>} : memref<18x18x128xbf16, #tpu.memory_space<vmem>>, vector<16x16x128xbf16>,
    %cst_73 = arith.constant 0.000000e+00 : f32
    %74 = vector.broadcast %cst_73 : f32 to vector<256x128xf32>
    %c0_74 = arith.constant 0 : index
    %c0_75 = arith.constant 0 : index
    %c0_76 = arith.constant 0 : index
    %75 = vector.load %arg10[%c0_74, %c0_75, %c0_76] : memref<18x18x128xbf16, #tpu.memory_space<vmem>>, vector<16x16x128xbf16>
    %76 = vector.shape_cast %75 : vector<16x16x128xbf16> to vector<256x128xbf16>
    %c0_77 = arith.constant 0 : index
    %c0_78 = arith.constant 0 : index
    %c0_79 = arith.constant 0 : index
    %77 = vector.load %arg4[%c0_77, %c0_78, %c0_79] : memref<9x128x128xbf16, #tpu.memory_space<vmem>>, vector<1x128x128xbf16>
    %78 = vector.shape_cast %77 : vector<1x128x128xbf16> to vector<128x128xbf16>
    %cst_80 = arith.constant dense<0.000000e+00> : vector<256x128xf32>
    %79 = tpu.matmul %76, %78, %cst_80 {dimension_numbers = #tpu.dot_dimension_numbers<[1], [0], [0], [1], [0, 0, 1, 1], [], []>} : vector<256x128xbf16>, vector<128x128xbf16>, vector<256x128xf32> -> vector<256x128xf32>
    %80 = arith.addf %74, %79 : vector<256x128xf32>
    %c0_81 = arith.constant 0 : index
    %c1_82 = arith.constant 1 : index
    %c0_83 = arith.constant 0 : index
    %81 = vector.load %arg10[%c0_81, %c1_82, %c0_83] : memref<18x18x128xbf16, #tpu.memory_space<vmem>>, vector<16x16x128xbf16>
    %82 = vector.shape_cast %81 : vector<16x16x128xbf16> to vector<256x128xbf16>
    %c1_84 = arith.constant 1 : index
    %c0_85 = arith.constant 0 : index
    %c0_86 = arith.constant 0 : index
    %83 = vector.load %arg4[%c1_84, %c0_85, %c0_86] : memref<9x128x128xbf16, #tpu.memory_space<vmem>>, vector<1x128x128xbf16>
    %84 = vector.shape_cast %83 : vector<1x128x128xbf16> to vector<128x128xbf16>
    %cst_87 = arith.constant dense<0.000000e+00> : vector<256x128xf32>
    %85 = tpu.matmul %82, %84, %cst_87 {dimension_numbers = #tpu.dot_dimension_numbers<[1], [0], [0], [1], [0, 0, 1, 1], [], []>} : vector<256x128xbf16>, vector<128x128xbf16>, vector<256x128xf32> -> vector<256x128xf32>
    %86 = arith.addf %80, %85 : vector<256x128xf32>
    %c0_88 = arith.constant 0 : index
    %c2_89 = arith.constant 2 : index
    %c0_90 = arith.constant 0 : index
    %87 = vector.load %arg10[%c0_88, %c2_89, %c0_90] : memref<18x18x128xbf16, #tpu.memory_space<vmem>>, vector<16x16x128xbf16>
    %88 = vector.shape_cast %87 : vector<16x16x128xbf16> to vector<256x128xbf16>
    %c2_91 = arith.constant 2 : index
    %c0_92 = arith.constant 0 : index
    %c0_93 = arith.constant 0 : index
    %89 = vector.load %arg4[%c2_91, %c0_92, %c0_93] : memref<9x128x128xbf16, #tpu.memory_space<vmem>>, vector<1x128x128xbf16>
    %90 = vector.shape_cast %89 : vector<1x128x128xbf16> to vector<128x128xbf16>
    %cst_94 = arith.constant dense<0.000000e+00> : vector<256x128xf32>
    %91 = tpu.matmul %88, %90, %cst_94 {dimension_numbers = #tpu.dot_dimension_numbers<[1], [0], [0], [1], [0, 0, 1, 1], [], []>} : vector<256x128xbf16>, vector<128x128xbf16>, vector<256x128xf32> -> vector<256x128xf32>
    %92 = arith.addf %86, %91 : vector<256x128xf32>
    %c1_95 = arith.constant 1 : index
    %c0_96 = arith.constant 0 : index
    %c0_97 = arith.constant 0 : index
    %93 = vector.load %arg10[%c1_95, %c0_96, %c0_97] : memref<18x18x128xbf16, #tpu.memory_space<vmem>>, vector<16x16x128xbf16>
    %94 = vector.shape_cast %93 : vector<16x16x128xbf16> to vector<256x128xbf16>
    %c3_98 = arith.constant 3 : index
    %c0_99 = arith.constant 0 : index
    %c0_100 = arith.constant 0 : index
    %95 = vector.load %arg4[%c3_98, %c0_99, %c0_100] : memref<9x128x128xbf16, #tpu.memory_space<vmem>>, vector<1x128x128xbf16>
    %96 = vector.shape_cast %95 : vector<1x128x128xbf16> to vector<128x128xbf16>
    %cst_101 = arith.constant dense<0.000000e+00> : vector<256x128xf32>
    %97 = tpu.matmul %94, %96, %cst_101 {dimension_numbers = #tpu.dot_dimension_numbers<[1], [0], [0], [1], [0, 0, 1, 1], [], []>} : vector<256x128xbf16>, vector<128x128xbf16>, vector<256x128xf32> -> vector<256x128xf32>
    %98 = arith.addf %92, %97 : vector<256x128xf32>
    %c1_102 = arith.constant 1 : index
    %c1_103 = arith.constant 1 : index
    %c0_104 = arith.constant 0 : index
    %99 = vector.load %arg10[%c1_102, %c1_103, %c0_104] : memref<18x18x128xbf16, #tpu.memory_space<vmem>>, vector<16x16x128xbf16>
    %100 = vector.shape_cast %99 : vector<16x16x128xbf16> to vector<256x128xbf16>
    %c4_105 = arith.constant 4 : index
    %c0_106 = arith.constant 0 : index
    %c0_107 = arith.constant 0 : index
    %101 = vector.load %arg4[%c4_105, %c0_106, %c0_107] : memref<9x128x128xbf16, #tpu.memory_space<vmem>>, vector<1x128x128xbf16>
    %102 = vector.shape_cast %101 : vector<1x128x128xbf16> to vector<128x128xbf16>
    %cst_108 = arith.constant dense<0.000000e+00> : vector<256x128xf32>
    %103 = tpu.matmul %100, %102, %cst_108 {dimension_numbers = #tpu.dot_dimension_numbers<[1], [0], [0], [1], [0, 0, 1, 1], [], []>} : vector<256x128xbf16>, vector<128x128xbf16>, vector<256x128xf32> -> vector<256x128xf32>
    %104 = arith.addf %98, %103 : vector<256x128xf32>
    %c1_109 = arith.constant 1 : index
    %c2_110 = arith.constant 2 : index
    %c0_111 = arith.constant 0 : index
    %105 = vector.load %arg10[%c1_109, %c2_110, %c0_111] : memref<18x18x128xbf16, #tpu.memory_space<vmem>>, vector<16x16x128xbf16>
    %106 = vector.shape_cast %105 : vector<16x16x128xbf16> to vector<256x128xbf16>
    %c5_112 = arith.constant 5 : index
    %c0_113 = arith.constant 0 : index
    %c0_114 = arith.constant 0 : index
    %107 = vector.load %arg4[%c5_112, %c0_113, %c0_114] : memref<9x128x128xbf16, #tpu.memory_space<vmem>>, vector<1x128x128xbf16>
    %108 = vector.shape_cast %107 : vector<1x128x128xbf16> to vector<128x128xbf16>
    %cst_115 = arith.constant dense<0.000000e+00> : vector<256x128xf32>
    %109 = tpu.matmul %106, %108, %cst_115 {dimension_numbers = #tpu.dot_dimension_numbers<[1], [0], [0], [1], [0, 0, 1, 1], [], []>} : vector<256x128xbf16>, vector<128x128xbf16>, vector<256x128xf32> -> vector<256x128xf32>
    %110 = arith.addf %104, %109 : vector<256x128xf32>
    %c2_116 = arith.constant 2 : index
    %c0_117 = arith.constant 0 : index
    %c0_118 = arith.constant 0 : index
    %111 = vector.load %arg10[%c2_116, %c0_117, %c0_118] : memref<18x18x128xbf16, #tpu.memory_space<vmem>>, vector<16x16x128xbf16>
    %112 = vector.shape_cast %111 : vector<16x16x128xbf16> to vector<256x128xbf16>
    %c6_119 = arith.constant 6 : index
    %c0_120 = arith.constant 0 : index
    %c0_121 = arith.constant 0 : index
    %113 = vector.load %arg4[%c6_119, %c0_120, %c0_121] : memref<9x128x128xbf16, #tpu.memory_space<vmem>>, vector<1x128x128xbf16>
    %114 = vector.shape_cast %113 : vector<1x128x128xbf16> to vector<128x128xbf16>
    %cst_122 = arith.constant dense<0.000000e+00> : vector<256x128xf32>
    %115 = tpu.matmul %112, %114, %cst_122 {dimension_numbers = #tpu.dot_dimension_numbers<[1], [0], [0], [1], [0, 0, 1, 1], [], []>} : vector<256x128xbf16>, vector<128x128xbf16>, vector<256x128xf32> -> vector<256x128xf32>
    %116 = arith.addf %110, %115 : vector<256x128xf32>
    %c2_123 = arith.constant 2 : index
    %c1_124 = arith.constant 1 : index
    %c0_125 = arith.constant 0 : index
    %117 = vector.load %arg10[%c2_123, %c1_124, %c0_125] : memref<18x18x128xbf16, #tpu.memory_space<vmem>>, vector<16x16x128xbf16>
    %118 = vector.shape_cast %117 : vector<16x16x128xbf16> to vector<256x128xbf16>
    %c7_126 = arith.constant 7 : index
    %c0_127 = arith.constant 0 : index
    %c0_128 = arith.constant 0 : index
    %119 = vector.load %arg4[%c7_126, %c0_127, %c0_128] : memref<9x128x128xbf16, #tpu.memory_space<vmem>>, vector<1x128x128xbf16>
    %120 = vector.shape_cast %119 : vector<1x128x128xbf16> to vector<128x128xbf16>
    %cst_129 = arith.constant dense<0.000000e+00> : vector<256x128xf32>
    %121 = tpu.matmul %118, %120, %cst_129 {dimension_numbers = #tpu.dot_dimension_numbers<[1], [0], [0], [1], [0, 0, 1, 1], [], []>} : vector<256x128xbf16>, vector<128x128xbf16>, vector<256x128xf32> -> vector<256x128xf32>
    %122 = arith.addf %116, %121 : vector<256x128xf32>
    %c2_130 = arith.constant 2 : index
    %c2_131 = arith.constant 2 : index
    %c0_132 = arith.constant 0 : index
    %123 = vector.load %arg10[%c2_130, %c2_131, %c0_132] : memref<18x18x128xbf16, #tpu.memory_space<vmem>>, vector<16x16x128xbf16>
    %124 = vector.shape_cast %123 : vector<16x16x128xbf16> to vector<256x128xbf16>
    %c8_133 = arith.constant 8 : index
    %c0_134 = arith.constant 0 : index
    %c0_135 = arith.constant 0 : index
    %125 = vector.load %arg4[%c8_133, %c0_134, %c0_135] : memref<9x128x128xbf16, #tpu.memory_space<vmem>>, vector<1x128x128xbf16>
    %126 = vector.shape_cast %125 : vector<1x128x128xbf16> to vector<128x128xbf16>
    %cst_136 = arith.constant dense<0.000000e+00> : vector<256x128xf32>
    %127 = tpu.matmul %124, %126, %cst_136 {dimension_numbers = #tpu.dot_dimension_numbers<[1], [0], [0], [1], [0, 0, 1, 1], [], []>} : vector<256x128xbf16>, vector<128x128xbf16>, vector<256x128xf32> -> vector<256x128xf32>
    %128 = arith.addf %122, %127 : vector<256x128xf32>
    %c0_137 = arith.constant 0 : index
    %c0_138 = arith.constant 0 : index
    %129 = vector.load %arg5[%c0_137, %c0_138] : memref<1x128xf32, #tpu.memory_space<vmem>>, vector<1x128xf32>
    %130 = vector.broadcast %129 : vector<1x128xf32> to vector<256x128xf32>
    %131 = arith.addf %128, %130 : vector<256x128xf32>
    %132 = arith.addf %131, %68 : vector<256x128xf32>
    %cst_139 = arith.constant 0.000000e+00 : f32
    %133 = vector.broadcast %cst_139 : f32 to vector<256x128xf32>
    %134 = arith.maximumf %132, %133 : vector<256x128xf32>
    %cst_140 = arith.constant dense<0.000000e+00> : vector<128xf32>
    %135 = vector.multi_reduction <add>, %134, %cst_140 [0] : vector<256x128xf32> to vector<128xf32>
    %136 = vector.shape_cast %135 : vector<128xf32> to vector<1x128xf32>
    %cst_141 = arith.constant 3.906250e-03 : f32
    %137 = vector.broadcast %cst_141 : f32 to vector<1x128xf32>
    %138 = arith.mulf %136, %137 : vector<1x128xf32>
    %c0_142 = arith.constant 0 : index
    %c0_143 = arith.constant 0 : index
    %c0_144 = arith.constant 0 : index
    %139 = vector.load %arg8[%c0_142, %c0_143, %c0_144] : memref<1x1x128xf32, #tpu.memory_space<vmem>>, vector<1x1x128xf32>
    %140 = vector.shape_cast %139 : vector<1x1x128xf32> to vector<1x128xf32>
    %141 = vector.shape_cast %138 : vector<1x128xf32> to vector<1x1x128xf32>
    tpu.vector_store %arg8[%c0_142, %c0_143, %c0_144], %141 {strides = array<i32>} : memref<1x1x128xf32, #tpu.memory_space<vmem>>, vector<1x1x128xf32>,
    %142 = arith.truncf %138 : vector<1x128xf32> to vector<1x128xbf16>
    %c0_145 = arith.constant 0 : index
    %c0_146 = arith.constant 0 : index
    %143 = vector.load %arg6[%c0_145, %c0_146] : memref<128x1024xbf16, #tpu.memory_space<vmem>>, vector<128x1024xbf16>
    %cst_147 = arith.constant dense<0.000000e+00> : vector<1x1024xf32>
    %144 = tpu.matmul %142, %143, %cst_147 {dimension_numbers = #tpu.dot_dimension_numbers<[1], [0], [0], [1], [0, 0, 1, 1], [], []>} : vector<1x128xbf16>, vector<128x1024xbf16>, vector<1x1024xf32> -> vector<1x1024xf32>
    %c0_148 = arith.constant 0 : index
    %c0_149 = arith.constant 0 : index
    %145 = vector.load %arg7[%c0_148, %c0_149] : memref<1x1024xf32, #tpu.memory_space<vmem>>, vector<1x1024xf32>
    %146 = arith.addf %144, %145 : vector<1x1024xf32>
    %147 = arith.negf %146 : vector<1x1024xf32>
    %148 = math.exp %147 : vector<1x1024xf32>
    %cst_150 = arith.constant 1.000000e+00 : f32
    %149 = vector.broadcast %cst_150 : f32 to vector<1x1024xf32>
    %150 = arith.addf %149, %148 : vector<1x1024xf32>
    %151 = arith.divf %149, %150 : vector<1x1024xf32>
    %c0_151 = arith.constant 0 : index
    %c0_152 = arith.constant 0 : index
    %c0_153 = arith.constant 0 : index
    %152 = vector.load %arg9[%c0_151, %c0_152, %c0_153] : memref<1x1x1024xf32, #tpu.memory_space<vmem>>, vector<1x1x1024xf32>
    %153 = vector.shape_cast %152 : vector<1x1x1024xf32> to vector<1x1024xf32>
    %154 = vector.shape_cast %151 : vector<1x1024xf32> to vector<1x1x1024xf32>
    tpu.vector_store %arg9[%c0_151, %c0_152, %c0_153], %154 {strides = array<i32>} : memref<1x1x1024xf32, #tpu.memory_space<vmem>>, vector<1x1x1024xf32>,
    return
  }
  func.func @transform_0(%arg0: i32) -> (i32, i32, i32, i32) {
    %c0_i32 = arith.constant 0 : i32
    %c0_i32_0 = arith.constant 0 : i32
    %c0_i32_1 = arith.constant 0 : i32
    %c0_i32_2 = arith.constant 0 : i32
    return %arg0, %c0_i32, %c0_i32_0, %c0_i32_1 : i32, i32, i32, i32
  }
  func.func @transform_1(%arg0: i32) -> (i32, i32, i32) {
    %c0_i32 = arith.constant 0 : i32
    %c0_i32_0 = arith.constant 0 : i32
    %c0_i32_1 = arith.constant 0 : i32
    %c0_i32_2 = arith.constant 0 : i32
    return %c0_i32, %c0_i32_0, %c0_i32_1 : i32, i32, i32
  }
  func.func @transform_2(%arg0: i32) -> (i32, i32) {
    %c0_i32 = arith.constant 0 : i32
    %c0_i32_0 = arith.constant 0 : i32
    %c0_i32_1 = arith.constant 0 : i32
    return %c0_i32, %c0_i32_0 : i32, i32
  }
  func.func @transform_3(%arg0: i32) -> (i32, i32, i32) {
    %c0_i32 = arith.constant 0 : i32
    %c0_i32_0 = arith.constant 0 : i32
    %c0_i32_1 = arith.constant 0 : i32
    %c0_i32_2 = arith.constant 0 : i32
    return %c0_i32, %c0_i32_0, %c0_i32_1 : i32, i32, i32
  }
  func.func @transform_4(%arg0: i32) -> (i32, i32) {
    %c0_i32 = arith.constant 0 : i32
    %c0_i32_0 = arith.constant 0 : i32
    %c0_i32_1 = arith.constant 0 : i32
    return %c0_i32, %c0_i32_0 : i32, i32
  }
  func.func @transform_5(%arg0: i32) -> (i32, i32) {
    %c0_i32 = arith.constant 0 : i32
    %c0_i32_0 = arith.constant 0 : i32
    %c0_i32_1 = arith.constant 0 : i32
    return %c0_i32, %c0_i32_0 : i32, i32
  }
  func.func @transform_6(%arg0: i32) -> (i32, i32) {
    %c0_i32 = arith.constant 0 : i32
    %c0_i32_0 = arith.constant 0 : i32
    %c0_i32_1 = arith.constant 0 : i32
    return %c0_i32, %c0_i32_0 : i32, i32
  }
  func.func @transform_7(%arg0: i32) -> (i32, i32, i32) {
    %c0_i32 = arith.constant 0 : i32
    %c0_i32_0 = arith.constant 0 : i32
    %c0_i32_1 = arith.constant 0 : i32
    return %arg0, %c0_i32, %c0_i32_0 : i32, i32, i32
  }
  func.func @transform_8(%arg0: i32) -> (i32, i32, i32) {
    %c0_i32 = arith.constant 0 : i32
    %c0_i32_0 = arith.constant 0 : i32
    %c0_i32_1 = arith.constant 0 : i32
    return %arg0, %c0_i32, %c0_i32_0 : i32, i32, i32
  }
}

</mosaic_0001>

<bundles_post_ra>
// kernel: dual_resnet_forward.1
= control target key start
LH: loop header
LB: loop body
LE: loop exit
PB: predicated region body
PF: predicated region fallthrough
CT: control target
= control target key end

     0   :  { %s13731_s27 = smov 0   ;;  %s18837_s0 = inlined_call_operand.vmem [shape: bf16[2,18,18,4], index: 0, kind: input, shape index: {}]   ;;  %s18838_s1 = inlined_call_operand.vmem [shape: bf16[9,4,128], index: 1, kind: input, shape index: {}]   ;;  %s18839_s2 = inlined_call_operand.vmem [shape: f32[1,128], index: 2, kind: input, shape index: {}]   ;;  %s18840_s3 = inlined_call_operand.vmem [shape: bf16[9,128,128], index: 3, kind: input, shape index: {}]   ;;  %s18841_s4 = inlined_call_operand.vmem [shape: f32[1,128], index: 4, kind: input, shape index: {}]   ;;  %s18842_s5 = inlined_call_operand.vmem [shape: bf16[128,1024], index: 5, kind: input, shape index: {}]   ;;  %s18843_s6 = inlined_call_operand.vmem [shape: f32[1,1024], index: 6, kind: input, shape index: {}]   ;;  %s18844_s7 = inlined_call_operand.vmem [shape: f32[2,1,128], index: 7, kind: output, shape index: {0}]   ;;  %s18845_s8 = inlined_call_operand.vmem [shape: f32[2,1,1024], index: 8, kind: output, shape index: {1}]  }
   0x1 LB: > { %s11255_s28 = sadd.s32 4294967295, %s13682_s27   ;;  %p11259_p0 = scmp.ge.s32.totalorder %s13682_s27, 1  ;;  %s13682_s27 = sphi %s13731_s27, %s19_s27  }
   0x2   : > { %p265_p1 = scmp.lt.s32.totalorder %s13682_s27, 3 }
   0x4   : > { %p266_p2 = pnand %p11259_p0, %p265_p1 }
   0x6   : > { %269 = sbr.rel (%p266_p2) target bundleno = 1426 (0x592), region = 48 }
   0xb   : > { %v11262_v0 = vld [vmem:[%s18838_s1 + $0x2] sm:$0x3]  ;;  %vm849_vm0 = vcmask 1041408   ;;  %v346_v1 = vld [vmem:[%s18838_s1] sm:$0x3]  ;;  %p301_p3 = scmp.lt.s32.totalorder %s11255_s28, 1 }
   0xc   : > { %13437 = vmatprep.subr.msk.bf16.mxu0 %vm849_vm0, %v11262_v0  ;;  %v851_v2 = vsel %vm849_vm0, %v11262_v0, 0  ;;  %13438 = vmatprep.subr.msk.bf16.mxu1 %vm849_vm0, %v346_v1  ;;  %v1143_v3 = vsel %vm849_vm0, %v346_v1, 0  ;;  %vm363_vm1 = vsmask.f32 3328  ;;  %vm364_vm2 = vsmask.f32 7440 }
   0xd   : > { %12700 = vmatpush3.bf16.msra.mxu0 %v851_v2  ;;  %12734 = vmatpush3.bf16.msra.mxu1 %v1143_v3  ;;  %s19296_s28 = smov (!%p301_p3, %s11255_s28), 1  ;;  %v11343_v4 = vld [vmem:[%s18838_s1 + $0x4] sm:$0x3]  ;;  %v11408_v5 = vld [vmem:[%s18838_s1 + $0x6] sm:$0x3]  ;;  %vm800_vm3 = vcmask 31744   ;;  %vm13804_vm4 = vmor %vm363_vm1, %vm364_vm2 }
   0xe   : > { %13439 = vmatprep.subr.msk.bf16.mxu0 %vm849_vm0, %v11343_v4  ;;  %v13759_v6 = vsel %vm849_vm0, %v11343_v4, 0  ;;  %13440 = vmatprep.subr.msk.bf16.mxu1 %vm849_vm0, %v11408_v5  ;;  %v1927_v7 = vsel %vm849_vm0, %v11408_v5, 0  ;;  %v13766_v8 = vld [vmem:[%s18838_s1 + $0x8] sm:$0x3]  ;;  %s13446_s17 = smul.u32 216, %s19296_s28  ;;  %v18903_v36 = vmov 0 }
   0xf   : > { %v13771_v9 = vsel %vm849_vm0, %v13766_v8, 0  ;;  %v18904_v36 = vsel %vm13804_vm4, 4294967295, %v18903_v36  ;;  %vm1354_vm5 = vcmask 1042432   ;;  %vm1355_vm6 = vcmask 1046532   ;;  %s11261_s14 = sshll.u32 %s19296_s28, 3 }
  0x10   : > { %s13776_s20 = scalar_lea.vmem %s18837_s0, %s13446_s17  ;;  %18905 = vst [vmem:[#allocation3_spill] sm:$0xff] %v18904_v36  ;;  %vm14066_vm7 = vmor %vm1354_vm5, %vm1355_vm6  ;;  %vm5418_vm8 = vcmask 1043456   ;;  %vm5419_vm9 = vsmask.f32 7938  ;;  %vm5094_vm10 = vsmask.f32 256  ;;  %s308_s17 = scalar_lea.vmem %s18844_s7, %s19296_s28 }
  0x11   : > { %v314_v10 = vld [vmem:[%s13776_s20] sm:$0xf]  ;;  %v13780_v11 = vld [vmem:[%s13776_s20 + $0x4] sm:$0xf]  ;;  %v13783_v12 = vld [vmem:[%s13776_s20 + $0x8] sm:$0x1] }
  0x12   : > { %v367_v13 = vshrl.u32 %v314_v10, 16  ;;  %v370_v14 = vshll.u32 %v314_v10, 16  ;;  %v376_v15 = vshll.u32 %v13780_v11, 16  ;;  %v380_v16 = vshrl.u32 %v13780_v11, 16  ;;  %v316_v17 = vld [vmem:[%s13776_s20 + $0xc] sm:$0xf]  ;;  %vm16011_vm13 = vmand %vm5418_vm8, %vm5419_vm9 }
  0x13   : > { %v386_v18 = vshll.u32 %v13783_v12, 16  ;;  %v1362_v19 = vrot.slane %v13783_v12, 5  ;;  %v11295_v20 = vcombine.low %v314_v10, %v13780_v11  ;;  %v13792_v21 = vld [vmem:[%s13776_s20 + $0x10] sm:$0xf]  ;;  %v13795_v22 = vld [vmem:[%s13776_s20 + $0x14] sm:$0x1] }
  0x14   : > { %v369_v23 = vrot.slane %v367_v13, 4  ;;  %v372_v24 = vrot.slane %v370_v14, 5  ;;  %v378_v25 = vrot.slane %v376_v15, 5  ;;  %v382_v26 = vrot.slane %v380_v16, 4  ;;  %v318_v35 = vld [vmem:[%s13776_s20 + $0x18] sm:$0xf] }
  0x15   : > { %v388_v27 = vrot.slane %v386_v18, 5  ;;  %12735 = vmatprep.mubr.msk.bf16.mxu1 %vm800_vm3, %v11295_v20  ;;  %v391_v28 = vshrl.u32 %v316_v17, 16  ;;  %v394_v29 = vshll.u32 %v316_v17, 16  ;;  %v400_v30 = vshll.u32 %v13792_v21, 16  ;;  %v13810_v45 = vld [vmem:[%s13776_s20 + $0x1c] sm:$0xf] }
  0x16   : > { %v373_v31 = vor.u32 %v372_v24, %v369_v23  ;;  %v383_v32 = vor.u32 %v382_v26, %v378_v25  ;;  %v404_v33 = vshrl.u32 %v13792_v21, 16  ;;  %v410_v34 = vshll.u32 %v13795_v22, 16  ;;  %v13815_v49 = vld [vmem:[%s13776_s20 + $0x20] sm:$0x1]  ;;  %v320_v55 = vld [vmem:[%s13776_s20 + $0x24] sm:$0xf] }
  0x17   : > { %v393_v37 = vrot.slane %v391_v28, 4  ;;  %v396_v38 = vrot.slane %v394_v29, 5  ;;  %v402_v39 = vrot.slane %v400_v30, 5  ;;  %v1366_v40 = vrot.slane %v13792_v21, 5  ;;  %v13827_v0 = vld [vmem:[%s13776_s20 + $0x28] sm:$0xf] }
  0x18   : > { %v374_v41 = vrot.slane %v373_v31, 4  ;;  %v384_v42 = vrot.slane %v383_v32, 4  ;;  %v406_v43 = vrot.slane %v404_v33, 4  ;;  %v412_v44 = vrot.slane %v410_v34, 5  ;;  %v13834_v4 = vld [vmem:[%s13776_s20 + $0x2c] sm:$0x1] }
  0x19   : > { %v397_v46 = vor.u32 %v396_v38, %v393_v37  ;;  %v1369_v47 = vrot.slane %v13795_v22, 5  ;;  %v11296_v48 = vcombine.low %v316_v17, %v13792_v21  ;;  %v415_v50 = vshrl.u32 %v318_v35, 16  ;;  %v13849_v31 = vld [vmem:[%s13776_s20 + $0x38] sm:$0x1] }
  0x1a   : > { %v379_v51 = vsel %vm13804_vm4, %v374_v41, %v378_v25  ;;  %v389_v52 = vsel %vm13804_vm4, %v384_v42, %v388_v27  ;;  %v407_v53 = vor.u32 %v406_v43, %v402_v39  ;;  %v418_v54 = vshll.u32 %v318_v35, 16  ;;  %v13844_v27 = vld [vmem:[%s13776_s20 + $0x34] sm:$0xf] }
  0x1b   : > { %v11263_v56 = vcombine.low %v379_v51, %v389_v52  ;;  %v398_v57 = vrot.slane %v397_v46, 4  ;;  %12736 = vmatmul.mubr.msk.bf16.vlgmr.msra.gmra.mxu1 %vm800_vm3, %v11296_v48  ;;  %v417_v58 = vrot.slane %v415_v50, 4  ;;  %v424_v59 = vshll.u32 %v13810_v45, 16  ;;  %v324_v48 = vld [vmem:[%s13776_s20 + $0x3c] sm:$0xf] }
  0x1c   : > { %v408_v60 = vrot.slane %v407_v53, 4  ;;  %v420_v61 = vrot.slane %v418_v54, 5  ;;  %v428_v62 = vshrl.u32 %v13810_v45, 16  ;;  %v434_v63 = vshll.u32 %v13815_v49, 16  ;;  %12802 = vmatpush3.bf16.msra.mxu1 %v1927_v7  ;;  %v322_v7 = vld [vmem:[%s13776_s20 + $0x30] sm:$0xf] }
  0x1d   : > { %12701 = vmatprep.mubr.msk.bf16.mxu0 %vm800_vm3, %v11263_v56  ;;  %v403_v1 = vsel %vm13804_vm4, %v398_v57, %v402_v39  ;;  %v426_v2 = vrot.slane %v424_v59, 5  ;;  %v11297_v3 = vcombine.low %v318_v35, %v13810_v45  ;;  %v439_v5 = vshrl.u32 %v320_v55, 16  ;;  %v13864_v54 = vld [vmem:[%s13776_s20 + $0x40] sm:$0xf] }
  0x1e   : > { %v413_v10 = vsel %vm13804_vm4, %v408_v60, %v412_v44  ;;  %v421_v13 = vor.u32 %v420_v61, %v417_v58  ;;  %v430_v14 = vrot.slane %v428_v62, 4  ;;  %v436_v15 = vrot.slane %v434_v63, 5  ;;  %v13871_v60 = vld [vmem:[%s13776_s20 + $0x44] sm:$0x1] }
  0x1f   : > { %v11264_v16 = vcombine.low %v403_v1, %v413_v10  ;;  %12739 = vmatprep.mubr.msk.bf16.mxu1 %vm800_vm3, %v11297_v3  ;;  %v441_v17 = vrot.slane %v439_v5, 4  ;;  %v442_v18 = vshll.u32 %v320_v55, 16  ;;  %v448_v20 = vshll.u32 %v13827_v0, 16  ;;  %v326_v5 = vld [vmem:[%s13776_s20 + $0x48] sm:$0xf] }
  0x20   : > { %v422_v23 = vrot.slane %v421_v13, 4  ;;  %v431_v24 = vor.u32 %v430_v14, %v426_v2  ;;  %v452_v25 = vshrl.u32 %v13827_v0, 16  ;;  %v458_v26 = vshll.u32 %v13834_v4, 16 }
  0x21   : > { %12702 = vmatmul.mubr.msk.bf16.vlgmr.msra.gmra.mxu0 %vm800_vm3, %v11264_v16  ;;  %v444_v28 = vrot.slane %v442_v18, 5  ;;  %v450_v29 = vrot.slane %v448_v20, 5  ;;  %v11298_v30 = vcombine.low %v320_v55, %v13827_v0  ;;  %v463_v32 = vshrl.u32 %v322_v7, 16  ;;  %v13881_v20 = vld [vmem:[%s13776_s20 + $0x4c] sm:$0xf] }
  0x22   : > { %12768 = vmatpush3.bf16.msra.mxu0 %v13759_v6  ;;  %v427_v33 = vsel %vm13804_vm4, %v422_v23, %v426_v2  ;;  %v432_v34 = vrot.slane %v431_v24, 4  ;;  %v454_v35 = vrot.slane %v452_v25, 4  ;;  %v460_v37 = vrot.slane %v458_v26, 5  ;;  %v13888_v26 = vld [vmem:[%s13776_s20 + $0x50] sm:$0x1] }
  0x23   : > { %v445_v38 = vor.u32 %v444_v28, %v441_v17  ;;  %12740 = vmatmul.mubr.msk.bf16.gmra.mxu1 %vm800_vm3, %v11298_v30  ;;  %v465_v39 = vrot.slane %v463_v32, 4  ;;  %v466_v41 = vshll.u32 %v322_v7, 16  ;;  %v472_v42 = vshll.u32 %v13844_v27, 16  ;;  %13441 = vmatprep.subr.msk.bf16.mxu0 %vm849_vm0, %v13766_v8 }
  0x24   : > { %v437_v6 = vsel %vm13804_vm4, %v432_v34, %v436_v15  ;;  %v455_v43 = vor.u32 %v454_v35, %v450_v29  ;;  %v476_v44 = vshrl.u32 %v13844_v27, 16  ;;  %v482_v46 = vshll.u32 %v13849_v31, 16  ;;  %v328_v34 = vld [vmem:[%s13776_s20 + $0x54] sm:$0xf] }
  0x25   : > { %v11265_v50 = vcombine.low %v427_v33, %v437_v6  ;;  %v446_v51 = vrot.slane %v445_v38, 4  ;;  %v468_v52 = vrot.slane %v466_v41, 5  ;;  %v474_v53 = vrot.slane %v472_v42, 5 }
  0x26   : > { %v456_v55 = vrot.slane %v455_v43, 4  ;;  %v478_v56 = vrot.slane %v476_v44, 4  ;;  %v484_v8 = vrot.slane %v482_v46, 5  ;;  %v11299_v57 = vcombine.low %v322_v7, %v13844_v27  ;;  %v13898_v44 = vld [vmem:[%s13776_s20 + $0x58] sm:$0xf] }
  0x27   : > { %12705 = vmatprep.mubr.msk.bf16.mxu0 %vm800_vm3, %v11265_v50  ;;  %v451_v58 = vsel %vm13804_vm4, %v446_v51, %v450_v29  ;;  %v469_v59 = vor.u32 %v468_v52, %v465_v39  ;;  %v487_v61 = vshrl.u32 %v324_v48, 16  ;;  %v490_v62 = vshll.u32 %v324_v48, 16  ;;  %v13905_v51 = vld [vmem:[%s13776_s20 + $0x5c] sm:$0x1] }
  0x28   : > { %v461_v63 = vsel %vm13804_vm4, %v456_v55, %v460_v37  ;;  %v479_v1 = vor.u32 %v478_v56, %v474_v53  ;;  %12743 = vmatprep.mubr.msk.bf16.mxu1 %vm800_vm3, %v11299_v57  ;;  %v496_v2 = vshll.u32 %v13864_v54, 16  ;;  %v500_v3 = vshrl.u32 %v13864_v54, 16  ;;  %v330_v57 = vld [vmem:[%s13776_s20 + $0x60] sm:$0xf] }
  0x29   : > { %v11266_v10 = vcombine.low %v451_v58, %v461_v63  ;;  %v470_v13 = vrot.slane %v469_v59, 4  ;;  %v489_v14 = vrot.slane %v487_v61, 4  ;;  %v492_v15 = vrot.slane %v490_v62, 5 }
  0x2a   : > { %v480_v7 = vrot.slane %v479_v1, 4  ;;  %v498_v16 = vrot.slane %v496_v2, 5  ;;  %v502_v17 = vrot.slane %v500_v3, 4  ;;  %v506_v18 = vshll.u32 %v13871_v60, 16 }
  0x2b   : > { %12706 = vmatmul.mubr.msk.bf16.gmra.mxu0 %vm800_vm3, %v11266_v10  ;;  %v475_v23 = vsel %vm13804_vm4, %v470_v13, %v474_v53  ;;  %v493_v24 = vor.u32 %v492_v15, %v489_v14  ;;  %v11300_v25 = vcombine.low %v324_v48, %v13864_v54  ;;  %v511_v28 = vshrl.u32 %v326_v5, 16  ;;  %v13920_v15 = vld [vmem:[%s13776_s20 + $0x68] sm:$0x1] }
  0x2c   : > { %v485_v29 = vsel %vm13804_vm4, %v480_v7, %v484_v8  ;;  %v503_v30 = vor.u32 %v502_v17, %v498_v16  ;;  %v508_v32 = vrot.slane %v506_v18, 5  ;;  %v514_v33 = vshll.u32 %v326_v5, 16 }
  0x2d   : > { %v11267_v35 = vcombine.low %v475_v23, %v485_v29  ;;  %v494_v37 = vrot.slane %v493_v24, 4  ;;  %12744 = vmatmul.mubr.msk.bf16.gmra.mxu1 %vm800_vm3, %v11300_v25  ;;  %v513_v38 = vrot.slane %v511_v28, 4  ;;  %v520_v39 = vshll.u32 %v13881_v20, 16  ;;  %v332_v24 = vld [vmem:[%s13776_s20 + $0x6c] sm:$0xf] }
  0x2e   : > { %v504_v41 = vrot.slane %v503_v30, 4  ;;  %v516_v42 = vrot.slane %v514_v33, 5  ;;  %v524_v6 = vshrl.u32 %v13881_v20, 16  ;;  %v530_v43 = vshll.u32 %v13888_v26, 16 }
  0x2f   : > { %12709 = vmatprep.mubr.msk.bf16.mxu0 %vm800_vm3, %v11267_v35  ;;  %v499_v46 = vsel %vm13804_vm4, %v494_v37, %v498_v16  ;;  %v522_v48 = vrot.slane %v520_v39, 5  ;;  %v11301_v50 = vcombine.low %v326_v5, %v13881_v20  ;;  %v535_v52 = vshrl.u32 %v328_v34, 16  ;;  %v13915_v5 = vld [vmem:[%s13776_s20 + $0x64] sm:$0xf] }
  0x30   : > { %v509_v53 = vsel %vm13804_vm4, %v504_v41, %v508_v32  ;;  %v517_v55 = vor.u32 %v516_v42, %v513_v38  ;;  %v526_v56 = vrot.slane %v524_v6, 4  ;;  %v532_v8 = vrot.slane %v530_v43, 5  ;;  %v13928_v32 = vld [vmem:[%s13776_s20 + $0x70] sm:$0xf]  ;;  %v13935_v6 = vld [vmem:[%s13776_s20 + $0x74] sm:$0x1] }
  0x31   : > { %v11268_v58 = vcombine.low %v499_v46, %v509_v53  ;;  %12747 = vmatprep.mubr.msk.bf16.mxu1 %vm800_vm3, %v11301_v50  ;;  %v537_v59 = vrot.slane %v535_v52, 4  ;;  %v538_v61 = vshll.u32 %v328_v34, 16  ;;  %v544_v62 = vshll.u32 %v13898_v44, 16  ;;  %v334_v52 = vld [vmem:[%s13776_s20 + $0x78] sm:$0xf] }
  0x32   : > { %v518_v63 = vrot.slane %v517_v55, 4  ;;  %v527_v1 = vor.u32 %v526_v56, %v522_v48  ;;  %v548_v2 = vshrl.u32 %v13898_v44, 16  ;;  %v554_v3 = vshll.u32 %v13905_v51, 16 }
  0x33   : > { %12710 = vmatmul.mubr.msk.bf16.gmra.mxu0 %vm800_vm3, %v11268_v58  ;;  %v540_v10 = vrot.slane %v538_v61, 5  ;;  %v546_v13 = vrot.slane %v544_v62, 5  ;;  %v11302_v14 = vcombine.low %v328_v34, %v13898_v44  ;;  %v559_v7 = vshrl.u32 %v330_v57, 16  ;;  %v13948_v62 = vld [vmem:[%s13776_s20 + $0x7c] sm:$0xf] }
  0x34   : > { %v523_v16 = vsel %vm13804_vm4, %v518_v63, %v522_v48  ;;  %v528_v17 = vrot.slane %v527_v1, 4  ;;  %v550_v18 = vrot.slane %v548_v2, 4  ;;  %v556_v23 = vrot.slane %v554_v3, 5 }
  0x35   : > { %v541_v25 = vor.u32 %v540_v10, %v537_v59  ;;  %12748 = vmatmul.mubr.msk.bf16.gmra.mxu1 %vm800_vm3, %v11302_v14  ;;  %v561_v28 = vrot.slane %v559_v7, 4  ;;  %v562_v29 = vshll.u32 %v330_v57, 16  ;;  %v568_v30 = vshll.u32 %v13915_v5, 16  ;;  %v13951_v10 = vld [vmem:[%s13776_s20 + $0x80] sm:$0x1] }
  0x36   : > { %v533_v33 = vsel %vm13804_vm4, %v528_v17, %v532_v8  ;;  %v551_v34 = vor.u32 %v550_v18, %v546_v13  ;;  %v572_v35 = vshrl.u32 %v13915_v5, 16  ;;  %v578_v37 = vshll.u32 %v13920_v15, 16  ;;  %v336_v17 = vld [vmem:[%s13776_s20 + $0x84] sm:$0xf] }
  0x37   : > { %v11269_v38 = vcombine.low %v523_v16, %v533_v33  ;;  %v542_v39 = vrot.slane %v541_v25, 4  ;;  %v564_v41 = vrot.slane %v562_v29, 5  ;;  %v570_v42 = vrot.slane %v568_v30, 5 }
  0x38   : > { %v552_v43 = vrot.slane %v551_v34, 4  ;;  %v574_v46 = vrot.slane %v572_v35, 4  ;;  %v580_v48 = vrot.slane %v578_v37, 5  ;;  %v11303_v50 = vcombine.low %v330_v57, %v13915_v5  ;;  %v13962_v35 = vld [vmem:[%s13776_s20 + $0x88] sm:$0xf] }
  0x39   : > { %12713 = vmatprep.mubr.msk.bf16.mxu0 %vm800_vm3, %v11269_v38  ;;  %v547_v53 = vsel %vm13804_vm4, %v542_v39, %v546_v13  ;;  %v565_v55 = vor.u32 %v564_v41, %v561_v28  ;;  %v583_v56 = vshrl.u32 %v332_v24, 16  ;;  %v586_v8 = vshll.u32 %v332_v24, 16 }
  0x3a   : > { %v557_v58 = vsel %vm13804_vm4, %v552_v43, %v556_v23  ;;  %v575_v59 = vor.u32 %v574_v46, %v570_v42  ;;  %12751 = vmatprep.mubr.msk.bf16.mxu1 %vm800_vm3, %v11303_v50  ;;  %v592_v61 = vshll.u32 %v13928_v32, 16  ;;  %v596_v57 = vshrl.u32 %v13928_v32, 16  ;;  %v338_v50 = vld [vmem:[%s13776_s20 + $0x90] sm:$0xf] }
  0x3b   : > { %v11270_v63 = vcombine.low %v547_v53, %v557_v58  ;;  %v566_v1 = vrot.slane %v565_v55, 4  ;;  %v585_v2 = vrot.slane %v583_v56, 4  ;;  %v588_v3 = vrot.slane %v586_v8, 5 }
  0x3c   : > { %v576_v13 = vrot.slane %v575_v59, 4  ;;  %v594_v14 = vrot.slane %v592_v61, 5  ;;  %v598_v7 = vrot.slane %v596_v57, 4  ;;  %v602_v16 = vshll.u32 %v13935_v6, 16 }
  0x3d   : > { %12714 = vmatmul.mubr.msk.bf16.gmra.mxu0 %vm800_vm3, %v11270_v63  ;;  %v571_v18 = vsel %vm13804_vm4, %v566_v1, %v570_v42  ;;  %v589_v23 = vor.u32 %v588_v3, %v585_v2  ;;  %v11304_v25 = vcombine.low %v332_v24, %v13928_v32  ;;  %v607_v28 = vshrl.u32 %v334_v52, 16  ;;  %v13967_v42 = vld [vmem:[%s13776_s20 + $0x8c] sm:$0x1] }
  0x3e   : > { %v581_v29 = vsel %vm13804_vm4, %v576_v13, %v580_v48  ;;  %v599_v30 = vor.u32 %v598_v7, %v594_v14  ;;  %v604_v33 = vrot.slane %v602_v16, 5  ;;  %v610_v34 = vshll.u32 %v334_v52, 16  ;;  %v13981_v13 = vld [vmem:[%s13776_s20 + $0x94] sm:$0xf] }
  0x3f   : > { %v11271_v37 = vcombine.low %v571_v18, %v581_v29  ;;  %v590_v38 = vrot.slane %v589_v23, 4  ;;  %12752 = vmatmul.mubr.msk.bf16.gmra.mxu1 %vm800_vm3, %v11304_v25  ;;  %v609_v39 = vrot.slane %v607_v28, 4  ;;  %v616_v41 = vshll.u32 %v13948_v62, 16  ;;  %v13986_v18 = vld [vmem:[%s13776_s20 + $0x98] sm:$0x1] }
  0x40   : > { %v600_v24 = vrot.slane %v599_v30, 4  ;;  %v612_v43 = vrot.slane %v610_v34, 5  ;;  %v620_v46 = vshrl.u32 %v13948_v62, 16  ;;  %v626_v48 = vshll.u32 %v13951_v10, 16 }
  0x41   : > { %12717 = vmatprep.mubr.msk.bf16.mxu0 %vm800_vm3, %v11271_v37  ;;  %v595_v53 = vsel %vm13804_vm4, %v590_v38, %v594_v14  ;;  %v618_v55 = vrot.slane %v616_v41, 5  ;;  %v11305_v56 = vcombine.low %v334_v52, %v13948_v62  ;;  %v631_v8 = vshrl.u32 %v336_v17, 16  ;;  %v340_v38 = vld [vmem:[%s13776_s20 + $0x9c] sm:$0xf] }
  0x42   : > { %v605_v58 = vsel %vm13804_vm4, %v600_v24, %v604_v33  ;;  %v613_v59 = vor.u32 %v612_v43, %v609_v39  ;;  %v622_v61 = vrot.slane %v620_v46, 4  ;;  %v628_v57 = vrot.slane %v626_v48, 5 }
  0x43   : > { %v11272_v63 = vcombine.low %v595_v53, %v605_v58  ;;  %12755 = vmatprep.mubr.msk.bf16.mxu1 %vm800_vm3, %v11305_v56  ;;  %v633_v1 = vrot.slane %v631_v8, 4  ;;  %v634_v2 = vshll.u32 %v336_v17, 16  ;;  %v640_v3 = vshll.u32 %v13962_v35, 16 }
  0x44   : > { %v614_v14 = vrot.slane %v613_v59, 4  ;;  %v623_v52 = vor.u32 %v622_v61, %v618_v55  ;;  %v644_v7 = vshrl.u32 %v13962_v35, 16  ;;  %v650_v16 = vshll.u32 %v13967_v42, 16  ;;  %v14003_v61 = vld [vmem:[%s13776_s20 + $0xa4] sm:$0x1] }
  0x45   : > { %12718 = vmatmul.mubr.msk.bf16.gmra.mxu0 %vm800_vm3, %v11272_v63  ;;  %v636_v23 = vrot.slane %v634_v2, 5  ;;  %v642_v25 = vrot.slane %v640_v3, 5  ;;  %v11306_v28 = vcombine.low %v336_v17, %v13962_v35  ;;  %v655_v29 = vshrl.u32 %v338_v50, 16 }
  0x46   : > { %v619_v30 = vsel %vm13804_vm4, %v614_v14, %v618_v55  ;;  %v624_v33 = vrot.slane %v623_v52, 4  ;;  %v646_v34 = vrot.slane %v644_v7, 4  ;;  %v652_v37 = vrot.slane %v650_v16, 5  ;;  %v14000_v55 = vld [vmem:[%s13776_s20 + $0xa0] sm:$0xf] }
  0x47   : > { %v637_v39 = vor.u32 %v636_v23, %v633_v1  ;;  %12756 = vmatmul.mubr.msk.bf16.gmra.mxu1 %vm800_vm3, %v11306_v28  ;;  %v657_v41 = vrot.slane %v655_v29, 4  ;;  %v658_v24 = vshll.u32 %v338_v50, 16  ;;  %v664_v43 = vshll.u32 %v13981_v13, 16 }
  0x48   : > { %v629_v17 = vsel %vm13804_vm4, %v624_v33, %v628_v57  ;;  %v647_v46 = vor.u32 %v646_v34, %v642_v25  ;;  %v668_v48 = vshrl.u32 %v13981_v13, 16  ;;  %v674_v53 = vshll.u32 %v13986_v18, 16  ;;  %v342_v57 = vld [vmem:[%s13776_s20 + $0xa8] sm:$0xf] }
  0x49   : > { %v11273_v56 = vcombine.low %v619_v30, %v629_v17  ;;  %v638_v8 = vrot.slane %v637_v39, 4  ;;  %v660_v58 = vrot.slane %v658_v24, 5  ;;  %v666_v59 = vrot.slane %v664_v43, 5  ;;  %v14016_v30 = vld [vmem:[%s13776_s20 + $0xac] sm:$0xf] }
  0x4a   : > { %v648_v63 = vrot.slane %v647_v46, 4  ;;  %v670_v1 = vrot.slane %v668_v48, 4  ;;  %v676_v2 = vrot.slane %v674_v53, 5  ;;  %v11307_v3 = vcombine.low %v338_v50, %v13981_v13  ;;  %v344_v46 = vld [vmem:[%s13776_s20 + $0xb4] sm:$0xf] }
  0x4b   : > { %12721 = vmatprep.mubr.msk.bf16.mxu0 %vm800_vm3, %v11273_v56  ;;  %v643_v14 = vsel %vm13804_vm4, %v638_v8, %v642_v25  ;;  %v661_v52 = vor.u32 %v660_v58, %v657_v41  ;;  %v679_v7 = vshrl.u32 %v340_v38, 16  ;;  %v682_v16 = vshll.u32 %v340_v38, 16  ;;  %v14019_v41 = vld [vmem:[%s13776_s20 + $0xb0] sm:$0x1] }
  0x4c   : > { %v653_v23 = vsel %vm13804_vm4, %v648_v63, %v652_v37  ;;  %v671_v28 = vor.u32 %v670_v1, %v666_v59  ;;  %12759 = vmatprep.mubr.msk.bf16.mxu1 %vm800_vm3, %v11307_v3  ;;  %v688_v29 = vshll.u32 %v14000_v55, 16  ;;  %v692_v50 = vshrl.u32 %v14000_v55, 16 }
  0x4d   : > { %v11274_v33 = vcombine.low %v643_v14, %v653_v23  ;;  %v662_v34 = vrot.slane %v661_v52, 4  ;;  %v681_v39 = vrot.slane %v679_v7, 4  ;;  %v684_v25 = vrot.slane %v682_v16, 5  ;;  %v14030_v14 = vld [vmem:[%s13776_s20 + $0xb8] sm:$0xf] }
  0x4e   : > { %v672_v37 = vrot.slane %v671_v28, 4  ;;  %v690_v24 = vrot.slane %v688_v29, 5  ;;  %v694_v43 = vrot.slane %v692_v50, 4  ;;  %v698_v17 = vshll.u32 %v14003_v61, 16  ;;  %v14035_v23 = vld [vmem:[%s13776_s20 + $0xbc] sm:$0x1] }
  0x4f   : > { %12722 = vmatmul.mubr.msk.bf16.gmra.mxu0 %vm800_vm3, %v11274_v33  ;;  %v667_v48 = vsel %vm13804_vm4, %v662_v34, %v666_v59  ;;  %v685_v53 = vor.u32 %v684_v25, %v681_v39  ;;  %v11308_v56 = vcombine.low %v340_v38, %v14000_v55  ;;  %v703_v8 = vshrl.u32 %v342_v57, 16  ;;  %v1306_v50 = vld [vmem:[%s13776_s20] sm:$0xe] }
  0x50   : > { %v677_v58 = vsel %vm13804_vm4, %v672_v37, %v676_v2  ;;  %v695_v63 = vor.u32 %v694_v43, %v690_v24  ;;  %v700_v1 = vrot.slane %v698_v17, 5  ;;  %v706_v3 = vshll.u32 %v342_v57, 16 }
  0x51   : > { %v11275_v52 = vcombine.low %v667_v48, %v677_v58  ;;  %v686_v7 = vrot.slane %v685_v53, 4  ;;  %12760 = vmatmul.mubr.msk.bf16.gmra.mxu1 %vm800_vm3, %v11308_v56  ;;  %v705_v16 = vrot.slane %v703_v8, 4  ;;  %v712_v59 = vshll.u32 %v14016_v30, 16  ;;  %v14049_v53 = vld [vmem:[%s18838_s1 + $0xa] sm:$0x3] }
  0x52   : > { %v696_v38 = vrot.slane %v695_v63, 4  ;;  %v708_v28 = vrot.slane %v706_v3, 5  ;;  %v716_v29 = vshrl.u32 %v14016_v30, 16  ;;  %v722_v2 = vshll.u32 %v14019_v41, 16  ;;  %13442 = vmatprep.subr.msk.bf16.mxu1 %vm849_vm0, %v14049_v53 }
  0x53   : > { %12725 = vmatprep.mubr.msk.bf16.mxu0 %vm800_vm3, %v11275_v52  ;;  %v691_v33 = vsel %vm13804_vm4, %v686_v7, %v690_v24  ;;  %v714_v34 = vrot.slane %v712_v59, 5  ;;  %v11309_v39 = vcombine.low %v342_v57, %v14016_v30  ;;  %v727_v25 = vshrl.u32 %v344_v46, 16  ;;  %v1307_v52 = vld [vmem:[%s13776_s20 + $0xc] sm:$0xe] }
  0x54   : > { %v701_v37 = vsel %vm13804_vm4, %v696_v38, %v700_v1  ;;  %v709_v43 = vor.u32 %v708_v28, %v705_v16  ;;  %v718_v17 = vrot.slane %v716_v29, 4  ;;  %v724_v48 = vrot.slane %v722_v2, 5  ;;  %v13473_v7 = vld [vmem:[%s13776_s20 + $0xc] sm:$0xff]   ;;  %v1308_v29 = vld [vmem:[%s13776_s20 + $0x18] sm:$0xe] }
  0x55   : > { %v11276_v56 = vcombine.low %v691_v33, %v701_v37  ;;  %12763 = vmatprep.mubr.msk.bf16.mxu1 %vm800_vm3, %v11309_v39  ;;  %v729_v24 = vrot.slane %v727_v25, 4  ;;  %v730_v57 = vshll.u32 %v344_v46, 16  ;;  %v736_v8 = vshll.u32 %v14030_v14, 16 }
  0x56   : > { %v710_v58 = vrot.slane %v709_v43, 4  ;;  %v719_v63 = vor.u32 %v718_v17, %v714_v34  ;;  %v740_v1 = vshrl.u32 %v14030_v14, 16  ;;  %v746_v3 = vshll.u32 %v14035_v23, 16 }
  0x57   : > { %12726 = vmatmul.mubr.msk.bf16.gmra.mxu0 %vm800_vm3, %v11276_v56  ;;  %v732_v16 = vrot.slane %v730_v57, 5  ;;  %v738_v59 = vrot.slane %v736_v8, 5  ;;  %v11310_v38 = vcombine.low %v344_v46, %v14030_v14  ;;  %v11327_v28 = vrot.slane %v1306_v50, 9 }
  0x58   : > { %v715_v2 = vsel %vm13804_vm4, %v710_v58, %v714_v34  ;;  %v720_v33 = vrot.slane %v719_v63, 4  ;;  %v742_v39 = vrot.slane %v740_v1, 4  ;;  %v748_v25 = vrot.slane %v746_v3, 5  ;;  %v1309_v1 = vld [vmem:[%s13776_s20 + $0x24] sm:$0xe] }
  0x59   : > { %v18906_v37 = vmov 0  ;;  %v733_v43 = vor.u32 %v732_v16, %v729_v24  ;;  %12764 = vmatmul.mubr.msk.bf16.gmra.mxu1 %vm800_vm3, %v11310_v38  ;;  %v1359_v46 = vrot.slane %v13780_v11, 5  ;;  %v11328_v50 = vrot.slane %v1307_v52, 9  ;;  %v1311_v38 = vld [vmem:[%s13776_s20 + $0x3c] sm:$0xe] }
  0x5a   : > { %v18907_v37 = vsel %vm14066_vm7, 4294967295, %v18906_v37  ;;  %v1368_v34 = vrot.slane %v1366_v40, 4  ;;  %v725_v17 = vsel %vm13804_vm4, %v720_v33, %v724_v48  ;;  %v743_v56 = vor.u32 %v742_v39, %v738_v59  ;;  %12803 = vmatprep.mubr.msk.bf16.mxu1 %vm800_vm3, %v13473_v7  ;;  %v1310_v7 = vld [vmem:[%s13776_s20 + $0x30] sm:$0xe]  ;;  %v13475_v39 = vld [vmem:[%s13776_s20 + $0x24] sm:$0xff]  }
  0x5b   : > { %18908 = vst [vmem:[#allocation4_spill] sm:$0xff] %v18907_v37  ;;  %v11329_v57 = vrot.slane %v1308_v29, 9  ;;  %v1373_v8 = vrot.slane %v13810_v45, 5  ;;  %v11277_v24 = vcombine.low %v715_v2, %v725_v17  ;;  %v734_v58 = vrot.slane %v733_v43, 4 }
  0x5c   : > { %v1360_v11 = vsel %vm14066_vm7, %v11327_v28, %v1359_v46  ;;  %v1361_v63 = vrot.slane %v1359_v46, 4  ;;  %v744_v3 = vrot.slane %v743_v56, 4  ;;  %v14085_v48 = vsel %vm14066_vm7, %v11328_v50, %v1366_v40  ;;  %v1312_v46 = vld [vmem:[%s13776_s20 + $0x48] sm:$0xe] }
  0x5d   : > { %v14091_v45 = vsel %vm14066_vm7, %v1368_v34, %v1369_v47  ;;  %v14095_v52 = vsel %vm14066_vm7, %v11329_v57, %v1373_v8  ;;  %12729 = vmatprep.mubr.msk.bf16.mxu0 %vm800_vm3, %v11277_v24  ;;  %v739_v21 = vsel %vm13804_vm4, %v734_v58, %v738_v59  ;;  %v13474_v47 = vld [vmem:[%s13776_s20 + $0x18] sm:$0xff]   ;;  %v1375_v16 = vrot.slane %v1373_v8, 4  ;;  %v1313_v57 = vld [vmem:[%s13776_s20 + $0x54] sm:$0xe] }
  0x5e   : > { %v1363_v22 = vsel %vm14066_vm7, %v1361_v63, %v1362_v19  ;;  %v11345_v40 = vcombine.low %v14085_v48, %v14091_v45  ;;  %v749_v28 = vsel %vm13804_vm4, %v744_v3, %v748_v25  ;;  %v1376_v2 = vrot.slane %v13815_v49, 5 }
  0x5f   : > { %v11344_v29 = vcombine.low %v1360_v11, %v1363_v22  ;;  %v11330_v33 = vrot.slane %v1309_v1, 9  ;;  %v11278_v59 = vcombine.low %v739_v21, %v749_v28  ;;  %v1380_v12 = vrot.slane %v13827_v0, 5  ;;  %v1314_v1 = vld [vmem:[%s13776_s20 + $0x60] sm:$0xe] }
  0x60   : > { %v1383_v19 = vrot.slane %v13834_v4, 5  ;;  %v11331_v43 = vrot.slane %v1310_v7, 9  ;;  %v1377_v50 = vsel %vm14066_vm7, %v1375_v16, %v1376_v2  ;;  %v1387_v34 = vrot.slane %v13844_v27, 5  ;;  %v13476_v7 = vld [vmem:[%s13776_s20 + $0x30] sm:$0xff]   ;;  %v13477_v2 = vld [vmem:[%s13776_s20 + $0x3c] sm:$0xff]  }
  0x61   : > { %v1390_v25 = vrot.slane %v13849_v31, 5  ;;  %v11332_v17 = vrot.slane %v1311_v38, 9  ;;  %12730 = vmatmul.mubr.msk.bf16.gmra.mxu0 %vm800_vm3, %v11278_v59  ;;  %12804 = vmatmul.mubr.msk.bf16.vlgmr.msra.gmra.mxu1 %vm800_vm3, %v13474_v47  ;;  %v11346_v49 = vcombine.low %v14095_v52, %v1377_v50  ;;  %v14125_v0 = vsel %vm14066_vm7, %v11330_v33, %v1380_v12  ;;  %v1315_v52 = vld [vmem:[%s13776_s20 + $0x6c] sm:$0xe] }
  0x62   : > { %v1382_v4 = vrot.slane %v1380_v12, 4  ;;  %v1394_v56 = vrot.slane %v13864_v54, 5  ;;  %12769 = vmatprep.mubr.msk.bf16.mxu0 %vm800_vm3, %v11344_v29  ;;  %12807 = vmatprep.mubr.msk.bf16.mxu1 %vm800_vm3, %v13475_v39  ;;  %v14133_v27 = vsel %vm14066_vm7, %v11331_v43, %v1387_v34  ;;  %v1389_v31 = vrot.slane %v1387_v34, 4  ;;  %v1316_v29 = vld [vmem:[%s13776_s20 + $0x78] sm:$0xe] }
  0x63   : > { %v1397_v8 = vrot.slane %v13871_v60, 5  ;;  %v11333_v24 = vrot.slane %v1312_v46, 9  ;;  %v1401_v63 = vrot.slane %v13881_v20, 5  ;;  %v1404_v48 = vrot.slane %v13888_v26, 5  ;;  %v1317_v46 = vld [vmem:[%s13776_s20 + $0x84] sm:$0xe] }
  0x64   : > { %v14138_v58 = vsel %vm14066_vm7, %v1382_v4, %v1383_v19  ;;  %v14142_v54 = vsel %vm14066_vm7, %v11332_v17, %v1394_v56  ;;  %v1396_v11 = vrot.slane %v1394_v56, 4  ;;  %v14150_v60 = vsel %vm14066_vm7, %v1389_v31, %v1390_v25  ;;  %v14188_v50 = vld [vmem:[%s18838_s1 + $0xc] sm:$0x3]  ;;  %v1318_v56 = vld [vmem:[%s13776_s20 + $0x90] sm:$0xe] }
  0x65   : > { %v11347_v3 = vcombine.low %v14125_v0, %v14138_v58  ;;  %v11334_v45 = vrot.slane %v1313_v57, 9  ;;  %v11348_v21 = vcombine.low %v14133_v27, %v14150_v60  ;;  %v14163_v22 = vsel %vm14066_vm7, %v11333_v24, %v1401_v63  ;;  %v1319_v31 = vld [vmem:[%s13776_s20 + $0x9c] sm:$0xe] }
  0x66   : > { %v14159_v20 = vsel %vm14066_vm7, %v1396_v11, %v1397_v8  ;;  %v1403_v47 = vrot.slane %v1401_v63, 4  ;;  %v1408_v26 = vrot.slane %v13898_v44, 5  ;;  %v1411_v38 = vrot.slane %v13905_v51, 5  ;;  %v13478_v63 = vld [vmem:[%s13776_s20 + $0x48] sm:$0xff]  }
  0x67   : > { %v11349_v16 = vcombine.low %v14142_v54, %v14159_v20  ;;  %v11335_v28 = vrot.slane %v1314_v1, 9  ;;  %v1415_v39 = vrot.slane %v13915_v5, 5  ;;  %v1418_v59 = vrot.slane %v13920_v15, 5 }
  0x68   : > { %v14173_v33 = vsel %vm14066_vm7, %v1403_v47, %v1404_v48  ;;  %v11336_v12 = vrot.slane %v1315_v52, 9  ;;  %v14181_v44 = vsel %vm14066_vm7, %v11334_v45, %v1408_v26  ;;  %v1410_v51 = vrot.slane %v1408_v26, 4  ;;  %v1320_v52 = vld [vmem:[%s13776_s20 + $0xa8] sm:$0xe] }
  0x69   : > { %v11350_v19 = vcombine.low %v14163_v22, %v14173_v33  ;;  %v1422_v43 = vrot.slane %v13928_v32, 5  ;;  %12770 = vmatmul.mubr.msk.bf16.vlgmr.msra.gmra.mxu0 %vm800_vm3, %v11345_v40  ;;  %12808 = vmatmul.mubr.msk.bf16.gmra.mxu1 %vm800_vm3, %v13476_v7  ;;  %v14194_v5 = vsel %vm14066_vm7, %v11335_v28, %v1415_v39  ;;  %v1417_v15 = vrot.slane %v1415_v39, 4  ;;  %v13479_v7 = vld [vmem:[%s13776_s20 + $0x54] sm:$0xff]  }
  0x6a   : > { %v1425_v34 = vrot.slane %v13935_v6, 5  ;;  %v11337_v25 = vrot.slane %v1316_v29, 9  ;;  %12836 = vmatpush3.bf16.msra.mxu0 %v13771_v9  ;;  %12773 = vmatprep.mubr.msk.bf16.mxu0 %vm800_vm3, %v11346_v49  ;;  %v14201_v32 = vsel %vm14066_vm7, %v1410_v51, %v1411_v38  ;;  %v1429_v4 = vrot.slane %v13948_v62, 5  ;;  %v1321_v39 = vld [vmem:[%s13776_s20 + $0xb4] sm:$0xe] }
  0x6b   : > { %v14205_v40 = vsel %vm14066_vm7, %v11336_v12, %v1422_v43  ;;  %v1424_v17 = vrot.slane %v1422_v43, 4  ;;  %12811 = vmatprep.mubr.msk.bf16.mxu1 %vm800_vm3, %v13477_v2  ;;  %v11351_v9 = vcombine.low %v14181_v44, %v14201_v32  ;;  %v14214_v6 = vsel %vm14066_vm7, %v1417_v15, %v1418_v59  ;;  %13443 = vmatprep.subr.msk.bf16.mxu0 %vm849_vm0, %v14188_v50  ;;  %v14284_v15 = vld [vmem:[%s13776_s20 + $0x10] sm:$0xf]  ;;  %v11523_v22 = vld [vmem:[%s13776_s20 + $0x18] sm:$0xe] }
  0x6c   : > { %v1432_v49 = vrot.slane %v13951_v10, 5  ;;  %v11338_v57 = vrot.slane %v1317_v46, 9  ;;  %v11352_v62 = vcombine.low %v14194_v5, %v14214_v6  ;;  %v14228_v24 = vsel %vm14066_vm7, %v11337_v25, %v1429_v4 }
  0x6d   : > { %v14224_v8 = vsel %vm14066_vm7, %v1424_v17, %v1425_v34  ;;  %v1431_v11 = vrot.slane %v1429_v4, 4  ;;  %v1436_v1 = vrot.slane %v13962_v35, 5  ;;  %v1439_v48 = vrot.slane %v13967_v42, 5  ;;  %v14299_v4 = vld [vmem:[%s13776_s20 + $0x14] sm:$0x1] }
  0x6e   : > { %v11353_v10 = vcombine.low %v14205_v40, %v14224_v8  ;;  %v11339_v45 = vrot.slane %v1318_v56, 9  ;;  %v1443_v26 = vrot.slane %v13981_v13, 5  ;;  %v1446_v38 = vrot.slane %v13986_v18, 5  ;;  %v13480_v56 = vld [vmem:[%s13776_s20 + $0x60] sm:$0xff]  }
  0x6f   : > { %v14239_v47 = vsel %vm14066_vm7, %v1431_v11, %v1432_v49  ;;  %v11340_v28 = vrot.slane %v1319_v31, 9  ;;  %v14247_v35 = vsel %vm14066_vm7, %v11338_v57, %v1436_v1  ;;  %v1438_v42 = vrot.slane %v1436_v1, 4 }
  0x70   : > { %v11354_v29 = vcombine.low %v14228_v24, %v14239_v47  ;;  %v1450_v2 = vrot.slane %v14000_v55, 5  ;;  %v14253_v59 = vsel %vm14066_vm7, %v11339_v45, %v1443_v26  ;;  %v1445_v13 = vrot.slane %v1443_v26, 4  ;;  %v14319_v45 = vld [vmem:[%s13776_s20 + $0x1c] sm:$0xf] }
  0x71   : > { %v1453_v18 = vrot.slane %v14003_v61, 5  ;;  %v11341_v12 = vrot.slane %v1320_v52, 9  ;;  %12774 = vmatmul.mubr.msk.bf16.gmra.mxu0 %vm800_vm3, %v11347_v3  ;;  %12812 = vmatmul.mubr.msk.bf16.gmra.mxu1 %vm800_vm3, %v13478_v63  ;;  %v14263_v55 = vsel %vm14066_vm7, %v1438_v42, %v1439_v48  ;;  %v1457_v46 = vrot.slane %v14016_v30, 5  ;;  %v11441_v30 = vld [vmem:[%s13776_s20 + $0xc] sm:$0xf] }
  0x72   : > { %v14267_v51 = vsel %vm14066_vm7, %v11340_v28, %v1450_v2  ;;  %v1452_v43 = vrot.slane %v1450_v2, 4  ;;  %12777 = vmatprep.mubr.msk.bf16.mxu0 %vm800_vm3, %v11348_v21  ;;  %12815 = vmatprep.mubr.msk.bf16.mxu1 %vm800_vm3, %v13479_v7  ;;  %v11355_v61 = vcombine.low %v14247_v35, %v14263_v55  ;;  %v14279_v0 = vsel %vm14066_vm7, %v1445_v13, %v1446_v38  ;;  %v13481_v63 = vld [vmem:[%s13776_s20 + $0x6c] sm:$0xff]   ;;  %v14327_v2 = vld [vmem:[%s13776_s20 + $0x20] sm:$0x1] }
  0x73   : > { %v1460_v58 = vrot.slane %v14019_v41, 5  ;;  %v11342_v3 = vrot.slane %v1321_v39, 9  ;;  %v11356_v27 = vcombine.low %v14253_v59, %v14279_v0  ;;  %v1459_v21 = vrot.slane %v1457_v46, 4 }
  0x74   : > { %v14290_v60 = vsel %vm14066_vm7, %v1452_v43, %v1453_v18  ;;  %v1464_v25 = vrot.slane %v14030_v14, 5  ;;  %v1467_v41 = vrot.slane %v14035_v23, 5  ;;  %v3123_v17 = vsel %vm849_vm0, %v14049_v53, 0  ;;  %v11444_v14 = vld [vmem:[%s13776_s20 + $0x18] sm:$0xf] }
  0x75   : > { %v11357_v34 = vcombine.low %v14267_v51, %v14290_v60  ;;  %v14304_v49 = vsel %vm14066_vm7, %v11341_v12, %v1457_v46  ;;  %12870 = vmatpush3.bf16.msra.mxu1 %v3123_v17  ;;  %v2171_v57 = vshrl.u32 %v11441_v30, 16  ;;  %v2174_v31 = vshll.u32 %v11441_v30, 16 }
  0x76   : > { %v2180_v11 = vshll.u32 %v14284_v15, 16  ;;  %v14311_v23 = vsel %vm14066_vm7, %v1459_v21, %v1460_v58  ;;  %v14315_v53 = vsel %vm14066_vm7, %v11342_v3, %v1464_v25  ;;  %v1466_v1 = vrot.slane %v1464_v25, 4  ;;  %v11522_v58 = vld [vmem:[%s13776_s20 + $0xc] sm:$0xe] }
  0x77   : > { %v2184_v48 = vshrl.u32 %v14284_v15, 16  ;;  %v2173_v52 = vrot.slane %v2171_v57, 4  ;;  %v2176_v7 = vrot.slane %v2174_v31, 5  ;;  %v2190_v38 = vshll.u32 %v14299_v4, 16  ;;  %v13482_v57 = vld [vmem:[%s13776_s20 + $0x78] sm:$0xff]  }
  0x78   : > { %v2182_v26 = vrot.slane %v2180_v11, 5  ;;  %v14324_v28 = vsel %vm14066_vm7, %v1466_v1, %v1467_v41  ;;  %v2195_v39 = vshrl.u32 %v11444_v14, 16  ;;  %v2198_v13 = vshll.u32 %v11444_v14, 16  ;;  %v11447_v1 = vld [vmem:[%s13776_s20 + $0x24] sm:$0xf] }
  0x79   : > { %v2186_v42 = vrot.slane %v2184_v48, 4  ;;  %12778 = vmatmul.mubr.msk.bf16.gmra.mxu0 %vm800_vm3, %v11349_v16  ;;  %12816 = vmatmul.mubr.msk.bf16.gmra.mxu1 %vm800_vm3, %v13480_v56  ;;  %v11359_v18 = vcombine.low %v14315_v53, %v14324_v28  ;;  %v2177_v12 = vor.u32 %v2176_v7, %v2173_v52  ;;  %v2192_v43 = vrot.slane %v2190_v38, 5  ;;  %v13483_v48 = vld [vmem:[%s13776_s20 + $0x84] sm:$0xff]  }
  0x7a   : > { %v2204_v46 = vshll.u32 %v14319_v45, 16  ;;  %12781 = vmatprep.mubr.msk.bf16.mxu0 %vm800_vm3, %v11350_v19  ;;  %12819 = vmatprep.mubr.msk.bf16.mxu1 %vm800_vm3, %v13481_v63  ;;  %v2197_v20 = vrot.slane %v2195_v39, 4  ;;  %v2200_v16 = vrot.slane %v2198_v13, 5  ;;  %v2208_v3 = vshrl.u32 %v14319_v45, 16  ;;  %v14358_v39 = vld [vmem:[%s13776_s20 + $0x28] sm:$0xf] }
  0x7b   : > { %v2187_v54 = vor.u32 %v2186_v42, %v2182_v26  ;;  %v11358_v30 = vcombine.low %v14304_v49, %v14311_v23  ;;  %v2178_v21 = vrot.slane %v2177_v12, 4  ;;  %v2214_v41 = vshll.u32 %v14327_v2, 16  ;;  %v14370_v12 = vld [vmem:[%s13776_s20 + $0x2c] sm:$0x1] }
  0x7c   : > { %v2206_v25 = vrot.slane %v2204_v46, 5  ;;  %v2201_v19 = vor.u32 %v2200_v16, %v2197_v20  ;;  %v2210_v17 = vrot.slane %v2208_v3, 4  ;;  %v11538_v56 = vrot.slane %v11522_v58, 9  ;;  %v11450_v46 = vld [vmem:[%s13776_s20 + $0x30] sm:$0xf] }
  0x7d   : > { %v2188_v33 = vrot.slane %v2187_v54, 4  ;;  %v2183_v31 = vsel %vm13804_vm4, %v2178_v21, %v2182_v26  ;;  %v2216_v11 = vrot.slane %v2214_v41, 5  ;;  %v2914_v14 = vrot.slane %v14284_v15, 5  ;;  %v14408_v41 = vld [vmem:[%s13776_s20 + $0x38] sm:$0x1] }
  0x7e   : > { %v2917_v63 = vrot.slane %v14299_v4, 5  ;;  %v2202_v7 = vrot.slane %v2201_v19, 4  ;;  %v2211_v38 = vor.u32 %v2210_v17, %v2206_v25  ;;  %v11539_v42 = vrot.slane %v11523_v22, 9 }
  0x7f   : > { %v2193_v52 = vsel %vm13804_vm4, %v2188_v33, %v2192_v43  ;;  %v14362_v26 = vsel %vm849_vm0, %v14188_v50, 0  ;;  %v14366_v15 = vsel %vm14066_vm7, %v11538_v56, %v2914_v14  ;;  %v2916_v4 = vrot.slane %v2914_v14, 4  ;;  %v14377_v50 = vld [vmem:[%s13776_s20 + $0x34] sm:$0xf] }
  0x80   : > { %v2921_v13 = vrot.slane %v14319_v45, 5  ;;  %v2207_v43 = vsel %vm13804_vm4, %v2202_v7, %v2206_v25  ;;  %v2212_v58 = vrot.slane %v2211_v38, 4  ;;  %v2924_v54 = vrot.slane %v14327_v2, 5  ;;  %v14393_v2 = vld [vmem:[%s18838_s1 + $0xe] sm:$0x3] }
  0x81   : > { %v2219_v20 = vshrl.u32 %v11447_v1, 16  ;;  %12782 = vmatmul.mubr.msk.bf16.gmra.mxu0 %vm800_vm3, %v11351_v9  ;;  %12820 = vmatmul.mubr.msk.bf16.gmra.mxu1 %vm800_vm3, %v13482_v57  ;;  %v14384_v45 = vcombine.low %v2183_v31, %v2193_v52  ;;  %v14388_v16 = vsel %vm14066_vm7, %v2916_v4, %v2917_v63  ;;  %v2222_v21 = vshll.u32 %v11447_v1, 16  ;;  %v13484_v57 = vld [vmem:[%s13776_s20 + $0x90] sm:$0xff]   ;;  %v11524_v1 = vld [vmem:[%s13776_s20 + $0x24] sm:$0xe] }
  0x82   : > { %v2923_v3 = vrot.slane %v2921_v13, 4  ;;  %12785 = vmatprep.mubr.msk.bf16.mxu0 %vm800_vm3, %v11352_v62  ;;  %12823 = vmatprep.mubr.msk.bf16.mxu1 %vm800_vm3, %v13483_v48  ;;  %v2217_v44 = vsel %vm13804_vm4, %v2212_v58, %v2216_v11  ;;  %v14404_v32 = vsel %vm14066_vm7, %v11539_v42, %v2921_v13  ;;  %v2228_v25 = vshll.u32 %v14358_v39, 16  ;;  %v13485_v48 = vld [vmem:[%s13776_s20 + $0x9c] sm:$0xff]  }
  0x83   : > { %v2221_v9 = vrot.slane %v2219_v20, 4  ;;  %v14410_v5 = vcombine.low %v2207_v43, %v2217_v44  ;;  %v11555_v6 = vcombine.low %v14366_v15, %v14388_v16  ;;  %v2224_v62 = vrot.slane %v2222_v21, 5  ;;  %13444 = vmatprep.subr.msk.bf16.mxu1 %vm849_vm0, %v14393_v2  ;;  %v11453_v44 = vld [vmem:[%s13776_s20 + $0x3c] sm:$0xf]  ;;  %v14570_v15 = vld [vmem:[%s13776_s20 + $0x68] sm:$0x1] }
  0x84   : > { %v2232_v22 = vshrl.u32 %v14358_v39, 16  ;;  %v14419_v33 = vsel %vm14066_vm7, %v2923_v3, %v2924_v54  ;;  %v2230_v19 = vrot.slane %v2228_v25, 5  ;;  %v2238_v17 = vshll.u32 %v14370_v12, 16  ;;  %v11525_v54 = vld [vmem:[%s13776_s20 + $0x30] sm:$0xe] }
  0x85   : > { %v2243_v56 = vshrl.u32 %v11450_v46, 16  ;;  %v2225_v31 = vor.u32 %v2224_v62, %v2221_v9  ;;  %v2246_v14 = vshll.u32 %v11450_v46, 16  ;;  %v2252_v63 = vshll.u32 %v14377_v50, 16 }
  0x86   : > { %v2234_v11 = vrot.slane %v2232_v22, 4  ;;  %v2240_v52 = vrot.slane %v2238_v17, 5  ;;  %v2256_v38 = vshrl.u32 %v14377_v50, 16  ;;  %v2262_v42 = vshll.u32 %v14408_v41, 16  ;;  %v14440_v17 = vld [vmem:[%s13776_s20 + $0x40] sm:$0xf] }
  0x87   : > { %v2245_v7 = vrot.slane %v2243_v56, 4  ;;  %v2226_v4 = vrot.slane %v2225_v31, 4  ;;  %v2248_v43 = vrot.slane %v2246_v14, 5  ;;  %v2254_v58 = vrot.slane %v2252_v63, 5  ;;  %v14462_v31 = vld [vmem:[%s13776_s20 + $0x44] sm:$0x1] }
  0x88   : > { %v2235_v13 = vor.u32 %v2234_v11, %v2230_v19  ;;  %v11556_v46 = vcombine.low %v14404_v32, %v14419_v33  ;;  %v2258_v20 = vrot.slane %v2256_v38, 4  ;;  %v11540_v3 = vrot.slane %v11524_v1, 9  ;;  %v13486_v14 = vld [vmem:[%s13776_s20 + $0xa8] sm:$0xff]   ;;  %v13487_v38 = vld [vmem:[%s13776_s20 + $0xb4] sm:$0xff]   ;;  %v14607_v33 = vld [vmem:[%s13776_s20 + $0x70] sm:$0xf] }
  0x89   : > { %v2928_v21 = vrot.slane %v14358_v39, 5  ;;  %12786 = vmatmul.mubr.msk.bf16.gmra.mxu0 %vm800_vm3, %v11353_v10  ;;  %12824 = vmatmul.mubr.msk.bf16.gmra.mxu1 %vm800_vm3, %v13484_v57  ;;  %v2249_v25 = vor.u32 %v2248_v43, %v2245_v7  ;;  %v2264_v62 = vrot.slane %v2262_v42, 5  ;;  %v2931_v22 = vrot.slane %v14370_v12, 5  ;;  %v14473_v7 = vld [vmem:[%s13776_s20 + $0x4c] sm:$0xf] }
  0x8a   : > { %v2236_v9 = vrot.slane %v2235_v13, 4  ;;  %12789 = vmatprep.mubr.msk.bf16.mxu0 %vm800_vm3, %v11354_v29  ;;  %12827 = vmatprep.mubr.msk.bf16.mxu1 %vm800_vm3, %v13485_v48  ;;  %v2231_v40 = vsel %vm13804_vm4, %v2226_v4, %v2230_v19  ;;  %v2259_v8 = vor.u32 %v2258_v20, %v2254_v58  ;;  %v11541_v47 = vrot.slane %v11525_v54, 9  ;;  %v14480_v43 = vld [vmem:[%s13776_s20 + $0x50] sm:$0x1] }
  0x8b   : > { %v14451_v10 = vsel %vm14066_vm7, %v11540_v3, %v2928_v21  ;;  %v2930_v39 = vrot.slane %v2928_v21, 4  ;;  %v2250_v24 = vrot.slane %v2249_v25, 4  ;;  %v2935_v29 = vrot.slane %v14377_v50, 5  ;;  %v11526_v21 = vld [vmem:[%s13776_s20 + $0x3c] sm:$0xe] }
  0x8c   : > { %v2241_v12 = vsel %vm13804_vm4, %v2236_v9, %v2240_v52  ;;  %v2260_v56 = vrot.slane %v2259_v8, 4  ;;  %v2938_v57 = vrot.slane %v14408_v41, 5  ;;  %v2267_v11 = vshrl.u32 %v11453_v44, 16  ;;  %v11456_v52 = vld [vmem:[%s13776_s20 + $0x48] sm:$0xf] }
  0x8d   : > { %v14458_v19 = vsel %vm14066_vm7, %v2930_v39, %v2931_v22  ;;  %v14465_v63 = vcombine.low %v2231_v40, %v2241_v12  ;;  %v2255_v1 = vsel %vm13804_vm4, %v2250_v24, %v2254_v58  ;;  %v2937_v48 = vrot.slane %v2935_v29, 4  ;;  %v11527_v22 = vld [vmem:[%s13776_s20 + $0x48] sm:$0xe] }
  0x8e   : > { %v11557_v50 = vcombine.low %v14451_v10, %v14458_v19  ;;  %v2265_v41 = vsel %vm13804_vm4, %v2260_v56, %v2264_v62  ;;  %v2269_v42 = vrot.slane %v2267_v11, 4  ;;  %v2270_v4 = vshll.u32 %v11453_v44, 16 }
  0x8f   : > { %v2276_v13 = vshll.u32 %v14440_v17, 16  ;;  %v14482_v54 = vcombine.low %v2255_v1, %v2265_v41  ;;  %v14486_v58 = vsel %vm14066_vm7, %v11541_v47, %v2935_v29  ;;  %v2280_v20 = vshrl.u32 %v14440_v17, 16  ;;  %v11459_v41 = vld [vmem:[%s13776_s20 + $0x54] sm:$0xf] }
  0x90   : > { %v2286_v3 = vshll.u32 %v14462_v31, 16  ;;  %v14493_v9 = vsel %vm14066_vm7, %v2937_v48, %v2938_v57  ;;  %v2272_v44 = vrot.slane %v2270_v4, 5  ;;  %v2291_v62 = vshrl.u32 %v11456_v52, 16 }
  0x91   : > { %v2278_v25 = vrot.slane %v2276_v13, 5  ;;  %12790 = vmatmul.mubr.msk.bf16.gmra.mxu0 %vm800_vm3, %v11355_v61  ;;  %12828 = vmatmul.mubr.msk.bf16.gmra.mxu1 %vm800_vm3, %v13486_v14  ;;  %v2282_v40 = vrot.slane %v2280_v20, 4  ;;  %v2294_v39 = vshll.u32 %v11456_v52, 16  ;;  %v2300_v12 = vshll.u32 %v14473_v7, 16 }
  0x92   : > { %v2288_v8 = vrot.slane %v2286_v3, 5  ;;  %12793 = vmatprep.mubr.msk.bf16.mxu0 %vm800_vm3, %v11356_v27  ;;  %12831 = vmatprep.mubr.msk.bf16.mxu1 %vm800_vm3, %v13487_v38  ;;  %v2273_v24 = vor.u32 %v2272_v44, %v2269_v42  ;;  %v2293_v47 = vrot.slane %v2291_v62, 4  ;;  %v2304_v35 = vshrl.u32 %v14473_v7, 16  ;;  %v13488_v27 = vld [vmem:[%s13776_s20 + $0xc0] sm:$0xff]   ;;  %v14520_v3 = vld [vmem:[%s13776_s20 + $0x58] sm:$0xf] }
  0x93   : > { %v2310_v55 = vshll.u32 %v14480_v43, 16  ;;  %v2283_v61 = vor.u32 %v2282_v40, %v2278_v25  ;;  %v2296_v29 = vrot.slane %v2294_v39, 5  ;;  %v2302_v56 = vrot.slane %v2300_v12, 5 }
  0x94   : > { %v11542_v57 = vrot.slane %v11526_v21, 9  ;;  %v2274_v11 = vrot.slane %v2273_v24, 4  ;;  %v2306_v14 = vrot.slane %v2304_v35, 4  ;;  %v2942_v0 = vrot.slane %v14440_v17, 5  ;;  %v14523_v17 = vld [vmem:[%s13776_s20 + $0x5c] sm:$0x1] }
  0x95   : > { %v2312_v59 = vrot.slane %v2310_v55, 5  ;;  %v2284_v1 = vrot.slane %v2283_v61, 4  ;;  %v2297_v48 = vor.u32 %v2296_v29, %v2293_v47  ;;  %v2945_v52 = vrot.slane %v14462_v31, 5  ;;  %v14559_v35 = vld [vmem:[%s13776_s20 + $0x64] sm:$0xf] }
  0x96   : > { %v11543_v38 = vrot.slane %v11527_v22, 9  ;;  %v2279_v42 = vsel %vm13804_vm4, %v2274_v11, %v2278_v25  ;;  %v2307_v4 = vor.u32 %v2306_v14, %v2302_v56  ;;  %v14517_v13 = vsel %vm14066_vm7, %v11542_v57, %v2942_v0  ;;  %v11462_v22 = vld [vmem:[%s13776_s20 + $0x60] sm:$0xf] }
  0x97   : > { %v2944_v20 = vrot.slane %v2942_v0, 4  ;;  %v2289_v21 = vsel %vm13804_vm4, %v2284_v1, %v2288_v8  ;;  %v2298_v44 = vrot.slane %v2297_v48, 4  ;;  %v2949_v31 = vrot.slane %v14473_v7, 5 }
  0x98   : > { %v2952_v62 = vrot.slane %v14480_v43, 5  ;;  %v11558_v25 = vcombine.low %v14486_v58, %v14493_v9  ;;  %v2308_v40 = vrot.slane %v2307_v4, 4  ;;  %v2315_v12 = vshrl.u32 %v11459_v41, 16  ;;  %v11531_v58 = vld [vmem:[%s13776_s20 + $0x78] sm:$0xe] }
  0x99   : > { %v14534_v39 = vsel %vm14066_vm7, %v2944_v20, %v2945_v52  ;;  %12794 = vmatmul.mubr.msk.bf16.gmra.mxu0 %vm800_vm3, %v11357_v34  ;;  %12832 = vmatmul.mubr.msk.bf16.gmra.mxu1 %vm800_vm3, %v13488_v27  ;;  %v14541_v7 = vcombine.low %v2279_v42, %v2289_v21  ;;  %v2303_v43 = vsel %vm13804_vm4, %v2298_v44, %v2302_v56  ;;  %v2951_v24 = vrot.slane %v2949_v31, 4  ;;  %v11528_v56 = vld [vmem:[%s13776_s20 + $0x54] sm:$0xe]  ;;  %v11529_v52 = vld [vmem:[%s13776_s20 + $0x60] sm:$0xe] }
  0x9a   : > { %v11559_v8 = vcombine.low %v14517_v13, %v14534_v39  ;;  %12797 = vmatprep.mubr.msk.bf16.mxu0 %vm800_vm3, %v11358_v30  ;;  %12871 = vmatprep.mubr.msk.bf16.mxu1 %vm800_vm3, %v11555_v6  ;;  %v2313_v51 = vsel %vm13804_vm4, %v2308_v40, %v2312_v59  ;;  %v2317_v60 = vrot.slane %v2315_v12, 4  ;;  %v2318_v34 = vshll.u32 %v11459_v41, 16  ;;  %v11465_v20 = vld [vmem:[%s13776_s20 + $0x6c] sm:$0xf] }
  0x9b   : > { %v2324_v47 = vshll.u32 %v14520_v3, 16  ;;  %v14561_v55 = vcombine.low %v2303_v43, %v2313_v51  ;;  %v14565_v49 = vsel %vm14066_vm7, %v11543_v38, %v2949_v31  ;;  %v2328_v23 = vshrl.u32 %v14520_v3, 16 }
  0x9c   : > { %v2334_v30 = vshll.u32 %v14523_v17, 16  ;;  %v14574_v16 = vsel %vm14066_vm7, %v2951_v24, %v2952_v62  ;;  %v2320_v6 = vrot.slane %v2318_v34, 5  ;;  %v2339_v29 = vshrl.u32 %v11462_v22, 16 }
  0x9d   : > { %v2326_v61 = vrot.slane %v2324_v47, 5  ;;  %v2330_v57 = vrot.slane %v2328_v23, 4  ;;  %v2342_v14 = vshll.u32 %v11462_v22, 16  ;;  %v2348_v59 = vshll.u32 %v14559_v35, 16 }
  0x9e   : > { %v2336_v11 = vrot.slane %v2334_v30, 5  ;;  %v2321_v0 = vor.u32 %v2320_v6, %v2317_v60  ;;  %v2341_v27 = vrot.slane %v2339_v29, 4  ;;  %v2352_v1 = vshrl.u32 %v14559_v35, 16  ;;  %v11468_v60 = vld [vmem:[%s13776_s20 + $0x78] sm:$0xf] }
  0x9f   : > { %v2358_v48 = vshll.u32 %v14570_v15, 16  ;;  %v2331_v38 = vor.u32 %v2330_v57, %v2326_v61  ;;  %v2344_v41 = vrot.slane %v2342_v14, 5  ;;  %v2350_v42 = vrot.slane %v2348_v59, 5  ;;  %v14628_v30 = vld [vmem:[%s13776_s20 + $0x7c] sm:$0xf] }
  0xa0   : > { %v11544_v4 = vrot.slane %v11528_v56, 9  ;;  %v11560_v21 = vcombine.low %v14565_v49, %v14574_v16  ;;  %v2322_v44 = vrot.slane %v2321_v0, 4  ;;  %v2354_v31 = vrot.slane %v2352_v1, 4  ;;  %v14631_v6 = vld [vmem:[%s13776_s20 + $0x80] sm:$0x1] }
  0xa1   : > { %v2956_v62 = vrot.slane %v14520_v3, 5  ;;  %12798 = vmatmul.mubr.msk.bf16.gmra.mxu0 %vm800_vm3, %v11359_v18  ;;  %12872 = vmatmul.mubr.msk.bf16.vlgmr.msra.gmra.mxu1 %vm800_vm3, %v11556_v46  ;;  %v2332_v22 = vrot.slane %v2331_v38, 4  ;;  %v2345_v40 = vor.u32 %v2344_v41, %v2341_v27  ;;  %v2360_v12 = vrot.slane %v2358_v48, 5  ;;  %v11530_v57 = vld [vmem:[%s13776_s20 + $0x6c] sm:$0xe] }
  0xa2   : > { %v2959_v43 = vrot.slane %v14523_v17, 5  ;;  %12837 = vmatprep.mubr.msk.bf16.mxu0 %vm800_vm3, %v14384_v45  ;;  %12875 = vmatprep.mubr.msk.bf16.mxu1 %vm800_vm3, %v11557_v50  ;;  %v2327_v53 = vsel %vm13804_vm4, %v2322_v44, %v2326_v61  ;;  %v2355_v28 = vor.u32 %v2354_v31, %v2350_v42  ;;  %v11545_v10 = vrot.slane %v11529_v52, 9  ;;  %v14613_v50 = vld [vmem:[%s13776_s20 + $0x74] sm:$0x1] }
  0xa3   : > { %v14604_v18 = vsel %vm14066_vm7, %v11544_v4, %v2956_v62  ;;  %v2958_v32 = vrot.slane %v2956_v62, 4  ;;  %v2337_v45 = vsel %vm13804_vm4, %v2332_v22, %v2336_v11  ;;  %v2346_v46 = vrot.slane %v2345_v40, 4  ;;  %v14640_v11 = vld [vmem:[%s18838_s1 + $0x10] sm:$0x3] }
  0xa4   : > { %v2963_v19 = vrot.slane %v14559_v35, 5  ;;  %v2356_v3 = vrot.slane %v2355_v28, 4  ;;  %v2966_v24 = vrot.slane %v14570_v15, 5  ;;  %v2363_v51 = vshrl.u32 %v11465_v20, 16 }
  0xa5   : > { %v14617_v17 = vsel %vm14066_vm7, %v2958_v32, %v2959_v43  ;;  %v14621_v34 = vcombine.low %v2327_v53, %v2337_v45  ;;  %v2351_v47 = vsel %vm13804_vm4, %v2346_v46, %v2350_v42  ;;  %v2366_v15 = vshll.u32 %v11465_v20, 16  ;;  %v11471_v53 = vld [vmem:[%s13776_s20 + $0x84] sm:$0xf] }
  0xa6   : > { %v11561_v35 = vcombine.low %v14604_v18, %v14617_v17  ;;  %v2965_v23 = vrot.slane %v2963_v19, 4  ;;  %v2361_v61 = vsel %vm13804_vm4, %v2356_v3, %v2360_v12  ;;  %v2365_v29 = vrot.slane %v2363_v51, 4  ;;  %v14684_v3 = vld [vmem:[%s13776_s20 + $0x8c] sm:$0x1]  ;;  %v11476_v17 = vld [vmem:[%s13776_s20 + $0x98] sm:$0x1] }
  0xa7   : > { %v2372_v56 = vshll.u32 %v14607_v33, 16  ;;  %v14642_v14 = vcombine.low %v2351_v47, %v2361_v61  ;;  %v14646_v59 = vsel %vm14066_vm7, %v11545_v10, %v2963_v19  ;;  %v2376_v0 = vshrl.u32 %v14607_v33, 16 }
  0xa8   : > { %v2382_v27 = vshll.u32 %v14613_v50, 16  ;;  %v14652_v1 = vsel %vm14066_vm7, %v2965_v23, %v2966_v24  ;;  %v2368_v48 = vrot.slane %v2366_v15, 5  ;;  %v2387_v38 = vshrl.u32 %v11468_v60, 16 }
  0xa9   : > { %v2374_v52 = vrot.slane %v2372_v56, 5  ;;  %12838 = vmatmul.mubr.msk.bf16.vlgmr.msra.gmra.mxu0 %vm800_vm3, %v14410_v5  ;;  %12876 = vmatmul.mubr.msk.bf16.gmra.mxu1 %vm800_vm3, %v11558_v25  ;;  %v2378_v41 = vrot.slane %v2376_v0, 4  ;;  %v2390_v4 = vshll.u32 %v11468_v60, 16  ;;  %v2396_v20 = vshll.u32 %v14628_v30, 16  ;;  %v11474_v56 = vld [vmem:[%s13776_s20 + $0x90] sm:$0xf] }
  0xaa   : > { %v2384_v42 = vrot.slane %v2382_v27, 5  ;;  %12904 = vmatpush3.bf16.msra.mxu0 %v14362_v26  ;;  %12841 = vmatprep.mubr.msk.bf16.mxu0 %vm800_vm3, %v14465_v63  ;;  %v2369_v44 = vor.u32 %v2368_v48, %v2365_v29  ;;  %v2389_v31 = vrot.slane %v2387_v38, 4  ;;  %v2400_v5 = vshrl.u32 %v14628_v30, 16  ;;  %v11533_v38 = vld [vmem:[%s13776_s20 + $0x90] sm:$0xe] }
  0xab   : > { %v2406_v62 = vshll.u32 %v14631_v6, 16  ;;  %12879 = vmatprep.mubr.msk.bf16.mxu1 %vm800_vm3, %v11559_v8  ;;  %v2379_v9 = vor.u32 %v2378_v41, %v2374_v52  ;;  %v2392_v25 = vrot.slane %v2390_v4, 5  ;;  %v2398_v26 = vrot.slane %v2396_v20, 5  ;;  %13445 = vmatprep.subr.msk.bf16.mxu0 %vm849_vm0, %v14640_v11  ;;  %v14677_v8 = vld [vmem:[%s13776_s20 + $0x88] sm:$0xf] }
  0xac   : > { %v11546_v22 = vrot.slane %v11530_v57, 9  ;;  %v2370_v63 = vrot.slane %v2369_v44, 4  ;;  %v2402_v40 = vrot.slane %v2400_v5, 4  ;;  %v2970_v43 = vrot.slane %v14607_v33, 5  ;;  %v11475_v57 = vld [vmem:[%s13776_s20 + $0x94] sm:$0xf] }
  0xad   : > { %v2408_v12 = vrot.slane %v2406_v62, 5  ;;  %v2380_v28 = vrot.slane %v2379_v9, 4  ;;  %v2393_v32 = vor.u32 %v2392_v25, %v2389_v31  ;;  %v2973_v13 = vrot.slane %v14613_v50, 5 }
  0xae   : > { %v11547_v39 = vrot.slane %v11531_v58, 9  ;;  %v2375_v45 = vsel %vm13804_vm4, %v2370_v63, %v2374_v52  ;;  %v2403_v46 = vor.u32 %v2402_v40, %v2398_v26  ;;  %v2971_v10 = vsel %vm14066_vm7, %v11546_v22, %v2970_v43 }
  0xaf   : > { %v2972_v19 = vrot.slane %v2970_v43, 4  ;;  %v2385_v33 = vsel %vm13804_vm4, %v2380_v28, %v2384_v42  ;;  %v2394_v24 = vrot.slane %v2393_v32, 4  ;;  %v2977_v50 = vrot.slane %v14628_v30, 5 }
  0xb0   : > { %v2980_v51 = vrot.slane %v14631_v6, 5  ;;  %v11562_v60 = vcombine.low %v14646_v59, %v14652_v1  ;;  %v2404_v47 = vrot.slane %v2403_v46, 4  ;;  %v2411_v61 = vshrl.u32 %v11471_v53, 16 }
  0xb1   : > { %v2974_v23 = vsel %vm14066_vm7, %v2972_v19, %v2973_v13  ;;  %12842 = vmatmul.mubr.msk.bf16.gmra.mxu0 %vm800_vm3, %v14482_v54  ;;  %12880 = vmatmul.mubr.msk.bf16.gmra.mxu1 %vm800_vm3, %v11560_v21  ;;  %v14700_v30 = vcombine.low %v2375_v45, %v2385_v33  ;;  %v2399_v6 = vsel %vm13804_vm4, %v2394_v24, %v2398_v26  ;;  %v2979_v15 = vrot.slane %v2977_v50, 4  ;;  %v11477_v13 = vld [vmem:[%s13776_s20 + $0x9c] sm:$0xf] }
  0xb2   : > { %v11563_v29 = vcombine.low %v2971_v10, %v2974_v23  ;;  %12845 = vmatprep.mubr.msk.bf16.mxu0 %vm800_vm3, %v14541_v7  ;;  %12883 = vmatprep.mubr.msk.bf16.mxu1 %vm800_vm3, %v11561_v35  ;;  %v2409_v54 = vsel %vm13804_vm4, %v2404_v47, %v2408_v12  ;;  %v2413_v49 = vrot.slane %v2411_v61, 4  ;;  %v2414_v16 = vshll.u32 %v11471_v53, 16  ;;  %v11532_v35 = vld [vmem:[%s13776_s20 + $0x84] sm:$0xe] }
  0xb3   : > { %v2420_v21 = vshll.u32 %v14677_v8, 16  ;;  %v14715_v59 = vcombine.low %v2399_v6, %v2409_v54  ;;  %v14719_v0 = vsel %vm14066_vm7, %v11547_v39, %v2977_v50  ;;  %v2424_v7 = vshrl.u32 %v14677_v8, 16 }
  0xb4   : > { %v2430_v18 = vshll.u32 %v14684_v3, 16  ;;  %v14727_v27 = vsel %vm14066_vm7, %v2979_v15, %v2980_v51  ;;  %v2416_v1 = vrot.slane %v2414_v16, 5  ;;  %v2435_v52 = vshrl.u32 %v11474_v56, 16  ;;  %v14758_v51 = vld [vmem:[%s13776_s20 + $0xa4] sm:$0x1] }
  0xb5   : > { %v2422_v48 = vrot.slane %v2420_v21, 5  ;;  %v2426_v41 = vrot.slane %v2424_v7, 4  ;;  %v2438_v4 = vshll.u32 %v11474_v56, 16  ;;  %v2444_v20 = vshll.u32 %v11475_v57, 16  ;;  %v11481_v16 = vld [vmem:[%s13776_s20 + $0xac] sm:$0xf] }
  0xb6   : > { %v2432_v42 = vrot.slane %v2430_v18, 5  ;;  %v2417_v44 = vor.u32 %v2416_v1, %v2413_v49  ;;  %v2437_v31 = vrot.slane %v2435_v52, 4  ;;  %v2448_v5 = vshrl.u32 %v11475_v57, 16  ;;  %v14777_v18 = vld [vmem:[%s13776_s20 + $0xb0] sm:$0x1] }
  0xb7   : > { %v2454_v62 = vshll.u32 %v11476_v17, 16  ;;  %v2427_v58 = vor.u32 %v2426_v41, %v2422_v48  ;;  %v2440_v9 = vrot.slane %v2438_v4, 5  ;;  %v14730_v25 = vrot.slane %v2444_v20, 5 }
  0xb8   : > { %v11548_v26 = vrot.slane %v11532_v35, 9  ;;  %v2418_v22 = vrot.slane %v2417_v44, 4  ;;  %v2450_v63 = vrot.slane %v2448_v5, 4  ;;  %v2984_v12 = vrot.slane %v14677_v8, 5  ;;  %v11535_v5 = vld [vmem:[%s13776_s20 + $0xa8] sm:$0xe] }
  0xb9   : > { %v14732_v40 = vrot.slane %v2454_v62, 5  ;;  %12846 = vmatmul.mubr.msk.bf16.gmra.mxu0 %vm800_vm3, %v14561_v55  ;;  %12884 = vmatmul.mubr.msk.bf16.gmra.mxu1 %vm800_vm3, %v11562_v60  ;;  %v2428_v43 = vrot.slane %v2427_v58, 4  ;;  %v2441_v53 = vor.u32 %v2440_v9, %v2437_v31  ;;  %v2987_v28 = vrot.slane %v14684_v3, 5 }
  0xba   : > { %v11549_v32 = vrot.slane %v11533_v38, 9  ;;  %12849 = vmatprep.mubr.msk.bf16.mxu0 %vm800_vm3, %v14621_v34  ;;  %12887 = vmatprep.mubr.msk.bf16.mxu1 %vm800_vm3, %v11563_v29  ;;  %v2423_v39 = vsel %vm13804_vm4, %v2418_v22, %v2422_v48  ;;  %v2451_v55 = vor.u32 %v2450_v63, %v14730_v25  ;;  %v2985_v8 = vsel %vm14066_vm7, %v11548_v26, %v2984_v12  ;;  %v11478_v34 = vld [vmem:[%s13776_s20 + $0xa0] sm:$0xf]  ;;  %v11480_v29 = vld [vmem:[%s13776_s20 + $0xa8] sm:$0xf] }
  0xbb   : > { %v2986_v45 = vrot.slane %v2984_v12, 4  ;;  %v2433_v46 = vsel %vm13804_vm4, %v2428_v43, %v2432_v42  ;;  %v14750_v10 = vrot.slane %v2441_v53, 4  ;;  %v2991_v19 = vrot.slane %v11475_v57, 5  ;;  %v11534_v48 = vld [vmem:[%s13776_s20 + $0x9c] sm:$0xe] }
  0xbc   : > { %v2994_v3 = vrot.slane %v11476_v17, 5  ;;  %v11564_v33 = vcombine.low %v14719_v0, %v14727_v27  ;;  %v2452_v24 = vrot.slane %v2451_v55, 4  ;;  %v2459_v60 = vshrl.u32 %v11477_v13, 16 }
  0xbd   : > { %v2988_v50 = vsel %vm14066_vm7, %v2986_v45, %v2987_v28  ;;  %v14760_v47 = vcombine.low %v2423_v39, %v2433_v46  ;;  %v2447_v23 = vsel %vm13804_vm4, %v14750_v10, %v14730_v25  ;;  %v2992_v61 = vsel %vm14066_vm7, %v11549_v32, %v2991_v19  ;;  %v11483_v25 = vld [vmem:[%s13776_s20 + $0xb4] sm:$0xf]  ;;  %v14795_v28 = vld [vmem:[%s13776_s20 + $0xb8] sm:$0xf] }
  0xbe   : > { %v2993_v6 = vrot.slane %v2991_v19, 4  ;;  %v11565_v15 = vcombine.low %v2985_v8, %v2988_v50  ;;  %v2461_v56 = vrot.slane %v2459_v60, 4  ;;  %v2462_v54 = vshll.u32 %v11477_v13, 16  ;;  %v14803_v8 = vld [vmem:[%s13776_s20 + $0xbc] sm:$0x1] }
  0xbf   : > { %v2468_v49 = vshll.u32 %v11478_v34, 16  ;;  %v2457_v21 = vsel %vm13804_vm4, %v2452_v24, %v14732_v40  ;;  %v2472_v0 = vshrl.u32 %v11478_v34, 16  ;;  %v2478_v7 = vshll.u32 %v14758_v51, 16 }
  0xc0   : > { %v2995_v57 = vsel %vm14066_vm7, %v2993_v6, %v2994_v3  ;;  %v2464_v35 = vrot.slane %v2462_v54, 5  ;;  %v2483_v1 = vshrl.u32 %v11480_v29, 16  ;;  %v2486_v41 = vshll.u32 %v11480_v29, 16  ;;  %v11486_v3 = vld [vmem:[%s13776_s20 + $0xc0] sm:$0xf] }
  0xc1   : > { %v11566_v17 = vcombine.low %v2992_v61, %v2995_v57  ;;  %v2470_v27 = vrot.slane %v2468_v49, 5  ;;  %12850 = vmatmul.mubr.msk.bf16.gmra.mxu0 %vm800_vm3, %v14642_v14  ;;  %12888 = vmatmul.mubr.msk.bf16.gmra.mxu1 %vm800_vm3, %v11564_v33  ;;  %v2474_v52 = vrot.slane %v2472_v0, 4  ;;  %v2480_v38 = vrot.slane %v2478_v7, 5  ;;  %v14824_v29 = vld [vmem:[%s13776_s20 + $0xc8] sm:$0x1] }
  0xc2   : > { %v2492_v42 = vshll.u32 %v11481_v16, 16  ;;  %12853 = vmatprep.mubr.msk.bf16.mxu0 %vm800_vm3, %v14700_v30  ;;  %12891 = vmatprep.mubr.msk.bf16.mxu1 %vm800_vm3, %v11565_v15  ;;  %v2465_v4 = vor.u32 %v2464_v35, %v2461_v56  ;;  %v2485_v20 = vrot.slane %v2483_v1, 4  ;;  %v2496_v44 = vshrl.u32 %v11481_v16, 16  ;;  %v11536_v49 = vld [vmem:[%s13776_s20 + $0xb4] sm:$0xe] }
  0xc3   : > { %v2502_v31 = vshll.u32 %v14777_v18, 16  ;;  %v2475_v14 = vor.u32 %v2474_v52, %v2470_v27  ;;  %v2488_v62 = vrot.slane %v2486_v41, 5  ;;  %v11550_v9 = vrot.slane %v11534_v48, 9  ;;  %v11537_v35 = vld [vmem:[%s13776_s20 + $0xc0] sm:$0xe] }
  0xc4   : > { %v14788_v58 = vrot.slane %v2492_v42, 5  ;;  %v2466_v26 = vrot.slane %v2465_v4, 4  ;;  %v2498_v22 = vrot.slane %v2496_v44, 4  ;;  %v2998_v30 = vrot.slane %v11478_v34, 5 }
  0xc5   : > { %v14791_v63 = vrot.slane %v2502_v31, 5  ;;  %v2476_v40 = vrot.slane %v2475_v14, 4  ;;  %v2489_v12 = vor.u32 %v2488_v62, %v2485_v20  ;;  %v3001_v43 = vrot.slane %v14758_v51, 5  ;;  %v14816_v51 = vld [vmem:[%s13776_s20 + $0xc4] sm:$0xf] }
  0xc6   : > { %v11551_v53 = vrot.slane %v11535_v5, 9  ;;  %v2471_v32 = vsel %vm13804_vm4, %v2466_v26, %v2470_v27  ;;  %v2499_v13 = vor.u32 %v2498_v22, %v14788_v58  ;;  %v2999_v39 = vsel %vm14066_vm7, %v11550_v9, %v2998_v30 }
  0xc7   : > { %v3000_v55 = vrot.slane %v2998_v30, 4  ;;  %v2481_v45 = vsel %vm13804_vm4, %v2476_v40, %v2480_v38  ;;  %v14807_v46 = vrot.slane %v2489_v12, 4  ;;  %v3005_v10 = vrot.slane %v11481_v16, 5  ;;  %v11652_v30 = vld [vmem:[%s13776_s20 + $0x18] sm:$0xf] }
  0xc8   : > { %v3008_v19 = vrot.slane %v14777_v18, 5  ;;  %v11501_v34 = vcombine.low %v2447_v23, %v2457_v21  ;;  %v14811_v33 = vrot.slane %v2499_v13, 4  ;;  %v2507_v50 = vshrl.u32 %v11483_v25, 16 }
  0xc9   : > { %v3002_v24 = vsel %vm14066_vm7, %v3000_v55, %v3001_v43  ;;  %12854 = vmatmul.mubr.msk.bf16.gmra.mxu0 %vm800_vm3, %v14715_v59  ;;  %12892 = vmatmul.mubr.msk.bf16.gmra.mxu1 %vm800_vm3, %v11566_v17  ;;  %v11502_v60 = vcombine.low %v2471_v32, %v2481_v45  ;;  %v3006_v6 = vsel %vm14066_vm7, %v11551_v53, %v3005_v10  ;;  %v3007_v23 = vrot.slane %v3005_v10, 4 }
  0xca   : > { %v11567_v61 = vcombine.low %v2999_v39, %v3002_v24  ;;  %12857 = vmatprep.mubr.msk.bf16.mxu0 %vm800_vm3, %v14760_v47  ;;  %v2495_v15 = vsel %vm13804_vm4, %v14807_v46, %v14788_v58  ;;  %v2509_v59 = vrot.slane %v2507_v50, 4  ;;  %v2510_v56 = vshll.u32 %v11483_v25, 16 }
  0xcb   : > { %v2516_v54 = vshll.u32 %v14795_v28, 16  ;;  %v2505_v16 = vsel %vm13804_vm4, %v14811_v33, %v14791_v63  ;;  %v3009_v47 = vsel %vm14066_vm7, %v3007_v23, %v3008_v19  ;;  %v2520_v21 = vshrl.u32 %v14795_v28, 16  ;;  %v11655_v19 = vld [vmem:[%s13776_s20 + $0x24] sm:$0xf] }
  0xcc   : > { %12895 = vmatprep.mubr.msk.bf16.mxu1 %vm800_vm3, %v11567_v61  ;;  %v2526_v57 = vshll.u32 %v14803_v8, 16  ;;  %v11568_v0 = vcombine.low %v3006_v6, %v3009_v47  ;;  %v2512_v7 = vrot.slane %v2510_v56, 5  ;;  %v2531_v17 = vshrl.u32 %v11486_v3, 16  ;;  %v14879_v6 = vld [vmem:[%s13776_s20 + $0x28] sm:$0xf] }
  0xcd   : > { %v2518_v18 = vrot.slane %v2516_v54, 5  ;;  %v2522_v27 = vrot.slane %v2520_v21, 4  ;;  %v2534_v48 = vshll.u32 %v11486_v3, 16  ;;  %v2540_v52 = vshll.u32 %v14816_v51, 16 }
  0xce   : > { %v2528_v1 = vrot.slane %v2526_v57, 5  ;;  %v2513_v38 = vor.u32 %v2512_v7, %v2509_v59  ;;  %v2533_v41 = vrot.slane %v2531_v17, 4  ;;  %v2544_v42 = vshrl.u32 %v14816_v51, 16  ;;  %v11658_v7 = vld [vmem:[%s13776_s20 + $0x30] sm:$0xf] }
  0xcf   : > { %v2550_v4 = vshll.u32 %v14824_v29, 16  ;;  %v2523_v20 = vor.u32 %v2522_v27, %v2518_v18  ;;  %v2536_v44 = vrot.slane %v2534_v48, 5  ;;  %v14847_v31 = vrot.slane %v2540_v52, 5 }
  0xd0   : > { %v11552_v5 = vrot.slane %v11536_v49, 9  ;;  %v2514_v14 = vrot.slane %v2513_v38, 4  ;;  %v2546_v62 = vrot.slane %v2544_v42, 4  ;;  %v3012_v9 = vrot.slane %v14795_v28, 5  ;;  %v11653_v28 = vld [vmem:[%s13776_s20 + $0x1c] sm:$0xf] }
  0xd1   : > { %v14849_v58 = vrot.slane %v2550_v4, 5  ;;  %12858 = vmatmul.mubr.msk.bf16.gmra.mxu0 %vm800_vm3, %v11501_v34  ;;  %12896 = vmatmul.mubr.msk.bf16.gmra.mxu1 %vm800_vm3, %v11568_v0  ;;  %v2524_v25 = vrot.slane %v2523_v20, 4  ;;  %v2537_v26 = vor.u32 %v2536_v44, %v2533_v41  ;;  %v3015_v22 = vrot.slane %v14803_v8, 5  ;;  %v11654_v8 = vld [vmem:[%s13776_s20 + $0x20] sm:$0x1]  ;;  %v13489_v4 = vld [vmem:[%s13776_s20 + $0x18] sm:$0xff]  }
  0xd2   : > { %v11553_v63 = vrot.slane %v11537_v35, 9  ;;  %12861 = vmatprep.mubr.msk.bf16.mxu0 %vm800_vm3, %v11502_v60  ;;  %v2519_v40 = vsel %vm13804_vm4, %v2514_v14, %v2518_v18  ;;  %v2547_v12 = vor.u32 %v2546_v62, %v14847_v31  ;;  %v3013_v43 = vsel %vm14066_vm7, %v11552_v5, %v3012_v9  ;;  %v11660_v5 = vld [vmem:[%s13776_s20 + $0x38] sm:$0x1] }
  0xd3   : > { %v3014_v53 = vrot.slane %v3012_v9, 4  ;;  %v2529_v32 = vsel %vm13804_vm4, %v2524_v25, %v2528_v1  ;;  %v2538_v13 = vrot.slane %v2537_v26, 4  ;;  %v3019_v39 = vrot.slane %v14816_v51, 5  ;;  %v11659_v1 = vld [vmem:[%s13776_s20 + $0x34] sm:$0xf] }
  0xd4   : > { %v3022_v55 = vrot.slane %v14824_v29, 5  ;;  %v2548_v45 = vrot.slane %v2547_v12, 4  ;;  %v4208_v10 = vsel %vm849_vm0, %v14393_v2, 0  ;;  %v11503_v3 = vcombine.low %v2495_v15, %v2505_v16  ;;  %v14888_v16 = vld [vmem:[%s13776_s20 + $0x2c] sm:$0x1] }
  0xd5   : > { %v3016_v46 = vsel %vm14066_vm7, %v3014_v53, %v3015_v22  ;;  %v3020_v33 = vsel %vm14066_vm7, %v11553_v63, %v3019_v39  ;;  %v3021_v24 = vrot.slane %v3019_v39, 4  ;;  %12938 = vmatpush3.bf16.msra.mxu1 %v4208_v10  ;;  %v11504_v50 = vcombine.low %v2519_v40, %v2529_v32  ;;  %v11661_v26 = vld [vmem:[%s13776_s20 + $0x3c] sm:$0xf] }
  0xd6   : > { %v11569_v34 = vcombine.low %v3013_v43, %v3016_v46  ;;  %v2543_v51 = vsel %vm13804_vm4, %v2538_v13, %v14847_v31  ;;  %v3726_v60 = vshrl.u32 %v11652_v30, 16  ;;  %v3729_v61 = vshll.u32 %v11652_v30, 16 }
  0xd7   : > { %v2553_v2 = vsel %vm13804_vm4, %v2548_v45, %v14849_v58  ;;  %v3023_v23 = vsel %vm14066_vm7, %v3021_v24, %v3022_v55  ;;  %v3735_v29 = vshll.u32 %v11653_v28, 16  ;;  %v3739_v15 = vshrl.u32 %v11653_v28, 16  ;;  %v11662_v45 = vld [vmem:[%s13776_s20 + $0x40] sm:$0xf]  ;;  %v11663_v24 = vld [vmem:[%s13776_s20 + $0x44] sm:$0x1] }
  0xd8   : > { %12899 = vmatprep.mubr.msk.bf16.mxu1 %vm800_vm3, %v11569_v34  ;;  %v11570_v59 = vcombine.low %v3020_v33, %v3023_v23  ;;  %v3728_v56 = vrot.slane %v3726_v60, 4  ;;  %v3731_v54 = vrot.slane %v3729_v61, 5  ;;  %v3745_v49 = vshll.u32 %v11654_v8, 16 }
  0xd9   : > { %12862 = vmatmul.mubr.msk.bf16.gmra.mxu0 %vm800_vm3, %v11503_v3  ;;  %v3737_v47 = vrot.slane %v3735_v29, 5  ;;  %v3741_v21 = vrot.slane %v3739_v15, 4  ;;  %v3750_v57 = vshrl.u32 %v11655_v19, 16  ;;  %v3753_v0 = vshll.u32 %v11655_v19, 16 }
  0xda   : > { %12865 = vmatprep.mubr.msk.bf16.mxu0 %vm800_vm3, %v11504_v50  ;;  %12900 = vmatmul.mubr.msk.bf16.gmra.mxu1 %vm800_vm3, %v11570_v59  ;;  %v3732_v18 = vor.u32 %v3731_v54, %v3728_v56  ;;  %v3747_v17 = vrot.slane %v3745_v49, 5  ;;  %v3759_v35 = vshll.u32 %v14879_v6, 16  ;;  %v3763_v27 = vshrl.u32 %v14879_v6, 16  ;;  %v11664_v49 = vld [vmem:[%s13776_s20 + $0x48] sm:$0xf] }
  0xdb   : > { %v12737_v48 = vpop.f32.mrf.mxu1  ;;  %v3742_v52 = vor.u32 %v3741_v21, %v3737_v47  ;;  %v3752_v38 = vrot.slane %v3750_v57, 4  ;;  %v3755_v41 = vrot.slane %v3753_v0, 5  ;;  %v3769_v42 = vshll.u32 %v14888_v16, 16  ;;  %v13491_v21 = vld [vmem:[%s13776_s20 + $0x30] sm:$0xff]  }
  0xdc   : > { %v3733_v20 = vrot.slane %v3732_v18, 4  ;;  %v3761_v44 = vrot.slane %v3759_v35, 5  ;;  %v3765_v31 = vrot.slane %v3763_v27, 4  ;;  %v11505_v14 = vcombine.low %v2543_v51, %v2553_v2  ;;  %v13490_v2 = vld [vmem:[%s13776_s20 + $0x24] sm:$0xff]   ;;  %v11665_v18 = vld [vmem:[%s13776_s20 + $0x4c] sm:$0xf] }
  0xdd   : > { %v3743_v62 = vrot.slane %v3742_v52, 4  ;;  %v1179_v58 = vpop.f32.mrf.mxu1  ;;  %v3756_v9 = vor.u32 %v3755_v41, %v3752_v38  ;;  %v3771_v25 = vrot.slane %v3769_v42, 5  ;;  %v3774_v30 = vshrl.u32 %v11658_v7, 16  ;;  %v11666_v38 = vld [vmem:[%s13776_s20 + $0x50] sm:$0x1] }
  0xde   : > { %v3738_v22 = vsel %vm13804_vm4, %v3733_v20, %v3737_v47  ;;  %v3766_v63 = vor.u32 %v3765_v31, %v3761_v44  ;;  %v3777_v40 = vshll.u32 %v11658_v7, 16  ;;  %v3783_v28 = vshll.u32 %v11659_v1, 16  ;;  %v11667_v41 = vld [vmem:[%s13776_s20 + $0x54] sm:$0xf] }
  0xdf   : > { %v3748_v12 = vsel %vm13804_vm4, %v3743_v62, %v3747_v17  ;;  %v3757_v43 = vrot.slane %v3756_v9, 4  ;;  %v12738_v53 = vpop.f32.mrf.mxu1  ;;  %v3787_v32 = vshrl.u32 %v11659_v1, 16  ;;  %v3776_v55 = vrot.slane %v3774_v30, 4 }
  0xe0   : > { %v11701_v13 = vcombine.low %v3738_v22, %v3748_v12  ;;  %v3767_v39 = vrot.slane %v3766_v63, 4  ;;  %v3779_v8 = vrot.slane %v3777_v40, 5  ;;  %v3785_v3 = vrot.slane %v3783_v28, 5  ;;  %v14936_v63 = vld [vmem:[%s13776_s20 + $0x58] sm:$0xf] }
  0xe1   : > { %12866 = vmatmul.mubr.msk.bf16.gmra.mxu0 %vm800_vm3, %v11505_v14  ;;  %v12703_v46 = vpop.f32.mrf.mxu0  ;;  %v3762_v10 = vsel %vm13804_vm4, %v3757_v43, %v3761_v44  ;;  %v1182_v19 = vpop.f32.mrf.mxu1  ;;  %v3789_v34 = vrot.slane %v3787_v32, 4  ;;  %v3793_v33 = vshll.u32 %v11660_v5, 16  ;;  %v3798_v61 = vshrl.u32 %v11661_v26, 16 }
  0xe2   : > { %12905 = vmatprep.mubr.msk.bf16.mxu0 %vm800_vm3, %v13489_v4  ;;  %v14911_v50 = vadd.f32 %v12737_v48, %v12703_v46  ;;  %12939 = vmatprep.mubr.msk.bf16.mxu1 %vm800_vm3, %v11701_v13  ;;  %v3772_v51 = vsel %vm13804_vm4, %v3767_v39, %v3771_v25  ;;  %v3780_v60 = vor.u32 %v3779_v8, %v3776_v55  ;;  %v3801_v54 = vshll.u32 %v11661_v26, 16  ;;  %v14941_v39 = vld [vmem:[%s13776_s20 + $0x5c] sm:$0x1] }
  0xe3   : > { %v887_v23 = vpop.f32.mrf.mxu0  ;;  %v11702_v29 = vcombine.low %v3762_v10, %v3772_v51  ;;  %v12741_v15 = vpop.f32.mrf.mxu1  ;;  %v3790_v59 = vor.u32 %v3789_v34, %v3785_v3  ;;  %v3795_v56 = vrot.slane %v3793_v33, 5  ;;  %v3800_v0 = vrot.slane %v3798_v61, 4  ;;  %v13493_v33 = vld [vmem:[%s13776_s20 + $0x48] sm:$0xff]   ;;  %v11670_v61 = vld [vmem:[%s13776_s20 + $0x60] sm:$0xf] }
  0xe4   : > { %v14918_v47 = vadd.f32 %v1179_v58, %v887_v23  ;;  %v3781_v57 = vrot.slane %v3780_v60, 4  ;;  %v3807_v7 = vshll.u32 %v11662_v45, 16  ;;  %v3803_v1 = vrot.slane %v3801_v54, 5 }
  0xe5   : > { %12940 = vmatmul.mubr.msk.bf16.vlgmr.msra.gmra.mxu1 %vm800_vm3, %v11702_v29  ;;  %v12704_v17 = vpop.f32.mrf.mxu0  ;;  %v3791_v35 = vrot.slane %v3790_v59, 4  ;;  %v1195_v27 = vpop.f32.mrf.mxu1  ;;  %v3811_v48 = vshrl.u32 %v11662_v45, 16  ;;  %v3817_v52 = vshll.u32 %v11663_v24, 16  ;;  %v4678_v42 = vsel %vm849_vm0, %v14640_v11, 0  ;;  %v13492_v45 = vld [vmem:[%s13776_s20 + $0x3c] sm:$0xff]  }
  0xe6   : > { %v14927_v4 = vadd.f32 %v12738_v53, %v12704_v17  ;;  %v3786_v20 = vsel %vm13804_vm4, %v3781_v57, %v3785_v3  ;;  %v3809_v44 = vrot.slane %v3807_v7, 5  ;;  %v3804_v14 = vor.u32 %v3803_v1, %v3800_v0  ;;  %v14958_v0 = vld [vmem:[%s13776_s20 + $0x64] sm:$0xf] }
  0xe7   : > { %v890_v31 = vpop.f32.mrf.mxu0  ;;  %v3796_v5 = vsel %vm13804_vm4, %v3791_v35, %v3795_v56  ;;  %v3813_v62 = vrot.slane %v3811_v48, 4  ;;  %v3819_v58 = vrot.slane %v3817_v52, 5  ;;  %v12742_v9 = vpop.f32.mrf.mxu1  ;;  %v3822_v22 = vshrl.u32 %v11664_v49, 16  ;;  %v14962_v52 = vld [vmem:[%s13776_s20 + $0x68] sm:$0x1] }
  0xe8   : > { %v14933_v25 = vadd.f32 %v1182_v19, %v890_v31  ;;  %v11703_v26 = vcombine.low %v3786_v20, %v3796_v5  ;;  %v3825_v11 = vshll.u32 %v11664_v49, 16  ;;  %v3805_v30 = vrot.slane %v3804_v14, 4 }
  0xe9   : > { %12906 = vmatmul.mubr.msk.bf16.vlgmr.msra.gmra.mxu0 %vm800_vm3, %v13490_v2  ;;  %v3814_v40 = vor.u32 %v3813_v62, %v3809_v44  ;;  %v1198_v12 = vpop.f32.mrf.mxu1  ;;  %v3831_v43 = vshll.u32 %v11665_v18, 16  ;;  %v3835_v53 = vshrl.u32 %v11665_v18, 16  ;;  %v3824_v28 = vrot.slane %v3822_v22, 4 }
  0xea   : > { %12972 = vmatpush3.bf16.msra.mxu0 %v4678_v42  ;;  %12909 = vmatprep.mubr.msk.bf16.mxu0 %vm800_vm3, %v13491_v21  ;;  %v3827_v32 = vrot.slane %v3825_v11, 5  ;;  %v3841_v13 = vshll.u32 %v11666_v38, 16  ;;  %v3846_v55 = vshrl.u32 %v11667_v41, 16  ;;  %v3810_v46 = vsel %vm13804_vm4, %v3805_v30, %v3809_v44  ;;  %v11673_v42 = vld [vmem:[%s13776_s20 + $0x6c] sm:$0xf] }
  0xeb   : > { %v12707_v8 = vpop.f32.mrf.mxu0  ;;  %12943 = vmatprep.mubr.msk.bf16.mxu1 %vm800_vm3, %v11703_v26  ;;  %v3815_v10 = vrot.slane %v3814_v40, 4  ;;  %v3833_v19 = vrot.slane %v3831_v43, 5  ;;  %v3837_v3 = vrot.slane %v3835_v53, 4  ;;  %v3849_v56 = vshll.u32 %v11667_v41, 16 }
  0xec   : > { %v14947_v34 = vadd.f32 %v12741_v15, %v12707_v8  ;;  %v3828_v24 = vor.u32 %v3827_v32, %v3824_v28  ;;  %v3843_v51 = vrot.slane %v3841_v13, 5  ;;  %v3848_v60 = vrot.slane %v3846_v55, 4  ;;  %v14979_v32 = vld [vmem:[%s13776_s20 + $0x70] sm:$0xf] }
  0xed   : > { %v903_v2 = vpop.f32.mrf.mxu0  ;;  %v3820_v23 = vsel %vm13804_vm4, %v3815_v10, %v3819_v58  ;;  %v12745_v29 = vpop.f32.mrf.mxu1  ;;  %v3838_v59 = vor.u32 %v3837_v3, %v3833_v19  ;;  %v3855_v54 = vshll.u32 %v14936_v63, 16  ;;  %v3859_v57 = vshrl.u32 %v14936_v63, 16 }
  0xee   : > { %v14954_v49 = vadd.f32 %v1195_v27, %v903_v2  ;;  %v11704_v15 = vcombine.low %v3810_v46, %v3820_v23  ;;  %v3829_v21 = vrot.slane %v3828_v24, 4  ;;  %v3851_v35 = vrot.slane %v3849_v56, 5  ;;  %v13494_v46 = vld [vmem:[%s13776_s20 + $0x54] sm:$0xff]   ;;  %v13495_v2 = vld [vmem:[%s13776_s20 + $0x60] sm:$0xff]  }
  0xef   : > { %v12708_v7 = vpop.f32.mrf.mxu0  ;;  %v3839_v18 = vrot.slane %v3838_v59, 4  ;;  %v1211_v17 = vpop.f32.mrf.mxu1  ;;  %v3857_v1 = vrot.slane %v3855_v54, 5  ;;  %v3865_v48 = vshll.u32 %v14941_v39, 16  ;;  %v3861_v41 = vrot.slane %v3859_v57, 4  ;;  %v11676_v59 = vld [vmem:[%s13776_s20 + $0x78] sm:$0xf] }
  0xf0   : > { %12944 = vmatmul.mubr.msk.bf16.gmra.mxu1 %vm800_vm3, %v11704_v15  ;;  %v14965_v27 = vadd.f32 %v12742_v9, %v12708_v7  ;;  %v3834_v38 = vsel %vm13804_vm4, %v3829_v21, %v3833_v19  ;;  %v3852_v31 = vor.u32 %v3851_v35, %v3848_v60  ;;  %v3870_v62 = vshrl.u32 %v11670_v61, 16 }
  0xf1   : > { %12910 = vmatmul.mubr.msk.bf16.gmra.mxu0 %vm800_vm3, %v13492_v45  ;;  %v906_v20 = vpop.f32.mrf.mxu0  ;;  %v3844_v44 = vsel %vm13804_vm4, %v3839_v18, %v3843_v51  ;;  %v3867_v5 = vrot.slane %v3865_v48, 5  ;;  %v12746_v14 = vpop.f32.mrf.mxu1  ;;  %v3862_v26 = vor.u32 %v3861_v41, %v3857_v1  ;;  %v3873_v22 = vshll.u32 %v11670_v61, 16  ;;  %v14986_v45 = vld [vmem:[%s13776_s20 + $0x74] sm:$0x1]  ;;  %v14998_v18 = vld [vmem:[%s13776_s20 + $0x7c] sm:$0xf] }
  0xf2   : > { %v14973_v58 = vadd.f32 %v1198_v12, %v906_v20  ;;  %12913 = vmatprep.mubr.msk.bf16.mxu0 %vm800_vm3, %v13493_v33  ;;  %v11705_v9 = vcombine.low %v3834_v38, %v3844_v44  ;;  %v3853_v30 = vrot.slane %v3852_v31, 4  ;;  %v3872_v43 = vrot.slane %v3870_v62, 4  ;;  %v15005_v38 = vld [vmem:[%s13776_s20 + $0x80] sm:$0x1] }
  0xf3   : > { %v12711_v11 = vpop.f32.mrf.mxu0  ;;  %v1214_v40 = vpop.f32.mrf.mxu1  ;;  %v3879_v53 = vshll.u32 %v14958_v0, 16  ;;  %v3883_v28 = vshrl.u32 %v14958_v0, 16  ;;  %v3863_v13 = vrot.slane %v3862_v26, 4  ;;  %v3875_v55 = vrot.slane %v3873_v22, 5  ;;  %v11679_v26 = vld [vmem:[%s13776_s20 + $0x84] sm:$0xf] }
  0xf4   : > { %v14981_v12 = vadd.f32 %v12745_v29, %v12711_v11  ;;  %12947 = vmatprep.mubr.msk.bf16.mxu1 %vm800_vm3, %v11705_v9  ;;  %v3889_v8 = vshll.u32 %v14962_v52, 16  ;;  %v3858_v19 = vsel %vm13804_vm4, %v3853_v30, %v3857_v1  ;;  %v3894_v51 = vshrl.u32 %v11673_v42, 16  ;;  %v13496_v22 = vld [vmem:[%s13776_s20 + $0x6c] sm:$0xff]  }
  0xf5   : > { %v919_v10 = vpop.f32.mrf.mxu0  ;;  %v12749_v3 = vpop.f32.mrf.mxu1  ;;  %v3881_v33 = vrot.slane %v3879_v53, 5  ;;  %v3885_v24 = vrot.slane %v3883_v28, 4  ;;  %v3868_v61 = vsel %vm13804_vm4, %v3863_v13, %v3867_v5  ;;  %v3876_v23 = vor.u32 %v3875_v55, %v3872_v43 }
  0xf6   : > { %v14991_v60 = vadd.f32 %v1211_v17, %v919_v10  ;;  %v3891_v29 = vrot.slane %v3889_v8, 5  ;;  %v11706_v56 = vcombine.low %v3858_v19, %v3868_v61  ;;  %v3896_v57 = vrot.slane %v3894_v51, 4 }
  0xf7   : > { %v12712_v54 = vpop.f32.mrf.mxu0  ;;  %v3886_v15 = vor.u32 %v3885_v24, %v3881_v33  ;;  %v1227_v21 = vpop.f32.mrf.mxu1  ;;  %v3897_v7 = vshll.u32 %v11673_v42, 16  ;;  %v3877_v17 = vrot.slane %v3876_v23, 4  ;;  %v3903_v1 = vshll.u32 %v14979_v32, 16  ;;  %v13497_v23 = vld [vmem:[%s13776_s20 + $0x78] sm:$0xff]  }
  0xf8   : > { %v15000_v35 = vadd.f32 %v12746_v14, %v12712_v54  ;;  %v3907_v48 = vshrl.u32 %v14979_v32, 16  ;;  %12948 = vmatmul.mubr.msk.bf16.gmra.mxu1 %vm800_vm3, %v11706_v56  ;;  %v3913_v44 = vshll.u32 %v14986_v45, 16  ;;  %v3918_v28 = vshrl.u32 %v11676_v59, 16  ;;  %v11682_v54 = vld [vmem:[%s13776_s20 + $0x90] sm:$0xf] }
  0xf9   : > { %12914 = vmatmul.mubr.msk.bf16.gmra.mxu0 %vm800_vm3, %v13494_v46  ;;  %v922_v41 = vpop.f32.mrf.mxu0  ;;  %v3887_v20 = vrot.slane %v3886_v15, 4  ;;  %v3899_v42 = vrot.slane %v3897_v7, 5  ;;  %v12750_v31 = vpop.f32.mrf.mxu1  ;;  %v3882_v14 = vsel %vm13804_vm4, %v3877_v17, %v3881_v33  ;;  %v3905_v62 = vrot.slane %v3903_v1, 5  ;;  %v15021_v46 = vld [vmem:[%s13776_s20 + $0x88] sm:$0xf] }
  0xfa   : > { %v15010_v5 = vadd.f32 %v1214_v40, %v922_v41  ;;  %12917 = vmatprep.mubr.msk.bf16.mxu0 %vm800_vm3, %v13495_v2  ;;  %v3909_v9 = vrot.slane %v3907_v48, 4  ;;  %v3915_v43 = vrot.slane %v3913_v44, 5  ;;  %v3921_v55 = vshll.u32 %v11676_v59, 16  ;;  %v15030_v59 = vld [vmem:[%s13776_s20 + $0x8c] sm:$0x1] }
  0xfb   : > { %v3892_v11 = vsel %vm13804_vm4, %v3887_v20, %v3891_v29  ;;  %v3900_v30 = vor.u32 %v3899_v42, %v3896_v57  ;;  %v1230_v53 = vpop.f32.mrf.mxu1  ;;  %v3927_v8 = vshll.u32 %v14998_v18, 16  ;;  %v3920_v33 = vrot.slane %v3918_v28, 4 }
  0xfc   : > { %v11707_v40 = vcombine.low %v3882_v14, %v3892_v11  ;;  %v3910_v13 = vor.u32 %v3909_v9, %v3905_v62  ;;  %v3931_v24 = vshrl.u32 %v14998_v18, 16  ;;  %v3937_v51 = vshll.u32 %v15005_v38, 16 }
  0xfd   : > { %v12715_v10 = vpop.f32.mrf.mxu0  ;;  %v3901_v19 = vrot.slane %v3900_v30, 4  ;;  %v3923_v29 = vrot.slane %v3921_v55, 5  ;;  %v3929_v56 = vrot.slane %v3927_v8, 5  ;;  %v3942_v48 = vshrl.u32 %v11679_v26, 16 }
  0xfe   : > { %v15025_v61 = vadd.f32 %v12749_v3, %v12715_v10  ;;  %12951 = vmatprep.mubr.msk.bf16.mxu1 %vm800_vm3, %v11707_v40  ;;  %v3911_v2 = vrot.slane %v3910_v13, 4  ;;  %v3933_v17 = vrot.slane %v3931_v24, 4  ;;  %v3939_v1 = vrot.slane %v3937_v51, 5 }
  0xff   : > { %v935_v15 = vpop.f32.mrf.mxu0  ;;  %v3906_v57 = vsel %vm13804_vm4, %v3901_v19, %v3905_v62  ;;  %v12753_v7 = vpop.f32.mrf.mxu1  ;;  %v3924_v20 = vor.u32 %v3923_v29, %v3920_v33  ;;  %v3945_v42 = vshll.u32 %v11679_v26, 16  ;;  %v3944_v62 = vrot.slane %v3942_v48, 4  ;;  %v15046_v26 = vld [vmem:[%s13776_s20 + $0x94] sm:$0xf]  ;;  %v11685_v33 = vld [vmem:[%s13776_s20 + $0x9c] sm:$0xf] }
 0x100   : > { %v15035_v41 = vadd.f32 %v1227_v21, %v935_v15  ;;  %v3916_v3 = vsel %vm13804_vm4, %v3911_v2, %v3915_v43  ;;  %v3934_v9 = vor.u32 %v3933_v17, %v3929_v56  ;;  %v3951_v30 = vshll.u32 %v15021_v46, 16  ;;  %v13498_v15 = vld [vmem:[%s13776_s20 + $0x84] sm:$0xff]  }
 0x101   : > { %12918 = vmatmul.mubr.msk.bf16.gmra.mxu0 %vm800_vm3, %v13496_v22  ;;  %v11708_v44 = vcombine.low %v3906_v57, %v3916_v3  ;;  %v12716_v14 = vpop.f32.mrf.mxu0  ;;  %v1243_v11 = vpop.f32.mrf.mxu1  ;;  %v3925_v21 = vrot.slane %v3924_v20, 4  ;;  %v3947_v40 = vrot.slane %v3945_v42, 5  ;;  %v3955_v43 = vshrl.u32 %v15021_v46, 16  ;;  %v15049_v22 = vld [vmem:[%s13776_s20 + $0x98] sm:$0x1] }
 0x102   : > { %v15041_v28 = vadd.f32 %v12750_v31, %v12716_v14  ;;  %12921 = vmatprep.mubr.msk.bf16.mxu0 %vm800_vm3, %v13497_v23  ;;  %v3935_v55 = vrot.slane %v3934_v9, 4  ;;  %v3953_v8 = vrot.slane %v3951_v30, 5  ;;  %v3961_v10 = vshll.u32 %v15030_v59, 16  ;;  %v15067_v9 = vld [vmem:[%s13776_s20 + $0xa0] sm:$0xf] }
 0x103   : > { %12952 = vmatmul.mubr.msk.bf16.gmra.mxu1 %vm800_vm3, %v11708_v44  ;;  %v938_v13 = vpop.f32.mrf.mxu0  ;;  %v12754_v31 = vpop.f32.mrf.mxu1  ;;  %v3966_v19 = vshrl.u32 %v11682_v54, 16  ;;  %v3930_v51 = vsel %vm13804_vm4, %v3925_v21, %v3929_v56  ;;  %v3948_v2 = vor.u32 %v3947_v40, %v3944_v62  ;;  %v3957_v23 = vrot.slane %v3955_v43, 4  ;;  %v13499_v56 = vld [vmem:[%s13776_s20 + $0x90] sm:$0xff]  }
 0x104   : > { %18909 = vst [vmem:[#allocation5_spill] sm:$0xff] %v15041_v28  ;;  %v15054_v24 = vadd.f32 %v1230_v53, %v938_v13  ;;  %v3940_v57 = vsel %vm13804_vm4, %v3935_v55, %v3939_v1  ;;  %v3963_v17 = vrot.slane %v3961_v10, 5  ;;  %v3969_v20 = vshll.u32 %v11682_v54, 16  ;;  %v15073_v13 = vld [vmem:[%s13776_s20 + $0xa4] sm:$0x1] }
 0x105   : > { %v12719_v29 = vpop.f32.mrf.mxu0  ;;  %v15061_v48 = vpop.f32.mrf.mxu1  ;;  %v3968_v3 = vrot.slane %v3966_v19, 4  ;;  %v11709_v53 = vcombine.low %v3930_v51, %v3940_v57  ;;  %v3949_v44 = vrot.slane %v3948_v2, 4  ;;  %v3958_v14 = vor.u32 %v3957_v23, %v3953_v8  ;;  %18913 = vst [vmem:[#allocation9_spill] sm:$0xff] %v15073_v13  ;;  %v11688_v19 = vld [vmem:[%s13776_s20 + $0xa8] sm:$0xf] }
 0x106   : > { %18910 = vst [vmem:[#allocation6_spill] sm:$0xff] %v15054_v24  ;;  %18911 = vst [vmem:[#allocation7_spill] sm:$0xff] %v15061_v48  ;;  %v15063_v42 = vadd.f32 %v12753_v7, %v12719_v29  ;;  %v3971_v21 = vrot.slane %v3969_v20, 5  ;;  %v3975_v1 = vshll.u32 %v15046_v26, 16  ;;  %v3979_v40 = vshrl.u32 %v15046_v26, 16 }
 0x107   : > { %v951_v62 = vpop.f32.mrf.mxu0  ;;  %v12757_v30 = vpop.f32.mrf.mxu1  ;;  %v3985_v43 = vshll.u32 %v15049_v22, 16  ;;  %12955 = vmatprep.mubr.msk.bf16.mxu1 %vm800_vm3, %v11709_v53  ;;  %v3954_v7 = vsel %vm13804_vm4, %v3949_v44, %v3953_v8  ;;  %v3959_v55 = vrot.slane %v3958_v14, 4  ;;  %v3990_v10 = vshrl.u32 %v11685_v33, 16  ;;  %v15088_v14 = vld [vmem:[%s13776_s20 + $0xac] sm:$0xf] }
 0x108   : > { %18912 = vst [vmem:[#allocation8_spill] sm:$0xff] %v15063_v42  ;;  %v15076_v54 = vadd.f32 %v1243_v11, %v951_v62  ;;  %v3972_v2 = vor.u32 %v3971_v21, %v3968_v3  ;;  %v3977_v23 = vrot.slane %v3975_v1, 5  ;;  %v3981_v29 = vrot.slane %v3979_v40, 4  ;;  %v15118_v24 = vld [vmem:[%s13776_s20 + $0xbc] sm:$0x1] }
 0x109   : > { %12922 = vmatmul.mubr.msk.bf16.gmra.mxu0 %vm800_vm3, %v13498_v15  ;;  %v12720_v51 = vpop.f32.mrf.mxu0  ;;  %v3987_v57 = vrot.slane %v3985_v43, 5  ;;  %v1259_v20 = vpop.f32.mrf.mxu1  ;;  %v3964_v11 = vsel %vm13804_vm4, %v3959_v55, %v3963_v17  ;;  %v3992_v8 = vrot.slane %v3990_v10, 4  ;;  %v3993_v44 = vshll.u32 %v11685_v33, 16  ;;  %v13500_v33 = vld [vmem:[%s13776_s20 + $0x9c] sm:$0xff]   ;;  %18921 = vst [vmem:[#allocation17_spill] sm:$0xff] %v15118_v24 }
 0x10a   : > { %18914 = vst [vmem:[#allocation10_spill] sm:$0xff] %v15076_v54  ;;  %v15084_v53 = vadd.f32 %v12754_v31, %v12720_v51  ;;  %12925 = vmatprep.mubr.msk.bf16.mxu0 %vm800_vm3, %v13499_v56  ;;  %v11710_v15 = vcombine.low %v3954_v7, %v3964_v11  ;;  %v3973_v3 = vrot.slane %v3972_v2, 4  ;;  %v3982_v21 = vor.u32 %v3981_v29, %v3977_v23  ;;  %v15096_v56 = vld [vmem:[%s13776_s20 + $0xb0] sm:$0x1]  ;;  %v11691_v29 = vld [vmem:[%s13776_s20 + $0xb4] sm:$0xf] }
 0x10b   : > { %v15090_v62 = vpop.f32.mrf.mxu0  ;;  %v3999_v1 = vshll.u32 %v15067_v9, 16  ;;  %v12758_v40 = vpop.f32.mrf.mxu1  ;;  %v3995_v17 = vrot.slane %v3993_v44, 5  ;;  %v4003_v31 = vshrl.u32 %v15067_v9, 16  ;;  %v4009_v43 = vshll.u32 %v15073_v13, 16  ;;  %18917 = vst [vmem:[#allocation13_spill] sm:$0xff] %v15096_v56 }
 0x10c   : > { %18915 = vst [vmem:[#allocation11_spill] sm:$0xff] %v15084_v53  ;;  %18916 = vst [vmem:[#allocation12_spill] sm:$0xff] %v15090_v62  ;;  %12956 = vmatmul.mubr.msk.bf16.gmra.mxu1 %vm800_vm3, %v11710_v15  ;;  %v3978_v7 = vsel %vm13804_vm4, %v3973_v3, %v3977_v23  ;;  %v3983_v55 = vrot.slane %v3982_v21, 4  ;;  %v4014_v2 = vshrl.u32 %v11688_v19, 16  ;;  %v13501_v62 = vld [vmem:[%s13776_s20 + $0xa8] sm:$0xff]   ;;  %v4017_v53 = vshll.u32 %v11688_v19, 16 }
 0x10d   : > { %v4001_v10 = vrot.slane %v3999_v1, 5  ;;  %v15102_v51 = vpop.f32.mrf.mxu1  ;;  %v3996_v11 = vor.u32 %v3995_v17, %v3992_v8  ;;  %v4005_v44 = vrot.slane %v4003_v31, 4  ;;  %v4011_v48 = vrot.slane %v4009_v43, 5  ;;  %v15111_v21 = vld [vmem:[%s13776_s20 + $0xb8] sm:$0xf] }
 0x10e   : > { %18918 = vst [vmem:[#allocation14_spill] sm:$0xff] %v15102_v51  ;;  %v3988_v15 = vsel %vm13804_vm4, %v3983_v55, %v3987_v57  ;;  %v4016_v42 = vrot.slane %v4014_v2, 4  ;;  %v4023_v23 = vshll.u32 %v15088_v14, 16  ;;  %v4027_v3 = vshrl.u32 %v15088_v14, 16  ;;  %18919 = vst [vmem:[#allocation15_spill] sm:$0xff] %v15111_v21 }
 0x10f   : > { %v12723_v54 = vpop.f32.mrf.mxu0  ;;  %v11711_v51 = vcombine.low %v3978_v7, %v3988_v15  ;;  %v3997_v8 = vrot.slane %v3996_v11, 4  ;;  %v4006_v17 = vor.u32 %v4005_v44, %v4001_v10  ;;  %v4019_v57 = vrot.slane %v4017_v53, 5  ;;  %v11694_v11 = vld [vmem:[%s13776_s20 + $0xc0] sm:$0xf]  ;;  %v13502_v44 = vld [vmem:[%s13776_s20 + $0xb4] sm:$0xff]  }
 0x110   : > { %v15113_v1 = vadd.f32 %v12757_v30, %v12723_v54  ;;  %v4025_v43 = vrot.slane %v4023_v23, 5  ;;  %v4029_v55 = vrot.slane %v4027_v3, 4  ;;  %v4033_v2 = vshll.u32 %v15096_v56, 16  ;;  %v13503_v56 = vld [vmem:[%s13776_s20 + $0xc0] sm:$0xff]  }
 0x111   : > { %12926 = vmatmul.mubr.msk.bf16.gmra.mxu0 %vm800_vm3, %v13500_v33  ;;  %v967_v19 = vpop.f32.mrf.mxu0  ;;  %v12761_v31 = vpop.f32.mrf.mxu1  ;;  %12959 = vmatprep.mubr.msk.bf16.mxu1 %vm800_vm3, %v11711_v51  ;;  %v4002_v54 = vsel %vm13804_vm4, %v3997_v8, %v4001_v10  ;;  %v4007_v7 = vrot.slane %v4006_v17, 4  ;;  %v4038_v33 = vshrl.u32 %v11691_v29, 16  ;;  %v4020_v15 = vor.u32 %v4019_v57, %v4016_v42  ;;  %v15134_v8 = vld [vmem:[%s13776_s20 + $0xc4] sm:$0xf] }
 0x112   : > { %18920 = vst [vmem:[#allocation16_spill] sm:$0xff] %v15113_v1  ;;  %v15121_v30 = vadd.f32 %v1259_v20, %v967_v19  ;;  %12929 = vmatprep.mubr.msk.bf16.mxu0 %vm800_vm3, %v13501_v62  ;;  %v4030_v23 = vor.u32 %v4029_v55, %v4025_v43  ;;  %v4035_v3 = vrot.slane %v4033_v2, 5  ;;  %v4041_v51 = vshll.u32 %v11691_v29, 16  ;;  %18924 = vst [vmem:[#allocation20_spill] sm:$0xff] %v15134_v8  ;;  %v15140_v29 = vld [vmem:[%s13776_s20 + $0xc8] sm:$0x1] }
 0x113   : > { %v12724_v53 = vpop.f32.mrf.mxu0  ;;  %v1275_v1 = vpop.f32.mrf.mxu1  ;;  %v4012_v20 = vsel %vm13804_vm4, %v4007_v7, %v4011_v48  ;;  %v4040_v10 = vrot.slane %v4038_v33, 4  ;;  %v4047_v62 = vshll.u32 %v15111_v21, 16  ;;  %v4021_v42 = vrot.slane %v4020_v15, 4  ;;  %18926 = vst [vmem:[#allocation22_spill] sm:$0xff] %v15140_v29 }
 0x114   : > { %18922 = vst [vmem:[#allocation18_spill] sm:$0xff] %v15121_v30  ;;  %v15130_v19 = vadd.f32 %v12758_v40, %v12724_v53  ;;  %v11712_v17 = vcombine.low %v4002_v54, %v4012_v20  ;;  %v4031_v57 = vrot.slane %v4030_v23, 4  ;;  %v4043_v55 = vrot.slane %v4041_v51, 5  ;;  %v11697_v53 = vld [vmem:[%s13776_s20 + $0xcc] sm:$0xf] }
 0x115   : > { %v15136_v30 = vpop.f32.mrf.mxu0  ;;  %v12762_v2 = vpop.f32.mrf.mxu1  ;;  %v4049_v40 = vrot.slane %v4047_v62, 5  ;;  %v4051_v7 = vshrl.u32 %v15111_v21, 16  ;;  %v4057_v33 = vshll.u32 %v15118_v24, 16  ;;  %v4026_v15 = vsel %vm13804_vm4, %v4021_v42, %v4025_v43  ;;  %v15156_v24 = vld [vmem:[%s13776_s20 + $0xd0] sm:$0xf] }
 0x116   : > { %18923 = vst [vmem:[#allocation19_spill] sm:$0xff] %v15130_v19  ;;  %18925 = vst [vmem:[#allocation21_spill] sm:$0xff] %v15136_v30  ;;  %12960 = vmatmul.mubr.msk.bf16.gmra.mxu1 %vm800_vm3, %v11712_v17  ;;  %v4036_v23 = vsel %vm13804_vm4, %v4031_v57, %v4035_v3  ;;  %v4044_v51 = vor.u32 %v4043_v55, %v4040_v10  ;;  %v4062_v48 = vshrl.u32 %v11694_v11, 16  ;;  %v4065_v28 = vshll.u32 %v11694_v11, 16 }
 0x117   : > { %v12727_v54 = vpop.f32.mrf.mxu0  ;;  %v15151_v20 = vpop.f32.mrf.mxu1  ;;  %v11713_v62 = vcombine.low %v4026_v15, %v4036_v23  ;;  %v4053_v19 = vrot.slane %v4051_v7, 4  ;;  %v4059_v21 = vrot.slane %v4057_v33, 5  ;;  %v4071_v3 = vshll.u32 %v15134_v8, 16 }
 0x118   : > { %18927 = vst [vmem:[#allocation23_spill] sm:$0xff] %v15151_v20  ;;  %v15153_v30 = vadd.f32 %v12761_v31, %v12727_v54  ;;  %v4045_v13 = vrot.slane %v4044_v51, 4  ;;  %v4064_v42 = vrot.slane %v4062_v48, 4  ;;  %v4075_v57 = vshrl.u32 %v15134_v8, 16  ;;  %v15168_v54 = vld [vmem:[%s13776_s20 + $0xd4] sm:$0x1] }
 0x119   : > { %12930 = vmatmul.mubr.msk.bf16.gmra.mxu0 %vm800_vm3, %v13502_v44  ;;  %v983_v17 = vpop.f32.mrf.mxu0  ;;  %v12765_v43 = vpop.f32.mrf.mxu1  ;;  %12963 = vmatprep.mubr.msk.bf16.mxu1 %vm800_vm3, %v11713_v62  ;;  %v4054_v31 = vor.u32 %v4053_v19, %v4049_v40  ;;  %v4081_v44 = vshll.u32 %v15140_v29, 16  ;;  %v4067_v48 = vrot.slane %v4065_v28, 5  ;;  %v4073_v11 = vrot.slane %v4071_v3, 5  ;;  %v11733_v51 = vld [vmem:[%s13776_s20 + $0x18] sm:$0xe] }
 0x11a   : > { %18928 = vst [vmem:[#allocation24_spill] sm:$0xff] %v15153_v30  ;;  %v15161_v10 = vadd.f32 %v1275_v1, %v983_v17  ;;  %12933 = vmatprep.mubr.msk.bf16.mxu0 %vm800_vm3, %v13503_v56  ;;  %v4086_v15 = vshrl.u32 %v11697_v53, 16  ;;  %v4050_v1 = vsel %vm13804_vm4, %v4045_v13, %v4049_v40  ;;  %v4077_v56 = vrot.slane %v4075_v57, 4  ;;  %v13504_v17 = vld [vmem:[%s13776_s20 + $0xcc] sm:$0xff]  }
 0x11b   : > { %v12728_v7 = vpop.f32.mrf.mxu0  ;;  %v1291_v33 = vpop.f32.mrf.mxu1  ;;  %v4055_v19 = vrot.slane %v4054_v31, 4  ;;  %v4068_v55 = vor.u32 %v4067_v48, %v4064_v42  ;;  %v4089_v28 = vshll.u32 %v11697_v53, 16  ;;  %v4095_v3 = vshll.u32 %v15156_v24, 16  ;;  %v11734_v53 = vld [vmem:[%s13776_s20 + $0x24] sm:$0xe] }
 0x11c   : > { %18929 = vst [vmem:[#allocation25_spill] sm:$0xff] %v15161_v10  ;;  %v15172_v23 = vadd.f32 %v12762_v2, %v12728_v7  ;;  %v4088_v20 = vrot.slane %v4086_v15, 4  ;;  %v4078_v13 = vor.u32 %v4077_v56, %v4073_v11  ;;  %v4083_v40 = vrot.slane %v4081_v44, 5  ;;  %v11735_v8 = vld [vmem:[%s13776_s20 + $0x30] sm:$0xe] }
 0x11d   : > { %v15175_v62 = vpop.f32.mrf.mxu0  ;;  %v12766_v10 = vpop.f32.mrf.mxu1  ;;  %v4060_v30 = vsel %vm13804_vm4, %v4055_v19, %v4059_v21  ;;  %v4099_v2 = vshrl.u32 %v15156_v24, 16  ;;  %v4069_v57 = vrot.slane %v4068_v55, 4  ;;  %v4091_v7 = vrot.slane %v4089_v28, 5  ;;  %v13657_v55 = vld [vmem:[%s13776_s20 + $0x1c] sm:$0xf] }
 0x11e   : > { %18930 = vst [vmem:[#allocation26_spill] sm:$0xff] %v15172_v23  ;;  %18931 = vst [vmem:[#allocation27_spill] sm:$0xff] %v15175_v62  ;;  %v11714_v31 = vcombine.low %v4050_v1, %v4060_v30  ;;  %v4097_v62 = vrot.slane %v4095_v3, 5  ;;  %v4079_v48 = vrot.slane %v4078_v13, 4  ;;  %v4105_v23 = vshll.u32 %v15168_v54, 16 }
 0x11f   : > { %v15182_v42 = vpop.f32.mrf.mxu1  ;;  %v4101_v15 = vrot.slane %v4099_v2, 4  ;;  %v11749_v29 = vrot.slane %v11733_v51, 9  ;;  %v4074_v30 = vsel %vm13804_vm4, %v4069_v57, %v4073_v11  ;;  %v4092_v44 = vor.u32 %v4091_v7, %v4088_v20  ;;  %v13658_v19 = vld [vmem:[%s13776_s20 + $0x20] sm:$0x1]  ;;  %v11736_v7 = vld [vmem:[%s13776_s20 + $0x3c] sm:$0xe] }
 0x120   : > { %18932 = vst [vmem:[#allocation28_spill] sm:$0xff] %v15182_v42  ;;  %12964 = vmatmul.mubr.msk.bf16.gmra.mxu1 %vm800_vm3, %v11714_v31  ;;  %v4469_v1 = vrot.slane %v13657_v55, 5  ;;  %v4472_v56 = vrot.slane %v13658_v19, 5  ;;  %v4084_v51 = vsel %vm13804_vm4, %v4079_v48, %v4083_v40  ;;  %v4107_v2 = vrot.slane %v4105_v23, 5 }
 0x121   : > { %v12731_v21 = vpop.f32.mrf.mxu0  ;;  %12934 = vmatmul.mubr.msk.bf16.gmra.mxu0 %vm800_vm3, %v13504_v17  ;;  %v15193_v28 = vpop.f32.mrf.mxu1  ;;  %v4102_v13 = vor.u32 %v4101_v15, %v4097_v62  ;;  %v11715_v31 = vcombine.low %v4074_v30, %v4084_v51  ;;  %v4093_v42 = vrot.slane %v4092_v44, 4  ;;  %v18933_v40 = vrot.slane %v14879_v6, 5  ;;  %v13659_v44 = vld [vmem:[%s13776_s20 + $0x34] sm:$0xf] }
 0x122   : > { %v15195_v3 = vadd.f32 %v12765_v43, %v12731_v21  ;;  %v4470_v20 = vsel %vm14066_vm7, %v11749_v29, %v4469_v1  ;;  %v4471_v11 = vrot.slane %v4469_v1, 4  ;;  %v11750_v21 = vrot.slane %v11734_v53, 9  ;;  %v11738_v6 = vld [vmem:[%s13776_s20 + $0x54] sm:$0xe] }
 0x123   : > { %v999_v17 = vpop.f32.mrf.mxu0  ;;  %v15201_v57 = vpop.f32.mrf.mxu1  ;;  %v4103_v43 = vrot.slane %v4102_v13, 4  ;;  %v4478_v23 = vrot.slane %v18933_v40, 4  ;;  %12967 = vmatprep.mubr.msk.bf16.mxu1 %vm800_vm3, %v11715_v31  ;;  %v4098_v48 = vsel %vm13804_vm4, %v4093_v42, %v4097_v62  ;;  %v4483_v1 = vrot.slane %v13659_v44, 5  ;;  %v11737_v42 = vld [vmem:[%s13776_s20 + $0x48] sm:$0xe] }
 0x124   : > { %v15204_v55 = vadd.f32 %v1291_v33, %v999_v17  ;;  %v4473_v29 = vsel %vm14066_vm7, %v4471_v11, %v4472_v56  ;;  %v11751_v33 = vrot.slane %v11735_v8, 9  ;;  %v18934_v13 = vmov %v18933_v40  ;;  %v13660_v56 = vld [vmem:[%s13776_s20 + $0x44] sm:$0x1]  ;;  %v13661_v40 = vld [vmem:[%s13776_s20 + $0x38] sm:$0x1] }
 0x125   : > { %v12732_v15 = vpop.f32.mrf.mxu0  ;;  %v15213_v30 = vpop.f32.mrf.mxu1  ;;  %v4108_v53 = vsel %vm13804_vm4, %v4103_v43, %v4107_v2  ;;  %v11766_v51 = vcombine.low %v4470_v20, %v4473_v29  ;;  %v4477_v62 = vsel %vm14066_vm7, %v11750_v21, %v18934_v13  ;;  %v4493_v31 = vrot.slane %v13660_v56, 5  ;;  %v13662_v29 = vld [vmem:[%s13776_s20 + $0x40] sm:$0xf]  ;;  %v13663_v13 = vld [vmem:[%s13776_s20 + $0x4c] sm:$0xf] }
 0x126   : > { %v15218_v19 = vadd.f32 %v12766_v10, %v12732_v15  ;;  %v11716_v17 = vcombine.low %v4098_v48, %v4108_v53  ;;  %v18935_v11 = vrot.slane %v14888_v16, 5  ;;  %v4485_v10 = vrot.slane %v4483_v1, 4 }
 0x127   : > { %v15226_v8 = vpop.f32.mrf.mxu0  ;;  %v15232_v20 = vpop.f32.mrf.mxu1  ;;  %12973 = vmatprep.mubr.msk.bf16.mxu0 %vm800_vm3, %v11766_v51  ;;  %v4484_v21 = vsel %vm14066_vm7, %v11751_v33, %v4483_v1  ;;  %v4486_v48 = vrot.slane %v13661_v40, 5  ;;  %v11752_v15 = vrot.slane %v11736_v7, 9  ;;  %v11753_v53 = vrot.slane %v11737_v42, 9 }
 0x128   : > { %v4480_v2 = vsel %vm14066_vm7, %v4478_v23, %v18935_v11  ;;  %18936 = vst [vmem:[#allocation29_spill] sm:$0xff] %v15232_v20  ;;  %12968 = vmatmul.mubr.msk.bf16.gmra.mxu1 %vm800_vm3, %v11716_v17  ;;  %v4490_v23 = vrot.slane %v13662_v29, 5  ;;  %v4497_v56 = vrot.slane %v13663_v13, 5  ;;  %v13664_v11 = vld [vmem:[%s13776_s20 + $0x50] sm:$0x1]  ;;  %v11754_v7 = vrot.slane %v11738_v6, 9 }
 0x129   : > { %v11767_v43 = vcombine.low %v4477_v62, %v4480_v2  ;;  %v12771_v16 = vpop.f32.mrf.mxu0  ;;  %v12809_v44 = vpop.f32.mrf.mxu1  ;;  %v4500_v20 = vrot.slane %v13664_v11, 5  ;;  %v4487_v33 = vsel %vm14066_vm7, %v4485_v10, %v4486_v48  ;;  %v4504_v1 = vrot.slane %v14936_v63, 5  ;;  %v11739_v63 = vld [vmem:[%s13776_s20 + $0x60] sm:$0xe] }
 0x12a   : > { %v1733_v51 = vadd.f32 %v12771_v16, %v14911_v50  ;;  %v4507_v62 = vrot.slane %v14941_v39, 5  ;;  %v11768_v2 = vcombine.low %v4484_v21, %v4487_v33  ;;  %v4491_v42 = vsel %vm14066_vm7, %v11752_v15, %v4490_v23 }
 0x12b   : > { %12974 = vmatmul.mubr.msk.bf16.vlgmr.msra.gmra.mxu0 %vm800_vm3, %v11767_v43  ;;  %v1604_v17 = vpop.f32.mrf.mxu0  ;;  %v4492_v40 = vrot.slane %v4490_v23, 4  ;;  %v1979_v29 = vpop.f32.mrf.mxu1  ;;  %v4498_v10 = vsel %vm14066_vm7, %v11753_v53, %v4497_v56  ;;  %v4499_v6 = vrot.slane %v4497_v56, 4  ;;  %v4505_v48 = vsel %vm14066_vm7, %v11754_v7, %v4504_v1  ;;  %v11740_v56 = vld [vmem:[%s13776_s20 + $0x6c] sm:$0xe] }
 0x12c   : > { %v1731_v13 = vadd.f32 %v1604_v17, %v14918_v47  ;;  %v15253_v50 = vadd.f32 %v15193_v28, %v1733_v51  ;;  %12977 = vmatprep.mubr.msk.bf16.mxu0 %vm800_vm3, %v11768_v2  ;;  %v4506_v47 = vrot.slane %v4504_v1, 4  ;;  %v4511_v15 = vrot.slane %v14958_v0, 5 }
 0x12d   : > { %v12772_v43 = vpop.f32.mrf.mxu0  ;;  %v4494_v39 = vsel %vm14066_vm7, %v4492_v40, %v4493_v31  ;;  %v12810_v21 = vpop.f32.mrf.mxu1  ;;  %v4501_v53 = vsel %vm14066_vm7, %v4499_v6, %v4500_v20  ;;  %v11755_v7 = vrot.slane %v11739_v63, 9  ;;  %v4514_v17 = vrot.slane %v14962_v52, 5 }
 0x12e   : > { %v1734_v28 = vadd.f32 %v12772_v43, %v14927_v4  ;;  %v15266_v16 = vadd.f32 %v15201_v57, %v1731_v13  ;;  %v11769_v23 = vcombine.low %v4491_v42, %v4494_v39  ;;  %v11770_v51 = vcombine.low %v4498_v10, %v4501_v53 }
 0x12f   : > { %v1607_v11 = vpop.f32.mrf.mxu0  ;;  %v15271_v31 = vpop.f32.mrf.mxu1  ;;  %v4508_v33 = vsel %vm14066_vm7, %v4506_v47, %v4507_v62  ;;  %v4513_v1 = vrot.slane %v4511_v15, 4  ;;  %v4521_v20 = vrot.slane %v14986_v45, 5  ;;  %v11756_v40 = vrot.slane %v11740_v56, 9 }
 0x130   : > { %v15276_v0 = vadd.f32 %v1607_v11, %v14933_v25  ;;  %v15279_v4 = vadd.f32 %v15213_v30, %v1734_v28  ;;  %v11771_v57 = vcombine.low %v4505_v48, %v4508_v33  ;;  %v4518_v13 = vrot.slane %v14979_v32, 5  ;;  %v11741_v32 = vld [vmem:[%s13776_s20 + $0x78] sm:$0xe] }
 0x131   : > { %v12775_v2 = vpop.f32.mrf.mxu0  ;;  %v12813_v42 = vpop.f32.mrf.mxu1  ;;  %v4512_v10 = vsel %vm14066_vm7, %v11755_v7, %v4511_v15  ;;  %v4525_v43 = vrot.slane %v14998_v18, 5  ;;  %v11757_v56 = vrot.slane %v11741_v32, 9  ;;  %v4528_v33 = vrot.slane %v15005_v38, 5 }
 0x132   : > { %v1737_v62 = vadd.f32 %v12775_v2, %v14947_v34  ;;  %v4519_v52 = vsel %vm14066_vm7, %v11756_v40, %v4518_v13  ;;  %v4520_v45 = vrot.slane %v4518_v13, 4  ;;  %v4515_v34 = vsel %vm14066_vm7, %v4513_v1, %v4514_v17 }
 0x133   : > { %12978 = vmatmul.mubr.msk.bf16.gmra.mxu0 %vm800_vm3, %v11769_v23  ;;  %v1620_v25 = vpop.f32.mrf.mxu0  ;;  %v1995_v30 = vpop.f32.mrf.mxu1  ;;  %vm5095_vm11 = vsmask.f32 4368  ;;  %vm5425_vm12 = vcmask 1040384  }
 0x134   : > { %12981 = vmatprep.mubr.msk.bf16.mxu0 %vm800_vm3, %v11770_v51  ;;  %v1735_v6 = vadd.f32 %v1620_v25, %v14954_v49  ;;  %v15292_v63 = vadd.f32 %v12809_v44, %v1737_v62  ;;  %v4522_v47 = vsel %vm14066_vm7, %v4520_v45, %v4521_v20  ;;  %v11772_v49 = vcombine.low %v4512_v10, %v4515_v34  ;;  %v11742_v20 = vld [vmem:[%s13776_s20 + $0x84] sm:$0xe]  ;;  %vm16028_vm14 = vmor %vm5094_vm10, %vm5095_vm11 }
 0x135   : > { %v12776_v39 = vpop.f32.mrf.mxu0  ;;  %v12814_v48 = vpop.f32.mrf.mxu1  ;;  %v11773_v23 = vcombine.low %v4519_v52, %v4522_v47  ;;  %v4527_v51 = vrot.slane %v4525_v43, 4  ;;  %v11758_v52 = vrot.slane %v11742_v20, 9  ;;  %vm16034_vm15 = vmand %vm5425_vm12, %vm5094_vm10 }
 0x136   : > { %v1738_v15 = vadd.f32 %v12776_v39, %v14965_v27  ;;  %v15301_v28 = vadd.f32 %v1979_v29, %v1735_v6 }
 0x137   : > { %v1623_v53 = vpop.f32.mrf.mxu0  ;;  %v15303_v44 = vpop.f32.mrf.mxu1  ;;  %v4529_v38 = vsel %vm14066_vm7, %v4527_v51, %v4528_v33  ;;  %v11745_v51 = vld [vmem:[%s13776_s20 + $0xa8] sm:$0xe]  ;;  %v4553_v33 = vrot.slane %v15088_v14, 5 }
 0x138   : > { %v15306_v11 = vadd.f32 %v1623_v53, %v14973_v58  ;;  %v15308_v18 = vadd.f32 %v12810_v21, %v1738_v15  ;;  %v4526_v58 = vsel %vm14066_vm7, %v11757_v56, %v4525_v43  ;;  %v4532_v21 = vrot.slane %v15021_v46, 5  ;;  %v11744_v53 = vld [vmem:[%s13776_s20 + $0x9c] sm:$0xe] }
 0x139   : > { %v12779_v7 = vpop.f32.mrf.mxu0  ;;  %v12817_v27 = vpop.f32.mrf.mxu1  ;;  %v11774_v6 = vcombine.low %v4526_v58, %v4529_v38 }
 0x13a   : > { %v1741_v29 = vadd.f32 %v12779_v7, %v14981_v12  ;;  %v11743_v12 = vld [vmem:[%s13776_s20 + $0x90] sm:$0xe] }
 0x13b   : > { %12982 = vmatmul.mubr.msk.bf16.gmra.mxu0 %vm800_vm3, %v11771_v57  ;;  %v1636_v1 = vpop.f32.mrf.mxu0  ;;  %v2011_v17 = vpop.f32.mrf.mxu1  ;;  %v4539_v57 = vrot.slane %v15046_v26, 5  ;;  %v11759_v34 = vrot.slane %v11743_v12, 9 }
 0x13c   : > { %12985 = vmatprep.mubr.msk.bf16.mxu0 %vm800_vm3, %v11772_v49  ;;  %v1739_v2 = vadd.f32 %v1636_v1, %v14991_v60  ;;  %v15319_v40 = vadd.f32 %v12813_v42, %v1741_v29  ;;  %v4534_v60 = vrot.slane %v4532_v21, 4  ;;  %v4535_v42 = vrot.slane %v15030_v59, 5  ;;  %v18937_v1 = vld [vmem:[#allocation5_spill] sm:$0xff] }
 0x13d   : > { %v12780_v13 = vpop.f32.mrf.mxu0  ;;  %v12818_v62 = vpop.f32.mrf.mxu1  ;;  %v4541_v43 = vrot.slane %v4539_v57, 4  ;;  %v4533_v59 = vsel %vm14066_vm7, %v11758_v52, %v4532_v21  ;;  %v4546_v49 = vrot.slane %v15067_v9, 5 }
 0x13e   : > { %v1742_v25 = vadd.f32 %v12780_v13, %v15000_v35  ;;  %v15326_v10 = vadd.f32 %v1995_v30, %v1739_v2  ;;  %v4542_v35 = vrot.slane %v15049_v22, 5  ;;  %v4540_v22 = vsel %vm14066_vm7, %v11759_v34, %v4539_v57  ;;  %v18941_v34 = vld [vmem:[#allocation8_spill] sm:$0xff] }
 0x13f   : > { %v1639_v45 = vpop.f32.mrf.mxu0  ;;  %v15328_v46 = vpop.f32.mrf.mxu1  ;;  %v11760_v2 = vrot.slane %v11744_v53, 9  ;;  %v11761_v13 = vrot.slane %v11745_v51, 9  ;;  %v11746_v51 = vld [vmem:[%s13776_s20 + $0xb4] sm:$0xe] }
 0x140   : > { %v15332_v32 = vadd.f32 %v1639_v45, %v15010_v5  ;;  %v15334_v26 = vadd.f32 %v12814_v48, %v1742_v25  ;;  %v4536_v5 = vsel %vm14066_vm7, %v4534_v60, %v4535_v42  ;;  %v18939_v25 = vld [vmem:[#allocation6_spill] sm:$0xff]  ;;  %v4555_v45 = vrot.slane %v4553_v33, 4 }
 0x141   : > { %v12783_v30 = vpop.f32.mrf.mxu0  ;;  %v12821_v39 = vpop.f32.mrf.mxu1  ;;  %v11775_v21 = vcombine.low %v4533_v59, %v4536_v5  ;;  %v18942_v59 = vld [vmem:[#allocation15_spill] sm:$0xff] }
 0x142   : > { %v1745_v47 = vadd.f32 %v12783_v30, %v15025_v61  ;;  %v4547_v30 = vsel %vm14066_vm7, %v11760_v2, %v4546_v49  ;;  %v4560_v5 = vrot.slane %v18942_v59, 5  ;;  %v18945_v2 = vld [vmem:[#allocation11_spill] sm:$0xff]  ;;  %v18948_v59 = vld [vmem:[#allocation16_spill] sm:$0xff] }
 0x143   : > { %12986 = vmatmul.mubr.msk.bf16.gmra.mxu0 %vm800_vm3, %v11773_v23  ;;  %v1652_v15 = vpop.f32.mrf.mxu0  ;;  %v2027_v48 = vpop.f32.mrf.mxu1  ;;  %v4543_v23 = vsel %vm14066_vm7, %v4541_v43, %v4542_v35 }
 0x144   : > { %12989 = vmatprep.mubr.msk.bf16.mxu0 %vm800_vm3, %v11774_v6  ;;  %v1743_v61 = vadd.f32 %v1652_v15, %v15035_v41  ;;  %v15349_v56 = vadd.f32 %v12817_v27, %v1745_v47  ;;  %v11776_v9 = vcombine.low %v4540_v22, %v4543_v23  ;;  %v4548_v41 = vrot.slane %v4546_v49, 4  ;;  %v18938_v27 = vld [vmem:[#allocation9_spill] sm:$0xff]  ;;  %v18943_v22 = vld [vmem:[#allocation10_spill] sm:$0xff] }
 0x145   : > { %v12784_v7 = vpop.f32.mrf.mxu0  ;;  %v12822_v29 = vpop.f32.mrf.mxu1  ;;  %v4549_v57 = vrot.slane %v18938_v27, 5  ;;  %v18940_v6 = vld [vmem:[#allocation13_spill] sm:$0xff]  ;;  %v4554_v15 = vsel %vm14066_vm7, %v11761_v13, %v4553_v33  ;;  %v4562_v13 = vrot.slane %v4560_v5, 4 }
 0x146   : > { %v1746_v58 = vadd.f32 %v12784_v7, %v18937_v1  ;;  %v15356_v20 = vadd.f32 %v2011_v17, %v1743_v61  ;;  %v4556_v17 = vrot.slane %v18940_v6, 5  ;;  %v18944_v7 = vld [vmem:[#allocation20_spill] sm:$0xff] }
 0x147   : > { %v1655_v38 = vpop.f32.mrf.mxu0  ;;  %v15358_v12 = vpop.f32.mrf.mxu1  ;;  %v4567_v1 = vrot.slane %v18944_v7, 5 }
 0x148   : > { %v15362_v52 = vadd.f32 %v1655_v38, %v18939_v25  ;;  %v15364_v14 = vadd.f32 %v12818_v62, %v1746_v58  ;;  %v4550_v62 = vsel %vm14066_vm7, %v4548_v41, %v4549_v57  ;;  %v4557_v23 = vsel %vm14066_vm7, %v4555_v45, %v4556_v17  ;;  %v18946_v25 = vld [vmem:[#allocation17_spill] sm:$0xff] }
 0x149   : > { %v12787_v60 = vpop.f32.mrf.mxu0  ;;  %v12825_v42 = vpop.f32.mrf.mxu1  ;;  %v11777_v33 = vcombine.low %v4547_v30, %v4550_v62  ;;  %v11778_v27 = vcombine.low %v4554_v15, %v4557_v23  ;;  %v4563_v45 = vrot.slane %v18946_v25, 5  ;;  %v18949_v23 = vld [vmem:[#allocation18_spill] sm:$0xff] }
 0x14a   : > { %v1749_v43 = vadd.f32 %v12787_v60, %v18941_v34  ;;  %v4569_v60 = vrot.slane %v4567_v1, 4  ;;  %v18947_v34 = vld [vmem:[#allocation22_spill] sm:$0xff] }
 0x14b   : > { %12990 = vmatmul.mubr.msk.bf16.gmra.mxu0 %vm800_vm3, %v11775_v21  ;;  %v1668_v35 = vpop.f32.mrf.mxu0  ;;  %v2043_v47 = vpop.f32.mrf.mxu1  ;;  %v11747_v21 = vld [vmem:[%s13776_s20 + $0xc0] sm:$0xe] }
 0x14c   : > { %12993 = vmatprep.mubr.msk.bf16.mxu0 %vm800_vm3, %v11776_v9  ;;  %v1747_v53 = vadd.f32 %v1668_v35, %v18943_v22  ;;  %v15378_v61 = vadd.f32 %v12821_v39, %v1749_v43  ;;  %v11762_v39 = vrot.slane %v11746_v51, 9  ;;  %v11763_v17 = vrot.slane %v11747_v21, 9 }
 0x14d   : > { %v12788_v49 = vpop.f32.mrf.mxu0  ;;  %v12826_v58 = vpop.f32.mrf.mxu1  ;;  %v4570_v43 = vrot.slane %v18947_v34, 5 }
 0x14e   : > { %v1750_v38 = vadd.f32 %v12788_v49, %v18945_v2  ;;  %v15386_v9 = vadd.f32 %v2027_v48, %v1747_v53  ;;  %v4561_v15 = vsel %vm14066_vm7, %v11762_v39, %v4560_v5  ;;  %v4574_v53 = vrot.slane %v15156_v24, 5  ;;  %v11748_v2 = vld [vmem:[%s13776_s20 + $0xcc] sm:$0xe]  ;;  %v13505_v5 = vld [vmem:[%s18840_s3 + $0x78] sm:$0xff]  }
 0x14f   : > { %v15388_v41 = vpop.f32.mrf.mxu0  ;;  %v15390_v57 = vpop.f32.mrf.mxu1  ;;  %v4568_v49 = vsel %vm14066_vm7, %v11763_v17, %v4567_v1  ;;  %v4571_v21 = vsel %vm14066_vm7, %v4569_v60, %v4570_v43  ;;  %13005 = vmatprep.subr.bf16.mxu1 %v13505_v5  ;;  %v4577_v60 = vrot.slane %v15168_v54, 5  ;;  %v18952_v54 = vld [vmem:[#allocation25_spill] sm:$0xff] }
 0x150   : > { %v15393_v6 = vadd.f32 %v12822_v29, %v1750_v38  ;;  %v4564_v29 = vsel %vm14066_vm7, %v4562_v13, %v4563_v45  ;;  %v11780_v25 = vcombine.low %v4568_v49, %v4571_v21  ;;  %v11764_v45 = vrot.slane %v11748_v2, 9  ;;  %13006 = vmatpush3.bf16.msra.mxu1 %v13505_v5  ;;  %v18953_v21 = vld [vmem:[#allocation26_spill] sm:$0xff] }
 0x151   : > { %v12791_v35 = vpop.f32.mrf.mxu0  ;;  %v12829_v48 = vpop.f32.mrf.mxu1  ;;  %v11779_v13 = vcombine.low %v4561_v15, %v4564_v29  ;;  %v4576_v17 = vrot.slane %v4574_v53, 4 }
 0x152   : > { %v1753_v30 = vadd.f32 %v12791_v35, %v18948_v59  ;;  %v18951_v59 = vld [vmem:[#allocation24_spill] sm:$0xff] }
 0x153   : > { %12994 = vmatmul.mubr.msk.bf16.gmra.mxu0 %vm800_vm3, %v11777_v33  ;;  %v1684_v62 = vpop.f32.mrf.mxu0  ;;  %v2059_v22 = vpop.f32.mrf.mxu1  ;;  %v4578_v15 = vsel %vm14066_vm7, %v4576_v17, %v4577_v60 }
 0x154   : > { %12997 = vmatprep.mubr.msk.bf16.mxu0 %vm800_vm3, %v11778_v27  ;;  %v1751_v51 = vadd.f32 %v1684_v62, %v18949_v23  ;;  %v15405_v7 = vadd.f32 %v12825_v42, %v1753_v30  ;;  %v18950_v27 = vld [vmem:[#allocation19_spill] sm:$0xff]  ;;  %v4575_v62 = vsel %vm14066_vm7, %v11764_v45, %v4574_v53 }
 0x155   : > { %v12792_v38 = vpop.f32.mrf.mxu0  ;;  %v12830_v33 = vpop.f32.mrf.mxu1 }
 0x156   : > { %v1754_v39 = vadd.f32 %v12792_v38, %v18950_v27  ;;  %v15416_v24 = vadd.f32 %v2043_v47, %v1751_v51  ;;  %v11781_v38 = vcombine.low %v4575_v62, %v4578_v15  ;;  %v13506_v27 = vld [vmem:[%s18840_s3 + $0x70] sm:$0xff]  }
 0x157   : > { %v15418_v42 = vpop.f32.mrf.mxu0  ;;  %v15420_v1 = vpop.f32.mrf.mxu1  ;;  %13007 = vmatprep.subr.bf16.mxu1 %v13506_v27 }
 0x158   : > { %v15423_v34 = vadd.f32 %v12826_v58, %v1754_v39  ;;  %13008 = vmatpush3.bf16.msra.mxu1 %v13506_v27 }
 0x159   : > { %v12795_v43 = vpop.f32.mrf.mxu0  ;;  %v12833_v35 = vpop.f32.mrf.mxu1 }
 0x15a   : > { %v1757_v30 = vadd.f32 %v12795_v43, %v18951_v59 }
 0x15b   : > { %12998 = vmatmul.mubr.msk.bf16.gmra.mxu0 %vm800_vm3, %v11779_v13  ;;  %v1700_v47 = vpop.f32.mrf.mxu0  ;;  %v2075_v29 = vpop.f32.mrf.mxu1 }
 0x15c   : > { %13001 = vmatprep.mubr.msk.bf16.mxu0 %vm800_vm3, %v11780_v25  ;;  %v1755_v23 = vadd.f32 %v1700_v47, %v18952_v54  ;;  %v15433_v58 = vadd.f32 %v12829_v48, %v1757_v30  ;;  %v13507_v54 = vld [vmem:[%s18840_s3 + $0x68] sm:$0xff]  }
 0x15d   : > { %v12796_v51 = vpop.f32.mrf.mxu0  ;;  %v12834_v49 = vpop.f32.mrf.mxu1  ;;  %13009 = vmatprep.subr.bf16.mxu1 %v13507_v54 }
 0x15e   : > { %v1758_v2 = vadd.f32 %v12796_v51, %v18953_v21  ;;  %v15436_v5 = vadd.f32 %v2059_v22, %v1755_v23  ;;  %13010 = vmatpush3.bf16.msra.mxu1 %v13507_v54 }
 0x15f   : > { %v15441_v53 = vpop.f32.mrf.mxu0  ;;  %v15443_v39 = vpop.f32.mrf.mxu1 }
 0x160   : > { %v15445_v13 = vadd.f32 %v12830_v33, %v1758_v2  ;;  %v13509_v2 = vld [vmem:[%s18840_s3 + $0x38] sm:$0xff]  }
 0x161   : > { %v12799_v48 = vpop.f32.mrf.mxu0  ;;  %v15447_v25 = vpop.f32.mrf.mxu1  ;;  %13053 = vmatprep.subr.bf16.mxu0 %v13509_v2 }
 0x162   : > { %v1761_v45 = vadd.f32 %v12799_v48, %v15195_v3  ;;  %13054 = vmatpush3.bf16.msra.mxu0 %v13509_v2 }
 0x163   : > { %13002 = vmatmul.mubr.msk.bf16.gmra.mxu0 %vm800_vm3, %v11781_v38  ;;  %v1716_v22 = vpop.f32.mrf.mxu0  ;;  %v15451_v17 = vpop.f32.mrf.mxu1 }
 0x164   : > { %18954 = vst [vmem:[#allocation5_spill] sm:$0xff] %v15451_v17  ;;  %v1759_v60 = vadd.f32 %v1716_v22, %v15204_v55  ;;  %v15454_v43 = vadd.f32 %v12833_v35, %v1761_v45 }
 0x165   : > { %v12800_v59 = vpop.f32.mrf.mxu0  ;;  %v15456_v30 = vpop.f32.mrf.mxu1 }
 0x166   : > { %18955 = vst [vmem:[#allocation9_spill] sm:$0xff] %v15456_v30  ;;  %v1762_v33 = vadd.f32 %v12800_v59, %v15218_v19  ;;  %v15459_v47 = vadd.f32 %v2075_v29, %v1759_v60 }
 0x167   : > { %v15461_v62 = vpop.f32.mrf.mxu0  ;;  %v15463_v15 = vpop.f32.mrf.mxu1 }
 0x168   : > { %18956 = vst [vmem:[#allocation6_spill] sm:$0xff] %v15463_v15  ;;  %v15465_v3 = vadd.f32 %v12834_v49, %v1762_v33 }
 0x169   : > { %v12839_v55 = vpop.f32.mrf.mxu0  ;;  %v15470_v35 = vpop.f32.mrf.mxu1 }
 0x16a   : > { %18957 = vst [vmem:[#allocation13_spill] sm:$0xff] %v15470_v35  ;;  %v15473_v23 = vadd.f32 %v12839_v55, %v15253_v50 }
 0x16b   : > { %v2689_v19 = vpop.f32.mrf.mxu0  ;;  %v15475_v29 = vpop.f32.mrf.mxu1 }
 0x16c   : > { %18958 = vst [vmem:[#allocation8_spill] sm:$0xff] %v15475_v29  ;;  %v15478_v51 = vadd.f32 %v2689_v19, %v15266_v16  ;;  %v18852_v16 = vmov 0   ;;  %v13512_v19 = vld [vmem:[%s18840_s3 + $0x28] sm:$0xff]  }
 0x16d   : > { %v12840_v49 = vpop.f32.mrf.mxu0  ;;  %v15480_v21 = vpop.f32.mrf.mxu1  ;;  %4950 = vst [vmem:[#allocation2 + $0x18] sm:$0xf] %v18852_v16  ;;  %4944 = vst [vmem:[#allocation2] sm:$0xf] %v18852_v16 }
 0x16e   : > { %v15486_v38 = vadd.f32 %v12840_v49, %v15279_v4  ;;  %4945 = vst [vmem:[#allocation2 + $0x4] sm:$0xf] %v18852_v16  ;;  %4946 = vst [vmem:[#allocation2 + $0x8] sm:$0x1] %v18852_v16  ;;  %v13510_v4 = vld [vmem:[%s18840_s3 + $0x30] sm:$0xff]  }
 0x16f   : > { %v15488_v50 = vpop.f32.mrf.mxu0  ;;  %v15490_v27 = vpop.f32.mrf.mxu1  ;;  %4947 = vst [vmem:[#allocation2 + $0xc] sm:$0xf] %v18852_v16  ;;  %4948 = vst [vmem:[#allocation2 + $0x10] sm:$0xf] %v18852_v16  ;;  %13055 = vmatprep.subr.bf16.mxu0 %v13510_v4 }
 0x170   : > { %18959 = vst [vmem:[#allocation15_spill] sm:$0xff] %v15486_v38  ;;  %18960 = vst [vmem:[#allocation10_spill] sm:$0xff] %v15490_v27  ;;  %13056 = vmatpush3.bf16.msra.mxu0 %v13510_v4  ;;  %v13513_v4 = vld [vmem:[%s18840_s3 + $0x20] sm:$0xff]  }
 0x171   : > { %v12843_v48 = vpop.f32.mrf.mxu0  ;;  %v15492_v45 = vpop.f32.mrf.mxu1  ;;  %4949 = vst [vmem:[#allocation2 + $0x14] sm:$0x1] %v18852_v16  ;;  %4951 = vst [vmem:[#allocation2 + $0x1c] sm:$0xf] %v18852_v16  ;;  %13057 = vmatprep.subr.bf16.mxu0 %v13512_v19 }
 0x172   : > { %4952 = vst [vmem:[#allocation2 + $0x20] sm:$0x1] %v18852_v16  ;;  %4953 = vst [vmem:[#allocation2 + $0x24] sm:$0xf] %v18852_v16  ;;  %v15552_v22 = vadd.f32 %v12843_v48, %v15292_v63 }
 0x173   : > { %4954 = vst [vmem:[#allocation2 + $0x28] sm:$0xf] %v18852_v16  ;;  %4955 = vst [vmem:[#allocation2 + $0x2c] sm:$0x1] %v18852_v16  ;;  %v2705_v60 = vpop.f32.mrf.mxu0  ;;  %v3191_v59 = vpop.f32.mrf.mxu1 }
 0x174   : > { %4956 = vst [vmem:[#allocation2 + $0x30] sm:$0xf] %v18852_v16  ;;  %4957 = vst [vmem:[#allocation2 + $0x34] sm:$0xf] %v18852_v16  ;;  %v15555_v33 = vadd.f32 %v2705_v60, %v15301_v28  ;;  %13058 = vmatpush3.bf16.msra.mxu0 %v13512_v19 }
 0x175   : > { %4958 = vst [vmem:[#allocation2 + $0x38] sm:$0x1] %v18852_v16  ;;  %4959 = vst [vmem:[#allocation2 + $0x3c] sm:$0xf] %v18852_v16  ;;  %v12844_v54 = vpop.f32.mrf.mxu0  ;;  %v12882_v55 = vpop.f32.mrf.mxu1  ;;  %13059 = vmatprep.subr.bf16.mxu0 %v13513_v4 }
 0x176   : > { %4960 = vst [vmem:[#allocation2 + $0x40] sm:$0xf] %v18852_v16  ;;  %4961 = vst [vmem:[#allocation2 + $0x44] sm:$0x1] %v18852_v16  ;;  %v2823_v49 = vadd.f32 %v12844_v54, %v15308_v18  ;;  %v13508_v18 = vld [vmem:[%s18840_s3 + $0x60] sm:$0xff]  }
 0x177   : > { %4962 = vst [vmem:[#allocation2 + $0x48] sm:$0xf] %v18852_v16  ;;  %4963 = vst [vmem:[#allocation2 + $0x4c] sm:$0xf] %v18852_v16  ;;  %v15561_v2 = vpop.f32.mrf.mxu0  ;;  %13011 = vmatprep.subr.bf16.mxu1 %v13508_v18 }
 0x178   : > { %4964 = vst [vmem:[#allocation2 + $0x50] sm:$0x1] %v18852_v16  ;;  %4965 = vst [vmem:[#allocation2 + $0x54] sm:$0xf] %v18852_v16  ;;  %v15566_v63 = vadd.f32 %v15480_v21, %v2823_v49  ;;  %13060 = vmatpush3.bf16.msra.mxu0 %v13513_v4  ;;  %13012 = vmatpush3.bf16.msra.mxu1 %v13508_v18  ;;  %v13516_v18 = vld [vmem:[%s18840_s3 + $0x10] sm:$0xff]  }
 0x179   : > { %4966 = vst [vmem:[#allocation2 + $0x58] sm:$0xf] %v18852_v16  ;;  %4967 = vst [vmem:[#allocation2 + $0x5c] sm:$0x1] %v18852_v16  ;;  %v12847_v28 = vpop.f32.mrf.mxu0 }
 0x17a   : > { %4968 = vst [vmem:[#allocation2 + $0x60] sm:$0xf] %v18852_v16  ;;  %4969 = vst [vmem:[#allocation2 + $0x64] sm:$0xf] %v18852_v16  ;;  %v2826_v60 = vadd.f32 %v12847_v28, %v15319_v40  ;;  %v13515_v40 = vld [vmem:[%s18840_s3 + $0x18] sm:$0xff]  }
 0x17b   : > { %4970 = vst [vmem:[#allocation2 + $0x68] sm:$0x1] %v18852_v16  ;;  %4971 = vst [vmem:[#allocation2 + $0x6c] sm:$0xf] %v18852_v16  ;;  %v2721_v54 = vpop.f32.mrf.mxu0  ;;  %13061 = vmatprep.subr.bf16.mxu0 %v13515_v40 }
 0x17c   : > { %4972 = vst [vmem:[#allocation2 + $0x70] sm:$0xf] %v18852_v16  ;;  %4973 = vst [vmem:[#allocation2 + $0x74] sm:$0x1] %v18852_v16  ;;  %v15577_v21 = vadd.f32 %v15492_v45, %v2826_v60  ;;  %13062 = vmatpush3.bf16.msra.mxu0 %v13515_v40 }
 0x17d   : > { %4974 = vst [vmem:[#allocation2 + $0x78] sm:$0xf] %v18852_v16  ;;  %4975 = vst [vmem:[#allocation2 + $0x7c] sm:$0xf] %v18852_v16  ;;  %v12848_v19 = vpop.f32.mrf.mxu0  ;;  %13063 = vmatprep.subr.bf16.mxu0 %v13516_v18 }
 0x17e   : > { %4976 = vst [vmem:[#allocation2 + $0x80] sm:$0x1] %v18852_v16  ;;  %4977 = vst [vmem:[#allocation2 + $0x84] sm:$0xf] %v18852_v16  ;;  %v2827_v28 = vadd.f32 %v12848_v19, %v15334_v26 }
 0x17f   : > { %4978 = vst [vmem:[#allocation2 + $0x88] sm:$0xf] %v18852_v16  ;;  %4979 = vst [vmem:[#allocation2 + $0x8c] sm:$0x1] %v18852_v16  ;;  %v15585_v29 = vpop.f32.mrf.mxu0 }
 0x180   : > { %4980 = vst [vmem:[#allocation2 + $0x90] sm:$0xf] %v18852_v16  ;;  %4981 = vst [vmem:[#allocation2 + $0x94] sm:$0xf] %v18852_v16  ;;  %13064 = vmatpush3.bf16.msra.mxu0 %v13516_v18 }
 0x181   : > { %4982 = vst [vmem:[#allocation2 + $0x98] sm:$0x1] %v18852_v16  ;;  %4983 = vst [vmem:[#allocation2 + $0x9c] sm:$0xf] %v18852_v16  ;;  %v12851_v45 = vpop.f32.mrf.mxu0 }
 0x182   : > { %4984 = vst [vmem:[#allocation2 + $0xa0] sm:$0xf] %v18852_v16  ;;  %4985 = vst [vmem:[#allocation2 + $0xa4] sm:$0x1] %v18852_v16  ;;  %v2830_v60 = vadd.f32 %v12851_v45, %v15349_v56 }
 0x183   : > { %4986 = vst [vmem:[#allocation2 + $0xa8] sm:$0xf] %v18852_v16  ;;  %4987 = vst [vmem:[#allocation2 + $0xac] sm:$0xf] %v18852_v16 }
 0x184   : > { %4988 = vst [vmem:[#allocation2 + $0xb0] sm:$0x1] %v18852_v16  ;;  %4989 = vst [vmem:[#allocation2 + $0xb4] sm:$0xf] %v18852_v16 }
 0x185   : > { %4990 = vst [vmem:[#allocation2 + $0xb8] sm:$0xf] %v18852_v16  ;;  %4991 = vst [vmem:[#allocation2 + $0xbc] sm:$0x1] %v18852_v16 }
 0x186   : > { %4992 = vst [vmem:[#allocation2 + $0xc0] sm:$0xf] %v18852_v16  ;;  %4993 = vst [vmem:[#allocation2 + $0xc4] sm:$0xf] %v18852_v16 }
 0x187   : > { %4994 = vst [vmem:[#allocation2 + $0xc8] sm:$0x1] %v18852_v16  ;;  %4995 = vst [vmem:[#allocation2 + $0xcc] sm:$0xf] %v18852_v16 }
 0x188   : > { %4996 = vst [vmem:[#allocation2 + $0xd0] sm:$0xf] %v18852_v16  ;;  %4997 = vst [vmem:[#allocation2 + $0xd4] sm:$0x1] %v18852_v16  ;;  %v15563_v16 = vpop.f32.mrf.mxu1 }
 0x189   : > { %18961 = vst [vmem:[#allocation20_spill] sm:$0xff] %v15552_v22  ;;  %18962 = vst [vmem:[#allocation11_spill] sm:$0xff] %v15555_v33 }
 0x18a   : > { %18963 = vst [vmem:[#allocation17_spill] sm:$0xff] %v15563_v16  ;;  %v12885_v48 = vpop.f32.mrf.mxu1  ;;  %v2824_v16 = vadd.f32 %v2721_v54, %v15326_v10  ;;  %18964 = vst [vmem:[#allocation22_spill] sm:$0xff] %v15585_v29  ;;  %v15589_v10 = vadd.f32 %v12882_v55, %v2827_v28  ;;  %v2737_v54 = vpop.f32.mrf.mxu0 }
 0x18b   : > { %v15599_v19 = vadd.f32 %v12885_v48, %v2830_v60  ;;  %v13518_v48 = vld [vmem:[%s18840_s3 + $0x8] sm:$0xff]  }
 0x18c   : > { %v3207_v37 = vpop.f32.mrf.mxu1  ;;  %v15583_v27 = vadd.f32 %v3191_v59, %v2824_v16  ;;  %v13511_v16 = vld [vmem:[%s18840_s3 + $0x58] sm:$0xff]   ;;  %v2828_v59 = vadd.f32 %v2737_v54, %v15356_v20  ;;  %v12852_v55 = vpop.f32.mrf.mxu0  ;;  %13065 = vmatprep.subr.bf16.mxu0 %v13518_v48 }
 0x18d   : > { %13013 = vmatprep.subr.bf16.mxu1 %v13511_v16  ;;  %v2831_v56 = vadd.f32 %v12852_v55, %v15364_v14  ;;  %13066 = vmatpush3.bf16.msra.mxu0 %v13518_v48  ;;  %v5536_v48 = vld [vmem:[#allocation2 + $0x4] sm:$0xf] }
 0x18e   : > { %v12886_v49 = vpop.f32.mrf.mxu1  ;;  %v15602_v28 = vadd.f32 %v3207_v37, %v2828_v59  ;;  %13014 = vmatpush3.bf16.msra.mxu1 %v13511_v16  ;;  %v15604_v45 = vpop.f32.mrf.mxu0  ;;  %v13514_v37 = vld [vmem:[%s18840_s3 + $0x50] sm:$0xff]  }
 0x18f   : > { %18966 = vst [vmem:[#allocation18_spill] sm:$0xff] %v15604_v45  ;;  %v15608_v29 = vadd.f32 %v12886_v49, %v2831_v56  ;;  %13015 = vmatprep.subr.bf16.mxu1 %v13514_v37 }
 0x190   : > { %v15587_v33 = vpop.f32.mrf.mxu1  ;;  %v12855_v35 = vpop.f32.mrf.mxu0 }
 0x191   : > { %18965 = vst [vmem:[#allocation16_spill] sm:$0xff] %v15587_v33  ;;  %v2834_v60 = vadd.f32 %v12855_v35, %v15378_v61  ;;  %v13519_v61 = vld [vmem:[%s18840_s3] sm:$0xff]  }
 0x192   : > { %v12889_v4 = vpop.f32.mrf.mxu1  ;;  %v2753_v14 = vpop.f32.mrf.mxu0  ;;  %13016 = vmatpush3.bf16.msra.mxu1 %v13514_v37  ;;  %13067 = vmatprep.subr.bf16.mxu0 %v13519_v61 }
 0x193   : > { %v2832_v54 = vadd.f32 %v2753_v14, %v15386_v9  ;;  %v15618_v16 = vadd.f32 %v12889_v4, %v2834_v60  ;;  %13068 = vmatpush3.bf16.msra.mxu0 %v13519_v61  ;;  %v5535_v4 = vld [vmem:[#allocation2] sm:$0xf] }
 0x194   : > { %v3223_v26 = vpop.f32.mrf.mxu1  ;;  %v12856_v49 = vpop.f32.mrf.mxu0  ;;  %v11871_v14 = vcombine.low %v5535_v4, %v5536_v48 }
 0x195   : > { %v2835_v35 = vadd.f32 %v12856_v49, %v15393_v6  ;;  %v15624_v55 = vadd.f32 %v3223_v26, %v2832_v54  ;;  %v13517_v6 = vld [vmem:[%s18840_s3 + $0x48] sm:$0xff]  }
 0x196   : > { %v12890_v40 = vpop.f32.mrf.mxu1  ;;  %v15626_v56 = vpop.f32.mrf.mxu0  ;;  %13069 = vmatprep.mubr.bf16.mxu0 %v11871_v14  ;;  %13017 = vmatprep.subr.bf16.mxu1 %v13517_v6  ;;  %v13521_v14 = vld [vmem:[%s18840_s3 + $0x40] sm:$0xff]  }
 0x197   : > { %18968 = vst [vmem:[#allocation24_spill] sm:$0xff] %v15626_v56  ;;  %v15630_v9 = vadd.f32 %v12890_v40, %v2835_v35  ;;  %13018 = vmatpush3.bf16.msra.mxu1 %v13517_v6 }
 0x198   : > { %v15606_v33 = vpop.f32.mrf.mxu1  ;;  %v12859_v60 = vpop.f32.mrf.mxu0  ;;  %13019 = vmatprep.subr.bf16.mxu1 %v13521_v14 }
 0x199   : > { %18967 = vst [vmem:[#allocation19_spill] sm:$0xff] %v15606_v33  ;;  %v2838_v45 = vadd.f32 %v12859_v60, %v15405_v7 }
 0x19a   : > { %v12893_v20 = vpop.f32.mrf.mxu1  ;;  %v2769_v26 = vpop.f32.mrf.mxu0 }
 0x19b   : > { %v2836_v49 = vadd.f32 %v2769_v26, %v15416_v24  ;;  %13020 = vmatpush3.bf16.msra.mxu1 %v13521_v14 }
 0x19c   : > { %v3239_v18 = vpop.f32.mrf.mxu1  ;;  %v12860_v40 = vpop.f32.mrf.mxu0 }
 0x19d   : > { %v2839_v35 = vadd.f32 %v12860_v40, %v15423_v34  ;;  %v15640_v56 = vadd.f32 %v3239_v18, %v2836_v49 }
 0x19e   : > { %v12894_v59 = vpop.f32.mrf.mxu1  ;;  %v15642_v7 = vpop.f32.mrf.mxu0 }
 0x19f   : > { %18970 = vst [vmem:[#allocation26_spill] sm:$0xff] %v15642_v7  ;;  %v15649_v22 = vadd.f32 %v12894_v59, %v2839_v35  ;;  %v5600_v59 = vshrl.u32 %v5535_v4, 16  ;;  %v5603_v35 = vshll.u32 %v5535_v4, 16 }
 0x1a0   : > { %v15628_v33 = vpop.f32.mrf.mxu1  ;;  %v12863_v24 = vpop.f32.mrf.mxu0 }
 0x1a1   : > { %18969 = vst [vmem:[#allocation25_spill] sm:$0xff] %v15628_v33  ;;  %v15637_v33 = vadd.f32 %v12893_v20, %v2838_v45  ;;  %v2842_v45 = vadd.f32 %v12863_v24, %v15433_v58  ;;  %v5613_v58 = vshrl.u32 %v5536_v48, 16 }
 0x1a2   : > { %v12897_v37 = vpop.f32.mrf.mxu1  ;;  %v2785_v6 = vpop.f32.mrf.mxu0 }
 0x1a3   : > { %v2840_v34 = vadd.f32 %v2785_v6, %v15436_v5  ;;  %v15653_v18 = vadd.f32 %v12897_v37, %v2842_v45  ;;  %v5602_v37 = vrot.slane %v5600_v59, 4  ;;  %v5605_v45 = vrot.slane %v5603_v35, 5 }
 0x1a4   : > { %v3255_v54 = vpop.f32.mrf.mxu1  ;;  %v12864_v49 = vpop.f32.mrf.mxu0  ;;  %v5609_v6 = vshll.u32 %v5536_v48, 16  ;;  %v5615_v4 = vrot.slane %v5613_v58, 4 }
 0x1a5   : > { %v2843_v40 = vadd.f32 %v12864_v49, %v15445_v13 }
 0x1a6   : > { %v12898_v61 = vpop.f32.mrf.mxu1  ;;  %v15658_v15 = vpop.f32.mrf.mxu0 }
 0x1a7   : > { %18972 = vst [vmem:[#allocation31_spill] sm:$0xff] %v15658_v15  ;;  %v15660_v30 = vadd.f32 %v12898_v61, %v2843_v40  ;;  %v5583_v61 = vld [vmem:[#allocation2 + $0x8] sm:$0x1] }
 0x1a8   : > { %v15644_v60 = vpop.f32.mrf.mxu1  ;;  %v12867_v14 = vpop.f32.mrf.mxu0  ;;  %v5619_v35 = vshll.u32 %v5583_v61, 16 }
 0x1a9   : > { %18971 = vst [vmem:[#allocation30_spill] sm:$0xff] %v15644_v60  ;;  %v15656_v60 = vadd.f32 %v3255_v54, %v2840_v34  ;;  %v2846_v5 = vadd.f32 %v12867_v14, %v15454_v43  ;;  %v5611_v34 = vrot.slane %v5609_v6, 5 }
 0x1aa   : > { %v12901_v20 = vpop.f32.mrf.mxu1  ;;  %v2801_v38 = vpop.f32.mrf.mxu0 }
 0x1ab   : > { %v2844_v13 = vadd.f32 %v2801_v38, %v15459_v47  ;;  %v15666_v54 = vadd.f32 %v12901_v20, %v2846_v5  ;;  %v5616_v43 = vor.u32 %v5615_v4, %v5611_v34  ;;  %v5621_v5 = vrot.slane %v5619_v35, 5  ;;  %v13525_v4 = vld [vmem:[%s18840_s3 + $0xb8] sm:$0xff]  }
 0x1ac   : > { %v3271_v26 = vpop.f32.mrf.mxu1  ;;  %v12868_v49 = vpop.f32.mrf.mxu0  ;;  %13101 = vmatprep.subr.bf16.mxu1 %v13525_v4 }
 0x1ad   : > { %v2847_v40 = vadd.f32 %v12868_v49, %v15465_v3  ;;  %v15671_v17 = vadd.f32 %v3271_v26, %v2844_v13  ;;  %v5617_v20 = vrot.slane %v5616_v43, 4 }
 0x1ae   : > { %v12902_v7 = vpop.f32.mrf.mxu1  ;;  %v15673_v59 = vpop.f32.mrf.mxu0 }
 0x1af   : > { %v15677_v47 = vadd.f32 %v12902_v7, %v2847_v40 }
 0x1b0   : > { %v15662_v24 = vpop.f32.mrf.mxu1  ;;  %v15679_v58 = vpop.f32.mrf.mxu0 }
 0x1b1   : > { %18973 = vst [vmem:[#allocation32_spill] sm:$0xff] %v15662_v24  ;;  %v5606_v24 = vor.u32 %v5605_v45, %v5602_v37  ;;  %v5622_v37 = vsel %vm13804_vm4, %v5617_v20, %v5621_v5 }
 0x1b2   : > { %v15668_v15 = vpop.f32.mrf.mxu1  ;;  %v15685_v26 = vpop.f32.mrf.mxu0 }
 0x1b3   : > { %v5607_v38 = vrot.slane %v5606_v24, 4 }
 0x1b4   : > { %v15675_v48 = vpop.f32.mrf.mxu1  ;;  %v15691_v7 = vpop.f32.mrf.mxu0 }
 0x1b5   : > { %v5612_v3 = vsel %vm13804_vm4, %v5607_v38, %v5611_v34 }
 0x1b6   : > { %v15681_v14 = vpop.f32.mrf.mxu1  ;;  %v11847_v6 = vcombine.low %v5612_v3, %v5622_v37  ;;  %v15693_v24 = vpop.f32.mrf.mxu0 }
 0x1b8   : > { %v15689_v45 = vpop.f32.mrf.mxu1  ;;  %13021 = vmatprep.mubr.bf16.mxu1 %v11847_v6  ;;  %v15700_v34 = vpop.f32.mrf.mxu0 }
 0x1ba   : > { %v15695_v13 = vpop.f32.mrf.mxu1  ;;  %v15704_v61 = vpop.f32.mrf.mxu0 }
 0x1bc   : > { %v15702_v49 = vpop.f32.mrf.mxu1  ;;  %v12912_v43 = vpop.f32.mrf.mxu0 }
 0x1bd   : > { %18974 = vst [vmem:[#allocation33_spill] sm:$0xff] %v15702_v49  ;;  %v15709_v35 = vadd.f32 %v12912_v43, %v15566_v63 }
 0x1be   : > { %v15706_v40 = vpop.f32.mrf.mxu1  ;;  %v15713_v20 = vpop.f32.mrf.mxu0 }
 0x1bf   : > { %18975 = vst [vmem:[#allocation34_spill] sm:$0xff] %v15706_v40 }
 0x1c0   : > { %v15711_v38 = vpop.f32.mrf.mxu1  ;;  %v12915_v5 = vpop.f32.mrf.mxu0 }
 0x1c1   : > { %18976 = vst [vmem:[#allocation35_spill] sm:$0xff] %v15711_v38  ;;  %v15718_v37 = vadd.f32 %v12915_v5, %v15577_v21 }
 0x1c2   : > { %v15715_v3 = vpop.f32.mrf.mxu1  ;;  %v3550_v6 = vpop.f32.mrf.mxu0 }
 0x1c3   : > { %18977 = vst [vmem:[#allocation36_spill] sm:$0xff] %v15715_v3  ;;  %18978 = vst [vmem:[#allocation37_spill] sm:$0xff] %v15718_v37  ;;  %v15723_v36 = vadd.f32 %v3550_v6, %v15583_v27 }
 0x1c4   : > { %v15720_v4 = vpop.f32.mrf.mxu1  ;;  %v12916_v40 = vpop.f32.mrf.mxu0 }
 0x1c5   : > { %18979 = vst [vmem:[#allocation38_spill] sm:$0xff] %v15720_v4  ;;  %v15728_v63 = vadd.f32 %v12916_v40, %v15589_v10 }
 0x1c6   : > { %v15725_v49 = vpop.f32.mrf.mxu1  ;;  %v15730_v43 = vpop.f32.mrf.mxu0 }
 0x1c7   : > { %18980 = vst [vmem:[#allocation39_spill] sm:$0xff] %v15725_v49  ;;  %18981 = vst [vmem:[#allocation40_spill] sm:$0xff] %v15728_v63 }
 0x1c8   : > { %v15732_v38 = vpop.f32.mrf.mxu1  ;;  %v12919_v3 = vpop.f32.mrf.mxu0 }
 0x1c9   : > { %18982 = vst [vmem:[#allocation41_spill] sm:$0xff] %v15732_v38  ;;  %v15735_v21 = vadd.f32 %v12919_v3, %v15599_v19 }
 0x1ca   : > { %v3566_v5 = vpop.f32.mrf.mxu0  ;;  %v15737_v37 = vpop.f32.mrf.mxu1 }
 0x1cb   : > { %v15740_v27 = vadd.f32 %v3566_v5, %v15602_v28 }
 0x1cc   : > { %v12920_v6 = vpop.f32.mrf.mxu0  ;;  %v15742_v4 = vpop.f32.mrf.mxu1 }
 0x1cd   : > { %18983 = vst [vmem:[#allocation42_spill] sm:$0xff] %v15740_v27  ;;  %18984 = vst [vmem:[#allocation43_spill] sm:$0xff] %v15742_v4  ;;  %v15745_v10 = vadd.f32 %v12920_v6, %v15608_v29  ;;  %v19004_v27 = vld [vmem:[#allocation27_spill] sm:$0xff] }
 0x1ce   : > { %v15747_v40 = vpop.f32.mrf.mxu0  ;;  %v15749_v49 = vpop.f32.mrf.mxu1 }
 0x1cf   : > { %18985 = vst [vmem:[#allocation44_spill] sm:$0xff] %v15745_v10  ;;  %18986 = vst [vmem:[#allocation45_spill] sm:$0xff] %v15749_v49 }
 0x1d0   : > { %v12923_v38 = vpop.f32.mrf.mxu0  ;;  %v15751_v63 = vpop.f32.mrf.mxu1 }
 0x1d1   : > { %18987 = vst [vmem:[#allocation46_spill] sm:$0xff] %v15751_v63  ;;  %v15754_v19 = vadd.f32 %v12923_v38, %v15618_v16 }
 0x1d2   : > { %v3582_v3 = vpop.f32.mrf.mxu0  ;;  %v15759_v5 = vpop.f32.mrf.mxu1 }
 0x1d3   : > { %18988 = vst [vmem:[#allocation47_spill] sm:$0xff] %v15754_v19  ;;  %v15757_v28 = vadd.f32 %v3582_v3, %v15624_v55  ;;  %18990 = vst [vmem:[#allocation49_spill] sm:$0xff] %v15759_v5  ;;  %v19001_v19 = vld [vmem:[#allocation21_spill] sm:$0xff] }
 0x1d4   : > { %v12924_v4 = vpop.f32.mrf.mxu0  ;;  %v15764_v6 = vpop.f32.mrf.mxu1 }
 0x1d5   : > { %18989 = vst [vmem:[#allocation48_spill] sm:$0xff] %v15757_v28  ;;  %v15762_v29 = vadd.f32 %v12924_v4, %v15630_v9  ;;  %18992 = vst [vmem:[#allocation51_spill] sm:$0xff] %v15764_v6  ;;  %v18999_v6 = vld [vmem:[#allocation12_spill] sm:$0xff] }
 0x1d6   : > { %v15766_v10 = vpop.f32.mrf.mxu0  ;;  %v15768_v49 = vpop.f32.mrf.mxu1 }
 0x1d7   : > { %18991 = vst [vmem:[#allocation50_spill] sm:$0xff] %v15762_v29  ;;  %18993 = vst [vmem:[#allocation52_spill] sm:$0xff] %v15768_v49  ;;  %v19000_v49 = vld [vmem:[#allocation7_spill] sm:$0xff] }
 0x1d8   : > { %v12927_v63 = vpop.f32.mrf.mxu0  ;;  %v15773_v38 = vpop.f32.mrf.mxu1  ;;  %v1247_v5 = vadd.f32 %v19000_v49, %v18999_v6 }
 0x1d9   : > { %v15771_v16 = vadd.f32 %v12927_v63, %v15637_v33  ;;  %18995 = vst [vmem:[#allocation54_spill] sm:$0xff] %v15773_v38  ;;  %v19002_v33 = vld [vmem:[#allocation14_spill] sm:$0xff] }
 0x1da   : > { %v3598_v55 = vpop.f32.mrf.mxu0  ;;  %v15781_v4 = vpop.f32.mrf.mxu1  ;;  %v1263_v63 = vadd.f32 %v19002_v33, %v19001_v19  ;;  %v1748_v49 = vadd.f32 %v15388_v41, %v1247_v5 }
 0x1db   : > { %18994 = vst [vmem:[#allocation53_spill] sm:$0xff] %v15771_v16  ;;  %v15776_v3 = vadd.f32 %v3598_v55, %v15640_v56  ;;  %18998 = vst [vmem:[#allocation57_spill] sm:$0xff] %v15781_v4  ;;  %v19005_v56 = vld [vmem:[#allocation23_spill] sm:$0xff] }
 0x1dc   : > { %v12928_v28 = vpop.f32.mrf.mxu0  ;;  %v15789_v16 = vpop.f32.mrf.mxu1  ;;  %v1279_v55 = vadd.f32 %v19005_v56, %v19004_v27  ;;  %v1752_v6 = vadd.f32 %v15418_v42, %v1263_v63  ;;  %v2099_v42 = vadd.f32 %v15303_v44, %v15332_v32  ;;  %v3288_v44 = vadd.f32 %v15447_v25, %v15473_v23  ;;  %v19008_v32 = vld [vmem:[#allocation5_spill] sm:$0xff]  ;;  %v19014_v63 = vld [vmem:[#allocation22_spill] sm:$0xff] }
 0x1dd   : > { %18996 = vst [vmem:[#allocation55_spill] sm:$0xff] %v15776_v3  ;;  %v15779_v9 = vadd.f32 %v12928_v28, %v15649_v22  ;;  %19003 = vst [vmem:[#allocation12_spill] sm:$0xff] %v15789_v16  ;;  %v19006_v3 = vld [vmem:[#allocation28_spill] sm:$0xff]  ;;  %v19017_v25 = vld [vmem:[#allocation18_spill] sm:$0xff] }
 0x1de   : > { %v15783_v29 = vpop.f32.mrf.mxu0  ;;  %v1295_v22 = vadd.f32 %v19006_v3, %v15226_v8  ;;  %v15802_v19 = vpop.f32.mrf.mxu1  ;;  %v1756_v16 = vadd.f32 %v15441_v53, %v1279_v55  ;;  %v2095_v8 = vadd.f32 %v15271_v31, %v15306_v11  ;;  %v2103_v53 = vadd.f32 %v15328_v46, %v15362_v52  ;;  %v19009_v3 = vld [vmem:[#allocation15_spill] sm:$0xff]  ;;  %v19010_v46 = vld [vmem:[#allocation9_spill] sm:$0xff] }
 0x1df   : > { %18997 = vst [vmem:[#allocation56_spill] sm:$0xff] %v15779_v9  ;;  %v19007_v9 = vld [vmem:[#allocation29_spill] sm:$0xff]  ;;  %v3289_v52 = vadd.f32 %v19010_v46, %v19009_v3  ;;  %v2825_v55 = vadd.f32 %v19014_v63, %v2099_v42 }
 0x1e0   : > { %v12931_v38 = vpop.f32.mrf.mxu0  ;;  %v2091_v4 = vadd.f32 %v19007_v9, %v15276_v0  ;;  %v1760_v27 = vadd.f32 %v15461_v62, %v1295_v22  ;;  %v15812_v0 = vpop.f32.mrf.mxu1  ;;  %v2107_v62 = vadd.f32 %v15358_v12, %v1748_v49  ;;  %v2821_v31 = vadd.f32 %v15561_v2, %v2095_v8  ;;  %v19011_v12 = vld [vmem:[#allocation6_spill] sm:$0xff] }
 0x1e1   : > { %v15796_v28 = vadd.f32 %v12931_v38, %v15653_v18  ;;  %v2829_v23 = vadd.f32 %v19017_v25, %v2103_v53 }
 0x1e2   : > { %v3614_v33 = vpop.f32.mrf.mxu0  ;;  %v2817_v18 = vadd.f32 %v15488_v50, %v2091_v4  ;;  %v2115_v50 = vadd.f32 %v15420_v1, %v1756_v16  ;;  %v2119_v38 = vadd.f32 %v15443_v39, %v1760_v27  ;;  %v19013_v4 = vld [vmem:[#allocation13_spill] sm:$0xff]  ;;  %v15838_v22 = vpop.f32.mrf.mxu1  ;;  %v19015_v39 = vld [vmem:[#allocation11_spill] sm:$0xff]  ;;  %v19016_v16 = vld [vmem:[#allocation8_spill] sm:$0xff] }
 0x1e3   : > { %v15807_v56 = vadd.f32 %v3614_v33, %v15656_v60  ;;  %v2111_v60 = vadd.f32 %v15390_v57, %v1752_v6  ;;  %v19012_v57 = vld [vmem:[#allocation20_spill] sm:$0xff]  ;;  %v3290_v49 = vadd.f32 %v19016_v16, %v19015_v39  ;;  %v19019_v27 = vld [vmem:[#allocation10_spill] sm:$0xff] }
 0x1e4   : > { %v12932_v41 = vpop.f32.mrf.mxu0  ;;  %v3287_v9 = vadd.f32 %v19011_v12, %v2817_v18  ;;  %v3292_v2 = vadd.f32 %v19013_v4, %v19012_v57  ;;  %v19018_v6 = vld [vmem:[#allocation24_spill] sm:$0xff]  ;;  %v3291_v8 = vadd.f32 %v19019_v27, %v2821_v31  ;;  %v19020_v18 = vld [vmem:[#allocation26_spill] sm:$0xff]  ;;  %v2845_v42 = vadd.f32 %v15673_v59, %v2119_v38  ;;  %v15851_v46 = vpop.f32.mrf.mxu1  ;;  %v19022_v4 = vld [vmem:[#allocation17_spill] sm:$0xff] }
 0x1e5   : > { %v15817_v5 = vadd.f32 %v12932_v41, %v15660_v30  ;;  %v3286_v30 = vadd.f32 %v19008_v32, %v15478_v51  ;;  %v2833_v51 = vadd.f32 %v19018_v6, %v2107_v62  ;;  %v2837_v41 = vadd.f32 %v19020_v18, %v2111_v60  ;;  %v19021_v32 = vld [vmem:[#allocation31_spill] sm:$0xff]  ;;  %v19028_v6 = vld [vmem:[#allocation33_spill] sm:$0xff] }
 0x1e6   : > { %v15824_v11 = vpop.f32.mrf.mxu0  ;;  %v2841_v3 = vadd.f32 %v19021_v32, %v2115_v50  ;;  %v3647_v57 = vadd.f32 %v15679_v58, %v3288_v44  ;;  %v3648_v62 = vadd.f32 %v15691_v7, %v3289_v52  ;;  %v3295_v31 = vadd.f32 %v19022_v4, %v2825_v55  ;;  %v15863_v38 = vpop.f32.mrf.mxu1  ;;  %v19024_v44 = vld [vmem:[#allocation19_spill] sm:$0xff]  ;;  %v19026_v55 = vld [vmem:[#allocation30_spill] sm:$0xff] }
 0x1e7   : > { %v3645_v53 = vadd.f32 %v15685_v26, %v3286_v30  ;;  %v3646_v60 = vadd.f32 %v15693_v24, %v3287_v9  ;;  %v3651_v50 = vadd.f32 %v15700_v34, %v3292_v2  ;;  %v3649_v59 = vadd.f32 %v15704_v61, %v3290_v49  ;;  %v19025_v30 = vld [vmem:[#allocation25_spill] sm:$0xff]  ;;  %v19027_v9 = vld [vmem:[#allocation32_spill] sm:$0xff] }
 0x1e8   : > { %v12935_v1 = vpop.f32.mrf.mxu0  ;;  %v3303_v26 = vadd.f32 %v19024_v44, %v2833_v51  ;;  %v3650_v7 = vadd.f32 %v15713_v20, %v3291_v8  ;;  %v3307_v52 = vadd.f32 %v19025_v30, %v2837_v41  ;;  %v3311_v24 = vadd.f32 %v19026_v55, %v2841_v3  ;;  %v4343_v2 = vpop.f32.mrf.mxu1  ;;  %v15910_v3 = vld [vmem:[%s18840_s3 + $0xf8] sm:$0xff]   ;;  %v19044_v55 = vld [vmem:[#allocation48_spill] sm:$0xff] }
 0x1e9   : > { %v15845_v33 = vadd.f32 %v12935_v1, %v15666_v54  ;;  %v19023_v1 = vld [vmem:[#allocation16_spill] sm:$0xff]  ;;  %v3315_v34 = vadd.f32 %v19027_v9, %v2845_v42  ;;  %v3654_v61 = vadd.f32 %v15730_v43, %v3295_v31  ;;  %v4373_v16 = vadd.f32 %v15668_v15, %v3647_v57  ;;  %v19029_v43 = vld [vmem:[#allocation34_spill] sm:$0xff]  ;;  %v19030_v15 = vld [vmem:[#allocation35_spill] sm:$0xff]  ;;  %13149 = vmatprep.subr.bf16.mxu0 %v15910_v3 }
 0x1ea   : > { %v3630_v12 = vpop.f32.mrf.mxu0  ;;  %v3299_v58 = vadd.f32 %v19023_v1, %v2829_v23  ;;  %v4371_v49 = vadd.f32 %v15675_v48, %v3645_v53  ;;  %v4374_v25 = vadd.f32 %v15681_v14, %v3648_v62  ;;  %v15881_v23 = vadd.f32 %v15695_v13, %v3651_v50  ;;  %v12969_v8 = vpop.f32.mrf.mxu1  ;;  %v19031_v48 = vld [vmem:[#allocation37_spill] sm:$0xff]  ;;  %v19032_v14 = vld [vmem:[#allocation36_spill] sm:$0xff]  ;;  %v19037_v31 = vld [vmem:[#allocation42_spill] sm:$0xff] }
 0x1eb   : > { %v15857_v54 = vadd.f32 %v3630_v12, %v15671_v17  ;;  %v15884_v51 = vadd.f32 %v19028_v6, %v3649_v59  ;;  %v15888_v27 = vadd.f32 %v19029_v43, %v15709_v35  ;;  %v15891_v18 = vadd.f32 %v19030_v15, %v3650_v7  ;;  %v15905_v35 = vld [vmem:[%s18839_s2] ss:$0 sm:$0xff]  ;;  %v19035_v12 = vld [vmem:[#allocation39_spill] sm:$0xff]  ;;  %v19036_v53 = vld [vmem:[#allocation41_spill] sm:$0xff] }
 0x1ec   : > { %v12936_v63 = vpop.f32.mrf.mxu0  ;;  %v3658_v20 = vadd.f32 %v15747_v40, %v3299_v58  ;;  %v15895_v41 = vadd.f32 %v19032_v14, %v19031_v48  ;;  %v3662_v13 = vadd.f32 %v15766_v10, %v3303_v26  ;;  %v19034_v42 = vld [vmem:[#allocation40_spill] sm:$0xff]  ;;  %v15921_v10 = vadd.f32 %v15737_v37, %v15735_v21  ;;  %v4356_v62 = vpop.f32.mrf.mxu1  ;;  %v19041_v58 = vld [vmem:[#allocation46_spill] sm:$0xff]  ;;  %v19042_v37 = vld [vmem:[#allocation47_spill] sm:$0xff] }
 0x1ed   : > { %v15869_v17 = vadd.f32 %v12936_v63, %v15677_v47  ;;  %v4372_v47 = vadd.f32 %v15689_v45, %v3646_v60  ;;  %v19033_v45 = vld [vmem:[#allocation38_spill] sm:$0xff]  ;;  %v15914_v57 = vadd.f32 %v19035_v12, %v19034_v42  ;;  %v19038_v60 = vld [vmem:[#allocation43_spill] sm:$0xff]  ;;  %v19039_v59 = vld [vmem:[#allocation44_spill] sm:$0xff]  ;;  %v3666_v26 = vadd.f32 %v15783_v29, %v3307_v52 }
 0x1ee   : > { %v3633_v39 = vpop.f32.mrf.mxu0  ;;  %v15899_v40 = vadd.f32 %v19033_v45, %v15723_v36  ;;  %v15917_v36 = vadd.f32 %v19036_v53, %v3654_v61  ;;  %v15925_v50 = vadd.f32 %v19038_v60, %v19037_v31  ;;  %v19040_v63 = vld [vmem:[#allocation45_spill] sm:$0xff]  ;;  %v15932_v44 = vadd.f32 %v19041_v58, %v3658_v20  ;;  %v19045_v9 = vld [vmem:[#allocation51_spill] sm:$0xff]  ;;  %v19046_v15 = vld [vmem:[#allocation50_spill] sm:$0xff] }
 0x1ef   : > { %v15929_v1 = vadd.f32 %v19040_v63, %v19039_v59  ;;  %v19043_v21 = vld [vmem:[#allocation49_spill] sm:$0xff]  ;;  %v15942_v61 = vadd.f32 %v19045_v9, %v19044_v55  ;;  %v19047_v20 = vld [vmem:[#allocation52_spill] sm:$0xff]  ;;  %v19048_v29 = vld [vmem:[#allocation54_spill] sm:$0xff]  ;;  %v3670_v42 = vadd.f32 %v15824_v11, %v3311_v24  ;;  %v15969_v58 = vadd.f32 %v15812_v0, %v3666_v26 }
 0x1f0   : > { %v12975_v32 = vpop.f32.mrf.mxu0  ;;  %v15938_v30 = vadd.f32 %v19043_v21, %v19042_v37  ;;  %v15947_v48 = vadd.f32 %v19047_v20, %v19046_v15  ;;  %v15950_v52 = vadd.f32 %v19048_v29, %v3662_v13  ;;  %v19049_v14 = vld [vmem:[#allocation53_spill] sm:$0xff]  ;;  %v19051_v53 = vld [vmem:[#allocation55_spill] sm:$0xff]  ;;  %v19052_v31 = vld [vmem:[#allocation12_spill] sm:$0xff]  ;;  %v15973_v11 = vadd.f32 %v15838_v22, %v15796_v28 }
 0x1f1   : > { %v4843_v4 = vadd.f32 %v12975_v32, %v4373_v16  ;;  %v12970_v16 = vpop.f32.mrf.mxu1  ;;  %v19050_v45 = vld [vmem:[#allocation57_spill] sm:$0xff]  ;;  %v19054_v13 = vld [vmem:[#allocation56_spill] sm:$0xff]  ;;  %v3674_v24 = vadd.f32 %v3633_v39, %v3315_v34  ;;  %v15986_v0 = vadd.f32 %v15863_v38, %v15817_v5  ;;  %v15988_v28 = vadd.f32 %v4343_v2, %v3670_v42 }
 0x1f2   : > { %v4714_v7 = vpop.f32.mrf.mxu0  ;;  %v15954_v32 = vadd.f32 %v19050_v45, %v19049_v14  ;;  %v15966_v63 = vadd.f32 %v15802_v19, %v19054_v13  ;;  %v15982_v19 = vadd.f32 %v15851_v46, %v15807_v56  ;;  %v15991_v22 = vadd.f32 %v12969_v8, %v15845_v33 }
 0x1f3   : > { %v4882_v6 = vadd.f32 %v15905_v35, %v4843_v4  ;;  %v4841_v43 = vadd.f32 %v4714_v7, %v4371_v49  ;;  %v15959_v4 = vadd.f32 %v19052_v31, %v19051_v53  ;;  %v4359_v37 = vpop.f32.mrf.mxu1  ;;  %v15994_v39 = vadd.f32 %v4356_v62, %v15857_v54  ;;  %v5421_v53 = vld [vmem:[#allocation2 + $0xc] sm:$0xf] }
 0x1f4   : > { %v12976_v12 = vpop.f32.mrf.mxu0  ;;  %v16001_v56 = vadd.f32 %v12970_v16, %v15869_v17  ;;  %v16003_v5 = vadd.f32 %v4359_v37, %v3674_v24  ;;  %v5430_v17 = vld [vmem:[#allocation2 + $0x18] sm:$0xf] }
 0x1f5   : > { %v15961_v49 = vmax.f32 %v4882_v6, 0.0  ;;  %v4880_v60 = vadd.f32 %v15905_v35, %v4841_v43  ;;  %v4844_v59 = vadd.f32 %v12976_v12, %v4374_v25 }
 0x1f6   : > { %v4717_v7 = vpop.f32.mrf.mxu0 }
 0x1f7   : > { %19053 = vst [vmem:[#allocation7_spill] sm:$0xff] %v15961_v49  ;;  %v12300_v21 = vpack.c.bf16 %v15961_v49, %v15961_v49  ;;  %v15977_v55 = vmax.f32 %v4880_v60, 0.0  ;;  %v4883_v25 = vadd.f32 %v15905_v35, %v4844_v59  ;;  %v4842_v9 = vadd.f32 %v4717_v7, %v4372_v47 }
 0x1f8   : > { %v12979_v34 = vpop.f32.mrf.mxu0 }
 0x1f9   : > { %19055 = vst [vmem:[#allocation21_spill] sm:$0xff] %v15977_v55  ;;  %v5115_v26 = vshrl.u32 %v12300_v21, 16  ;;  %v12298_v47 = vpack.c.bf16 %v15977_v55, %v15977_v55  ;;  %v15998_v6 = vmax.f32 %v4883_v25, 0.0  ;;  %v4881_v46 = vadd.f32 %v15905_v35, %v4842_v9 }
 0x1fa   : > { %v4847_v33 = vadd.f32 %v12979_v34, %v15881_v23  ;;  %v4730_v38 = vpop.f32.mrf.mxu0  ;;  %v5118_v8 = vshll.u32 %v12300_v21, 16  ;;  %v5434_v34 = vld [vmem:[#allocation2 + $0x20] sm:$0x1] }
 0x1fb   : > { %19056 = vst [vmem:[#allocation14_spill] sm:$0xff] %v15998_v6  ;;  %v5117_v2 = vrot.slane %v5115_v26, 7  ;;  %v5098_v54 = vshrl.u32 %v12298_v47, 16  ;;  %v12301_v62 = vpack.c.bf16 %v15998_v6, %v15998_v6  ;;  %v5101_v16 = vshll.u32 %v12298_v47, 16 }
 0x1fc   : > { %v16015_v15 = vmax.f32 %v4881_v46, 0.0  ;;  %v4886_v20 = vadd.f32 %v15905_v35, %v4847_v33  ;;  %v4845_v23 = vadd.f32 %v4730_v38, %v15884_v51  ;;  %v12980_v29 = vpop.f32.mrf.mxu0 }
 0x1fd   : > { %v5120_v14 = vor.u32 %v5118_v8, %v5117_v2  ;;  %v5121_v45 = vrot.slane %v5117_v2, 4  ;;  %v5100_v42 = vrot.slane %v5098_v54, 7  ;;  %v5123_v12 = vshrl.u32 %v12301_v62, 16 }
 0x1fe   : > { %19059 = vst [vmem:[#allocation27_spill] sm:$0xff] %v16015_v15  ;;  %v5126_v31 = vshll.u32 %v12301_v62, 16  ;;  %v12299_v60 = vpack.c.bf16 %v16015_v15, %v16015_v15  ;;  %v16021_v59 = vmax.f32 %v4886_v20, 0.0  ;;  %v4884_v13 = vadd.f32 %v15905_v35, %v4845_v23  ;;  %v4733_v24 = vpop.f32.mrf.mxu0 }
 0x1ff   : > { %v5431_v7 = vsel %vm16011_vm13, %v5120_v14, %v5430_v17  ;;  %v5103_v37 = vor.u32 %v5101_v16, %v5100_v42  ;;  %v5104_v51 = vrot.slane %v5100_v42, 4  ;;  %v5125_v25 = vrot.slane %v5123_v12, 7 }
 0x200   : > { %19060 = vst [vmem:[#allocation23_spill] sm:$0xff] %v16021_v59  ;;  %5432 = vst [vmem:[#allocation2 + $0x18] sm:$0xf] %v5431_v7  ;;  %v5106_v26 = vshrl.u32 %v12299_v60, 16  ;;  %v5109_v47 = vshll.u32 %v12299_v60, 16  ;;  %v12304_v46 = vpack.c.bf16 %v16021_v59, %v16021_v59  ;;  %v16040_v33 = vmax.f32 %v4884_v13, 0.0  ;;  %v12983_v38 = vpop.f32.mrf.mxu0 }
 0x201   : > { %v5422_v2 = vsel %vm16011_vm13, %v5103_v37, %v5421_v53  ;;  %v5128_v8 = vor.u32 %v5126_v31, %v5125_v25  ;;  %v5130_v54 = vrot.slane %v5125_v25, 4  ;;  %v4848_v62 = vadd.f32 %v12980_v29, %v15888_v27  ;;  %v5427_v60 = vld [vmem:[#allocation2 + $0x14] sm:$0x1]  ;;  %v5444_v25 = vld [vmem:[#allocation2 + $0x30] sm:$0xf] }
 0x202   : > { %19065 = vst [vmem:[#allocation28_spill] sm:$0xff] %v16040_v33  ;;  %5423 = vst [vmem:[#allocation2 + $0xc] sm:$0xf] %v5422_v2  ;;  %v5108_v17 = vrot.slane %v5106_v26, 7  ;;  %v5149_v16 = vshrl.u32 %v12304_v46, 16  ;;  %v5152_v20 = vshll.u32 %v12304_v46, 16  ;;  %v12302_v23 = vpack.c.bf16 %v16040_v33, %v16040_v33  ;;  %v4746_v14 = vpop.f32.mrf.mxu0 }
 0x203   : > { %v5129_v42 = vsel %vm16028_vm14, %v5121_v45, %v5128_v8  ;;  %v5435_v12 = vsel %vm16034_vm15, %v5130_v54, %v5434_v34  ;;  %v4887_v53 = vadd.f32 %v15905_v35, %v4848_v62  ;;  %v4846_v31 = vadd.f32 %v4733_v24, %v15891_v18 }
 0x204   : > { %5433 = vst [vmem:[#allocation2 + $0x1c] sm:$0xf] %v5129_v42  ;;  %5436 = vst [vmem:[#allocation2 + $0x20] sm:$0x1] %v5435_v12  ;;  %v5111_v27 = vor.u32 %v5109_v47, %v5108_v17  ;;  %v5113_v29 = vrot.slane %v5108_v17, 4  ;;  %v5151_v13 = vrot.slane %v5149_v16, 7  ;;  %v12984_v37 = vpop.f32.mrf.mxu0  ;;  %v4851_v34 = vadd.f32 %v12983_v38, %v15895_v41 }
 0x205   : > { %v5132_v7 = vshrl.u32 %v12302_v23, 16  ;;  %v5135_v26 = vshll.u32 %v12302_v23, 16  ;;  %v16053_v46 = vmax.f32 %v4887_v53, 0.0  ;;  %v4885_v45 = vadd.f32 %v15905_v35, %v4846_v31 }
 0x206   : > { %v5112_v2 = vsel %vm16028_vm14, %v5104_v51, %v5111_v27  ;;  %v5428_v18 = vsel %vm16034_vm15, %v5113_v29, %v5427_v60  ;;  %v5154_v24 = vor.u32 %v5152_v20, %v5151_v13  ;;  %v5155_v47 = vrot.slane %v5151_v13, 4  ;;  %v4749_v8 = vpop.f32.mrf.mxu0  ;;  %v5437_v51 = vld [vmem:[#allocation2 + $0x24] sm:$0xf] }
 0x207   : > { %19066 = vst [vmem:[#allocation29_spill] sm:$0xff] %v16053_v46  ;;  %5424 = vst [vmem:[#allocation2 + $0x10] sm:$0xf] %v5112_v2  ;;  %v5134_v54 = vrot.slane %v5132_v7, 7  ;;  %v12305_v62 = vpack.c.bf16 %v16053_v46, %v16053_v46  ;;  %v16063_v17 = vmax.f32 %v4885_v45, 0.0  ;;  %v4890_v16 = vadd.f32 %v15905_v35, %v4851_v34 }
 0x208   : > { %5429 = vst [vmem:[#allocation2 + $0x14] sm:$0x1] %v5428_v18  ;;  %v5445_v41 = vsel %vm16011_vm13, %v5154_v24, %v5444_v25  ;;  %v4849_v38 = vadd.f32 %v4746_v14, %v15899_v40  ;;  %v4852_v20 = vadd.f32 %v12984_v37, %v15914_v57  ;;  %v4850_v23 = vadd.f32 %v4749_v8, %v15917_v36  ;;  %v12987_v42 = vpop.f32.mrf.mxu0  ;;  %v5448_v25 = vld [vmem:[#allocation2 + $0x38] sm:$0x1] }
 0x209   : > { %19067 = vst [vmem:[#allocation5_spill] sm:$0xff] %v16063_v17  ;;  %5446 = vst [vmem:[#allocation2 + $0x30] sm:$0xf] %v5445_v41  ;;  %v5137_v12 = vor.u32 %v5135_v26, %v5134_v54  ;;  %v5138_v60 = vrot.slane %v5134_v54, 4  ;;  %v5157_v53 = vshrl.u32 %v12305_v62, 16  ;;  %v5160_v31 = vshll.u32 %v12305_v62, 16 }
 0x20a   : > { %v12303_v27 = vpack.c.bf16 %v16063_v17, %v16063_v17  ;;  %v16073_v29 = vmax.f32 %v4890_v16, 0.0  ;;  %v4888_v13 = vadd.f32 %v15905_v35, %v4849_v38  ;;  %v4891_v7 = vadd.f32 %v15905_v35, %v4852_v20  ;;  %v4762_v40 = vpop.f32.mrf.mxu0 }
 0x20b   : > { %v5438_v57 = vsel %vm16011_vm13, %v5137_v12, %v5437_v51  ;;  %v5159_v36 = vrot.slane %v5157_v53, 7  ;;  %v4889_v14 = vadd.f32 %v15905_v35, %v4850_v23  ;;  %v4855_v37 = vadd.f32 %v12987_v42, %v15921_v10  ;;  %v5441_v23 = vld [vmem:[#allocation2 + $0x2c] sm:$0x1] }
 0x20c   : > { %19068 = vst [vmem:[#allocation15_spill] sm:$0xff] %v16073_v29  ;;  %5439 = vst [vmem:[#allocation2 + $0x24] sm:$0xf] %v5438_v57  ;;  %v5140_v26 = vshrl.u32 %v12303_v27, 16  ;;  %v5143_v45 = vshll.u32 %v12303_v27, 16  ;;  %v12308_v34 = vpack.c.bf16 %v16073_v29, %v16073_v29  ;;  %v16083_v2 = vmax.f32 %v4888_v13, 0.0  ;;  %v12988_v18 = vpop.f32.mrf.mxu0 }
 0x20d   : > { %v5162_v24 = vor.u32 %v5160_v31, %v5159_v36  ;;  %v5164_v8 = vrot.slane %v5159_v36, 4  ;;  %v16085_v54 = vmax.f32 %v4891_v7, 0.0  ;;  %v16087_v62 = vmax.f32 %v4889_v14, 0.0  ;;  %v5458_v13 = vld [vmem:[#allocation2 + $0x48] sm:$0xf] }
 0x20e   : > { %19069 = vst [vmem:[#allocation9_spill] sm:$0xff] %v16083_v2  ;;  %v5142_v16 = vrot.slane %v5140_v26, 7  ;;  %v5183_v41 = vshrl.u32 %v12308_v34, 16  ;;  %v5186_v51 = vshll.u32 %v12308_v34, 16  ;;  %v12306_v10 = vpack.c.bf16 %v16083_v2, %v16083_v2  ;;  %v4765_v57 = vpop.f32.mrf.mxu0 }
 0x20f   : > { %19070 = vst [vmem:[#allocation6_spill] sm:$0xff] %v16085_v54  ;;  %19071 = vst [vmem:[#allocation20_spill] sm:$0xff] %v16087_v62  ;;  %v5163_v38 = vsel %vm16028_vm14, %v5155_v47, %v5162_v24  ;;  %v5449_v20 = vsel %vm16034_vm15, %v5164_v8, %v5448_v25  ;;  %v12309_v42 = vpack.c.bf16 %v16085_v54, %v16085_v54  ;;  %v5455_v54 = vld [vmem:[#allocation2 + $0x44] sm:$0x1] }
 0x210   : > { %v12307_v12 = vpack.c.bf16 %v16087_v62, %v16087_v62  ;;  %5447 = vst [vmem:[#allocation2 + $0x34] sm:$0xf] %v5163_v38  ;;  %5450 = vst [vmem:[#allocation2 + $0x38] sm:$0x1] %v5449_v20  ;;  %v5145_v53 = vor.u32 %v5143_v45, %v5142_v16  ;;  %v5147_v31 = vrot.slane %v5142_v16, 4  ;;  %v5185_v27 = vrot.slane %v5183_v41, 7 }
 0x211   : > { %v5166_v7 = vshrl.u32 %v12306_v10, 16  ;;  %v5169_v36 = vshll.u32 %v12306_v10, 16  ;;  %v5191_v47 = vshrl.u32 %v12309_v42, 16  ;;  %v5194_v14 = vshll.u32 %v12309_v42, 16  ;;  %v5451_v16 = vld [vmem:[#allocation2 + $0x3c] sm:$0xf] }
 0x212   : > { %v5174_v26 = vshrl.u32 %v12307_v12, 16  ;;  %v5146_v25 = vsel %vm16028_vm14, %v5138_v60, %v5145_v53  ;;  %v5442_v34 = vsel %vm16034_vm15, %v5147_v31, %v5441_v23  ;;  %v5188_v24 = vor.u32 %v5186_v51, %v5185_v27  ;;  %v5462_v42 = vld [vmem:[#allocation2 + $0x50] sm:$0x1]  ;;  %v12991_v51 = vpop.f32.mrf.mxu0 }
 0x213   : > { %v5189_v8 = vrot.slane %v5185_v27, 4  ;;  %5440 = vst [vmem:[#allocation2 + $0x28] sm:$0xf] %v5146_v25  ;;  %5443 = vst [vmem:[#allocation2 + $0x2c] sm:$0x1] %v5442_v34  ;;  %v5168_v45 = vrot.slane %v5166_v7, 7  ;;  %v4894_v29 = vadd.f32 %v15905_v35, %v4855_v37  ;;  %v4853_v60 = vadd.f32 %v4762_v40, %v15925_v50 }
 0x214   : > { %v5193_v41 = vrot.slane %v5191_v47, 7  ;;  %v5176_v38 = vrot.slane %v5174_v26, 7  ;;  %v5177_v20 = vshll.u32 %v12307_v12, 16  ;;  %v5459_v10 = vsel %vm16011_vm13, %v5188_v24, %v5458_v13  ;;  %v5537_v25 = vld [vmem:[#allocation2 + $0xc] sm:$0xf]  ;;  %v16126_v34 = vpop.f32.mrf.mxu0 }
 0x215   : > { %v4856_v23 = vadd.f32 %v12988_v18, %v15929_v1  ;;  %5460 = vst [vmem:[#allocation2 + $0x48] sm:$0xf] %v5459_v10  ;;  %v5171_v53 = vor.u32 %v5169_v36, %v5168_v45  ;;  %v5172_v31 = vrot.slane %v5168_v45, 4  ;;  %v16108_v12 = vmax.f32 %v4894_v29, 0.0  ;;  %v5472_v10 = vld [vmem:[#allocation2 + $0x60] sm:$0xf] }
 0x216   : > { %v5196_v27 = vor.u32 %v5194_v14, %v5193_v41  ;;  %v5198_v7 = vrot.slane %v5193_v41, 4  ;;  %v5179_v47 = vor.u32 %v5177_v20, %v5176_v38  ;;  %v5181_v26 = vrot.slane %v5176_v38, 4  ;;  %v5543_v62 = vld [vmem:[#allocation2 + $0x30] sm:$0xf] }
 0x217   : > { %19072 = vst [vmem:[#allocation13_spill] sm:$0xff] %v16108_v12  ;;  %v4892_v13 = vadd.f32 %v15905_v35, %v4853_v60  ;;  %v5452_v37 = vsel %vm16011_vm13, %v5171_v53, %v5451_v16  ;;  %v4895_v40 = vadd.f32 %v15905_v35, %v4856_v23  ;;  %v12312_v36 = vpack.c.bf16 %v16108_v12, %v16108_v12  ;;  %v16138_v53 = vld [vmem:[#allocation2 + $0x10] sm:$0xf] }
 0x218   : > { %v5197_v50 = vsel %vm16028_vm14, %v5189_v8, %v5196_v27  ;;  %v5463_v1 = vsel %vm16034_vm15, %v5198_v7, %v5462_v42  ;;  %5453 = vst [vmem:[#allocation2 + $0x3c] sm:$0xf] %v5452_v37  ;;  %v5180_v29 = vsel %vm16028_vm14, %v5172_v31, %v5179_v47  ;;  %v5456_v18 = vsel %vm16034_vm15, %v5181_v26, %v5455_v54  ;;  %v5539_v27 = vld [vmem:[#allocation2 + $0x18] sm:$0xf]  ;;  %v12992_v7 = vpop.f32.mrf.mxu0  ;;  %v13604_v17 = vld [vmem:[#allocation2 + $0x30] sm:$0xff]  }
 0x219   : > { %5461 = vst [vmem:[#allocation2 + $0x4c] sm:$0xf] %v5197_v50  ;;  %5464 = vst [vmem:[#allocation2 + $0x50] sm:$0x1] %v5463_v1  ;;  %v16124_v14 = vmax.f32 %v4892_v13, 0.0  ;;  %v16128_v24 = vmax.f32 %v4895_v40, 0.0  ;;  %v4854_v8 = vadd.f32 %v4765_v57, %v15932_v44  ;;  %v4859_v45 = vadd.f32 %v12991_v51, %v15938_v30 }
 0x21a   : > { %5454 = vst [vmem:[#allocation2 + $0x40] sm:$0xf] %v5180_v29  ;;  %5457 = vst [vmem:[#allocation2 + $0x44] sm:$0x1] %v5456_v18  ;;  %v5624_v16 = vshrl.u32 %v5537_v25, 16  ;;  %v5217_v41 = vshrl.u32 %v12312_v36, 16 }
 0x21b   : > { %19073 = vst [vmem:[#allocation22_spill] sm:$0xff] %v16124_v14  ;;  %19074 = vst [vmem:[#allocation11_spill] sm:$0xff] %v16128_v24  ;;  %v5220_v38 = vshll.u32 %v12312_v36, 16  ;;  %v12310_v54 = vpack.c.bf16 %v16124_v14, %v16124_v14  ;;  %v5627_v20 = vshll.u32 %v5537_v25, 16  ;;  %v12313_v42 = vpack.c.bf16 %v16128_v24, %v16128_v24  ;;  %v5465_v18 = vld [vmem:[#allocation2 + $0x54] sm:$0xf] }
 0x21c   : > { %v4893_v60 = vadd.f32 %v15905_v35, %v4854_v8  ;;  %v4898_v23 = vadd.f32 %v15905_v35, %v4859_v45  ;;  %v16140_v44 = vrot.slane %v5624_v16, 4  ;;  %v5219_v30 = vrot.slane %v5217_v41, 7  ;;  %v13537_v41 = vld [vmem:[%s18840_s3 + $0xf0] sm:$0xff]  }
 0x21d   : > { %v5200_v57 = vshrl.u32 %v12310_v54, 16  ;;  %v5203_v51 = vshll.u32 %v12310_v54, 16  ;;  %v16142_v31 = vrot.slane %v5627_v20, 5  ;;  %v5225_v47 = vshrl.u32 %v12313_v42, 16 }
 0x21e   : > { %v5228_v26 = vshll.u32 %v12313_v42, 16  ;;  %v16144_v13 = vmax.f32 %v4893_v60, 0.0  ;;  %v16146_v37 = vmax.f32 %v4898_v23, 0.0  ;;  %v5222_v50 = vor.u32 %v5220_v38, %v5219_v30  ;;  %v5476_v42 = vld [vmem:[#allocation2 + $0x68] sm:$0x1]  ;;  %v4781_v23 = vpop.f32.mrf.mxu0 }
 0x21f   : > { %v5223_v1 = vrot.slane %v5219_v30, 4  ;;  %v5202_v40 = vrot.slane %v5200_v57, 7  ;;  %v5227_v36 = vrot.slane %v5225_v47, 7  ;;  %v11872_v16 = vcombine.low %v5537_v25, %v16138_v53 }
 0x220   : > { %19075 = vst [vmem:[#allocation8_spill] sm:$0xff] %v16144_v13  ;;  %19076 = vst [vmem:[#allocation18_spill] sm:$0xff] %v16146_v37  ;;  %v12311_v8 = vpack.c.bf16 %v16144_v13, %v16144_v13  ;;  %v12316_v45 = vpack.c.bf16 %v16146_v37, %v16146_v37  ;;  %v5473_v38 = vsel %vm16011_vm13, %v5222_v50, %v5472_v10  ;;  %v5648_v60 = vshrl.u32 %v5539_v27, 16  ;;  %v16159_v37 = vld [vmem:[#allocation2 + $0x1c] sm:$0xf]  ;;  %v13540_v10 = vld [vmem:[%s18840_s3 + $0xe8] sm:$0xff]  }
 0x221   : > { %v5205_v54 = vor.u32 %v5203_v51, %v5202_v40  ;;  %v5206_v20 = vrot.slane %v5202_v40, 4  ;;  %5474 = vst [vmem:[#allocation2 + $0x60] sm:$0xf] %v5473_v38  ;;  %v5230_v30 = vor.u32 %v5228_v26, %v5227_v36  ;;  %v5232_v57 = vrot.slane %v5227_v36, 4  ;;  %13070 = vmatmul.mubr.bf16.vlgmr.msra.gmra.mxu0 %v11872_v16 }
 0x222   : > { %v5208_v47 = vshrl.u32 %v12311_v8, 16  ;;  %v5211_v29 = vshll.u32 %v12311_v8, 16  ;;  %v5251_v24 = vshrl.u32 %v12316_v45, 16  ;;  %v5254_v12 = vshll.u32 %v12316_v45, 16  ;;  %13150 = vmatpush3.bf16.msra.mxu0 %v15910_v3  ;;  %v5486_v3 = vld [vmem:[#allocation2 + $0x78] sm:$0xf] }
 0x223   : > { %v5466_v25 = vsel %vm16011_vm13, %v5205_v54, %v5465_v18  ;;  %v16163_v13 = vrot.slane %v5648_v60, 4  ;;  %v5231_v51 = vsel %vm16028_vm14, %v5223_v1, %v5230_v30  ;;  %v5477_v26 = vsel %vm16034_vm15, %v5232_v57, %v5476_v42  ;;  %13151 = vmatprep.subr.bf16.mxu0 %v13537_v41  ;;  %v5469_v18 = vld [vmem:[#allocation2 + $0x5c] sm:$0x1]  ;;  %v12995_v1 = vpop.f32.mrf.mxu0  ;;  %v5541_v30 = vld [vmem:[#allocation2 + $0x24] sm:$0xf] }
 0x224   : > { %5467 = vst [vmem:[#allocation2 + $0x54] sm:$0xf] %v5466_v25  ;;  %v5210_v50 = vrot.slane %v5208_v47, 7  ;;  %v5651_v40 = vshll.u32 %v5539_v27, 16  ;;  %5475 = vst [vmem:[#allocation2 + $0x64] sm:$0xf] %v5231_v51  ;;  %v11873_v45 = vcombine.low %v5539_v27, %v16159_v37  ;;  %v4857_v16 = vadd.f32 %v16126_v34, %v15942_v61 }
 0x225   : > { %5478 = vst [vmem:[#allocation2 + $0x68] sm:$0x1] %v5477_v26  ;;  %v16173_v36 = vrot.slane %v5251_v24, 7  ;;  %v4860_v60 = vadd.f32 %v12992_v7, %v15947_v48  ;;  %v4858_v27 = vadd.f32 %v4781_v23, %v15950_v52  ;;  %v16186_v25 = vld [vmem:[#allocation2 + $0x28] sm:$0xf]  ;;  %v13542_v61 = vld [vmem:[%s18840_s3 + $0xe0] sm:$0xff]   ;;  %v4863_v7 = vadd.f32 %v12995_v1, %v15954_v32 }
 0x226   : > { %v5213_v38 = vor.u32 %v5211_v29, %v5210_v50  ;;  %v5215_v54 = vrot.slane %v5210_v50, 4  ;;  %v16179_v42 = vrot.slane %v5651_v40, 5  ;;  %13073 = vmatprep.mubr.bf16.mxu0 %v11873_v45  ;;  %v4896_v47 = vadd.f32 %v15905_v35, %v4857_v16  ;;  %13152 = vmatpush3.bf16.msra.mxu0 %v13537_v41  ;;  %v16213_v45 = vpop.f32.mrf.mxu0 }
 0x227   : > { %v5256_v57 = vor.u32 %v5254_v12, %v16173_v36  ;;  %v4899_v34 = vadd.f32 %v15905_v35, %v4860_v60  ;;  %13153 = vmatprep.subr.bf16.mxu0 %v13540_v10  ;;  %v4897_v41 = vadd.f32 %v15905_v35, %v4858_v27  ;;  %v5672_v23 = vshrl.u32 %v5541_v30, 16  ;;  %v13545_v60 = vld [vmem:[%s18840_s3 + $0xd8] sm:$0xff]   ;;  %v5479_v27 = vld [vmem:[#allocation2 + $0x6c] sm:$0xf] }
 0x228   : > { %v5214_v48 = vsel %vm16028_vm14, %v5206_v20, %v5213_v38  ;;  %v5470_v12 = vsel %vm16034_vm15, %v5215_v54, %v5469_v18  ;;  %v16199_v29 = vmax.f32 %v4896_v47, 0.0  ;;  %v4902_v51 = vadd.f32 %v15905_v35, %v4863_v7  ;;  %v5490_v7 = vld [vmem:[#allocation2 + $0x80] sm:$0x1] }
 0x229   : > { %5468 = vst [vmem:[#allocation2 + $0x58] sm:$0xf] %v5214_v48  ;;  %5471 = vst [vmem:[#allocation2 + $0x5c] sm:$0x1] %v5470_v12  ;;  %v5487_v52 = vsel %vm16011_vm13, %v5256_v57, %v5486_v3  ;;  %v16202_v20 = vmax.f32 %v4899_v34, 0.0  ;;  %v5675_v26 = vshll.u32 %v5541_v30, 16  ;;  %v11874_v3 = vcombine.low %v5541_v30, %v16186_v25 }
 0x22a   : > { %19077 = vst [vmem:[#allocation24_spill] sm:$0xff] %v16199_v29  ;;  %5488 = vst [vmem:[#allocation2 + $0x78] sm:$0xf] %v5487_v52  ;;  %v12314_v32 = vpack.c.bf16 %v16199_v29, %v16199_v29  ;;  %v16208_v40 = vmax.f32 %v4897_v41, 0.0  ;;  %v16210_v18 = vrot.slane %v5672_v23, 4  ;;  %13154 = vmatpush3.bf16.msra.mxu0 %v13540_v10  ;;  %v16217_v1 = vmax.f32 %v4902_v51, 0.0  ;;  %v16231_v51 = vpop.f32.mrf.mxu0 }
 0x22b   : > { %19078 = vst [vmem:[#allocation10_spill] sm:$0xff] %v16202_v20  ;;  %v12317_v16 = vpack.c.bf16 %v16202_v20, %v16202_v20  ;;  %v16219_v38 = vrot.slane %v5675_v26, 5  ;;  %v5630_v54 = vor.u32 %v16142_v31, %v16140_v44  ;;  %13155 = vmatprep.subr.bf16.mxu0 %v13542_v61  ;;  %13074 = vmatmul.mubr.bf16.gmra.mxu0 %v11874_v3  ;;  %v5633_v47 = vshll.u32 %v16138_v53, 16  ;;  %v13547_v26 = vld [vmem:[%s18840_s3 + $0xd0] sm:$0xff]  }
 0x22c   : > { %19079 = vst [vmem:[#allocation26_spill] sm:$0xff] %v16208_v40  ;;  %19080 = vst [vmem:[#allocation31_spill] sm:$0xff] %v16217_v1  ;;  %v5234_v57 = vshrl.u32 %v12314_v32, 16  ;;  %v5237_v30 = vshll.u32 %v12314_v32, 16  ;;  %v12315_v10 = vpack.c.bf16 %v16208_v40, %v16208_v40  ;;  %v12320_v34 = vpack.c.bf16 %v16217_v1, %v16217_v1 }
 0x22d   : > { %v5259_v48 = vshrl.u32 %v12317_v16, 16  ;;  %v5262_v12 = vshll.u32 %v12317_v16, 16  ;;  %v5631_v44 = vrot.slane %v5630_v54, 4  ;;  %v5635_v23 = vrot.slane %v5633_v47, 5  ;;  %v5584_v16 = vld [vmem:[#allocation2 + $0x14] sm:$0x1] }
 0x22e   : > { %v5236_v31 = vrot.slane %v5234_v57, 7  ;;  %v5242_v52 = vshrl.u32 %v12315_v10, 16  ;;  %v5245_v41 = vshll.u32 %v12315_v10, 16  ;;  %13156 = vmatpush3.bf16.msra.mxu0 %v13542_v61  ;;  %v5285_v3 = vshrl.u32 %v12320_v34, 16  ;;  %v5483_v10 = vld [vmem:[#allocation2 + $0x74] sm:$0x1] }
 0x22f   : > { %v5261_v32 = vrot.slane %v5259_v48, 7  ;;  %v5288_v50 = vshll.u32 %v12320_v34, 16  ;;  %v19081_v8 = vshrl.u32 %v16138_v53, 16  ;;  %13157 = vmatprep.subr.bf16.mxu0 %v13545_v60  ;;  %v5500_v47 = vld [vmem:[#allocation2 + $0x90] sm:$0xf]  ;;  %v5636_v61 = vsel %vm13804_vm4, %v5631_v44, %v5635_v23 }
 0x230   : > { %v5239_v54 = vor.u32 %v5237_v30, %v5236_v31  ;;  %v5240_v57 = vrot.slane %v5236_v31, 4  ;;  %v5244_v1 = vrot.slane %v5242_v52, 7  ;;  %v16240_v14 = vrot.slane %v5285_v3, 7  ;;  %v16244_v30 = vld [vmem:[#allocation2 + $0x34] sm:$0xf]  ;;  %v4797_v31 = vpop.f32.mrf.mxu0 }
 0x231   : > { %v5639_v24 = vrot.slane %v19081_v8, 4  ;;  %v5264_v40 = vor.u32 %v5262_v12, %v5261_v32  ;;  %v5266_v29 = vrot.slane %v5261_v32, 4  ;;  %v5643_v2 = vshll.u32 %v5584_v16, 16 }
 0x232   : > { %v5480_v34 = vsel %vm16011_vm13, %v5239_v54, %v5479_v27  ;;  %v5247_v53 = vor.u32 %v5245_v41, %v5244_v1  ;;  %v5249_v8 = vrot.slane %v5244_v1, 4  ;;  %13158 = vmatpush3.bf16.msra.mxu0 %v13545_v60  ;;  %v19083_v52 = vrot.slane %v16173_v36, 4  ;;  %v13550_v1 = vld [vmem:[%s18840_s3 + $0xc8] sm:$0xff]  }
 0x233   : > { %v5640_v48 = vor.u32 %v5639_v24, %v5635_v23  ;;  %5481 = vst [vmem:[#allocation2 + $0x6c] sm:$0xf] %v5480_v34  ;;  %v5491_v24 = vsel %vm16034_vm15, %v5266_v29, %v5490_v7  ;;  %v5290_v44 = vor.u32 %v5288_v50, %v16240_v14  ;;  %v5291_v27 = vrot.slane %v16240_v14, 4  ;;  %13159 = vmatprep.subr.bf16.mxu0 %v13547_v26  ;;  %v5585_v29 = vld [vmem:[#allocation2 + $0x20] sm:$0x1] }
 0x234   : > { %v5265_v12 = vsel %vm16028_vm14, %v19083_v52, %v5264_v40  ;;  %5492 = vst [vmem:[#allocation2 + $0x80] sm:$0x1] %v5491_v24  ;;  %v5248_v36 = vsel %vm16028_vm14, %v5240_v57, %v5247_v53  ;;  %v5484_v40 = vsel %vm16034_vm15, %v5249_v8, %v5483_v10  ;;  %v5645_v41 = vrot.slane %v5643_v2, 5  ;;  %v12999_v57 = vpop.f32.mrf.mxu0  ;;  %v5545_v10 = vld [vmem:[#allocation2 + $0x3c] sm:$0xf] }
 0x235   : > { %5489 = vst [vmem:[#allocation2 + $0x7c] sm:$0xf] %v5265_v12  ;;  %v5641_v60 = vrot.slane %v5640_v48, 4  ;;  %5482 = vst [vmem:[#allocation2 + $0x70] sm:$0xf] %v5248_v36  ;;  %v5501_v50 = vsel %vm16011_vm13, %v5290_v44, %v5500_v47  ;;  %v5696_v7 = vshrl.u32 %v5543_v62, 16  ;;  %v11875_v16 = vcombine.low %v5543_v62, %v16244_v30 }
 0x236   : > { %5485 = vst [vmem:[#allocation2 + $0x74] sm:$0x1] %v5484_v40  ;;  %v5699_v23 = vshll.u32 %v5543_v62, 16  ;;  %5502 = vst [vmem:[#allocation2 + $0x90] sm:$0xf] %v5501_v50  ;;  %v4861_v54 = vadd.f32 %v16213_v45, %v15959_v4  ;;  %v5654_v2 = vor.u32 %v16179_v42, %v16163_v13  ;;  %13160 = vmatpush3.bf16.msra.mxu0 %v13547_v26  ;;  %v5657_v53 = vshll.u32 %v16159_v37, 16 }
 0x237   : > { %v5646_v3 = vsel %vm13804_vm4, %v5641_v60, %v5645_v41  ;;  %v16271_v48 = vrot.slane %v5696_v7, 4  ;;  %v13528_v62 = vld [vmem:[%s18840_s3 + $0xb0] sm:$0xff]   ;;  %13161 = vmatprep.subr.bf16.mxu0 %v13550_v1  ;;  %13077 = vmatprep.mubr.bf16.mxu0 %v11875_v16  ;;  %v19084_v13 = vshrl.u32 %v16159_v37, 16  ;;  %v5667_v26 = vshll.u32 %v5585_v29, 16  ;;  %v13665_v44 = vld [vmem:[%s18840_s3 + $0xb8] sm:$0xff]  }
 0x238   : > { %v11848_v47 = vcombine.low %v5636_v61, %v5646_v3  ;;  %v16273_v34 = vrot.slane %v5699_v23, 5  ;;  %v4900_v4 = vadd.f32 %v15905_v35, %v4861_v54  ;;  %v5655_v45 = vrot.slane %v5654_v2, 4  ;;  %v13552_v61 = vld [vmem:[%s18840_s3 + $0xc0] sm:$0xff]   ;;  %v16313_v23 = vld [vmem:[%s18840_s3 + $0x178] sm:$0xff]  }
 0x239   : > { %v5663_v42 = vrot.slane %v19084_v13, 4  ;;  %v5659_v8 = vrot.slane %v5657_v53, 5  ;;  %v4864_v52 = vadd.f32 %v16231_v51, %v15966_v63  ;;  %v4862_v12 = vadd.f32 %v4797_v31, %v15969_v58  ;;  %v16294_v40 = vld [vmem:[#allocation2 + $0x40] sm:$0xf]  ;;  %v13531_v31 = vld [vmem:[%s18840_s3 + $0xa8] sm:$0xff]  }
 0x23a   : > { %13022 = vmatmul.mubr.bf16.vlgmr.msra.gmra.mxu1 %v11848_v47  ;;  %v4867_v24 = vadd.f32 %v12999_v57, %v15973_v11  ;;  %v16292_v37 = vmax.f32 %v4900_v4, 0.0  ;;  %v5669_v36 = vrot.slane %v5667_v26, 5  ;;  %v5720_v60 = vshrl.u32 %v5545_v10, 16  ;;  %13162 = vmatpush3.bf16.msra.mxu0 %v13550_v1  ;;  %v16323_v4 = vpop.f32.mrf.mxu0 }
 0x23b   : > { %13102 = vmatpush3.bf16.msra.mxu1 %v13665_v44  ;;  %v5723_v41 = vshll.u32 %v5545_v10, 16  ;;  %v5660_v63 = vsel %vm13804_vm4, %v5655_v45, %v5659_v8  ;;  %v5664_v51 = vor.u32 %v5663_v42, %v5659_v8  ;;  %v4903_v58 = vadd.f32 %v15905_v35, %v4864_v52  ;;  %13163 = vmatprep.subr.bf16.mxu0 %v13552_v61  ;;  %v5493_v8 = vld [vmem:[#allocation2 + $0x84] sm:$0xf] }
 0x23c   : > { %19085 = vst [vmem:[#allocation17_spill] sm:$0xff] %v16292_v37  ;;  %v4901_v11 = vadd.f32 %v15905_v35, %v4862_v12  ;;  %13103 = vmatprep.subr.bf16.mxu1 %v13528_v62  ;;  %v12318_v29 = vpack.c.bf16 %v16292_v37, %v16292_v37  ;;  %v4906_v50 = vadd.f32 %v15905_v35, %v4867_v24  ;;  %v16306_v7 = vrot.slane %v5720_v60, 4 }
 0x23d   : > { %v16308_v1 = vrot.slane %v5723_v41, 5  ;;  %v5665_v3 = vrot.slane %v5664_v51, 4  ;;  %v16315_v16 = vmax.f32 %v4903_v58, 0.0  ;;  %v11876_v53 = vcombine.low %v5545_v10, %v16294_v40  ;;  %v13534_v10 = vld [vmem:[%s18840_s3 + $0xa0] sm:$0xff]   ;;  %v5504_v51 = vld [vmem:[#allocation2 + $0x98] sm:$0x1] }
 0x23e   : > { %v16317_v54 = vmax.f32 %v4901_v11, 0.0  ;;  %v5268_v57 = vshrl.u32 %v12318_v29, 16  ;;  %v5271_v47 = vshll.u32 %v12318_v29, 16  ;;  %v16320_v35 = vmax.f32 %v4906_v50, 0.0  ;;  %13164 = vmatpush3.bf16.msra.mxu0 %v13552_v61  ;;  %v16342_v11 = vpop.f32.mrf.mxu0  ;;  %v5559_v21 = vld [vmem:[#allocation2 + $0x90] sm:$0xf] }
 0x23f   : > { %19086 = vst [vmem:[#allocation16_spill] sm:$0xff] %v16315_v16  ;;  %13104 = vmatpush3.bf16.msra.mxu1 %v13528_v62  ;;  %v5670_v45 = vsel %vm13804_vm4, %v5665_v3, %v5669_v36  ;;  %v12321_v13 = vpack.c.bf16 %v16315_v16, %v16315_v16  ;;  %v5678_v26 = vor.u32 %v16219_v38, %v16210_v18  ;;  %v5681_v12 = vshll.u32 %v16186_v25, 16  ;;  %v16340_v38 = vld [vmem:[#allocation2 + $0x2c] sm:$0x1] }
 0x240   : > { %19087 = vst [vmem:[#allocation19_spill] sm:$0xff] %v16317_v54  ;;  %19088 = vst [vmem:[#allocation25_spill] sm:$0xff] %v16320_v35  ;;  %v12319_v42 = vpack.c.bf16 %v16317_v54, %v16317_v54  ;;  %13105 = vmatprep.subr.bf16.mxu1 %v13531_v31  ;;  %v5270_v62 = vrot.slane %v5268_v57, 7  ;;  %v11849_v61 = vcombine.low %v5660_v63, %v5670_v45  ;;  %13078 = vmatmul.mubr.bf16.gmra.mxu0 %v11876_v53  ;;  %v13539_v53 = vld [vmem:[%s18840_s3 + $0x98] sm:$0xff]   ;;  %v5497_v45 = vld [vmem:[#allocation2 + $0x8c] sm:$0x1] }
 0x241   : > { %v12324_v52 = vpack.c.bf16 %v16320_v35, %v16320_v35  ;;  %13245 = vmatprep.subr.bf16.mxu0 %v16313_v23  ;;  %v5293_v24 = vshrl.u32 %v12321_v13, 16  ;;  %v5296_v44 = vshll.u32 %v12321_v13, 16  ;;  %v5679_v3 = vrot.slane %v5678_v26, 4 }
 0x242   : > { %v5276_v36 = vshrl.u32 %v12319_v42, 16  ;;  %v5279_v18 = vshll.u32 %v12319_v42, 16  ;;  %v5273_v60 = vor.u32 %v5271_v47, %v5270_v62  ;;  %v5274_v41 = vrot.slane %v5270_v62, 4  ;;  %13025 = vmatprep.mubr.bf16.mxu1 %v11849_v61 }
 0x243   : > { %v5319_v58 = vshrl.u32 %v12324_v52, 16  ;;  %v5322_v63 = vshll.u32 %v12324_v52, 16  ;;  %13106 = vmatpush3.bf16.msra.mxu1 %v13531_v31  ;;  %v5295_v29 = vrot.slane %v5293_v24, 7  ;;  %v5683_v57 = vrot.slane %v5681_v12, 5  ;;  %v5514_v24 = vld [vmem:[#allocation2 + $0xa8] sm:$0xf] }
 0x244   : > { %v5278_v50 = vrot.slane %v5276_v36, 7  ;;  %13107 = vmatprep.subr.bf16.mxu1 %v13534_v10  ;;  %v5494_v47 = vsel %vm16011_vm13, %v5273_v60, %v5493_v8  ;;  %v19089_v42 = vshrl.u32 %v16186_v25, 16  ;;  %v5691_v31 = vshll.u32 %v16340_v38, 16  ;;  %v5547_v36 = vld [vmem:[#allocation2 + $0x48] sm:$0xf]  ;;  %v4813_v25 = vpop.f32.mrf.mxu0 }
 0x245   : > { %v16349_v13 = vrot.slane %v5319_v58, 7  ;;  %5495 = vst [vmem:[#allocation2 + $0x84] sm:$0xf] %v5494_v47  ;;  %v5298_v61 = vor.u32 %v5296_v44, %v5295_v29  ;;  %v5300_v26 = vrot.slane %v5295_v29, 4  ;;  %v5684_v8 = vsel %vm13804_vm4, %v5679_v3, %v5683_v57  ;;  %v16358_v58 = vld [vmem:[#allocation2 + $0x4c] sm:$0xf] }
 0x246   : > { %v5687_v62 = vrot.slane %v19089_v42, 4  ;;  %v5281_v52 = vor.u32 %v5279_v18, %v5278_v50  ;;  %v5283_v12 = vrot.slane %v5278_v50, 4  ;;  %v13544_v50 = vld [vmem:[%s18840_s3 + $0x90] sm:$0xff]   ;;  %v4865_v47 = vadd.f32 %v16323_v4, %v15982_v19  ;;  %v16393_v19 = vld [vmem:[%s18839_s2] ss:$0 sm:$0xff] }
 0x247   : > { %v5324_v2 = vor.u32 %v5322_v63, %v16349_v13  ;;  %v5325_v32 = vrot.slane %v16349_v13, 4  ;;  %13108 = vmatpush3.bf16.msra.mxu1 %v13534_v10  ;;  %v5299_v44 = vsel %vm16028_vm14, %v5291_v27, %v5298_v61  ;;  %v5505_v18 = vsel %vm16034_vm15, %v5300_v26, %v5504_v51  ;;  %v13003_v61 = vpop.f32.mrf.mxu0  ;;  %v5549_v26 = vld [vmem:[#allocation2 + $0x54] sm:$0xf]  ;;  %v5528_v3 = vld [vmem:[#allocation2 + $0xc0] sm:$0xf] }
 0x248   : > { %v5688_v60 = vor.u32 %v5687_v62, %v5683_v57  ;;  %v5282_v63 = vsel %vm16028_vm14, %v5274_v41, %v5281_v52  ;;  %v5498_v29 = vsel %vm16034_vm15, %v5283_v12, %v5497_v45  ;;  %13109 = vmatprep.subr.bf16.mxu1 %v13539_v53  ;;  %5503 = vst [vmem:[#allocation2 + $0x94] sm:$0xf] %v5299_v44  ;;  %5506 = vst [vmem:[#allocation2 + $0x98] sm:$0x1] %v5505_v18  ;;  %v16379_v45 = vld [vmem:[#allocation2 + $0x38] sm:$0x1] }
 0x249   : > { %5496 = vst [vmem:[#allocation2 + $0x88] sm:$0xf] %v5282_v63  ;;  %5499 = vst [vmem:[#allocation2 + $0x8c] sm:$0x1] %v5498_v29  ;;  %v5515_v14 = vsel %vm16011_vm13, %v5324_v2, %v5514_v24  ;;  %v5693_v10 = vrot.slane %v5691_v31, 5  ;;  %v5744_v51 = vshrl.u32 %v5547_v36, 16  ;;  %v11877_v57 = vcombine.low %v5547_v36, %v16358_v58 }
 0x24a   : > { %v5689_v27 = vrot.slane %v5688_v60, 4  ;;  %5516 = vst [vmem:[#allocation2 + $0xa8] sm:$0xf] %v5515_v14  ;;  %v5747_v41 = vshll.u32 %v5547_v36, 16  ;;  %v5702_v2 = vor.u32 %v16273_v34, %v16271_v48  ;;  %v5705_v31 = vshll.u32 %v16244_v30, 16  ;;  %v13549_v48 = vld [vmem:[%s18840_s3 + $0x88] sm:$0xff]  }
 0x24b   : > { %v16383_v62 = vrot.slane %v5744_v51, 4  ;;  %13110 = vmatpush3.bf16.msra.mxu1 %v13539_v53  ;;  %13081 = vmatprep.mubr.bf16.mxu0 %v11877_v57  ;;  %v4904_v4 = vadd.f32 %v16393_v19, %v4865_v47  ;;  %v19090_v24 = vshrl.u32 %v16244_v30, 16  ;;  %v4868_v60 = vadd.f32 %v16342_v11, %v15986_v0  ;;  %v16408_v63 = vld [vmem:[#allocation2 + $0x58] sm:$0xf] }
 0x24c   : > { %v5694_v42 = vsel %vm13804_vm4, %v5689_v27, %v5693_v10  ;;  %v16388_v12 = vrot.slane %v5747_v41, 5  ;;  %13111 = vmatprep.subr.bf16.mxu1 %v13544_v50  ;;  %v5703_v34 = vrot.slane %v5702_v2, 4  ;;  %v5707_v53 = vrot.slane %v5705_v31, 5 }
 0x24d   : > { %v11850_v52 = vcombine.low %v5684_v8, %v5694_v42  ;;  %v5711_v36 = vrot.slane %v19090_v24, 4  ;;  %v5715_v8 = vshll.u32 %v16379_v45, 16  ;;  %v16404_v44 = vmax.f32 %v4904_v4, 0.0 }
 0x24e   : > { %v4866_v18 = vadd.f32 %v4813_v25, %v15988_v28  ;;  %v4871_v30 = vadd.f32 %v13003_v61, %v15991_v22  ;;  %v5768_v29 = vshrl.u32 %v5549_v26, 16  ;;  %v5708_v14 = vsel %vm13804_vm4, %v5703_v34, %v5707_v53  ;;  %v13553_v22 = vld [vmem:[%s18840_s3 + $0x80] sm:$0xff]  }
 0x24f   : > { %13026 = vmatmul.mubr.bf16.gmra.mxu1 %v11850_v52  ;;  %19091 = vst [vmem:[#allocation30_spill] sm:$0xff] %v16404_v44  ;;  %v5712_v27 = vor.u32 %v5711_v36, %v5707_v53  ;;  %v5717_v10 = vrot.slane %v5715_v8, 5  ;;  %v4907_v51 = vadd.f32 %v16393_v19, %v4868_v60  ;;  %v12322_v0 = vpack.c.bf16 %v16404_v44, %v16404_v44 }
 0x250   : > { %13112 = vmatpush3.bf16.msra.mxu1 %v13544_v50  ;;  %v4905_v11 = vadd.f32 %v16393_v19, %v4866_v18  ;;  %v4910_v28 = vadd.f32 %v16393_v19, %v4871_v30  ;;  %v16417_v25 = vrot.slane %v5768_v29, 4  ;;  %v5771_v47 = vshll.u32 %v5549_v26, 16  ;;  %v16443_v18 = vld [vmem:[%s18840_s3 + $0x138] sm:$0xff]  }
 0x251   : > { %13113 = vmatprep.subr.bf16.mxu1 %v13549_v48  ;;  %v5713_v41 = vrot.slane %v5712_v27, 4  ;;  %v16422_v57 = vmax.f32 %v4907_v51, 0.0  ;;  %v5302_v42 = vshrl.u32 %v12322_v0, 16  ;;  %v5305_v2 = vshll.u32 %v12322_v0, 16  ;;  %v5507_v30 = vld [vmem:[#allocation2 + $0x9c] sm:$0xf] }
 0x252   : > { %v16425_v31 = vmax.f32 %v4905_v11, 0.0  ;;  %v16427_v61 = vmax.f32 %v4910_v28, 0.0  ;;  %v16433_v24 = vrot.slane %v5771_v47, 5  ;;  %v11878_v36 = vcombine.low %v5549_v26, %v16408_v63  ;;  %v16448_v11 = vld [vmem:[#allocation2 + $0x44] sm:$0x1]  ;;  %v4826_v28 = vpop.f32.mrf.mxu0 }
 0x253   : > { %19092 = vst [vmem:[#allocation32_spill] sm:$0xff] %v16422_v57  ;;  %v5718_v52 = vsel %vm13804_vm4, %v5713_v41, %v5717_v10  ;;  %v12325_v4 = vpack.c.bf16 %v16422_v57, %v16422_v57  ;;  %v5304_v34 = vrot.slane %v5302_v42, 7  ;;  %v5726_v26 = vor.u32 %v16308_v1, %v16306_v7  ;;  %v5518_v47 = vld [vmem:[#allocation2 + $0xb0] sm:$0x1]  ;;  %v5511_v1 = vld [vmem:[#allocation2 + $0xa4] sm:$0x1] }
 0x254   : > { %19093 = vst [vmem:[#allocation33_spill] sm:$0xff] %v16425_v31  ;;  %19094 = vst [vmem:[#allocation34_spill] sm:$0xff] %v16427_v61  ;;  %13114 = vmatpush3.bf16.msra.mxu1 %v13549_v48  ;;  %v11851_v53 = vcombine.low %v5708_v14, %v5718_v52  ;;  %v12323_v8 = vpack.c.bf16 %v16425_v31, %v16425_v31  ;;  %v12328_v60 = vpack.c.bf16 %v16427_v61, %v16427_v61 }
 0x255   : > { %13115 = vmatprep.subr.bf16.mxu1 %v13553_v22  ;;  %v5327_v29 = vshrl.u32 %v12325_v4, 16  ;;  %v5330_v27 = vshll.u32 %v12325_v4, 16  ;;  %13082 = vmatmul.mubr.bf16.gmra.mxu0 %v11878_v36  ;;  %v5729_v48 = vshll.u32 %v16294_v40, 16  ;;  %v5307_v14 = vor.u32 %v5305_v2, %v5304_v34 }
 0x256   : > { %v5308_v10 = vrot.slane %v5304_v34, 4  ;;  %13029 = vmatprep.mubr.bf16.mxu1 %v11851_v53  ;;  %v5310_v51 = vshrl.u32 %v12323_v8, 16  ;;  %v5313_v0 = vshll.u32 %v12323_v8, 16  ;;  %v5353_v42 = vshrl.u32 %v12328_v60, 16 }
 0x257   : > { %v5329_v41 = vrot.slane %v5327_v29, 7  ;;  %v5356_v52 = vshll.u32 %v12328_v60, 16  ;;  %v5727_v50 = vrot.slane %v5726_v26, 4  ;;  %v5508_v4 = vsel %vm16011_vm13, %v5307_v14, %v5507_v30 }
 0x258   : > { %13116 = vmatpush3.bf16.msra.mxu1 %v13553_v22  ;;  %v5312_v7 = vrot.slane %v5310_v51, 7  ;;  %v5731_v36 = vrot.slane %v5729_v48, 5  ;;  %v19095_v2 = vshrl.u32 %v16294_v40, 16  ;;  %5509 = vst [vmem:[#allocation2 + $0x9c] sm:$0xf] %v5508_v4  ;;  %v16455_v29 = vrot.slane %v5353_v42, 7  ;;  %v13004_v40 = vpop.f32.mrf.mxu0 }
 0x259   : > { %13197 = vmatprep.subr.bf16.mxu1 %v16443_v18  ;;  %v5332_v53 = vor.u32 %v5330_v27, %v5329_v41  ;;  %v5334_v8 = vrot.slane %v5329_v41, 4  ;;  %v5739_v60 = vshll.u32 %v16448_v11, 16  ;;  %v5551_v48 = vld [vmem:[#allocation2 + $0x60] sm:$0xf]  ;;  %v16460_v51 = vld [vmem:[#allocation2 + $0x64] sm:$0xf] }
 0x25a   : > { %v5735_v34 = vrot.slane %v19095_v2, 4  ;;  %v5315_v22 = vor.u32 %v5313_v0, %v5312_v7  ;;  %v5317_v26 = vrot.slane %v5312_v7, 4  ;;  %v5732_v30 = vsel %vm13804_vm4, %v5727_v50, %v5731_v36 }
 0x25b   : > { %v5333_v27 = vsel %vm16028_vm14, %v5325_v32, %v5332_v53  ;;  %v5519_v41 = vsel %vm16034_vm15, %v5334_v8, %v5518_v47  ;;  %v5358_v42 = vor.u32 %v5356_v52, %v16455_v29  ;;  %v5741_v13 = vrot.slane %v5739_v60, 5  ;;  %v4829_v60 = vpop.f32.mrf.mxu0 }
 0x25c   : > { %v5736_v14 = vor.u32 %v5735_v34, %v5731_v36  ;;  %5517 = vst [vmem:[#allocation2 + $0xac] sm:$0xf] %v5333_v27  ;;  %5520 = vst [vmem:[#allocation2 + $0xb0] sm:$0x1] %v5519_v41  ;;  %v5316_v50 = vsel %vm16028_vm14, %v5308_v10, %v5315_v22  ;;  %v5512_v4 = vsel %vm16034_vm15, %v5317_v26, %v5511_v1  ;;  %v16474_v36 = vld [vmem:[#allocation2 + $0x50] sm:$0x1] }
 0x25d   : > { %5510 = vst [vmem:[#allocation2 + $0xa0] sm:$0xf] %v5316_v50  ;;  %5513 = vst [vmem:[#allocation2 + $0xa4] sm:$0x1] %v5512_v4  ;;  %v5529_v32 = vsel %vm16011_vm13, %v5358_v42, %v5528_v3  ;;  %v5792_v47 = vshrl.u32 %v5551_v48, 16  ;;  %v5795_v52 = vshll.u32 %v5551_v48, 16  ;;  %v11879_v1 = vcombine.low %v5551_v48, %v16460_v51 }
 0x25e   : > { %v5737_v7 = vrot.slane %v5736_v14, 4  ;;  %v5553_v34 = vld [vmem:[#allocation2 + $0x6c] sm:$0xf]  ;;  %5530 = vst [vmem:[#allocation2 + $0xc0] sm:$0xf] %v5529_v32  ;;  %v4869_v53 = vadd.f32 %v4826_v28, %v15994_v39  ;;  %v5750_v8 = vor.u32 %v16388_v12, %v16383_v62  ;;  %v5753_v27 = vshll.u32 %v16358_v58, 16 }
 0x25f   : > { %v16485_v22 = vld [vmem:[#allocation2 + $0x70] sm:$0xf]  ;;  %v16487_v26 = vrot.slane %v5792_v47, 4  ;;  %v16489_v14 = vrot.slane %v5795_v52, 5  ;;  %13085 = vmatprep.mubr.bf16.mxu0 %v11879_v1  ;;  %v19096_v48 = vshrl.u32 %v16358_v58, 16  ;;  %v5763_v28 = vshll.u32 %v16474_v36, 16 }
 0x260   : > { %v5742_v10 = vsel %vm13804_vm4, %v5737_v7, %v5741_v13  ;;  %v4908_v41 = vadd.f32 %v16393_v19, %v4869_v53  ;;  %v5751_v42 = vrot.slane %v5750_v8, 4  ;;  %v5755_v62 = vrot.slane %v5753_v27, 5  ;;  %v16512_v8 = vld [vmem:[#allocation2 + $0x5c] sm:$0x1] }
 0x261   : > { %v11852_v3 = vcombine.low %v5732_v30, %v5742_v10  ;;  %v5759_v39 = vrot.slane %v19096_v48, 4  ;;  %v4872_v12 = vadd.f32 %v13004_v40, %v16001_v56  ;;  %v4870_v30 = vadd.f32 %v4829_v60, %v16003_v5  ;;  %v16530_v32 = vld [vmem:[#allocation2 + $0x7c] sm:$0xf] }
 0x262   : > { %v5816_v50 = vshrl.u32 %v5553_v34, 16  ;;  %v16498_v4 = vmax.f32 %v4908_v41, 0.0  ;;  %v5765_v7 = vrot.slane %v5763_v28, 5  ;;  %v5819_v13 = vshll.u32 %v5553_v34, 16 }
 0x263   : > { %13030 = vmatmul.mubr.bf16.gmra.mxu1 %v11852_v3  ;;  %v5756_v47 = vsel %vm13804_vm4, %v5751_v42, %v5755_v62  ;;  %v5760_v52 = vor.u32 %v5759_v39, %v5755_v62  ;;  %v4911_v10 = vadd.f32 %v16393_v19, %v4872_v12  ;;  %v4909_v1 = vadd.f32 %v16393_v19, %v4870_v30  ;;  %v5521_v62 = vld [vmem:[#allocation2 + $0xb4] sm:$0xf] }
 0x264   : > { %19097 = vst [vmem:[#allocation35_spill] sm:$0xff] %v16498_v4  ;;  %v12326_v56 = vpack.c.bf16 %v16498_v4, %v16498_v4  ;;  %v16507_v40 = vrot.slane %v5816_v50, 4  ;;  %v16509_v5 = vrot.slane %v5819_v13, 5  ;;  %v11880_v53 = vcombine.low %v5553_v34, %v16485_v22 }
 0x265   : > { %v5761_v60 = vrot.slane %v5760_v52, 4  ;;  %v16514_v3 = vmax.f32 %v4911_v10, 0.0  ;;  %v16516_v27 = vmax.f32 %v4909_v1, 0.0  ;;  %v5774_v41 = vor.u32 %v16433_v24, %v16417_v25  ;;  %v5555_v10 = vld [vmem:[#allocation2 + $0x78] sm:$0xf] }
 0x266   : > { %v5336_v19 = vshrl.u32 %v12326_v56, 16  ;;  %v5339_v42 = vshll.u32 %v12326_v56, 16  ;;  %13086 = vmatmul.mubr.bf16.gmra.mxu0 %v11880_v53  ;;  %v5777_v48 = vshll.u32 %v16408_v63, 16  ;;  %v19100_v39 = vshrl.u32 %v16408_v63, 16 }
 0x267   : > { %19098 = vst [vmem:[#allocation37_spill] sm:$0xff] %v16514_v3  ;;  %19099 = vst [vmem:[#allocation36_spill] sm:$0xff] %v16516_v27  ;;  %v5766_v34 = vsel %vm13804_vm4, %v5761_v60, %v5765_v7  ;;  %v12329_v12 = vpack.c.bf16 %v16514_v3, %v16514_v3  ;;  %v12327_v30 = vpack.c.bf16 %v16516_v27, %v16516_v27  ;;  %v5775_v50 = vrot.slane %v5774_v41, 4 }
 0x268   : > { %v5783_v28 = vrot.slane %v19100_v39, 4  ;;  %v5338_v25 = vrot.slane %v5336_v19, 7  ;;  %v11853_v24 = vcombine.low %v5756_v47, %v5766_v34  ;;  %v5779_v13 = vrot.slane %v5777_v48, 5  ;;  %v5532_v19 = vld [vmem:[#allocation2 + $0xc8] sm:$0x1] }
 0x269   : > { %v5787_v52 = vshll.u32 %v16512_v8, 16  ;;  %v5361_v1 = vshrl.u32 %v12329_v12, 16  ;;  %v5364_v56 = vshll.u32 %v12329_v12, 16  ;;  %v5344_v53 = vshrl.u32 %v12327_v30, 16  ;;  %v5525_v12 = vld [vmem:[#allocation2 + $0xbc] sm:$0x1] }
 0x26a   : > { %v5347_v39 = vshll.u32 %v12327_v30, 16  ;;  %v5341_v7 = vor.u32 %v5339_v42, %v5338_v25  ;;  %v5342_v60 = vrot.slane %v5338_v25, 4  ;;  %13033 = vmatprep.mubr.bf16.mxu1 %v11853_v24  ;;  %v5780_v2 = vsel %vm13804_vm4, %v5775_v50, %v5779_v13  ;;  %v16537_v50 = vld [vmem:[#allocation2 + $0x68] sm:$0x1] }
 0x26b   : > { %v5784_v0 = vor.u32 %v5783_v28, %v5779_v13  ;;  %v5363_v41 = vrot.slane %v5361_v1, 7  ;;  %v5346_v47 = vrot.slane %v5344_v53, 7  ;;  %v5789_v48 = vrot.slane %v5787_v52, 5  ;;  %v16542_v1 = vld [vmem:[#allocation2 + $0x88] sm:$0xf] }
 0x26c   : > { %v5840_v34 = vshrl.u32 %v5555_v10, 16  ;;  %v5522_v3 = vsel %vm16011_vm13, %v5341_v7, %v5521_v62  ;;  %v5843_v30 = vshll.u32 %v5555_v10, 16  ;;  %v5853_v27 = vshrl.u32 %v16530_v32, 16  ;;  %v5557_v62 = vld [vmem:[#allocation2 + $0x84] sm:$0xf] }
 0x26d   : > { %v5785_v61 = vrot.slane %v5784_v0, 4  ;;  %5523 = vst [vmem:[#allocation2 + $0xb4] sm:$0xf] %v5522_v3  ;;  %v5366_v42 = vor.u32 %v5364_v56, %v5363_v41  ;;  %v5368_v25 = vrot.slane %v5363_v41, 4  ;;  %v5349_v24 = vor.u32 %v5347_v39, %v5346_v47 }
 0x26e   : > { %v5351_v4 = vrot.slane %v5346_v47, 4  ;;  %v5842_v13 = vrot.slane %v5840_v34, 4  ;;  %v5845_v52 = vrot.slane %v5843_v30, 5  ;;  %v11881_v43 = vcombine.low %v5555_v10, %v16530_v32 }
 0x26f   : > { %v5790_v28 = vsel %vm13804_vm4, %v5785_v61, %v5789_v48  ;;  %v19101_v0 = vrot.slane %v16455_v29, 4  ;;  %v5533_v56 = vsel %vm16034_vm15, %v5368_v25, %v5532_v19  ;;  %v5350_v53 = vsel %vm16028_vm14, %v5342_v60, %v5349_v24  ;;  %v16559_v19 = vld [vmem:[#allocation2 + $0x74] sm:$0x1] }
 0x270   : > { %v5526_v61 = vsel %vm16034_vm15, %v5351_v4, %v5525_v12  ;;  %5534 = vst [vmem:[#allocation2 + $0xc8] sm:$0x1] %v5533_v56  ;;  %5524 = vst [vmem:[#allocation2 + $0xb8] sm:$0xf] %v5350_v53  ;;  %v11854_v10 = vcombine.low %v5780_v2, %v5790_v28  ;;  %13089 = vmatprep.mubr.bf16.mxu0 %v11881_v43  ;;  %v5798_v29 = vor.u32 %v16489_v14, %v16487_v26  ;;  %v16563_v48 = vld [vmem:[#allocation2 + $0x94] sm:$0xf] }
 0x271   : > { %v5367_v3 = vsel %vm16028_vm14, %v19101_v0, %v5366_v42  ;;  %5527 = vst [vmem:[#allocation2 + $0xbc] sm:$0x1] %v5526_v61  ;;  %v5801_v39 = vshll.u32 %v16460_v51, 16  ;;  %v19102_v7 = vshrl.u32 %v16460_v51, 16  ;;  %v5811_v9 = vshll.u32 %v16537_v50, 16 }
 0x272   : > { %5531 = vst [vmem:[#allocation2 + $0xc4] sm:$0xf] %v5367_v3  ;;  %v5864_v4 = vshrl.u32 %v5557_v62, 16  ;;  %v5867_v60 = vshll.u32 %v5557_v62, 16  ;;  %v5877_v47 = vshrl.u32 %v16542_v1, 16  ;;  %13034 = vmatmul.mubr.bf16.gmra.mxu1 %v11854_v10  ;;  %v5799_v2 = vrot.slane %v5798_v29, 4 }
 0x273   : > { %v5807_v41 = vrot.slane %v19102_v7, 4  ;;  %v5803_v34 = vrot.slane %v5801_v39, 5  ;;  %v11882_v26 = vcombine.low %v5557_v62, %v16542_v1  ;;  %v5822_v14 = vor.u32 %v16509_v5, %v16507_v40  ;;  %v16576_v29 = vld [vmem:[#allocation2 + $0x80] sm:$0x1] }
 0x274   : > { %v5813_v12 = vrot.slane %v5811_v9, 5  ;;  %v5866_v30 = vrot.slane %v5864_v4, 4  ;;  %v5869_v42 = vrot.slane %v5867_v60, 5  ;;  %v5825_v25 = vshll.u32 %v16485_v22, 16  ;;  %v5561_v60 = vld [vmem:[#allocation2 + $0x9c] sm:$0xf] }
 0x275   : > { %v5804_v24 = vsel %vm13804_vm4, %v5799_v2, %v5803_v34  ;;  %v5808_v28 = vor.u32 %v5807_v41, %v5803_v34  ;;  %13090 = vmatmul.mubr.bf16.gmra.mxu0 %v11882_v26  ;;  %v5823_v43 = vrot.slane %v5822_v14, 4  ;;  %v19103_v0 = vshrl.u32 %v16485_v22, 16  ;;  %v16580_v2 = vld [vmem:[#allocation2 + $0xa0] sm:$0xf] }
 0x276   : > { %v5827_v56 = vrot.slane %v5825_v25, 5  ;;  %v5835_v62 = vshll.u32 %v16559_v19, 16  ;;  %v5888_v53 = vshrl.u32 %v5559_v21, 16  ;;  %v5891_v61 = vshll.u32 %v5559_v21, 16 }
 0x277   : > { %v5831_v3 = vrot.slane %v19103_v0, 4  ;;  %v5809_v40 = vrot.slane %v5808_v28, 4  ;;  %v5901_v5 = vshrl.u32 %v16563_v48, 16  ;;  %v11883_v10 = vcombine.low %v5559_v21, %v16563_v48  ;;  %v16606_v57 = vld [vmem:[#allocation2 + $0xb8] sm:$0xf] }
 0x278   : > { %v5846_v39 = vor.u32 %v5845_v52, %v5842_v13  ;;  %v5828_v7 = vsel %vm13804_vm4, %v5823_v43, %v5827_v56  ;;  %v5837_v9 = vrot.slane %v5835_v62, 5  ;;  %v5890_v4 = vrot.slane %v5888_v53, 4 }
 0x279   : > { %v5832_v41 = vor.u32 %v5831_v3, %v5827_v56  ;;  %v5814_v34 = vsel %vm13804_vm4, %v5809_v40, %v5813_v12  ;;  %v5893_v26 = vrot.slane %v5891_v61, 5  ;;  %13093 = vmatprep.mubr.bf16.mxu0 %v11883_v10  ;;  %v5849_v21 = vshll.u32 %v16530_v32, 16  ;;  %v16592_v61 = vld [vmem:[#allocation2 + $0x8c] sm:$0x1]  ;;  %v5563_v40 = vld [vmem:[#allocation2 + $0xa8] sm:$0xf] }
 0x27a   : > { %v5847_v14 = vrot.slane %v5846_v39, 4  ;;  %v11855_v25 = vcombine.low %v5804_v24, %v5814_v34  ;;  %v5855_v13 = vrot.slane %v5853_v27, 4  ;;  %v5859_v52 = vshll.u32 %v16576_v29, 16  ;;  %v16596_v34 = vld [vmem:[#allocation2 + $0xac] sm:$0xf] }
 0x27b   : > { %v5833_v28 = vrot.slane %v5832_v41, 4  ;;  %v5851_v43 = vrot.slane %v5849_v21, 5  ;;  %v5912_v0 = vshrl.u32 %v5561_v60, 16  ;;  %v5915_v3 = vshll.u32 %v5561_v60, 16 }
 0x27c   : > { %v5925_v56 = vshrl.u32 %v16580_v2, 16  ;;  %13037 = vmatprep.mubr.bf16.mxu1 %v11855_v25  ;;  %v5861_v62 = vrot.slane %v5859_v52, 5  ;;  %v11884_v53 = vcombine.low %v5561_v60, %v16580_v2  ;;  %v5870_v24 = vor.u32 %v5869_v42, %v5866_v30  ;;  %v16599_v52 = vld [vmem:[#allocation2 + $0x98] sm:$0x1] }
 0x27d   : > { %v5838_v12 = vsel %vm13804_vm4, %v5833_v28, %v5837_v9  ;;  %v5852_v27 = vsel %vm13804_vm4, %v5847_v14, %v5851_v43  ;;  %v5856_v39 = vor.u32 %v5855_v13, %v5851_v43  ;;  %v5914_v41 = vrot.slane %v5912_v0, 4 }
 0x27e   : > { %v11856_v10 = vcombine.low %v5828_v7, %v5838_v12  ;;  %v5917_v21 = vrot.slane %v5915_v3, 5  ;;  %13094 = vmatmul.mubr.bf16.gmra.mxu0 %v11884_v53  ;;  %v5871_v25 = vrot.slane %v5870_v24, 4  ;;  %v5873_v9 = vshll.u32 %v16542_v1, 16  ;;  %v5565_v12 = vld [vmem:[#allocation2 + $0xb4] sm:$0xf] }
 0x27f   : > { %v5879_v28 = vrot.slane %v5877_v47, 4  ;;  %v5857_v60 = vrot.slane %v5856_v39, 4  ;;  %v5883_v30 = vshll.u32 %v16592_v61, 16  ;;  %v5936_v42 = vshrl.u32 %v5563_v40, 16 }
 0x280   : > { %13038 = vmatmul.mubr.bf16.gmra.mxu1 %v11856_v10  ;;  %v5939_v7 = vshll.u32 %v5563_v40, 16  ;;  %v5875_v14 = vrot.slane %v5873_v9, 5  ;;  %v5949_v13 = vshrl.u32 %v16596_v34, 16  ;;  %v11885_v43 = vcombine.low %v5563_v40, %v16596_v34 }
 0x281   : > { %v5894_v0 = vor.u32 %v5893_v26, %v5890_v4  ;;  %v5862_v3 = vsel %vm13804_vm4, %v5857_v60, %v5861_v62  ;;  %v5885_v53 = vrot.slane %v5883_v30, 5  ;;  %v5938_v47 = vrot.slane %v5936_v42, 4 }
 0x282   : > { %v5941_v24 = vrot.slane %v5939_v7, 5  ;;  %v11857_v10 = vcombine.low %v5852_v27, %v5862_v3  ;;  %v5876_v39 = vsel %vm13804_vm4, %v5871_v25, %v5875_v14  ;;  %v5880_v35 = vor.u32 %v5879_v28, %v5875_v14  ;;  %13097 = vmatprep.mubr.bf16.mxu0 %v11885_v43  ;;  %v16614_v25 = vld [vmem:[#allocation2 + $0xa4] sm:$0x1]  ;;  %v13551_v14 = vld [vmem:[#allocation2 + $0xc] sm:$0xff]  }
 0x283   : > { %v5895_v9 = vrot.slane %v5894_v0, 4  ;;  %v5897_v31 = vshll.u32 %v16563_v48, 16  ;;  %v5903_v44 = vrot.slane %v5901_v5, 4  ;;  %v5907_v4 = vshll.u32 %v16599_v52, 16  ;;  %v16619_v3 = vld [vmem:[#allocation2 + $0xb0] sm:$0x1] }
 0x284   : > { %v5960_v26 = vshrl.u32 %v5565_v12, 16  ;;  %13041 = vmatprep.mubr.bf16.mxu1 %v11857_v10  ;;  %v5881_v62 = vrot.slane %v5880_v35, 4  ;;  %v5963_v40 = vshll.u32 %v5565_v12, 16  ;;  %v5973_v60 = vshrl.u32 %v16606_v57, 16 }
 0x285   : > { %v11886_v30 = vcombine.low %v5565_v12, %v16606_v57  ;;  %v5899_v27 = vrot.slane %v5897_v31, 5  ;;  %v5909_v42 = vrot.slane %v5907_v4, 5  ;;  %v5918_v28 = vor.u32 %v5917_v21, %v5914_v41 }
 0x286   : > { %v5962_v7 = vrot.slane %v5960_v26, 4  ;;  %v5886_v5 = vsel %vm13804_vm4, %v5881_v62, %v5885_v53  ;;  %v5965_v43 = vrot.slane %v5963_v40, 5  ;;  %v5921_v0 = vshll.u32 %v16580_v2, 16 }
 0x287   : > { %13098 = vmatmul.mubr.bf16.gmra.mxu0 %v11886_v30  ;;  %v5927_v35 = vrot.slane %v5925_v56, 4  ;;  %v11858_v10 = vcombine.low %v5876_v39, %v5886_v5  ;;  %v5900_v31 = vsel %vm13804_vm4, %v5895_v9, %v5899_v27  ;;  %v5904_v12 = vor.u32 %v5903_v44, %v5899_v27  ;;  %v16628_v27 = vld [vmem:[#allocation2 + $0xbc] sm:$0x1] }
 0x288   : > { %v5919_v4 = vrot.slane %v5918_v28, 4  ;;  %13165 = vmatprep.mubr.bf16.mxu0 %v13551_v14  ;;  %v5923_v26 = vrot.slane %v5921_v0, 5  ;;  %v5931_v41 = vshll.u32 %v16614_v25, 16  ;;  %v5942_v21 = vor.u32 %v5941_v24, %v5938_v47  ;;  %v6578_v28 = vld [vmem:[#allocation2] sm:$0xe] }
 0x289   : > { %v5945_v53 = vshll.u32 %v16596_v34, 16  ;;  %13042 = vmatmul.mubr.bf16.gmra.mxu1 %v11858_v10  ;;  %v5905_v62 = vrot.slane %v5904_v12, 4  ;;  %v5951_v40 = vrot.slane %v5949_v13, 4  ;;  %v5955_v56 = vshll.u32 %v16619_v3, 16  ;;  %v6579_v13 = vld [vmem:[#allocation2 + $0xc] sm:$0xe] }
 0x28a   : > { %v5966_v30 = vor.u32 %v5965_v43, %v5962_v7  ;;  %v5924_v39 = vsel %vm13804_vm4, %v5919_v4, %v5923_v26  ;;  %v5928_v5 = vor.u32 %v5927_v35, %v5923_v26  ;;  %v5933_v9 = vrot.slane %v5931_v41, 5  ;;  %v13554_v7 = vld [vmem:[#allocation2 + $0x18] sm:$0xff]   ;;  %v13569_v35 = vld [vmem:[%s18840_s3 + $0x170] sm:$0xff]  }
 0x28b   : > { %v5943_v44 = vrot.slane %v5942_v21, 4  ;;  %v5910_v47 = vsel %vm13804_vm4, %v5905_v62, %v5909_v42  ;;  %v5947_v24 = vrot.slane %v5945_v53, 5  ;;  %v5957_v14 = vrot.slane %v5955_v56, 5  ;;  %v13555_v21 = vld [vmem:[#allocation2 + $0x24] sm:$0xff]  }
 0x28c   : > { %v16632_v0 = vrot.slane %v5966_v30, 4  ;;  %v11859_v10 = vcombine.low %v5900_v31, %v5910_v47  ;;  %v5929_v12 = vrot.slane %v5928_v5, 4  ;;  %v5969_v43 = vshll.u32 %v16606_v57, 16  ;;  %v13667_v56 = vld [vmem:[#allocation2 + $0x4] sm:$0xf] }
 0x28d   : > { %v5975_v4 = vrot.slane %v5973_v60, 4  ;;  %v5948_v26 = vsel %vm13804_vm4, %v5943_v44, %v5947_v24  ;;  %v5952_v41 = vor.u32 %v5951_v40, %v5947_v24  ;;  %v5979_v42 = vshll.u32 %v16628_v27, 16  ;;  %v13668_v30 = vld [vmem:[#allocation2 + $0x8] sm:$0x1]  ;;  %v6580_v47 = vld [vmem:[#allocation2 + $0x18] sm:$0xe] }
 0x28e   : > { %v11895_v53 = vrot.slane %v6578_v28, 9  ;;  %13045 = vmatprep.mubr.bf16.mxu1 %v11859_v10  ;;  %v5934_v31 = vsel %vm13804_vm4, %v5929_v12, %v5933_v9  ;;  %v5971_v62 = vrot.slane %v5969_v43, 5  ;;  %v6628_v60 = vrot.slane %v13667_v56, 5 }
 0x28f   : > { %13166 = vmatmul.mubr.bf16.vlgmr.msra.gmra.mxu0 %v13554_v7  ;;  %v6631_v5 = vrot.slane %v13668_v30, 5  ;;  %v11860_v16 = vcombine.low %v5924_v39, %v5934_v31  ;;  %v5953_v54 = vrot.slane %v5952_v41, 4  ;;  %v5981_v37 = vrot.slane %v5979_v42, 5  ;;  %v13572_v39 = vld [vmem:[%s18840_s3 + $0x168] sm:$0xff]   ;;  %v13670_v7 = vld [vmem:[#allocation2 + $0x14] sm:$0x1] }
 0x290   : > { %13169 = vmatprep.mubr.bf16.mxu0 %v13555_v21  ;;  %v11896_v40 = vrot.slane %v6579_v13, 9  ;;  %13246 = vmatpush3.bf16.msra.mxu0 %v16313_v23  ;;  %v5972_v44 = vsel %vm13804_vm4, %v16632_v0, %v5971_v62  ;;  %v5976_v28 = vor.u32 %v5975_v4, %v5971_v62  ;;  %v16649_v24 = vsel %vm14066_vm7, %v11895_v53, %v6628_v60  ;;  %v13669_v23 = vld [vmem:[#allocation2 + $0x10] sm:$0xf]  ;;  %v6581_v4 = vld [vmem:[#allocation2 + $0x24] sm:$0xe] }
 0x291   : > { %v6630_v10 = vrot.slane %v6628_v60, 4  ;;  %13247 = vmatprep.subr.bf16.mxu0 %v13569_v35  ;;  %13046 = vmatmul.mubr.bf16.gmra.mxu1 %v11860_v16  ;;  %v5958_v13 = vsel %vm13804_vm4, %v5953_v54, %v5957_v14  ;;  %v6635_v12 = vrot.slane %v13669_v23, 5  ;;  %v6638_v43 = vrot.slane %v13670_v7, 5  ;;  %v13671_v53 = vld [vmem:[#allocation2 + $0x1c] sm:$0xf]  ;;  %v13556_v30 = vld [vmem:[#allocation2 + $0x30] sm:$0xff]  }
 0x292   : > { %v11897_v0 = vrot.slane %v6580_v47, 9  ;;  %v11861_v41 = vcombine.low %v5948_v26, %v5958_v13  ;;  %v5977_v42 = vrot.slane %v5976_v28, 4  ;;  %v6642_v31 = vrot.slane %v13671_v53, 5  ;;  %v13672_v14 = vld [vmem:[#allocation2 + $0x20] sm:$0x1] }
 0x293   : > { %v6632_v21 = vsel %vm14066_vm7, %v6630_v10, %v6631_v5  ;;  %v16661_v16 = vsel %vm14066_vm7, %v11896_v40, %v6635_v12  ;;  %v6637_v54 = vrot.slane %v6635_v12, 4  ;;  %v6645_v56 = vrot.slane %v13672_v14, 5  ;;  %v6582_v60 = vld [vmem:[#allocation2 + $0x30] sm:$0xe]  ;;  %v13574_v40 = vld [vmem:[%s18840_s3 + $0x160] sm:$0xff]  }
 0x294   : > { %v11927_v62 = vcombine.low %v16649_v24, %v6632_v21  ;;  %13248 = vmatpush3.bf16.msra.mxu0 %v13569_v35  ;;  %13049 = vmatprep.mubr.bf16.mxu1 %v11861_v41  ;;  %v5982_v26 = vsel %vm13804_vm4, %v5977_v42, %v5981_v37  ;;  %v16667_v5 = vsel %vm14066_vm7, %v11897_v0, %v6642_v31  ;;  %v6644_v47 = vrot.slane %v6642_v31, 4  ;;  %v13558_v10 = vld [vmem:[#allocation2 + $0x3c] sm:$0xff]   ;;  %v13673_v13 = vld [vmem:[#allocation2 + $0x28] sm:$0xf] }
 0x295   : > { %v11898_v28 = vrot.slane %v6581_v4, 9  ;;  %13249 = vmatprep.subr.bf16.mxu0 %v13572_v39  ;;  %v11862_v24 = vcombine.low %v5972_v44, %v5982_v26  ;;  %v16674_v35 = vsel %vm14066_vm7, %v6637_v54, %v6638_v43  ;;  %v6649_v37 = vrot.slane %v13673_v13, 5  ;;  %v6583_v12 = vld [vmem:[#allocation2 + $0x3c] sm:$0xe]  ;;  %v13674_v44 = vld [vmem:[#allocation2 + $0x34] sm:$0xf] }
 0x296   : > { %v6652_v23 = vrot.slane %v16340_v38, 5  ;;  %v11928_v7 = vcombine.low %v16661_v16, %v16674_v35  ;;  %v16681_v0 = vsel %vm14066_vm7, %v6644_v47, %v6645_v56  ;;  %v11899_v4 = vrot.slane %v6582_v60, 9  ;;  %v6584_v42 = vld [vmem:[#allocation2 + $0x48] sm:$0xe]  ;;  %v13675_v56 = vld [vmem:[#allocation2 + $0x40] sm:$0xf] }
 0x297   : > { %13170 = vmatmul.mubr.bf16.gmra.mxu0 %v13556_v30  ;;  %v6656_v41 = vrot.slane %v13674_v44, 5  ;;  %v11929_v43 = vcombine.low %v16667_v5, %v16681_v0  ;;  %v16687_v38 = vsel %vm14066_vm7, %v11898_v28, %v6649_v37  ;;  %v6651_v21 = vrot.slane %v6649_v37, 4  ;;  %v13577_v26 = vld [vmem:[%s18840_s3 + $0x158] sm:$0xff]   ;;  %v6585_v28 = vld [vmem:[#allocation2 + $0x54] sm:$0xe] }
 0x298   : > { %13173 = vmatprep.mubr.bf16.mxu0 %v13558_v10  ;;  %v6659_v53 = vrot.slane %v16379_v45, 5  ;;  %13250 = vmatpush3.bf16.msra.mxu0 %v13572_v39  ;;  %v11900_v14 = vrot.slane %v6583_v12, 9  ;;  %v6663_v60 = vrot.slane %v13675_v56, 5  ;;  %v6666_v45 = vrot.slane %v16448_v11, 5  ;;  %v13559_v12 = vld [vmem:[#allocation2 + $0x48] sm:$0xff]  }
 0x299   : > { %v16692_v31 = vsel %vm14066_vm7, %v11899_v4, %v6656_v41  ;;  %v6658_v54 = vrot.slane %v6656_v41, 4  ;;  %13251 = vmatprep.subr.bf16.mxu0 %v13574_v40  ;;  %13050 = vmatmul.mubr.bf16.gmra.mxu1 %v11862_v24  ;;  %v16699_v30 = vsel %vm14066_vm7, %v6651_v21, %v6652_v23  ;;  %v11901_v39 = vrot.slane %v6584_v42, 9  ;;  %v6586_v23 = vld [vmem:[#allocation2 + $0x60] sm:$0xe] }
 0x29a   : > { %v6670_v47 = vrot.slane %v16358_v58, 5  ;;  %13117 = vmatprep.mubr.bf16.mxu1 %v11927_v62  ;;  %v11930_v10 = vcombine.low %v16687_v38, %v16699_v30  ;;  %v16711_v24 = vsel %vm14066_vm7, %v11900_v14, %v6663_v60  ;;  %v6665_v37 = vrot.slane %v6663_v60, 4  ;;  %v13561_v14 = vld [vmem:[#allocation2 + $0x54] sm:$0xff]  }
 0x29b   : > { %v16707_v13 = vsel %vm14066_vm7, %v6658_v54, %v6659_v53  ;;  %v6673_v4 = vrot.slane %v16474_v36, 5  ;;  %v11902_v41 = vrot.slane %v6585_v28, 9  ;;  %v6677_v42 = vrot.slane %v16408_v63, 5  ;;  %v6587_v53 = vld [vmem:[#allocation2 + $0x6c] sm:$0xe]  ;;  %v13579_v54 = vld [vmem:[%s18840_s3 + $0x150] sm:$0xff]  }
 0x29c   : > { %v11931_v11 = vcombine.low %v16692_v31, %v16707_v13  ;;  %v16717_v58 = vsel %vm14066_vm7, %v11901_v39, %v6670_v47  ;;  %v6672_v62 = vrot.slane %v6670_v47, 4  ;;  %13252 = vmatpush3.bf16.msra.mxu0 %v13574_v40  ;;  %v16722_v44 = vsel %vm14066_vm7, %v6665_v37, %v6666_v45  ;;  %v6588_v63 = vld [vmem:[#allocation2 + $0x78] sm:$0xe]  ;;  %v13560_v28 = vld [vmem:[%s18840_s3 + $0x130] sm:$0xff]  }
 0x29d   : > { %v6680_v21 = vrot.slane %v16512_v8, 5  ;;  %13253 = vmatprep.subr.bf16.mxu0 %v13577_v26  ;;  %v11932_v36 = vcombine.low %v16711_v24, %v16722_v44  ;;  %v11903_v56 = vrot.slane %v6586_v23, 9  ;;  %v6684_v60 = vrot.slane %v16460_v51, 5 }
 0x29e   : > { %v16733_v40 = vsel %vm14066_vm7, %v6672_v62, %v6673_v4  ;;  %v16740_v45 = vsel %vm14066_vm7, %v11902_v41, %v6677_v42  ;;  %v6679_v39 = vrot.slane %v6677_v42, 4  ;;  %v6687_v47 = vrot.slane %v16537_v50, 5  ;;  %v6589_v42 = vld [vmem:[#allocation2 + $0x84] sm:$0xe] }
 0x29f   : > { %13174 = vmatmul.mubr.bf16.gmra.mxu0 %v13559_v12  ;;  %v11933_v8 = vcombine.low %v16717_v58, %v16733_v40  ;;  %v16748_v51 = vsel %vm14066_vm7, %v11903_v56, %v6684_v60  ;;  %v6686_v37 = vrot.slane %v6684_v60, 4  ;;  %v11904_v23 = vrot.slane %v6587_v53, 9  ;;  %v8200_v56 = vld [vmem:[#allocation2 + $0xc] sm:$0xe]  ;;  %v16965_v40 = vld [vmem:[#allocation2 + $0x44] sm:$0x1] }
 0x2a0   : > { %13177 = vmatprep.mubr.bf16.mxu0 %v13561_v14  ;;  %v6691_v12 = vrot.slane %v16485_v22, 5  ;;  %13254 = vmatpush3.bf16.msra.mxu0 %v13577_v26  ;;  %v16753_v62 = vsel %vm14066_vm7, %v6679_v39, %v6680_v21  ;;  %v6694_v50 = vrot.slane %v16559_v19, 5  ;;  %v11905_v4 = vrot.slane %v6588_v63, 9  ;;  %v13582_v14 = vld [vmem:[%s18840_s3 + $0x148] sm:$0xff]   ;;  %v6590_v21 = vld [vmem:[#allocation2 + $0x90] sm:$0xe] }
 0x2a1   : > { %v6698_v41 = vrot.slane %v16530_v32, 5  ;;  %13255 = vmatprep.subr.bf16.mxu0 %v13579_v54  ;;  %13118 = vmatmul.mubr.bf16.vlgmr.msra.gmra.mxu1 %v11928_v7  ;;  %v16767_v26 = vsel %vm14066_vm7, %v6686_v37, %v6687_v47  ;;  %v6701_v53 = vrot.slane %v16576_v29, 5  ;;  %v11906_v0 = vrot.slane %v6589_v42, 9  ;;  %v6591_v63 = vld [vmem:[#allocation2 + $0x9c] sm:$0xe]  ;;  %v13562_v39 = vld [vmem:[#allocation2 + $0x60] sm:$0xff]  }
 0x2a2   : > { %v16771_v32 = vsel %vm14066_vm7, %v11904_v23, %v6691_v12  ;;  %v6693_v19 = vrot.slane %v6691_v12, 4  ;;  %13198 = vmatpush3.bf16.msra.mxu1 %v16443_v18  ;;  %13121 = vmatprep.mubr.bf16.mxu1 %v11929_v43  ;;  %v13563_v18 = vld [vmem:[%s18840_s3 + $0x128] sm:$0xff]   ;;  %v6705_v43 = vrot.slane %v16542_v1, 5  ;;  %v6708_v60 = vrot.slane %v16592_v61, 5  ;;  %v16800_v12 = vld [vmem:[#allocation2 + $0x10] sm:$0xf] }
 0x2a3   : > { %v16781_v35 = vsel %vm14066_vm7, %v11905_v4, %v6698_v41  ;;  %v6700_v7 = vrot.slane %v6698_v41, 4  ;;  %13199 = vmatprep.subr.bf16.mxu1 %v13560_v28  ;;  %v11907_v37 = vrot.slane %v6590_v21, 9  ;;  %v6712_v23 = vrot.slane %v16563_v48, 5  ;;  %v16809_v41 = vld [vmem:[#allocation2 + $0x14] sm:$0x1]  ;;  %v13583_v48 = vld [vmem:[%s18840_s3 + $0x140] sm:$0xff]  }
 0x2a4   : > { %v16789_v5 = vsel %vm14066_vm7, %v6693_v19, %v6694_v50  ;;  %13256 = vmatpush3.bf16.msra.mxu0 %v13579_v54  ;;  %v13564_v50 = vld [vmem:[#allocation2 + $0x6c] sm:$0xff]   ;;  %v16806_v61 = vsel %vm14066_vm7, %v11906_v0, %v6705_v43  ;;  %v6707_v54 = vrot.slane %v6705_v43, 4  ;;  %v6715_v4 = vrot.slane %v16599_v52, 5  ;;  %v13566_v52 = vld [vmem:[%s18840_s3 + $0x120] sm:$0xff]  }
 0x2a5   : > { %v16797_v47 = vsel %vm14066_vm7, %v6700_v7, %v6701_v53  ;;  %13257 = vmatprep.subr.bf16.mxu0 %v13582_v14  ;;  %v16816_v42 = vsel %vm14066_vm7, %v11907_v37, %v6712_v23  ;;  %v6714_v19 = vrot.slane %v6712_v23, 4  ;;  %v11908_v21 = vrot.slane %v6591_v63, 9  ;;  %v8201_v53 = vld [vmem:[#allocation2 + $0x18] sm:$0xe]  ;;  %v6592_v37 = vld [vmem:[#allocation2 + $0xa8] sm:$0xe] }
 0x2a6   : > { %13200 = vmatpush3.bf16.msra.mxu1 %v13560_v28  ;;  %v6719_v7 = vrot.slane %v16580_v2, 5  ;;  %v16824_v0 = vsel %vm14066_vm7, %v6707_v54, %v6708_v60  ;;  %v6722_v28 = vrot.slane %v16614_v25, 5  ;;  %v12031_v43 = vrot.slane %v8200_v56, 9  ;;  %v16838_v60 = vld [vmem:[#allocation2 + $0x1c] sm:$0xf]  ;;  %v13568_v56 = vld [vmem:[#allocation2 + $0x84] sm:$0xff]  }
 0x2a7   : > { %13178 = vmatmul.mubr.bf16.gmra.mxu0 %v13562_v39  ;;  %13201 = vmatprep.subr.bf16.mxu1 %v13563_v18  ;;  %v8266_v39 = vrot.slane %v16800_v12, 5  ;;  %v16832_v63 = vsel %vm14066_vm7, %v6714_v19, %v6715_v4  ;;  %v16840_v25 = vld [vmem:[#allocation2 + $0x20] sm:$0x1]  ;;  %v8269_v19 = vrot.slane %v16809_v41, 5  ;;  %v11909_v30 = vrot.slane %v6592_v37, 9  ;;  %v13581_v58 = vld [vmem:[%s18840_s3 + $0x108] sm:$0xff]  }
 0x2a8   : > { %13181 = vmatprep.mubr.bf16.mxu0 %v13564_v50  ;;  %v16836_v23 = vsel %vm14066_vm7, %v11908_v21, %v6719_v7  ;;  %v6721_v50 = vrot.slane %v6719_v7, 4  ;;  %13258 = vmatpush3.bf16.msra.mxu0 %v13582_v14  ;;  %v8202_v14 = vld [vmem:[#allocation2 + $0x24] sm:$0xe]  ;;  %v16855_v21 = vld [vmem:[%s18840_s3 + $0x1f8] sm:$0xff]   ;;  %v6729_v7 = vrot.slane %v16619_v3, 5  ;;  %v8276_v31 = vrot.slane %v16840_v25, 5 }
 0x2a9   : > { %13122 = vmatmul.mubr.bf16.gmra.mxu1 %v11930_v10  ;;  %v16849_v54 = vsel %vm14066_vm7, %v12031_v43, %v8266_v39  ;;  %v8268_v4 = vrot.slane %v8266_v39, 4  ;;  %13259 = vmatprep.subr.bf16.mxu0 %v13583_v48  ;;  %v6726_v10 = vrot.slane %v16596_v34, 5  ;;  %v6593_v43 = vld [vmem:[#allocation2 + $0xb4] sm:$0xe]  ;;  %v13571_v39 = vld [vmem:[%s18840_s3 + $0x118] sm:$0xff]   ;;  %v6733_v2 = vrot.slane %v16606_v57, 5 }
 0x2aa   : > { %13125 = vmatprep.mubr.bf16.mxu1 %v11931_v11  ;;  %13202 = vmatpush3.bf16.msra.mxu1 %v13563_v18  ;;  %v16862_v38 = vsel %vm14066_vm7, %v6721_v50, %v6722_v28  ;;  %v12032_v11 = vrot.slane %v8201_v53, 9  ;;  %v8273_v18 = vrot.slane %v16838_v60, 5  ;;  %v16876_v28 = vld [vmem:[#allocation2 + $0x28] sm:$0xf]  ;;  %v13565_v34 = vld [vmem:[#allocation2 + $0x78] sm:$0xff]   ;;  %v13576_v57 = vld [vmem:[%s18840_s3 + $0x110] sm:$0xff]  }
 0x2ab   : > { %13203 = vmatprep.subr.bf16.mxu1 %v13566_v52  ;;  %v16873_v13 = vsel %vm14066_vm7, %v8268_v4, %v8269_v19  ;;  %v16882_v37 = vsel %vm14066_vm7, %v11909_v30, %v6726_v10  ;;  %v6728_v50 = vrot.slane %v6726_v10, 4  ;;  %v11910_v19 = vrot.slane %v6593_v43, 9  ;;  %v16890_v1 = vld [vmem:[#allocation2 + $0x2c] sm:$0x1]  ;;  %v16927_v43 = vld [vmem:[#allocation2 + $0x34] sm:$0xf] }
 0x2ac   : > { %13260 = vmatpush3.bf16.msra.mxu0 %v13583_v48  ;;  %v16887_v53 = vsel %vm14066_vm7, %v12032_v11, %v8273_v18  ;;  %v8275_v4 = vrot.slane %v8273_v18, 4  ;;  %v6736_v30 = vrot.slane %v16628_v27, 5  ;;  %v12033_v10 = vrot.slane %v8202_v14, 9  ;;  %v7446_v3 = vld [vmem:[#allocation2 + $0xc] sm:$0xf] }
 0x2ad   : > { %13341 = vmatprep.subr.bf16.mxu0 %v16855_v21  ;;  %v16895_v48 = vsel %vm14066_vm7, %v6728_v50, %v6729_v7  ;;  %v8280_v11 = vrot.slane %v16876_v28, 5  ;;  %v16910_v27 = vsel %vm14066_vm7, %v11910_v19, %v6733_v2  ;;  %v6735_v14 = vrot.slane %v6733_v2, 4  ;;  %v8203_v50 = vld [vmem:[#allocation2 + $0x30] sm:$0xe] }
 0x2ae   : > { %13204 = vmatpush3.bf16.msra.mxu1 %v13566_v52  ;;  %v16906_v52 = vsel %vm14066_vm7, %v8275_v4, %v8276_v31  ;;  %v7495_v2 = vshrl.u32 %v7446_v3, 16  ;;  %v7498_v4 = vshll.u32 %v7446_v3, 16  ;;  %v7504_v19 = vshll.u32 %v16800_v12, 16  ;;  %v16940_v3 = vld [vmem:[#allocation2 + $0x38] sm:$0x1] }
 0x2af   : > { %13182 = vmatmul.mubr.bf16.gmra.mxu0 %v13565_v34  ;;  %13205 = vmatprep.subr.bf16.mxu1 %v13571_v39  ;;  %v16916_v7 = vsel %vm14066_vm7, %v12033_v10, %v8280_v11  ;;  %v8282_v18 = vrot.slane %v8280_v11, 4  ;;  %v8283_v34 = vrot.slane %v16890_v1, 5  ;;  %v16924_v31 = vsel %vm14066_vm7, %v6735_v14, %v6736_v30  ;;  %v7449_v30 = vld [vmem:[#allocation2 + $0x18] sm:$0xf]  ;;  %v13570_v14 = vld [vmem:[#allocation2 + $0x90] sm:$0xff]   ;;  %v13573_v10 = vld [vmem:[#allocation2 + $0x9c] sm:$0xff]  }
 0x2b0   : > { %13185 = vmatprep.mubr.bf16.mxu0 %v13568_v56  ;;  %v7508_v44 = vshrl.u32 %v16800_v12, 16  ;;  %v7506_v11 = vrot.slane %v7504_v19, 5  ;;  %v12034_v12 = vrot.slane %v8203_v50, 9  ;;  %v8290_v29 = vrot.slane %v16940_v3, 5  ;;  %v8204_v50 = vld [vmem:[#allocation2 + $0x3c] sm:$0xe] }
 0x2b1   : > { %13126 = vmatmul.mubr.bf16.gmra.mxu1 %v11932_v36  ;;  %v16936_v24 = vsel %vm14066_vm7, %v8282_v18, %v8283_v34  ;;  %v7514_v36 = vshll.u32 %v16809_v41, 16  ;;  %v8287_v41 = vrot.slane %v16927_v43, 5  ;;  %v7519_v16 = vshrl.u32 %v7449_v30, 16 }
 0x2b2   : > { %13129 = vmatprep.mubr.bf16.mxu1 %v11933_v8  ;;  %13206 = vmatpush3.bf16.msra.mxu1 %v13571_v39  ;;  %v7497_v8 = vrot.slane %v7495_v2, 4  ;;  %v7500_v39 = vrot.slane %v7498_v4, 5  ;;  %v7510_v18 = vrot.slane %v7508_v44, 4  ;;  %v7522_v22 = vshll.u32 %v7449_v30, 16  ;;  %v16954_v44 = vld [vmem:[#allocation2 + $0x40] sm:$0xf] }
 0x2b3   : > { %13207 = vmatprep.subr.bf16.mxu1 %v13576_v57  ;;  %v7516_v34 = vrot.slane %v7514_v36, 5  ;;  %v16951_v2 = vsel %vm14066_vm7, %v12034_v12, %v8287_v41  ;;  %v8289_v4 = vrot.slane %v8287_v41, 4  ;;  %v7528_v19 = vshll.u32 %v16838_v60, 16  ;;  %v13584_v36 = vld [vmem:[%s18840_s3 + $0x100] sm:$0xff]  }
 0x2b4   : > { %v7501_v56 = vor.u32 %v7500_v39, %v7497_v8  ;;  %v7511_v46 = vor.u32 %v7510_v18, %v7506_v11  ;;  %v7521_v8 = vrot.slane %v7519_v16, 4  ;;  %v7532_v39 = vshrl.u32 %v16838_v60, 16 }
 0x2b5   : > { %v16962_v18 = vsel %vm14066_vm7, %v8289_v4, %v8290_v29  ;;  %v7530_v12 = vrot.slane %v7528_v19, 5  ;;  %v7538_v41 = vshll.u32 %v16840_v25, 16  ;;  %v19106_v29 = vcombine.low %v16748_v51, %v16767_v26  ;;  %v16985_v19 = vld [vmem:[%s18840_s3 + $0x1b8] sm:$0xff]   ;;  %v8205_v26 = vld [vmem:[#allocation2 + $0x48] sm:$0xe] }
 0x2b6   : > { %13208 = vmatpush3.bf16.msra.mxu1 %v13576_v57  ;;  %v7502_v30 = vrot.slane %v7501_v56, 4  ;;  %v7524_v57 = vrot.slane %v7522_v22, 5  ;;  %v7534_v60 = vrot.slane %v7532_v39, 4  ;;  %v7452_v56 = vld [vmem:[#allocation2 + $0x24] sm:$0xf]  ;;  %v8297_v51 = vrot.slane %v16965_v40, 5 }
 0x2b7   : > { %13186 = vmatmul.mubr.bf16.gmra.mxu0 %v13570_v14  ;;  %13209 = vmatprep.subr.bf16.mxu1 %v13581_v58  ;;  %v7512_v14 = vrot.slane %v7511_v46, 4  ;;  %v7540_v4 = vrot.slane %v7538_v41, 5  ;;  %v7546_v39 = vshll.u32 %v7452_v56, 16  ;;  %v13578_v41 = vld [vmem:[#allocation2 + $0xb4] sm:$0xff]   ;;  %v17003_v22 = vld [vmem:[#allocation2 + $0x50] sm:$0x1] }
 0x2b8   : > { %13189 = vmatprep.mubr.bf16.mxu0 %v13573_v10  ;;  %v19105_v10 = vcombine.low %v16740_v45, %v16753_v62  ;;  %v7507_v16 = vsel %vm13804_vm4, %v7502_v30, %v7506_v11  ;;  %v7525_v46 = vor.u32 %v7524_v57, %v7521_v8  ;;  %v12035_v45 = vrot.slane %v8204_v50, 9 }
 0x2b9   : > { %v7517_v25 = vsel %vm13804_vm4, %v7512_v14, %v7516_v34  ;;  %v8294_v62 = vrot.slane %v16954_v44, 5  ;;  %v7535_v8 = vor.u32 %v7534_v60, %v7530_v12  ;;  %v7543_v57 = vshrl.u32 %v7452_v56, 16  ;;  %v7455_v14 = vld [vmem:[#allocation2 + $0x30] sm:$0xf] }
 0x2ba   : > { %13130 = vmatmul.mubr.bf16.gmra.mxu1 %v19105_v10  ;;  %v16980_v11 = vcombine.low %v7507_v16, %v7517_v25  ;;  %v7526_v30 = vrot.slane %v7525_v46, 4  ;;  %v7552_v46 = vshll.u32 %v16876_v28, 16  ;;  %v7556_v60 = vshrl.u32 %v16876_v28, 16 }
 0x2bb   : > { %13133 = vmatprep.mubr.bf16.mxu1 %v19106_v29  ;;  %13210 = vmatpush3.bf16.msra.mxu1 %v13581_v58  ;;  %v13575_v58 = vld [vmem:[#allocation2 + $0xa8] sm:$0xff]   ;;  %v16990_v34 = vsel %vm14066_vm7, %v12035_v45, %v8294_v62  ;;  %v8296_v50 = vrot.slane %v8294_v62, 4  ;;  %v7536_v16 = vrot.slane %v7535_v8, 4  ;;  %v7545_v45 = vrot.slane %v7543_v57, 4 }
 0x2bc   : > { %13211 = vmatprep.subr.bf16.mxu1 %v13584_v36  ;;  %v7531_v10 = vsel %vm13804_vm4, %v7526_v30, %v7530_v12  ;;  %v16996_v29 = vld [vmem:[#allocation2 + $0x4c] sm:$0xf]  ;;  %v7548_v56 = vrot.slane %v7546_v39, 5  ;;  %v7562_v62 = vshll.u32 %v16890_v1, 16  ;;  %v7558_v30 = vrot.slane %v7556_v60, 4 }
 0x2bd   : > { %v17000_v25 = vsel %vm14066_vm7, %v8296_v50, %v8297_v51  ;;  %v7541_v28 = vsel %vm13804_vm4, %v7536_v16, %v7540_v4  ;;  %v12036_v50 = vrot.slane %v8205_v26, 9  ;;  %v19107_v1 = vcombine.low %v16771_v32, %v16789_v5 }
 0x2be   : > { %v12067_v12 = vcombine.low %v16990_v34, %v17000_v25  ;;  %v17010_v8 = vcombine.low %v7531_v10, %v7541_v28  ;;  %v7549_v51 = vor.u32 %v7548_v56, %v7545_v45  ;;  %v8301_v39 = vrot.slane %v16996_v29, 5  ;;  %v8206_v45 = vld [vmem:[#allocation2 + $0x54] sm:$0xe]  ;;  %v7458_v56 = vld [vmem:[#allocation2 + $0x3c] sm:$0xf] }
 0x2bf   : > { %13190 = vmatmul.mubr.bf16.gmra.mxu0 %v13575_v58  ;;  %13212 = vmatpush3.bf16.msra.mxu1 %v13584_v36  ;;  %v7554_v36 = vrot.slane %v7552_v46, 5  ;;  %v7564_v58 = vrot.slane %v7562_v62, 5  ;;  %v7567_v4 = vshrl.u32 %v7455_v14, 16  ;;  %v19108_v16 = vcombine.low %v16781_v35, %v16797_v47  ;;  %v13595_v34 = vld [vmem:[%s18840_s3 + $0x1d8] sm:$0xff]  }
 0x2c0   : > { %13193 = vmatprep.mubr.bf16.mxu0 %v13578_v41  ;;  %13293 = vmatprep.subr.bf16.mxu1 %v16985_v19  ;;  %v8304_v41 = vrot.slane %v17003_v22, 5  ;;  %v7550_v46 = vrot.slane %v7549_v51, 4  ;;  %v7570_v10 = vshll.u32 %v7455_v14, 16  ;;  %v7576_v60 = vshll.u32 %v16927_v43, 16 }
 0x2c1   : > { %v7559_v57 = vor.u32 %v7558_v30, %v7554_v36  ;;  %v7580_v26 = vshrl.u32 %v16927_v43, 16  ;;  %v17024_v5 = vsel %vm14066_vm7, %v12036_v50, %v8301_v39  ;;  %v8303_v62 = vrot.slane %v8301_v39, 4  ;;  %v17026_v30 = vld [vmem:[#allocation2 + $0x58] sm:$0xf] }
 0x2c2   : > { %13134 = vmatmul.mubr.bf16.gmra.mxu1 %v19107_v1  ;;  %v7569_v28 = vrot.slane %v7567_v4, 4  ;;  %v13580_v1 = vld [vmem:[#allocation2 + $0xc0] sm:$0xff]   ;;  %v7555_v35 = vsel %vm13804_vm4, %v7550_v46, %v7554_v36  ;;  %v7572_v47 = vrot.slane %v7570_v10, 5  ;;  %v7578_v14 = vrot.slane %v7576_v60, 5 }
 0x2c3   : > { %13137 = vmatprep.mubr.bf16.mxu1 %v19108_v16  ;;  %v7560_v32 = vrot.slane %v7559_v57, 4  ;;  %v7582_v51 = vrot.slane %v7580_v26, 4  ;;  %v17030_v16 = vld [vmem:[#allocation2 + $0x5c] sm:$0x1]  ;;  %v17036_v50 = vsel %vm14066_vm7, %v8303_v62, %v8304_v41  ;;  %v7586_v57 = vshll.u32 %v16940_v3, 16 }
 0x2c4   : > { %v12037_v39 = vrot.slane %v8206_v45, 9  ;;  %v12068_v36 = vcombine.low %v17024_v5, %v17036_v50  ;;  %v7573_v46 = vor.u32 %v7572_v47, %v7569_v28  ;;  %v19109_v60 = vcombine.low %v16849_v54, %v16873_v13 }
 0x2c5   : > { %v7565_v43 = vsel %vm13804_vm4, %v7560_v32, %v7564_v58  ;;  %v7583_v10 = vor.u32 %v7582_v51, %v7578_v14  ;;  %v7588_v58 = vrot.slane %v7586_v57, 5  ;;  %v8308_v26 = vrot.slane %v17026_v30, 5 }
 0x2c6   : > { %v17039_v4 = vcombine.low %v7555_v35, %v7565_v43  ;;  %v8311_v41 = vrot.slane %v17030_v16, 5  ;;  %v7591_v32 = vshrl.u32 %v7458_v56, 16  ;;  %v7574_v3 = vrot.slane %v7573_v46, 4  ;;  %v17049_v35 = vld [vmem:[#allocation2 + $0x64] sm:$0xf] }
 0x2c7   : > { %13194 = vmatmul.mubr.bf16.gmra.mxu0 %v13580_v1  ;;  %v7584_v45 = vrot.slane %v7583_v10, 4  ;;  %v7594_v62 = vshll.u32 %v7458_v56, 16  ;;  %v7600_v1 = vshll.u32 %v16954_v44, 16  ;;  %v19110_v28 = vcombine.low %v16806_v61, %v16824_v0  ;;  %v8207_v43 = vld [vmem:[#allocation2 + $0x60] sm:$0xe] }
 0x2c8   : > { %13261 = vmatprep.mubr.bf16.mxu0 %v19109_v60  ;;  %v17056_v54 = vsel %vm14066_vm7, %v12037_v39, %v8308_v26  ;;  %v8310_v13 = vrot.slane %v8308_v26, 4  ;;  %v7593_v47 = vrot.slane %v7591_v32, 4  ;;  %v7604_v51 = vshrl.u32 %v16954_v44, 16  ;;  %v17066_v10 = vld [vmem:[#allocation2 + $0x68] sm:$0x1] }
 0x2c9   : > { %v19111_v56 = vcombine.low %v16816_v42, %v16832_v63  ;;  %v7579_v57 = vsel %vm13804_vm4, %v7574_v3, %v7578_v14  ;;  %v7589_v61 = vsel %vm13804_vm4, %v7584_v45, %v7588_v58  ;;  %v7596_v0 = vrot.slane %v7594_v62, 5  ;;  %v7461_v39 = vld [vmem:[#allocation2 + $0x48] sm:$0xf]  ;;  %v13590_v3 = vld [vmem:[%s18840_s3 + $0x1f0] sm:$0xff]  }
 0x2ca   : > { %13138 = vmatmul.mubr.bf16.gmra.mxu1 %v19110_v28  ;;  %v7602_v46 = vrot.slane %v7600_v1, 5  ;;  %v17068_v60 = vcombine.low %v7579_v57, %v7589_v61  ;;  %v17072_v44 = vsel %vm14066_vm7, %v8310_v13, %v8311_v41  ;;  %v7606_v26 = vrot.slane %v7604_v51, 4 }
 0x2cb   : > { %13141 = vmatprep.mubr.bf16.mxu1 %v19111_v56  ;;  %v7610_v42 = vshll.u32 %v16965_v40, 16  ;;  %v12069_v63 = vcombine.low %v17056_v54, %v17072_v44  ;;  %v7597_v14 = vor.u32 %v7596_v0, %v7593_v47  ;;  %v12038_v32 = vrot.slane %v8207_v43, 9  ;;  %v8208_v43 = vld [vmem:[#allocation2 + $0x6c] sm:$0xe]  ;;  %v7464_v56 = vld [vmem:[#allocation2 + $0x54] sm:$0xf] }
 0x2cc   : > { %v8315_v58 = vrot.slane %v17049_v35, 5  ;;  %v7607_v45 = vor.u32 %v7606_v26, %v7602_v46  ;;  %v8318_v1 = vrot.slane %v17066_v10, 5  ;;  %v7615_v41 = vshrl.u32 %v7461_v39, 16  ;;  %v13598_v54 = vld [vmem:[%s18840_s3 + $0x1c8] sm:$0xff]  }
 0x2cd   : > { %v7612_v62 = vrot.slane %v7610_v42, 5  ;;  %v19112_v28 = vcombine.low %v16887_v53, %v16906_v52  ;;  %v7598_v40 = vrot.slane %v7597_v14, 4  ;;  %v7618_v51 = vshll.u32 %v7461_v39, 16  ;;  %v17094_v52 = vld [vmem:[#allocation2 + $0x70] sm:$0xf] }
 0x2ce   : > { %v17087_v13 = vsel %vm14066_vm7, %v12038_v32, %v8315_v58  ;;  %v8317_v47 = vrot.slane %v8315_v58, 4  ;;  %v19113_v57 = vcombine.low %v16916_v7, %v16936_v24  ;;  %v7608_v61 = vrot.slane %v7607_v45, 4  ;;  %v17104_v24 = vld [vmem:[#allocation2 + $0x74] sm:$0x1] }
 0x2cf   : > { %13262 = vmatmul.mubr.bf16.vlgmr.msra.gmra.mxu0 %v19112_v28  ;;  %v7617_v0 = vrot.slane %v7615_v41, 4  ;;  %v7624_v26 = vshll.u32 %v16996_v29, 16  ;;  %v7628_v53 = vshrl.u32 %v16996_v29, 16  ;;  %v7603_v42 = vsel %vm13804_vm4, %v7598_v40, %v7602_v46  ;;  %v13592_v29 = vld [vmem:[%s18840_s3 + $0x1e8] sm:$0xff]  }
 0x2d0   : > { %13265 = vmatprep.mubr.bf16.mxu0 %v19113_v57  ;;  %13342 = vmatpush3.bf16.msra.mxu0 %v16855_v21  ;;  %v17101_v39 = vsel %vm14066_vm7, %v8317_v47, %v8318_v1  ;;  %v7620_v14 = vrot.slane %v7618_v51, 5  ;;  %v7634_v7 = vshll.u32 %v17003_v22, 16  ;;  %v19114_v21 = vcombine.low %v16836_v23, %v16862_v38  ;;  %v8209_v51 = vld [vmem:[#allocation2 + $0x78] sm:$0xe] }
 0x2d1   : > { %13343 = vmatprep.subr.bf16.mxu0 %v13590_v3  ;;  %v7613_v46 = vsel %vm13804_vm4, %v7608_v61, %v7612_v62  ;;  %v12070_v32 = vcombine.low %v17087_v13, %v17101_v39  ;;  %v7626_v58 = vrot.slane %v7624_v26, 5  ;;  %v7630_v45 = vrot.slane %v7628_v53, 4 }
 0x2d2   : > { %13142 = vmatmul.mubr.bf16.gmra.mxu1 %v19114_v21  ;;  %v19115_v22 = vcombine.low %v16882_v37, %v16895_v48  ;;  %v17119_v1 = vcombine.low %v7603_v42, %v7613_v46  ;;  %v7621_v41 = vor.u32 %v7620_v14, %v7617_v0  ;;  %v7636_v28 = vrot.slane %v7634_v7, 5  ;;  %v7467_v48 = vld [vmem:[#allocation2 + $0x60] sm:$0xf] }
 0x2d3   : > { %v12039_v40 = vrot.slane %v8208_v43, 9  ;;  %v7631_v47 = vor.u32 %v7630_v45, %v7626_v58  ;;  %v8322_v23 = vrot.slane %v17094_v52, 5  ;;  %v8325_v38 = vrot.slane %v17104_v24, 5  ;;  %v13593_v43 = vld [vmem:[%s18840_s3 + $0x1e0] sm:$0xff]  }
 0x2d4   : > { %13145 = vmatprep.mubr.bf16.mxu1 %v19115_v22  ;;  %v7639_v62 = vshrl.u32 %v7464_v56, 16  ;;  %13344 = vmatpush3.bf16.msra.mxu0 %v13590_v3  ;;  %v7622_v57 = vrot.slane %v7621_v41, 4  ;;  %v7642_v61 = vshll.u32 %v7464_v56, 16  ;;  %v7648_v26 = vshll.u32 %v17026_v30, 16  ;;  %v17132_v3 = vld [vmem:[#allocation2 + $0x7c] sm:$0xf] }
 0x2d5   : > { %v7652_v37 = vshrl.u32 %v17026_v30, 16  ;;  %13345 = vmatprep.subr.bf16.mxu0 %v13592_v29  ;;  %v7632_v0 = vrot.slane %v7631_v47, 4  ;;  %v17130_v53 = vsel %vm14066_vm7, %v12039_v40, %v8322_v23  ;;  %v8324_v42 = vrot.slane %v8322_v23, 4  ;;  %v17139_v45 = vld [vmem:[#allocation2 + $0x80] sm:$0x1] }
 0x2d6   : > { %v7641_v14 = vrot.slane %v7639_v62, 4  ;;  %v19116_v56 = vcombine.low %v16951_v2, %v16962_v18  ;;  %v7627_v30 = vsel %vm13804_vm4, %v7622_v57, %v7626_v58  ;;  %v7644_v7 = vrot.slane %v7642_v61, 5 }
 0x2d7   : > { %v7650_v21 = vrot.slane %v7648_v26, 5  ;;  %v7654_v46 = vrot.slane %v7652_v37, 4  ;;  %v7637_v22 = vsel %vm13804_vm4, %v7632_v0, %v7636_v28  ;;  %v17148_v41 = vsel %vm14066_vm7, %v8324_v42, %v8325_v38  ;;  %v8210_v38 = vld [vmem:[#allocation2 + $0x84] sm:$0xe]  ;;  %v7470_v26 = vld [vmem:[#allocation2 + $0x6c] sm:$0xf] }
 0x2d8   : > { %13266 = vmatmul.mubr.bf16.gmra.mxu0 %v19116_v56  ;;  %v7658_v2 = vshll.u32 %v17030_v16, 16  ;;  %v12040_v18 = vrot.slane %v8209_v51, 9  ;;  %v17151_v58 = vcombine.low %v7627_v30, %v7637_v22  ;;  %v12071_v40 = vcombine.low %v17130_v53, %v17148_v41  ;;  %v17170_v42 = vld [vmem:[#allocation2 + $0x88] sm:$0xf]  ;;  %v17176_v30 = vld [vmem:[#allocation2 + $0x8c] sm:$0x1] }
 0x2d9   : > { %13269 = vmatprep.mubr.bf16.mxu0 %v12067_v12  ;;  %13346 = vmatpush3.bf16.msra.mxu0 %v13592_v29  ;;  %v7645_v47 = vor.u32 %v7644_v7, %v7641_v14  ;;  %v7655_v23 = vor.u32 %v7654_v46, %v7650_v21  ;;  %v19117_v25 = vcombine.low %v16910_v27, %v16924_v31  ;;  %v8329_v16 = vrot.slane %v17132_v3, 5  ;;  %v13596_v7 = vld [vmem:[%s18840_s3 + $0x1d0] sm:$0xff]  }
 0x2da   : > { %13347 = vmatprep.subr.bf16.mxu0 %v13593_v43  ;;  %v7660_v12 = vrot.slane %v7658_v2, 5  ;;  %v8332_v29 = vrot.slane %v17139_v45, 5  ;;  %v7663_v28 = vshrl.u32 %v7467_v48, 16  ;;  %v7666_v57 = vshll.u32 %v7467_v48, 16 }
 0x2db   : > { %13146 = vmatmul.mubr.bf16.gmra.mxu1 %v19117_v25  ;;  %v7646_v62 = vrot.slane %v7645_v47, 4  ;;  %v7656_v51 = vrot.slane %v7655_v23, 4  ;;  %v7672_v61 = vshll.u32 %v17049_v35, 16  ;;  %v17167_v37 = vsel %vm14066_vm7, %v12040_v18, %v8329_v16  ;;  %v13586_v23 = vld [vmem:[%s18840_s3 + $0x1b0] sm:$0xff]  }
 0x2dc   : > { %13213 = vmatprep.mubr.bf16.mxu1 %v16980_v11  ;;  %v8331_v27 = vrot.slane %v8329_v16, 4  ;;  %v7665_v31 = vrot.slane %v7663_v28, 4  ;;  %v7676_v0 = vshrl.u32 %v17049_v35, 16  ;;  %v7668_v14 = vrot.slane %v7666_v57, 5  ;;  %v17205_v28 = vld [vmem:[#allocation2 + $0x94] sm:$0xf] }
 0x2dd   : > { %13348 = vmatpush3.bf16.msra.mxu0 %v13593_v43  ;;  %v7651_v11 = vsel %vm13804_vm4, %v7646_v62, %v7650_v21  ;;  %v7661_v48 = vsel %vm13804_vm4, %v7656_v51, %v7660_v12  ;;  %v7674_v56 = vrot.slane %v7672_v61, 5  ;;  %v7682_v21 = vshll.u32 %v17066_v10, 16  ;;  %v8211_v62 = vld [vmem:[#allocation2 + $0x90] sm:$0xe] }
 0x2de   : > { %13349 = vmatprep.subr.bf16.mxu0 %v13595_v34  ;;  %v17181_v46 = vcombine.low %v7651_v11, %v7661_v48  ;;  %v17185_v35 = vsel %vm14066_vm7, %v8331_v27, %v8332_v29  ;;  %v7678_v43 = vrot.slane %v7676_v0, 4  ;;  %v7669_v2 = vor.u32 %v7668_v14, %v7665_v31  ;;  %v7473_v27 = vld [vmem:[#allocation2 + $0x78] sm:$0xf] }
 0x2df   : > { %v12072_v22 = vcombine.low %v17167_v37, %v17185_v35  ;;  %v12041_v18 = vrot.slane %v8210_v38, 9  ;;  %v8336_v47 = vrot.slane %v17170_v42, 5  ;;  %v7684_v25 = vrot.slane %v7682_v21, 5 }
 0x2e0   : > { %13270 = vmatmul.mubr.bf16.gmra.mxu0 %v12068_v36  ;;  %v7679_v10 = vor.u32 %v7678_v43, %v7674_v56  ;;  %v8339_v5 = vrot.slane %v17176_v30, 5  ;;  %v7687_v50 = vshrl.u32 %v7470_v26, 16  ;;  %v7670_v36 = vrot.slane %v7669_v2, 4 }
 0x2e1   : > { %13273 = vmatprep.mubr.bf16.mxu0 %v12069_v63  ;;  %13350 = vmatpush3.bf16.msra.mxu0 %v13595_v34  ;;  %v17203_v12 = vsel %vm14066_vm7, %v12041_v18, %v8336_v47  ;;  %v8338_v16 = vrot.slane %v8336_v47, 4  ;;  %v7690_v29 = vshll.u32 %v7470_v26, 16  ;;  %v7696_v34 = vshll.u32 %v17094_v52, 16  ;;  %v17222_v26 = vld [vmem:[#allocation2 + $0x98] sm:$0x1]  ;;  %v13599_v18 = vld [vmem:[%s18840_s3 + $0x1c0] sm:$0xff]  }
 0x2e2   : > { %13351 = vmatprep.subr.bf16.mxu0 %v13596_v7  ;;  %v7680_v44 = vrot.slane %v7679_v10, 4  ;;  %v7689_v63 = vrot.slane %v7687_v50, 4  ;;  %v7700_v38 = vshrl.u32 %v17094_v52, 16  ;;  %v7675_v51 = vsel %vm13804_vm4, %v7670_v36, %v7674_v56  ;;  %v7476_v50 = vld [vmem:[#allocation2 + $0x84] sm:$0xf] }
 0x2e3   : > { %13214 = vmatmul.mubr.bf16.vlgmr.msra.gmra.mxu1 %v17010_v8  ;;  %v17219_v57 = vsel %vm14066_vm7, %v8338_v16, %v8339_v5  ;;  %v7692_v61 = vrot.slane %v7690_v29, 5  ;;  %v7706_v8 = vshll.u32 %v17104_v24, 16  ;;  %v7698_v31 = vrot.slane %v7696_v34, 5  ;;  %v8212_v5 = vld [vmem:[#allocation2 + $0x9c] sm:$0xe] }
 0x2e4   : > { %13294 = vmatpush3.bf16.msra.mxu1 %v16985_v19  ;;  %13217 = vmatprep.mubr.bf16.mxu1 %v17039_v4  ;;  %v13587_v19 = vld [vmem:[%s18840_s3 + $0x1a8] sm:$0xff]   ;;  %v7685_v4 = vsel %vm13804_vm4, %v7680_v44, %v7684_v25  ;;  %v12073_v52 = vcombine.low %v17203_v12, %v17219_v57  ;;  %v7702_v0 = vrot.slane %v7700_v38, 4  ;;  %v12042_v14 = vrot.slane %v8211_v62, 9  ;;  %v17253_v16 = vld [vmem:[#allocation2 + $0xa0] sm:$0xf] }
 0x2e5   : > { %13295 = vmatprep.subr.bf16.mxu1 %v13586_v23  ;;  %13352 = vmatpush3.bf16.msra.mxu0 %v13596_v7  ;;  %v17231_v11 = vcombine.low %v7675_v51, %v7685_v4  ;;  %v7693_v24 = vor.u32 %v7692_v61, %v7689_v63  ;;  %v7708_v48 = vrot.slane %v7706_v8, 5  ;;  %v8343_v43 = vrot.slane %v17205_v28, 5  ;;  %v17259_v44 = vld [vmem:[#allocation2 + $0xa4] sm:$0x1]  ;;  %v13591_v8 = vld [vmem:[%s18840_s3 + $0x198] sm:$0xff]  }
 0x2e6   : > { %13353 = vmatprep.subr.bf16.mxu0 %v13598_v54  ;;  %v7703_v56 = vor.u32 %v7702_v0, %v7698_v31  ;;  %v8346_v21 = vrot.slane %v17222_v26, 5  ;;  %v7711_v2 = vshrl.u32 %v7473_v27, 16  ;;  %v7714_v47 = vshll.u32 %v7473_v27, 16 }
 0x2e7   : > { %v7694_v7 = vrot.slane %v7693_v24, 4  ;;  %v7720_v10 = vshll.u32 %v17132_v3, 16  ;;  %v7724_v25 = vshrl.u32 %v17132_v3, 16  ;;  %v17251_v13 = vsel %vm14066_vm7, %v12042_v14, %v8343_v43  ;;  %v17255_v3 = vpop.f32.mrf.mxu0  ;;  %v7479_v14 = vld [vmem:[#allocation2 + $0x90] sm:$0xf] }
 0x2e8   : > { %13296 = vmatpush3.bf16.msra.mxu1 %v13586_v23  ;;  %13274 = vmatmul.mubr.bf16.gmra.mxu0 %v12070_v32  ;;  %v13588_v23 = vld [vmem:[%s18840_s3 + $0x1a0] sm:$0xff]   ;;  %v7704_v36 = vrot.slane %v7703_v56, 4  ;;  %v8345_v39 = vrot.slane %v8343_v43, 4  ;;  %v7713_v32 = vrot.slane %v7711_v2, 4  ;;  %v7716_v53 = vrot.slane %v7714_v47, 5 }
 0x2e9   : > { %13297 = vmatprep.subr.bf16.mxu1 %v13587_v19  ;;  %13277 = vmatprep.mubr.bf16.mxu0 %v12071_v40  ;;  %v7699_v29 = vsel %vm13804_vm4, %v7694_v7, %v7698_v31  ;;  %v7722_v41 = vrot.slane %v7720_v10, 5  ;;  %v7726_v40 = vrot.slane %v7724_v25, 4  ;;  %v7730_v38 = vshll.u32 %v17139_v45, 16  ;;  %v8213_v7 = vld [vmem:[#allocation2 + $0xa8] sm:$0xe] }
 0x2ea   : > { %13354 = vmatpush3.bf16.msra.mxu0 %v13598_v54  ;;  %v7709_v63 = vsel %vm13804_vm4, %v7704_v36, %v7708_v48  ;;  %v17266_v34 = vsel %vm14066_vm7, %v8345_v39, %v8346_v21  ;;  %v12043_v62 = vrot.slane %v8212_v5, 9  ;;  %v8350_v61 = vrot.slane %v17253_v16, 5  ;;  %v17295_v5 = vld [vmem:[#allocation2 + $0xac] sm:$0xf] }
 0x2eb   : > { %13218 = vmatmul.mubr.bf16.gmra.mxu1 %v17068_v60  ;;  %13355 = vmatprep.subr.bf16.mxu0 %v13599_v18  ;;  %v17270_v51 = vcombine.low %v7699_v29, %v7709_v63  ;;  %v12074_v54 = vcombine.low %v17251_v13, %v17266_v34  ;;  %v7717_v60 = vor.u32 %v7716_v53, %v7713_v32  ;;  %v7732_v45 = vrot.slane %v7730_v38, 5 }
 0x2ec   : > { %13221 = vmatprep.mubr.bf16.mxu1 %v17119_v1  ;;  %13298 = vmatpush3.bf16.msra.mxu1 %v13587_v19  ;;  %v7727_v27 = vor.u32 %v7726_v40, %v7722_v41  ;;  %v8353_v4 = vrot.slane %v17259_v44, 5  ;;  %v7735_v31 = vshrl.u32 %v7476_v50, 16  ;;  %v17279_v1 = vpop.f32.mrf.mxu0  ;;  %v17283_v0 = vsel %vm14066_vm7, %v12043_v62, %v8350_v61  ;;  %v8214_v62 = vld [vmem:[#allocation2 + $0xb4] sm:$0xe] }
 0x2ed   : > { %13299 = vmatprep.subr.bf16.mxu1 %v13588_v23  ;;  %v7718_v19 = vrot.slane %v7717_v60, 4  ;;  %v8352_v24 = vrot.slane %v8350_v61, 4  ;;  %v7738_v48 = vshll.u32 %v7476_v50, 16  ;;  %v7744_v21 = vshll.u32 %v17170_v42, 16  ;;  %v17297_v50 = vld [vmem:[#allocation2 + $0xb0] sm:$0x1] }
 0x2ee   : > { %13356 = vmatpush3.bf16.msra.mxu0 %v13599_v18  ;;  %v7728_v56 = vrot.slane %v7727_v27, 4  ;;  %v7737_v43 = vrot.slane %v7735_v31, 4  ;;  %v7748_v2 = vshrl.u32 %v17170_v42, 16  ;;  %v7754_v18 = vshll.u32 %v17176_v30, 16  ;;  %v13594_v30 = vld [vmem:[%s18840_s3 + $0x190] sm:$0xff]  }
 0x2ef   : > { %v7723_v47 = vsel %vm13804_vm4, %v7718_v19, %v7722_v41  ;;  %v8354_v10 = vsel %vm14066_vm7, %v8352_v24, %v8353_v4  ;;  %v7740_v25 = vrot.slane %v7738_v48, 5  ;;  %v7746_v35 = vrot.slane %v7744_v21, 5  ;;  %v7482_v60 = vld [vmem:[#allocation2 + $0x9c] sm:$0xf]  ;;  %v17322_v4 = vld [vmem:[#allocation2 + $0xb8] sm:$0xf] }
 0x2f0   : > { %13278 = vmatmul.mubr.bf16.gmra.mxu0 %v12072_v22  ;;  %13300 = vmatpush3.bf16.msra.mxu1 %v13588_v23  ;;  %v7733_v37 = vsel %vm13804_vm4, %v7728_v56, %v7732_v45  ;;  %v12075_v42 = vcombine.low %v17283_v0, %v8354_v10  ;;  %v7750_v22 = vrot.slane %v7748_v2, 4  ;;  %v17308_v23 = vpop.f32.mrf.mxu0  ;;  %v7756_v32 = vrot.slane %v7754_v18, 5  ;;  %v17328_v0 = vld [vmem:[#allocation2 + $0xbc] sm:$0x1]  ;;  %v13597_v24 = vld [vmem:[%s18840_s3 + $0x188] sm:$0xff]  }
 0x2f1   : > { %13281 = vmatprep.mubr.bf16.mxu0 %v12073_v52  ;;  %13301 = vmatprep.subr.bf16.mxu1 %v13591_v8  ;;  %v17310_v36 = vcombine.low %v7723_v47, %v7733_v37  ;;  %v7741_v39 = vor.u32 %v7740_v25, %v7737_v43  ;;  %v12044_v12 = vrot.slane %v8213_v7, 9  ;;  %v8357_v52 = vrot.slane %v17295_v5, 5 }
 0x2f2   : > { %v7751_v57 = vor.u32 %v7750_v22, %v7746_v35  ;;  %v8360_v29 = vrot.slane %v17297_v50, 5  ;;  %v7759_v53 = vshrl.u32 %v7479_v14, 16  ;;  %v7762_v40 = vshll.u32 %v7479_v14, 16 }
 0x2f3   : > { %13222 = vmatmul.mubr.bf16.gmra.mxu1 %v17151_v58  ;;  %v7742_v41 = vrot.slane %v7741_v39, 4  ;;  %v7768_v63 = vshll.u32 %v17205_v28, 16  ;;  %v7772_v38 = vshrl.u32 %v17205_v28, 16  ;;  %v17320_v58 = vsel %vm14066_vm7, %v12044_v12, %v8357_v52 }
 0x2f4   : > { %13225 = vmatprep.mubr.bf16.mxu1 %v17181_v46  ;;  %13302 = vmatpush3.bf16.msra.mxu1 %v13591_v8  ;;  %v7752_v61 = vrot.slane %v7751_v57, 4  ;;  %v8359_v27 = vrot.slane %v8357_v52, 4  ;;  %v7761_v45 = vrot.slane %v7759_v53, 4  ;;  %v17324_v46 = vpop.f32.mrf.mxu0  ;;  %v7764_v31 = vrot.slane %v7762_v40, 5  ;;  %v17356_v57 = vld [vmem:[#allocation2 + $0xc4] sm:$0xf] }
 0x2f5   : > { %13303 = vmatprep.subr.bf16.mxu1 %v13594_v30  ;;  %v7747_v8 = vsel %vm13804_vm4, %v7742_v41, %v7746_v35  ;;  %v7770_v19 = vrot.slane %v7768_v63, 5  ;;  %v7774_v28 = vrot.slane %v7772_v38, 4  ;;  %v7778_v56 = vshll.u32 %v17222_v26, 16  ;;  %v8215_v26 = vld [vmem:[#allocation2 + $0xc0] sm:$0xe] }
 0x2f6   : > { %v7757_v48 = vsel %vm13804_vm4, %v7752_v61, %v7756_v32  ;;  %v8361_v14 = vsel %vm14066_vm7, %v8359_v27, %v8360_v29  ;;  %v12045_v43 = vrot.slane %v8214_v62, 9  ;;  %v7765_v7 = vor.u32 %v7764_v31, %v7761_v45  ;;  %v17346_v35 = vpop.f32.mrf.mxu0  ;;  %v7485_v40 = vld [vmem:[#allocation2 + $0xa8] sm:$0xf]  ;;  %v17376_v45 = vld [vmem:[%s18840_s3 + $0x238] sm:$0xff]  }
 0x2f7   : > { %v17341_v21 = vcombine.low %v7747_v8, %v7757_v48  ;;  %v12076_v2 = vcombine.low %v17320_v58, %v8361_v14  ;;  %v7775_v47 = vor.u32 %v7774_v28, %v7770_v19  ;;  %v7780_v10 = vrot.slane %v7778_v56, 5 }
 0x2f8   : > { %13282 = vmatmul.mubr.bf16.gmra.mxu0 %v12074_v54  ;;  %v8364_v25 = vrot.slane %v17322_v4, 5  ;;  %v8367_v18 = vrot.slane %v17328_v0, 5  ;;  %13304 = vmatpush3.bf16.msra.mxu1 %v13594_v30  ;;  %v7783_v37 = vshrl.u32 %v7482_v60, 16  ;;  %v7766_v22 = vrot.slane %v7765_v7, 4 }
 0x2f9   : > { %13285 = vmatprep.mubr.bf16.mxu0 %v12075_v42  ;;  %v7776_v13 = vrot.slane %v7775_v47, 4  ;;  %v7786_v34 = vshll.u32 %v7482_v60, 16  ;;  %v7792_v54 = vshll.u32 %v17253_v16, 16  ;;  %13305 = vmatprep.subr.bf16.mxu1 %v13597_v24  ;;  %v13600_v42 = vld [vmem:[%s18840_s3 + $0x180] sm:$0xff]   ;;  %v7796_v12 = vshrl.u32 %v17253_v16, 16 }
 0x2fa   : > { %v8365_v39 = vsel %vm14066_vm7, %v12045_v43, %v8364_v25  ;;  %v8366_v30 = vrot.slane %v8364_v25, 4  ;;  %v7785_v32 = vrot.slane %v7783_v37, 4  ;;  %v7771_v52 = vsel %vm13804_vm4, %v7766_v22, %v7770_v19  ;;  %v17390_v22 = vld [vmem:[#allocation2 + $0x1c] sm:$0xf] }
 0x2fb   : > { %13226 = vmatmul.mubr.bf16.gmra.mxu1 %v17231_v11  ;;  %v7781_v29 = vsel %vm13804_vm4, %v7776_v13, %v7780_v10  ;;  %v7788_v53 = vrot.slane %v7786_v34, 5  ;;  %v7794_v41 = vrot.slane %v7792_v54, 5  ;;  %v17363_v11 = vld [vmem:[#allocation2 + $0xc8] sm:$0x1]  ;;  %v7798_v38 = vrot.slane %v7796_v12, 4 }
 0x2fc   : > { %13229 = vmatprep.mubr.bf16.mxu1 %v17270_v51  ;;  %v17365_v63 = vcombine.low %v7771_v52, %v7781_v29  ;;  %v8368_v16 = vsel %vm14066_vm7, %v8366_v30, %v8367_v18  ;;  %v7802_v62 = vshll.u32 %v17259_v44, 16  ;;  %13306 = vmatpush3.bf16.msra.mxu1 %v13597_v24  ;;  %v17370_v51 = vpop.f32.mrf.mxu0  ;;  %v12046_v58 = vrot.slane %v8215_v26, 9  ;;  %v9085_v10 = vld [vmem:[#allocation2 + $0x18] sm:$0xf] }
 0x2fd   : > { %v12077_v60 = vcombine.low %v8365_v39, %v8368_v16  ;;  %v7789_v61 = vor.u32 %v7788_v53, %v7785_v32  ;;  %v8371_v27 = vrot.slane %v17356_v57, 5  ;;  %13307 = vmatprep.subr.bf16.mxu1 %v13600_v42  ;;  %v7799_v8 = vor.u32 %v7798_v38, %v7794_v41  ;;  %v7488_v39 = vld [vmem:[#allocation2 + $0xb4] sm:$0xf] }
 0x2fe   : > { %v7804_v31 = vrot.slane %v7802_v62, 5  ;;  %v8374_v19 = vrot.slane %v17363_v11, 5  ;;  %v7807_v28 = vshrl.u32 %v7485_v40, 16  ;;  %v7810_v14 = vshll.u32 %v7485_v40, 16  ;;  %v17383_v25 = vpop.f32.mrf.mxu0 }
 0x2ff   : > { %v7790_v44 = vrot.slane %v7789_v61, 4  ;;  %v8372_v24 = vsel %vm14066_vm7, %v12046_v58, %v8371_v27  ;;  %v8373_v48 = vrot.slane %v8371_v27, 4  ;;  %v7800_v56 = vrot.slane %v7799_v8, 4 }
 0x300   : > { %13286 = vmatmul.mubr.bf16.gmra.mxu0 %v12076_v2  ;;  %v7809_v43 = vrot.slane %v7807_v28, 4  ;;  %v7816_v7 = vshll.u32 %v17295_v5, 16  ;;  %v7820_v47 = vshrl.u32 %v17295_v5, 16  ;;  %13308 = vmatpush3.bf16.msra.mxu1 %v13600_v42  ;;  %v7812_v37 = vrot.slane %v7810_v14, 5  ;;  %v17396_v42 = vld [vmem:[#allocation2 + $0x20] sm:$0x1]  ;;  %v17403_v40 = vpop.f32.mrf.mxu0 }
 0x301   : > { %13289 = vmatprep.mubr.bf16.mxu0 %v12077_v60  ;;  %v7795_v2 = vsel %vm13804_vm4, %v7790_v44, %v7794_v41  ;;  %v8375_v18 = vsel %vm14066_vm7, %v8373_v48, %v8374_v19  ;;  %v7826_v26 = vshll.u32 %v17297_v50, 16  ;;  %13389 = vmatprep.subr.bf16.mxu1 %v17376_v45  ;;  %v7805_v5 = vsel %vm13804_vm4, %v7800_v56, %v7804_v31  ;;  %v17401_v41 = vpop.f32.mrf.mxu1  ;;  %v9088_v44 = vld [vmem:[#allocation2 + $0x24] sm:$0xf] }
 0x302   : > { %v12078_v13 = vcombine.low %v8372_v24, %v8375_v18  ;;  %v7818_v34 = vrot.slane %v7816_v7, 5  ;;  %v7822_v54 = vrot.slane %v7820_v47, 4  ;;  %v12019_v30 = vcombine.low %v7795_v2, %v7805_v5  ;;  %19118 = vst [vmem:[#allocation38_spill] sm:$0xff] %v17403_v40  ;;  %v17413_v7 = vpop.f32.mrf.mxu0 }
 0x303   : > { %13230 = vmatmul.mubr.bf16.gmra.mxu1 %v17310_v36  ;;  %v7813_v32 = vor.u32 %v7812_v37, %v7809_v43  ;;  %v7828_v50 = vrot.slane %v7826_v26, 5  ;;  %v9134_v12 = vshrl.u32 %v9085_v10, 16  ;;  %v9137_v29 = vshll.u32 %v9085_v10, 16  ;;  %v17411_v43 = vpop.f32.mrf.mxu1  ;;  %v17417_v37 = vld [vmem:[#allocation2 + $0x28] sm:$0xf] }
 0x304   : > { %13233 = vmatprep.mubr.bf16.mxu1 %v17341_v21  ;;  %v7823_v52 = vor.u32 %v7822_v54, %v7818_v34  ;;  %v9143_v53 = vshll.u32 %v17390_v22, 16  ;;  %v9147_v36 = vshrl.u32 %v17390_v22, 16  ;;  %v9153_v62 = vshll.u32 %v17396_v42, 16 }
 0x305   : > { %v7814_v16 = vrot.slane %v7813_v32, 4  ;;  %v9136_v38 = vrot.slane %v9134_v12, 4  ;;  %v7831_v60 = vshrl.u32 %v7488_v39, 16  ;;  %v9139_v61 = vrot.slane %v9137_v29, 5 }
 0x306   : > { %v7824_v21 = vrot.slane %v7823_v52, 4  ;;  %v9145_v58 = vrot.slane %v9143_v53, 5  ;;  %v9149_v27 = vrot.slane %v9147_v36, 4  ;;  %v9155_v31 = vrot.slane %v9153_v62, 5  ;;  %v7491_v52 = vld [vmem:[#allocation2 + $0xc0] sm:$0xf]  ;;  %v17427_v53 = vpop.f32.mrf.mxu1  ;;  %v17429_v36 = vpop.f32.mrf.mxu0 }
 0x307   : > { %v7819_v8 = vsel %vm13804_vm4, %v7814_v16, %v7818_v34  ;;  %v7833_v19 = vrot.slane %v7831_v60, 4  ;;  %v7834_v28 = vshll.u32 %v7488_v39, 16  ;;  %v9140_v48 = vor.u32 %v9139_v61, %v9136_v38  ;;  %v17420_v34 = vld [vmem:[#allocation2 + $0x2c] sm:$0x1] }
 0x308   : > { %13290 = vmatmul.mubr.bf16.gmra.mxu0 %v12078_v13  ;;  %v7829_v24 = vsel %vm13804_vm4, %v7824_v21, %v7828_v50  ;;  %v9150_v14 = vor.u32 %v9149_v27, %v9145_v58  ;;  %v7840_v56 = vshll.u32 %v17322_v4, 16  ;;  %v7844_v2 = vshrl.u32 %v17322_v4, 16 }
 0x309   : > { %v12020_v47 = vcombine.low %v7819_v8, %v7829_v24  ;;  %v7836_v10 = vrot.slane %v7834_v28, 5  ;;  %v7850_v18 = vshll.u32 %v17328_v0, 16  ;;  %v9141_v26 = vrot.slane %v9140_v48, 4 }
 0x30a   : > { %v9151_v5 = vrot.slane %v9150_v14, 4  ;;  %v7842_v13 = vrot.slane %v7840_v56, 5  ;;  %v9158_v54 = vshrl.u32 %v9088_v44, 16  ;;  %v7846_v32 = vrot.slane %v7844_v2, 4  ;;  %v9091_v14 = vld [vmem:[#allocation2 + $0x30] sm:$0xf]  ;;  %v17436_v56 = vpop.f32.mrf.mxu1 }
 0x30b   : > { %13234 = vmatmul.mubr.bf16.gmra.mxu1 %v17365_v63  ;;  %v7837_v39 = vor.u32 %v7836_v10, %v7833_v19  ;;  %v7852_v50 = vrot.slane %v7850_v18, 5  ;;  %v9161_v12 = vshll.u32 %v9088_v44, 16  ;;  %v9146_v4 = vsel %vm13804_vm4, %v9141_v26, %v9145_v58  ;;  %v17438_v10 = vpop.f32.mrf.mxu0 }
 0x30c   : > { %13237 = vmatprep.mubr.bf16.mxu1 %v12019_v30  ;;  %v9156_v0 = vsel %vm13804_vm4, %v9151_v5, %v9155_v31  ;;  %v9160_v29 = vrot.slane %v9158_v54, 4  ;;  %v9167_v63 = vshll.u32 %v17417_v37, 16  ;;  %v7847_v38 = vor.u32 %v7846_v32, %v7842_v13 }
 0x30d   : > { %v12143_v16 = vcombine.low %v9146_v4, %v9156_v0  ;;  %v7838_v30 = vrot.slane %v7837_v39, 4  ;;  %v9163_v62 = vrot.slane %v9161_v12, 5  ;;  %v9171_v21 = vshrl.u32 %v17417_v37, 16 }
 0x30e   : > { %v9169_v60 = vrot.slane %v9167_v63, 5  ;;  %v9177_v61 = vshll.u32 %v17420_v34, 16  ;;  %v7855_v58 = vshrl.u32 %v7491_v52, 16  ;;  %v7848_v8 = vrot.slane %v7847_v38, 4  ;;  %v17453_v38 = vpop.f32.mrf.mxu0 }
 0x30f   : > { %13357 = vmatprep.mubr.bf16.mxu0 %v12143_v16  ;;  %v7843_v27 = vsel %vm13804_vm4, %v7838_v30, %v7842_v13  ;;  %v9164_v31 = vor.u32 %v9163_v62, %v9160_v29  ;;  %v7858_v19 = vshll.u32 %v7491_v52, 16  ;;  %v9173_v28 = vrot.slane %v9171_v21, 4  ;;  %v17443_v13 = vld [vmem:[#allocation2 + $0x34] sm:$0xf]  ;;  %v17448_v29 = vld [vmem:[#allocation2 + $0x38] sm:$0x1] }
 0x310   : > { %v9179_v44 = vrot.slane %v9177_v61, 5  ;;  %v7857_v24 = vrot.slane %v7855_v58, 4  ;;  %v7864_v48 = vshll.u32 %v17356_v57, 16  ;;  %v7853_v2 = vsel %vm13804_vm4, %v7848_v8, %v7852_v50  ;;  %v9094_v61 = vld [vmem:[#allocation2 + $0x3c] sm:$0xf] }
 0x311   : > { %v9165_v18 = vrot.slane %v9164_v31, 4  ;;  %v7860_v26 = vrot.slane %v7858_v19, 5  ;;  %v7868_v5 = vshrl.u32 %v17356_v57, 16  ;;  %v12021_v54 = vcombine.low %v7843_v27, %v7853_v2  ;;  %v17459_v19 = vld [vmem:[#allocation2 + $0x40] sm:$0xf] }
 0x312   : > { %v9174_v39 = vor.u32 %v9173_v28, %v9169_v60  ;;  %v7866_v32 = vrot.slane %v7864_v48, 5  ;;  %v7874_v12 = vshll.u32 %v17363_v11, 16  ;;  %v9182_v50 = vshrl.u32 %v9091_v14, 16 }
 0x313   : > { %13238 = vmatmul.mubr.bf16.gmra.mxu1 %v12020_v47  ;;  %v9170_v52 = vsel %vm13804_vm4, %v9165_v18, %v9169_v60  ;;  %v7861_v4 = vor.u32 %v7860_v26, %v7857_v24  ;;  %v7870_v0 = vrot.slane %v7868_v5, 4  ;;  %v9185_v57 = vshll.u32 %v9091_v14, 16  ;;  %v17451_v47 = vpop.f32.mrf.mxu1  ;;  %v17463_v26 = vld [vmem:[#allocation2 + $0x44] sm:$0x1] }
 0x314   : > { %13241 = vmatprep.mubr.bf16.mxu1 %v12021_v54  ;;  %v9175_v63 = vrot.slane %v9174_v39, 4  ;;  %v7876_v16 = vrot.slane %v7874_v12, 5  ;;  %v9191_v30 = vshll.u32 %v17443_v13, 16  ;;  %v9184_v21 = vrot.slane %v9182_v50, 4 }
 0x315   : > { %v7862_v62 = vrot.slane %v7861_v4, 4  ;;  %v7871_v11 = vor.u32 %v7870_v0, %v7866_v32  ;;  %v9195_v60 = vshrl.u32 %v17443_v13, 16  ;;  %v9187_v27 = vrot.slane %v9185_v57, 5  ;;  %v17465_v39 = vpop.f32.mrf.mxu1  ;;  %v9097_v0 = vld [vmem:[#allocation2 + $0x48] sm:$0xf]  ;;  %v13601_v57 = vld [vmem:[#allocation2 + $0x18] sm:$0xff]  }
 0x316   : > { %v9180_v58 = vsel %vm13804_vm4, %v9175_v63, %v9179_v44  ;;  %v9193_v8 = vrot.slane %v9191_v30, 5  ;;  %v9201_v31 = vshll.u32 %v17448_v29, 16  ;;  %v9206_v5 = vshrl.u32 %v9094_v61, 16  ;;  %v17467_v44 = vpop.f32.mrf.mxu0 }
 0x317   : > { %v12144_v28 = vcombine.low %v9170_v52, %v9180_v58  ;;  %v7867_v24 = vsel %vm13804_vm4, %v7862_v62, %v7866_v32  ;;  %v7872_v48 = vrot.slane %v7871_v11, 4  ;;  %v9197_v14 = vrot.slane %v9195_v60, 4  ;;  %v17474_v58 = vld [vmem:[#allocation2 + $0x4c] sm:$0xf] }
 0x318   : > { %v9188_v2 = vor.u32 %v9187_v27, %v9184_v21  ;;  %v9203_v18 = vrot.slane %v9201_v31, 5  ;;  %v9209_v54 = vshll.u32 %v9094_v61, 16  ;;  %v9215_v4 = vshll.u32 %v17459_v19, 16 }
 0x319   : > { %13358 = vmatmul.mubr.bf16.vlgmr.msra.gmra.mxu0 %v12144_v28  ;;  %v7877_v12 = vsel %vm13804_vm4, %v7872_v48, %v7876_v16  ;;  %v9198_v52 = vor.u32 %v9197_v14, %v9193_v8  ;;  %v9219_v32 = vshrl.u32 %v17459_v19, 16  ;;  %v9208_v30 = vrot.slane %v9206_v5, 4  ;;  %v17482_v28 = vld [vmem:[#allocation2 + $0x50] sm:$0x1]  ;;  %v17484_v48 = vpop.f32.mrf.mxu1  ;;  %v17486_v14 = vpop.f32.mrf.mxu0 }
 0x31a   : > { %v12022_v50 = vcombine.low %v7867_v24, %v7877_v12  ;;  %v9189_v63 = vrot.slane %v9188_v2, 4  ;;  %v9211_v62 = vrot.slane %v9209_v54, 5  ;;  %v9217_v21 = vrot.slane %v9215_v4, 5 }
 0x31b   : > { %v9199_v11 = vrot.slane %v9198_v52, 4  ;;  %v9221_v60 = vrot.slane %v9219_v32, 4  ;;  %v9225_v61 = vshll.u32 %v17463_v26, 16  ;;  %v17480_v31 = vadd.f32 %v17255_v3, %v17401_v41 }
 0x31c   : > { %13242 = vmatmul.mubr.bf16.gmra.mxu1 %v12022_v50  ;;  %v9194_v16 = vsel %vm13804_vm4, %v9189_v63, %v9193_v8  ;;  %v9212_v27 = vor.u32 %v9211_v62, %v9208_v30  ;;  %v9230_v24 = vshrl.u32 %v9097_v0, 16  ;;  %v9233_v12 = vshll.u32 %v9097_v0, 16  ;;  %v9100_v30 = vld [vmem:[#allocation2 + $0x54] sm:$0xf] }
 0x31d   : > { %v9204_v2 = vsel %vm13804_vm4, %v9199_v11, %v9203_v18  ;;  %13309 = vmatprep.mubr.bf16.mxu1 %v13601_v57  ;;  %v9222_v5 = vor.u32 %v9221_v60, %v9217_v21  ;;  %v9227_v54 = vrot.slane %v9225_v61, 5  ;;  %v9239_v3 = vshll.u32 %v17474_v58, 16  ;;  %v17501_v57 = vld [vmem:[#allocation2 + $0x58] sm:$0xf]  ;;  %v17503_v11 = vpop.f32.mrf.mxu1  ;;  %v17505_v60 = vpop.f32.mrf.mxu0 }
 0x31e   : > { %v12145_v8 = vcombine.low %v9194_v16, %v9204_v2  ;;  %v9213_v52 = vrot.slane %v9212_v27, 4  ;;  %v9232_v4 = vrot.slane %v9230_v24, 4  ;;  %v9235_v32 = vrot.slane %v9233_v12, 5  ;;  %19119 = vst [vmem:[#allocation40_spill] sm:$0xff] %v17503_v11  ;;  %v13603_v2 = vld [vmem:[#allocation2 + $0x24] sm:$0xff]   ;;  %v13605_v12 = vld [vmem:[%s18840_s3 + $0x230] sm:$0xff]  }
 0x31f   : > { %v9223_v41 = vrot.slane %v9222_v5, 4  ;;  %v9243_v50 = vshrl.u32 %v17474_v58, 16  ;;  %v9249_v63 = vshll.u32 %v17482_v28, 16  ;;  %v9241_v62 = vrot.slane %v9239_v3, 5 }
 0x320   : > { %13361 = vmatprep.mubr.bf16.mxu0 %v12145_v8  ;;  %v17495_v18 = vadd.f32 %v17279_v1, %v17411_v43  ;;  %v17499_v0 = vadd.f32 %v17308_v23, %v17427_v53  ;;  %v9218_v61 = vsel %vm13804_vm4, %v9213_v52, %v9217_v21  ;;  %v9236_v27 = vor.u32 %v9235_v32, %v9232_v4  ;;  %v17511_v1 = vld [vmem:[#allocation2 + $0x5c] sm:$0x1]  ;;  %v9103_v52 = vld [vmem:[#allocation2 + $0x60] sm:$0xf] }
 0x321   : > { %v9228_v16 = vsel %vm13804_vm4, %v9223_v41, %v9227_v54  ;;  %v9245_v24 = vrot.slane %v9243_v50, 4  ;;  %v9251_v23 = vrot.slane %v9249_v63, 5  ;;  %v9254_v53 = vshrl.u32 %v9100_v30, 16  ;;  %v17523_v63 = vld [vmem:[#allocation2 + $0x64] sm:$0xf] }
 0x322   : > { %v12146_v43 = vcombine.low %v9218_v61, %v9228_v16  ;;  %v9257_v5 = vshll.u32 %v9100_v30, 16  ;;  %v9237_v8 = vrot.slane %v9236_v27, 4  ;;  %v9263_v21 = vshll.u32 %v17501_v57, 16  ;;  %v17527_v61 = vpop.f32.mrf.mxu0 }
 0x323   : > { %v9246_v3 = vor.u32 %v9245_v24, %v9241_v62  ;;  %v9267_v54 = vshrl.u32 %v17501_v57, 16  ;;  %v9256_v4 = vrot.slane %v9254_v53, 4  ;;  %v9273_v32 = vshll.u32 %v17511_v1, 16  ;;  %v17525_v30 = vpop.f32.mrf.mxu1 }
 0x324   : > { %13362 = vmatmul.mubr.bf16.gmra.mxu0 %v12146_v43  ;;  %13310 = vmatmul.mubr.bf16.vlgmr.msra.gmra.mxu1 %v13603_v2  ;;  %v9259_v41 = vrot.slane %v9257_v5, 5  ;;  %v17521_v50 = vadd.f32 %v17346_v35, %v17451_v47  ;;  %v9242_v16 = vsel %vm13804_vm4, %v9237_v8, %v9241_v62  ;;  %v9265_v24 = vrot.slane %v9263_v21, 5  ;;  %v17532_v35 = vld [vmem:[#allocation2 + $0x68] sm:$0x1] }
 0x325   : > { %v9247_v27 = vrot.slane %v9246_v3, 4  ;;  %13390 = vmatpush3.bf16.msra.mxu1 %v17376_v45  ;;  %13313 = vmatprep.mubr.bf16.mxu1 %v13604_v17  ;;  %v9269_v43 = vrot.slane %v9267_v54, 4  ;;  %v9275_v53 = vrot.slane %v9273_v32, 5  ;;  %v9278_v47 = vshrl.u32 %v9103_v52, 16  ;;  %v13608_v17 = vld [vmem:[%s18840_s3 + $0x228] sm:$0xff]   ;;  %v13606_v3 = vld [vmem:[#allocation2 + $0x3c] sm:$0xff]  }
 0x326   : > { %v9260_v2 = vor.u32 %v9259_v41, %v9256_v4  ;;  %13391 = vmatprep.subr.bf16.mxu1 %v13605_v12  ;;  %v9281_v5 = vshll.u32 %v9103_v52, 16  ;;  %v9287_v6 = vshll.u32 %v17523_v63, 16  ;;  %v9291_v62 = vshrl.u32 %v17523_v63, 16  ;;  %v17541_v4 = vpop.f32.mrf.mxu1  ;;  %v17543_v52 = vpop.f32.mrf.mxu0 }
 0x327   : > { %v9252_v59 = vsel %vm13804_vm4, %v9247_v27, %v9251_v23  ;;  %v9270_v33 = vor.u32 %v9269_v43, %v9265_v24  ;;  %v9280_v21 = vrot.slane %v9278_v47, 4  ;;  %v9297_v27 = vshll.u32 %v17532_v35, 16  ;;  %v9106_v43 = vld [vmem:[#allocation2 + $0x6c] sm:$0xf]  ;;  %v17556_v47 = vld [vmem:[#allocation2 + $0x74] sm:$0x1] }
 0x328   : > { %v12147_v45 = vcombine.low %v9242_v16, %v9252_v59  ;;  %v9261_v8 = vrot.slane %v9260_v2, 4  ;;  %v9283_v54 = vrot.slane %v9281_v5, 5  ;;  %v9289_v23 = vrot.slane %v9287_v6, 5  ;;  %v17554_v2 = vld [vmem:[#allocation2 + $0x70] sm:$0xf]  ;;  %v13611_v6 = vld [vmem:[%s18840_s3 + $0x220] sm:$0xff]   ;;  %v13032_v49 = vpop.f32.mrf.mxu1 }
 0x329   : > { %v9271_v41 = vrot.slane %v9270_v33, 4  ;;  %v9293_v32 = vrot.slane %v9291_v62, 4  ;;  %13392 = vmatpush3.bf16.msra.mxu1 %v13605_v12  ;;  %v17548_v59 = vadd.f32 %v17370_v51, %v17465_v39  ;;  %v17552_v16 = vadd.f32 %v17383_v25, %v17484_v48  ;;  %v17561_v33 = vpop.f32.mrf.mxu0  ;;  %v13607_v25 = vld [vmem:[#allocation2 + $0x48] sm:$0xff]  }
 0x32a   : > { %13365 = vmatprep.mubr.bf16.mxu0 %v12147_v45  ;;  %v9284_v15 = vor.u32 %v9283_v54, %v9280_v21  ;;  %v9266_v12 = vsel %vm13804_vm4, %v9261_v8, %v9265_v24  ;;  %v9299_v5 = vrot.slane %v9297_v27, 5  ;;  %13393 = vmatprep.subr.bf16.mxu1 %v13608_v17  ;;  %v9302_v45 = vshrl.u32 %v9106_v43, 16  ;;  %v9109_v54 = vld [vmem:[#allocation2 + $0x78] sm:$0xf]  ;;  %v17578_v27 = vld [vmem:[#allocation2 + $0x80] sm:$0x1] }
 0x32b   : > { %19120 = vst [vmem:[#allocation39_spill] sm:$0xff] %v17548_v59  ;;  %19121 = vst [vmem:[#allocation41_spill] sm:$0xff] %v17552_v16  ;;  %v9276_v51 = vsel %vm13804_vm4, %v9271_v41, %v9275_v53  ;;  %v9294_v39 = vor.u32 %v9293_v32, %v9289_v23  ;;  %v9305_v21 = vshll.u32 %v9106_v43, 16  ;;  %v9311_v16 = vshll.u32 %v17554_v2, 16  ;;  %v17570_v53 = vld [vmem:[#allocation2 + $0x7c] sm:$0xf]  ;;  %v17580_v43 = vpop.f32.mrf.mxu0 }
 0x32c   : > { %v12148_v48 = vcombine.low %v9266_v12, %v9276_v51  ;;  %13314 = vmatmul.mubr.bf16.gmra.mxu1 %v13606_v3  ;;  %v9285_v62 = vrot.slane %v9284_v15, 4  ;;  %v9315_v24 = vshrl.u32 %v17554_v2, 16  ;;  %v9321_v8 = vshll.u32 %v17556_v47, 16  ;;  %v13614_v12 = vld [vmem:[%s18840_s3 + $0x218] sm:$0xff]   ;;  %v13610_v59 = vld [vmem:[#allocation2 + $0x60] sm:$0xff]  }
 0x32d   : > { %v9295_v55 = vrot.slane %v9294_v39, 4  ;;  %13317 = vmatprep.mubr.bf16.mxu1 %v13607_v25  ;;  %13394 = vmatpush3.bf16.msra.mxu1 %v13608_v17  ;;  %v9304_v15 = vrot.slane %v9302_v45, 4  ;;  %v9307_v41 = vrot.slane %v9305_v21, 5  ;;  %v17576_v32 = vadd.f32 %v17413_v7, %v17525_v30  ;;  %v6181_v30 = vpop.f32.mrf.mxu1  ;;  %v13609_v21 = vld [vmem:[#allocation2 + $0x54] sm:$0xff]  }
 0x32e   : > { %13366 = vmatmul.mubr.bf16.gmra.mxu0 %v12148_v48  ;;  %v9290_v3 = vsel %vm13804_vm4, %v9285_v62, %v9289_v23  ;;  %13395 = vmatprep.subr.bf16.mxu1 %v13611_v6  ;;  %v9313_v51 = vrot.slane %v9311_v16, 5  ;;  %v9317_v23 = vrot.slane %v9315_v24, 4  ;;  %v9323_v39 = vrot.slane %v9321_v8, 5  ;;  %v17594_v8 = vpop.f32.mrf.mxu0 }
 0x32f   : > { %19122 = vst [vmem:[#allocation42_spill] sm:$0xff] %v17576_v32  ;;  %v9300_v17 = vsel %vm13804_vm4, %v9295_v55, %v9299_v5  ;;  %v9308_v48 = vor.u32 %v9307_v41, %v9304_v15  ;;  %v9326_v62 = vshrl.u32 %v9109_v54, 16  ;;  %v9329_v7 = vshll.u32 %v9109_v54, 16  ;;  %v9112_v54 = vld [vmem:[#allocation2 + $0x84] sm:$0xf]  ;;  %19124 = vst [vmem:[#allocation44_spill] sm:$0xff] %v17594_v8 }
 0x330   : > { %v12149_v25 = vcombine.low %v9290_v3, %v9300_v17  ;;  %v9318_v45 = vor.u32 %v9317_v23, %v9313_v51  ;;  %v9335_v32 = vshll.u32 %v17570_v53, 16  ;;  %v9339_v40 = vshrl.u32 %v17570_v53, 16  ;;  %v13617_v3 = vld [vmem:[%s18840_s3 + $0x210] sm:$0xff]   ;;  %v17599_v23 = vld [vmem:[#allocation2 + $0x88] sm:$0xf] }
 0x331   : > { %v9345_v11 = vshll.u32 %v17578_v27, 16  ;;  %13396 = vmatpush3.bf16.msra.mxu1 %v13611_v6  ;;  %v9309_v55 = vrot.slane %v9308_v48, 4  ;;  %v9328_v16 = vrot.slane %v9326_v62, 4  ;;  %v9331_v5 = vrot.slane %v9329_v7, 5  ;;  %v17609_v62 = vld [vmem:[#allocation2 + $0x8c] sm:$0x1] }
 0x332   : > { %13369 = vmatprep.mubr.bf16.mxu0 %v12149_v25  ;;  %v17592_v24 = vadd.f32 %v17429_v36, %v17541_v4  ;;  %13397 = vmatprep.subr.bf16.mxu1 %v13614_v12  ;;  %v9319_v15 = vrot.slane %v9318_v45, 4  ;;  %v9337_v41 = vrot.slane %v9335_v32, 5  ;;  %v9341_v17 = vrot.slane %v9339_v40, 4  ;;  %19127 = vst [vmem:[#allocation47_spill] sm:$0xff] %v17609_v62  ;;  %v13035_v7 = vpop.f32.mrf.mxu1 }
 0x333   : > { %v9347_v6 = vrot.slane %v9345_v11, 5  ;;  %v9314_v25 = vsel %vm13804_vm4, %v9309_v55, %v9313_v51  ;;  %v9332_v36 = vor.u32 %v9331_v5, %v9328_v16  ;;  %v17604_v4 = vadd.f32 %v17438_v10, %v13032_v49  ;;  %v9115_v10 = vld [vmem:[#allocation2 + $0x90] sm:$0xf] }
 0x334   : > { %19123 = vst [vmem:[#allocation43_spill] sm:$0xff] %v17592_v24  ;;  %13318 = vmatmul.mubr.bf16.gmra.mxu1 %v13609_v21  ;;  %v17607_v48 = vadd.f32 %v17453_v38, %v6181_v30  ;;  %v9324_v40 = vsel %vm13804_vm4, %v9319_v15, %v9323_v39  ;;  %v9342_v11 = vor.u32 %v9341_v17, %v9337_v41  ;;  %v9350_v32 = vshrl.u32 %v9112_v54, 16  ;;  %v6194_v38 = vpop.f32.mrf.mxu1  ;;  %v13620_v39 = vld [vmem:[%s18840_s3 + $0x208] sm:$0xff]  }
 0x335   : > { %19125 = vst [vmem:[#allocation45_spill] sm:$0xff] %v17604_v4  ;;  %13321 = vmatprep.mubr.bf16.mxu1 %v13610_v59  ;;  %v9353_v45 = vshll.u32 %v9112_v54, 16  ;;  %13398 = vmatpush3.bf16.msra.mxu1 %v13614_v12  ;;  %v12150_v51 = vcombine.low %v9314_v25, %v9324_v40  ;;  %v9333_v21 = vrot.slane %v9332_v36, 4  ;;  %v9359_v55 = vshll.u32 %v17599_v23, 16  ;;  %v17615_v30 = vpop.f32.mrf.mxu0  ;;  %v17621_v54 = vld [vmem:[#allocation2 + $0x94] sm:$0xf] }
 0x336   : > { %19126 = vst [vmem:[#allocation46_spill] sm:$0xff] %v17607_v48  ;;  %v9363_v49 = vshrl.u32 %v17599_v23, 16  ;;  %13399 = vmatprep.subr.bf16.mxu1 %v13617_v3  ;;  %v9343_v16 = vrot.slane %v9342_v11, 4  ;;  %v9352_v59 = vrot.slane %v9350_v32, 4  ;;  %v9369_v12 = vshll.u32 %v17609_v62, 16  ;;  %19128 = vst [vmem:[#allocation49_spill] sm:$0xff] %v17621_v54  ;;  %v13036_v8 = vpop.f32.mrf.mxu1 }
 0x337   : > { %v9355_v5 = vrot.slane %v9353_v45, 5  ;;  %13370 = vmatmul.mubr.bf16.gmra.mxu0 %v12150_v51  ;;  %v9338_v15 = vsel %vm13804_vm4, %v9333_v21, %v9337_v41  ;;  %v9361_v17 = vrot.slane %v9359_v55, 5  ;;  %v17626_v36 = vadd.f32 %v17467_v44, %v13035_v7  ;;  %v17628_v40 = vld [vmem:[#allocation2 + $0x98] sm:$0x1]  ;;  %v17630_v48 = vpop.f32.mrf.mxu0  ;;  %v13612_v41 = vld [vmem:[#allocation2 + $0x6c] sm:$0xff]  }
 0x338   : > { %v9365_v25 = vrot.slane %v9363_v49, 4  ;;  %19130 = vst [vmem:[#allocation51_spill] sm:$0xff] %v17628_v40  ;;  %v9348_v11 = vsel %vm13804_vm4, %v9343_v16, %v9347_v6  ;;  %v9371_v45 = vrot.slane %v9369_v12, 5  ;;  %v9374_v4 = vshrl.u32 %v9115_v10, 16  ;;  %v13613_v44 = vld [vmem:[#allocation2 + $0x78] sm:$0xff]   ;;  %v13623_v49 = vld [vmem:[%s18840_s3 + $0x200] sm:$0xff]  }
 0x339   : > { %19129 = vst [vmem:[#allocation48_spill] sm:$0xff] %v17626_v36  ;;  %v9356_v32 = vor.u32 %v9355_v5, %v9352_v59  ;;  %13400 = vmatpush3.bf16.msra.mxu1 %v13617_v3  ;;  %v12151_v51 = vcombine.low %v9338_v15, %v9348_v11  ;;  %v9377_v21 = vshll.u32 %v9115_v10, 16  ;;  %v9383_v55 = vshll.u32 %v17621_v54, 16  ;;  %v17635_v7 = vpop.f32.mrf.mxu0  ;;  %v6197_v59 = vpop.f32.mrf.mxu1  ;;  %v9118_v5 = vld [vmem:[#allocation2 + $0x9c] sm:$0xf] }
 0x33a   : > { %v9366_v24 = vor.u32 %v9365_v25, %v9361_v17  ;;  %13401 = vmatprep.subr.bf16.mxu1 %v13620_v39  ;;  %v9376_v6 = vrot.slane %v9374_v4, 4  ;;  %v9387_v16 = vshrl.u32 %v17621_v54, 16  ;;  %v9393_v3 = vshll.u32 %v17628_v40, 16  ;;  %v17645_v11 = vld [vmem:[#allocation2 + $0xa0] sm:$0xf] }
 0x33b   : > { %v9357_v36 = vrot.slane %v9356_v32, 4  ;;  %13373 = vmatprep.mubr.bf16.mxu0 %v12151_v51  ;;  %v9379_v12 = vrot.slane %v9377_v21, 5  ;;  %v9385_v15 = vrot.slane %v9383_v55, 5  ;;  %v17643_v25 = vadd.f32 %v17486_v14, %v6194_v38  ;;  %v17647_v62 = vpop.f32.mrf.mxu0 }
 0x33c   : > { %v9367_v10 = vrot.slane %v9366_v24, 4  ;;  %13322 = vmatmul.mubr.bf16.gmra.mxu1 %v13612_v41  ;;  %19132 = vst [vmem:[#allocation52_spill] sm:$0xff] %v17647_v62  ;;  %v9389_v32 = vrot.slane %v9387_v16, 4  ;;  %v9395_v54 = vrot.slane %v9393_v3, 5  ;;  %v17652_v40 = vadd.f32 %v17505_v60, %v13036_v8  ;;  %v17654_v24 = vld [vmem:[#allocation2 + $0xa4] sm:$0x1] }
 0x33d   : > { %19131 = vst [vmem:[#allocation50_spill] sm:$0xff] %v17643_v25  ;;  %v9362_v4 = vsel %vm13804_vm4, %v9357_v36, %v9361_v17  ;;  %13325 = vmatprep.mubr.bf16.mxu1 %v13613_v44  ;;  %19134 = vst [vmem:[#allocation53_spill] sm:$0xff] %v17654_v24  ;;  %13402 = vmatpush3.bf16.msra.mxu1 %v13620_v39  ;;  %v9380_v38 = vor.u32 %v9379_v12, %v9376_v6  ;;  %v9398_v41 = vshrl.u32 %v9118_v5, 16  ;;  %v9121_v44 = vld [vmem:[#allocation2 + $0xa8] sm:$0xf] }
 0x33e   : > { %19133 = vst [vmem:[#allocation54_spill] sm:$0xff] %v17652_v40  ;;  %v9372_v14 = vsel %vm13804_vm4, %v9367_v10, %v9371_v45  ;;  %v17659_v51 = vadd.f32 %v17527_v61, %v6197_v59  ;;  %13403 = vmatprep.subr.bf16.mxu1 %v13623_v49  ;;  %v9390_v17 = vor.u32 %v9389_v32, %v9385_v15  ;;  %v9401_v36 = vshll.u32 %v9118_v5, 16  ;;  %v17662_v60 = vpop.f32.mrf.mxu0  ;;  %v17666_v3 = vld [vmem:[#allocation2 + $0xac] sm:$0xf] }
 0x33f   : > { %v12152_v21 = vcombine.low %v9362_v4, %v9372_v14  ;;  %v9407_v55 = vshll.u32 %v17645_v11, 16  ;;  %v9381_v8 = vrot.slane %v9380_v38, 4  ;;  %v9400_v16 = vrot.slane %v9398_v41, 4  ;;  %19136 = vst [vmem:[#allocation55_spill] sm:$0xff] %v17666_v3  ;;  %v13615_v38 = vld [vmem:[#allocation2 + $0x84] sm:$0xff]  }
 0x340   : > { %19135 = vst [vmem:[#allocation57_spill] sm:$0xff] %v17659_v51  ;;  %v9411_v39 = vshrl.u32 %v17645_v11, 16  ;;  %v9417_v45 = vshll.u32 %v17654_v24, 16  ;;  %v13039_v6 = vpop.f32.mrf.mxu1  ;;  %v9391_v61 = vrot.slane %v9390_v17, 4  ;;  %v9403_v59 = vrot.slane %v9401_v36, 5  ;;  %v17671_v12 = vpop.f32.mrf.mxu0 }
 0x341   : > { %13374 = vmatmul.mubr.bf16.gmra.mxu0 %v12152_v21  ;;  %v9409_v10 = vrot.slane %v9407_v55, 5  ;;  %v17669_v5 = vadd.f32 %v17543_v52, %v13039_v6  ;;  %13404 = vmatpush3.bf16.msra.mxu1 %v13623_v49  ;;  %v9386_v4 = vsel %vm13804_vm4, %v9381_v8, %v9385_v15  ;;  %v17675_v41 = vld [vmem:[#allocation2 + $0xb0] sm:$0x1]  ;;  %v9422_v62 = vshrl.u32 %v9121_v44, 16 }
 0x342   : > { %v9413_v32 = vrot.slane %v9411_v39, 4  ;;  %v9419_v14 = vrot.slane %v9417_v45, 5  ;;  %19138 = vst [vmem:[#allocation56_spill] sm:$0xff] %v17675_v41  ;;  %v6210_v51 = vpop.f32.mrf.mxu1  ;;  %v9396_v21 = vsel %vm13804_vm4, %v9391_v61, %v9395_v54  ;;  %v9404_v17 = vor.u32 %v9403_v59, %v9400_v16  ;;  %v13616_v55 = vld [vmem:[#allocation2 + $0x90] sm:$0xff]   ;;  %v17680_v6 = vpop.f32.mrf.mxu0 }
 0x343   : > { %19137 = vst [vmem:[#allocation12_spill] sm:$0xff] %v17669_v5  ;;  %v9425_v36 = vshll.u32 %v9121_v44, 16  ;;  %v9431_v52 = vshll.u32 %v17666_v3, 16  ;;  %v12153_v49 = vcombine.low %v9386_v4, %v9396_v21  ;;  %v9424_v15 = vrot.slane %v9422_v62, 4  ;;  %v9124_v54 = vld [vmem:[#allocation2 + $0xb4] sm:$0xf] }
 0x344   : > { %v9414_v5 = vor.u32 %v9413_v32, %v9409_v10  ;;  %13326 = vmatmul.mubr.bf16.gmra.mxu1 %v13615_v38  ;;  %v9435_v8 = vshrl.u32 %v17666_v3, 16  ;;  %v13040_v39 = vpop.f32.mrf.mxu1  ;;  %v9405_v45 = vrot.slane %v9404_v17, 4  ;;  %v9441_v24 = vshll.u32 %v17675_v41, 16  ;;  %v17684_v44 = vpop.f32.mrf.mxu0  ;;  %v17694_v32 = vld [vmem:[#allocation2 + $0xb8] sm:$0xf] }
 0x345   : > { %v9427_v40 = vrot.slane %v9425_v36, 5  ;;  %v9433_v25 = vrot.slane %v9431_v52, 5  ;;  %13329 = vmatprep.mubr.bf16.mxu1 %v13616_v55  ;;  %13377 = vmatprep.mubr.bf16.mxu0 %v12153_v49  ;;  %v17687_v59 = vadd.f32 %v17561_v33, %v6210_v51  ;;  %v17690_v62 = vadd.f32 %v17580_v43, %v13040_v39  ;;  %19142 = vst [vmem:[#allocation59_spill] sm:$0xff] %v17694_v32  ;;  %v17698_v36 = vld [vmem:[#allocation2 + $0xbc] sm:$0x1] }
 0x346   : > { %v9415_v16 = vrot.slane %v9414_v5, 4  ;;  %v9437_v61 = vrot.slane %v9435_v8, 4  ;;  %v17692_v4 = vpop.f32.mrf.mxu1  ;;  %v9410_v38 = vsel %vm13804_vm4, %v9405_v45, %v9409_v10  ;;  %v9443_v17 = vrot.slane %v9441_v24, 5  ;;  %19143 = vst [vmem:[#allocation60_spill] sm:$0xff] %v17698_v36  ;;  %v9127_v10 = vld [vmem:[#allocation2 + $0xc0] sm:$0xf] }
 0x347   : > { %19139 = vst [vmem:[#allocation3_spill] sm:$0xff] %v17687_v59  ;;  %19140 = vst [vmem:[#allocation4_spill] sm:$0xff] %v17690_v62  ;;  %v9428_v21 = vor.u32 %v9427_v40, %v9424_v15  ;;  %v17700_v52 = vpop.f32.mrf.mxu0  ;;  %v9446_v5 = vshrl.u32 %v9124_v54, 16  ;;  %v9449_v43 = vshll.u32 %v9124_v54, 16  ;;  %v9455_v8 = vshll.u32 %v17694_v32, 16  ;;  %v13618_v62 = vld [vmem:[#allocation2 + $0x9c] sm:$0xff]  }
 0x348   : > { %19141 = vst [vmem:[#allocation58_spill] sm:$0xff] %v17692_v4  ;;  %v9420_v33 = vsel %vm13804_vm4, %v9415_v16, %v9419_v14  ;;  %v9438_v51 = vor.u32 %v9437_v61, %v9433_v25  ;;  %v9459_v39 = vshrl.u32 %v17694_v32, 16  ;;  %v9465_v4 = vshll.u32 %v17698_v36, 16  ;;  %v17709_v14 = vld [vmem:[#allocation2 + $0xc4] sm:$0xf] }
 0x349   : > { %v12154_v55 = vcombine.low %v9410_v38, %v9420_v33  ;;  %v9429_v49 = vrot.slane %v9428_v21, 4  ;;  %v17706_v40 = vpop.f32.mrf.mxu0  ;;  %v9448_v15 = vrot.slane %v9446_v5, 4  ;;  %v9451_v45 = vrot.slane %v9449_v43, 5  ;;  %v13043_v59 = vpop.f32.mrf.mxu1  ;;  %v17716_v21 = vld [vmem:[#allocation2 + $0xc8] sm:$0x1] }
 0x34a   : > { %v9439_v24 = vrot.slane %v9438_v51, 4  ;;  %v9457_v16 = vrot.slane %v9455_v8, 5  ;;  %v9461_v61 = vrot.slane %v9459_v39, 4  ;;  %v17714_v38 = vadd.f32 %v17615_v30, %v13043_v59  ;;  %19145 = vst [vmem:[#allocation62_spill] sm:$0xff] %v17716_v21  ;;  %v13619_v33 = vld [vmem:[#allocation2 + $0xa8] sm:$0xff]  }
 0x34b   : > { %13378 = vmatmul.mubr.bf16.gmra.mxu0 %v12154_v55  ;;  %v9434_v54 = vsel %vm13804_vm4, %v9429_v49, %v9433_v25  ;;  %v17718_v51 = vpop.f32.mrf.mxu0  ;;  %v9452_v43 = vor.u32 %v9451_v45, %v9448_v15  ;;  %v9467_v36 = vrot.slane %v9465_v4, 5  ;;  %v9470_v55 = vshrl.u32 %v9127_v10, 16  ;;  %v6226_v41 = vpop.f32.mrf.mxu1  ;;  %v9839_v45 = vld [vmem:[#allocation2 + $0x18] sm:$0xe] }
 0x34c   : > { %19144 = vst [vmem:[#allocation61_spill] sm:$0xff] %v17714_v38  ;;  %v9444_v5 = vsel %vm13804_vm4, %v9439_v24, %v9443_v17  ;;  %13330 = vmatmul.mubr.bf16.gmra.mxu1 %v13618_v62  ;;  %v9462_v25 = vor.u32 %v9461_v61, %v9457_v16  ;;  %v9473_v49 = vshll.u32 %v9127_v10, 16  ;;  %v9479_v8 = vshll.u32 %v17709_v14, 16 }
 0x34d   : > { %v12155_v32 = vcombine.low %v9434_v54, %v9444_v5  ;;  %13333 = vmatprep.mubr.bf16.mxu1 %v13619_v33  ;;  %v17723_v30 = vpop.f32.mrf.mxu0  ;;  %v9453_v59 = vrot.slane %v9452_v43, 4  ;;  %v9472_v39 = vrot.slane %v9470_v55, 4  ;;  %v9483_v38 = vshrl.u32 %v17709_v14, 16  ;;  %v13044_v17 = vpop.f32.mrf.mxu1  ;;  %v9130_v5 = vld [vmem:[#allocation2 + $0xcc] sm:$0xf] }
 0x34e   : > { %v9489_v3 = vshll.u32 %v17716_v21, 16  ;;  %v9463_v4 = vrot.slane %v9462_v25, 4  ;;  %v9475_v62 = vrot.slane %v9473_v49, 5  ;;  %v9481_v24 = vrot.slane %v9479_v8, 5 }
 0x34f   : > { %13381 = vmatprep.mubr.bf16.mxu0 %v12155_v32  ;;  %v17728_v15 = vadd.f32 %v17630_v48, %v6226_v41  ;;  %v17730_v10 = vpop.f32.mrf.mxu0  ;;  %v9485_v54 = vrot.slane %v9483_v38, 4  ;;  %v17733_v61 = vadd.f32 %v17635_v7, %v13044_v17  ;;  %v17735_v33 = vpop.f32.mrf.mxu1  ;;  %v9458_v43 = vsel %vm13804_vm4, %v9453_v59, %v9457_v16  ;;  %v17743_v41 = vld [vmem:[#allocation2 + $0xd0] sm:$0xf]  ;;  %v13621_v7 = vld [vmem:[#allocation2 + $0xb4] sm:$0xff]   ;;  %v13622_v16 = vld [vmem:[#allocation2 + $0xc0] sm:$0xff]  }
 0x350   : > { %19147 = vst [vmem:[#allocation64_spill] sm:$0xff] %v17735_v33  ;;  %v9468_v32 = vsel %vm13804_vm4, %v9463_v4, %v9467_v36  ;;  %v9476_v55 = vor.u32 %v9475_v62, %v9472_v39  ;;  %v9491_v25 = vrot.slane %v9489_v3, 5  ;;  %v12167_v17 = vrot.slane %v9839_v45, 9 }
 0x351   : > { %19146 = vst [vmem:[#allocation63_spill] sm:$0xff] %v17733_v61  ;;  %v17741_v48 = vpop.f32.mrf.mxu0  ;;  %v12156_v49 = vcombine.low %v9458_v43, %v9468_v32  ;;  %v9486_v38 = vor.u32 %v9485_v54, %v9481_v24  ;;  %v13047_v8 = vpop.f32.mrf.mxu1  ;;  %v9905_v61 = vrot.slane %v17390_v22, 5  ;;  %v9494_v59 = vshrl.u32 %v9130_v5, 16  ;;  %v17758_v43 = vld [vmem:[#allocation2 + $0xd4] sm:$0x1] }
 0x352   : > { %v9477_v33 = vrot.slane %v9476_v55, 4  ;;  %v17747_v21 = vadd.f32 %v17662_v60, %v13047_v8  ;;  %v9497_v36 = vshll.u32 %v9130_v5, 16  ;;  %v9908_v54 = vrot.slane %v17396_v42, 5 }
 0x353   : > { %v17749_v39 = vpop.f32.mrf.mxu0  ;;  %13382 = vmatmul.mubr.bf16.gmra.mxu0 %v12156_v49  ;;  %v9487_v3 = vrot.slane %v9486_v38, 4  ;;  %v6242_v4 = vpop.f32.mrf.mxu1  ;;  %v9907_v62 = vrot.slane %v9905_v61, 4  ;;  %v9503_v45 = vshll.u32 %v17743_v41, 16  ;;  %v9496_v5 = vrot.slane %v9494_v59, 4 }
 0x354   : > { %19148 = vst [vmem:[#allocation65_spill] sm:$0xff] %v17747_v21  ;;  %13334 = vmatmul.mubr.bf16.gmra.mxu1 %v13621_v7  ;;  %v9482_v22 = vsel %vm13804_vm4, %v9477_v33, %v9481_v24  ;;  %v17756_v60 = vadd.f32 %v17671_v12, %v6242_v4  ;;  %v9499_v32 = vrot.slane %v9497_v36, 5  ;;  %v9507_v24 = vshrl.u32 %v17743_v41, 16  ;;  %v9840_v33 = vld [vmem:[#allocation2 + $0x24] sm:$0xe] }
 0x355   : > { %13337 = vmatprep.mubr.bf16.mxu1 %v13622_v16  ;;  %v17760_v55 = vpop.f32.mrf.mxu0  ;;  %v9492_v49 = vsel %vm13804_vm4, %v9487_v3, %v9491_v25  ;;  %v13048_v38 = vpop.f32.mrf.mxu1  ;;  %v9909_v42 = vsel %vm14066_vm7, %v9907_v62, %v9908_v54  ;;  %v9505_v8 = vrot.slane %v9503_v45, 5  ;;  %v17769_v12 = vadd.f32 %v17324_v46, %v17436_v56  ;;  %v13624_v3 = vld [vmem:[#allocation2 + $0xcc] sm:$0xff]   ;;  %v19169_v21 = vld [vmem:[#allocation60_spill] sm:$0xff] }
 0x356   : > { %19149 = vst [vmem:[#allocation66_spill] sm:$0xff] %v17756_v60  ;;  %v12157_v7 = vcombine.low %v9482_v22, %v9492_v49  ;;  %v17772_v16 = vadd.f32 %v17680_v6, %v13048_v38  ;;  %v9500_v59 = vor.u32 %v9499_v32, %v9496_v5  ;;  %v9906_v4 = vsel %vm14066_vm7, %v12167_v17, %v9905_v61  ;;  %v9841_v60 = vld [vmem:[#allocation2 + $0x30] sm:$0xe]  ;;  %v9842_v17 = vld [vmem:[#allocation2 + $0x3c] sm:$0xe] }
 0x357   : > { %v17774_v36 = vpop.f32.mrf.mxu0  ;;  %v6245_v25 = vpop.f32.mrf.mxu1  ;;  %v9509_v62 = vrot.slane %v9507_v24, 4  ;;  %v9513_v54 = vshll.u32 %v17758_v43, 16  ;;  %v9912_v45 = vrot.slane %v17417_v37, 5  ;;  %v12199_v56 = vcombine.low %v9906_v4, %v9909_v42 }
 0x358   : > { %19150 = vst [vmem:[#allocation67_spill] sm:$0xff] %v17772_v16  ;;  %13385 = vmatprep.mubr.bf16.mxu0 %v12157_v7  ;;  %v17781_v46 = vadd.f32 %v17684_v44, %v6245_v25  ;;  %v9501_v6 = vrot.slane %v9500_v59, 4  ;;  %v12168_v22 = vrot.slane %v9840_v33, 9  ;;  %v9915_v61 = vrot.slane %v17420_v34, 5 }
 0x359   : > { %v17783_v5 = vpop.f32.mrf.mxu0  ;;  %v13051_v32 = vpop.f32.mrf.mxu1  ;;  %v9510_v49 = vor.u32 %v9509_v62, %v9505_v8  ;;  %v9515_v38 = vrot.slane %v9513_v54, 5  ;;  %v9914_v16 = vrot.slane %v9912_v45, 4  ;;  %v12169_v44 = vrot.slane %v9841_v60, 9  ;;  %v9843_v54 = vld [vmem:[#allocation2 + $0x48] sm:$0xe] }
 0x35a   : > { %19151 = vst [vmem:[#allocation68_spill] sm:$0xff] %v17781_v46  ;;  %v17787_v24 = vadd.f32 %v17700_v52, %v13051_v32  ;;  %v9913_v37 = vsel %vm14066_vm7, %v12168_v22, %v9912_v45  ;;  %v9919_v42 = vrot.slane %v17443_v13, 5  ;;  %v9506_v59 = vsel %vm13804_vm4, %v9501_v6, %v9505_v8 }
 0x35b   : > { %v17792_v7 = vpop.f32.mrf.mxu0  ;;  %v6258_v33 = vpop.f32.mrf.mxu1  ;;  %v9511_v25 = vrot.slane %v9510_v49, 4  ;;  %v9916_v34 = vsel %vm14066_vm7, %v9914_v16, %v9915_v61  ;;  %v9926_v52 = vrot.slane %v17459_v19, 5  ;;  %v9922_v13 = vrot.slane %v17448_v29, 5  ;;  %v9844_v49 = vld [vmem:[#allocation2 + $0x54] sm:$0xe] }
 0x35c   : > { %19152 = vst [vmem:[#allocation69_spill] sm:$0xff] %v17787_v24  ;;  %13338 = vmatmul.mubr.bf16.gmra.mxu1 %v13624_v3  ;;  %v17800_v4 = vadd.f32 %v17706_v40, %v6258_v33  ;;  %v9921_v60 = vrot.slane %v9919_v42, 4  ;;  %v12170_v3 = vrot.slane %v9842_v17, 9  ;;  %v12200_v6 = vcombine.low %v9913_v37, %v9916_v34 }
 0x35d   : > { %13405 = vmatprep.mubr.bf16.mxu1 %v12199_v56  ;;  %v17803_v62 = vpop.f32.mrf.mxu0  ;;  %v9516_v8 = vsel %vm13804_vm4, %v9511_v25, %v9515_v38  ;;  %v13052_v45 = vpop.f32.mrf.mxu1  ;;  %v9928_v22 = vrot.slane %v9926_v52, 4  ;;  %v9929_v16 = vrot.slane %v17463_v26, 5  ;;  %v9920_v40 = vsel %vm14066_vm7, %v12169_v44, %v9919_v42 }
 0x35e   : > { %19153 = vst [vmem:[#allocation70_spill] sm:$0xff] %v17800_v4  ;;  %v12158_v19 = vcombine.low %v9506_v59, %v9516_v8  ;;  %v17809_v56 = vadd.f32 %v17718_v51, %v13052_v45  ;;  %v9923_v29 = vsel %vm14066_vm7, %v9921_v60, %v9922_v13  ;;  %v17819_v38 = vsel %vm14066_vm7, %v12170_v3, %v9926_v52  ;;  %v9845_v59 = vld [vmem:[#allocation2 + $0x60] sm:$0xe]  ;;  %v9846_v13 = vld [vmem:[#allocation2 + $0x6c] sm:$0xe] }
 0x35f   : > { %v17815_v32 = vpop.f32.mrf.mxu0  ;;  %v6261_v20 = vpop.f32.mrf.mxu1  ;;  %v17823_v26 = vsel %vm14066_vm7, %v9928_v22, %v9929_v16  ;;  %v12171_v51 = vrot.slane %v9843_v54, 9  ;;  %v9933_v61 = vrot.slane %v17474_v58, 5  ;;  %v12201_v37 = vcombine.low %v9920_v40, %v9923_v29 }
 0x360   : > { %19154 = vst [vmem:[#allocation71_spill] sm:$0xff] %v17809_v56  ;;  %13386 = vmatmul.mubr.bf16.gmra.mxu0 %v12158_v19  ;;  %v17827_v17 = vadd.f32 %v17723_v30, %v6261_v20  ;;  %v9936_v42 = vrot.slane %v17482_v28, 5  ;;  %v9940_v33 = vrot.slane %v17501_v57, 5  ;;  %v12202_v34 = vcombine.low %v17819_v38, %v17823_v26 }
 0x361   : > { %v17829_v44 = vpop.f32.mrf.mxu0  ;;  %v13119_v25 = vpop.f32.mrf.mxu1  ;;  %v9934_v52 = vsel %vm14066_vm7, %v12171_v51, %v9933_v61  ;;  %v9935_v58 = vrot.slane %v9933_v61, 4  ;;  %v12172_v60 = vrot.slane %v9844_v49, 9  ;;  %v19156_v30 = vmov 0   ;;  %v9847_v49 = vld [vmem:[#allocation2 + $0x78] sm:$0xe] }
 0x362   : > { %19155 = vst [vmem:[#allocation72_spill] sm:$0xff] %v17827_v17  ;;  %10938 = vmatprep.mubr.bf16.mxu0 %v19156_v30  ;;  %v17839_v3 = vadd.f32 %v13119_v25, %v17480_v31  ;;  %v9942_v28 = vrot.slane %v9940_v33, 4  ;;  %v9943_v57 = vrot.slane %v17511_v1, 5  ;;  %v9947_v8 = vrot.slane %v17523_v63, 5  ;;  %v19164_v17 = vld [vmem:[#allocation53_spill] sm:$0xff] }
 0x363   : > { %v17841_v54 = vpop.f32.mrf.mxu0  ;;  %v6901_v45 = vpop.f32.mrf.mxu1  ;;  %v9937_v22 = vsel %vm14066_vm7, %v9935_v58, %v9936_v42  ;;  %v17849_v16 = vsel %vm14066_vm7, %v12172_v60, %v9940_v33  ;;  %v12173_v19 = vrot.slane %v9845_v59, 9  ;;  %v9954_v31 = vrot.slane %v17554_v2, 5  ;;  %v9848_v33 = vld [vmem:[#allocation2 + $0x84] sm:$0xe] }
 0x364   : > { %13406 = vmatmul.mubr.bf16.vlgmr.msra.gmra.mxu1 %v12200_v6  ;;  %v17853_v40 = vadd.f32 %v6901_v45, %v17495_v18  ;;  %v17859_v1 = vsel %vm14066_vm7, %v9942_v28, %v9943_v57  ;;  %v9950_v63 = vrot.slane %v17532_v35, 5  ;;  %v12174_v6 = vrot.slane %v9846_v13, 9  ;;  %v9849_v57 = vld [vmem:[#allocation2 + $0x90] sm:$0xe] }
 0x365   : > { %13409 = vmatprep.mubr.bf16.mxu1 %v12201_v37  ;;  %v17855_v29 = vpop.f32.mrf.mxu0  ;;  %v13120_v20 = vpop.f32.mrf.mxu1  ;;  %v12203_v38 = vcombine.low %v9934_v52, %v9937_v22  ;;  %v9949_v2 = vrot.slane %v9947_v8, 4  ;;  %v9956_v51 = vrot.slane %v9954_v31, 4  ;;  %v17871_v37 = vsel %vm14066_vm7, %v12173_v19, %v9947_v8 }
 0x366   : > { %v17865_v18 = vadd.f32 %v13120_v20, %v17499_v0  ;;  %v9957_v35 = vrot.slane %v17556_v47, 5  ;;  %v9961_v42 = vrot.slane %v17570_v53, 5  ;;  %v17881_v0 = vsel %vm14066_vm7, %v12174_v6, %v9954_v31  ;;  %v19157_v6 = vld [vmem:[#allocation47_spill] sm:$0xff]  ;;  %v19163_v47 = vld [vmem:[#allocation41_spill] sm:$0xff] }
 0x367   : > { %v17867_v61 = vpop.f32.mrf.mxu0  ;;  %v6904_v59 = vpop.f32.mrf.mxu1  ;;  %v17877_v25 = vsel %vm14066_vm7, %v9949_v2, %v9950_v63  ;;  %v12175_v52 = vrot.slane %v9847_v49, 9  ;;  %v9968_v58 = vrot.slane %v17599_v23, 5  ;;  %v9964_v28 = vrot.slane %v17578_v27, 5  ;;  %v19158_v27 = vld [vmem:[#allocation49_spill] sm:$0xff]  ;;  %v9850_v2 = vld [vmem:[#allocation2 + $0x9c] sm:$0xe] }
 0x368   : > { %v17885_v60 = vadd.f32 %v6904_v59, %v17769_v12  ;;  %v17893_v53 = vsel %vm14066_vm7, %v9956_v51, %v9957_v35  ;;  %v9963_v23 = vrot.slane %v9961_v42, 4  ;;  %v12176_v22 = vrot.slane %v9848_v33, 9 }
 0x369   : > { %v17887_v13 = vpop.f32.mrf.mxu0  ;;  %v13123_v8 = vpop.f32.mrf.mxu1  ;;  %v9970_v12 = vrot.slane %v9968_v58, 4  ;;  %v17905_v63 = vsel %vm14066_vm7, %v12175_v52, %v9961_v42  ;;  %v9971_v49 = vrot.slane %v19157_v6, 5  ;;  %v9975_v20 = vrot.slane %v19158_v27, 5  ;;  %v19159_v42 = vld [vmem:[#allocation39_spill] sm:$0xff] }
 0x36a   : > { %v17899_v19 = vadd.f32 %v13123_v8, %v17521_v50  ;;  %v17911_v35 = vsel %vm14066_vm7, %v9963_v23, %v9964_v28  ;;  %v17915_v50 = vsel %vm14066_vm7, %v12176_v22, %v9968_v58  ;;  %v12177_v33 = vrot.slane %v9849_v57, 9  ;;  %v19160_v28 = vld [vmem:[#allocation51_spill] sm:$0xff]  ;;  %v9851_v22 = vld [vmem:[#allocation2 + $0xa8] sm:$0xe] }
 0x36b   : > { %v17901_v31 = vpop.f32.mrf.mxu0  ;;  %v6917_v51 = vpop.f32.mrf.mxu1  ;;  %v9982_v59 = vrot.slane %v17645_v11, 5  ;;  %v17925_v6 = vsel %vm14066_vm7, %v9970_v12, %v9971_v49  ;;  %v9978_v23 = vrot.slane %v19160_v28, 5  ;;  %v9977_v57 = vrot.slane %v9975_v20, 4  ;;  %v19165_v49 = vld [vmem:[#allocation55_spill] sm:$0xff] }
 0x36c   : > { %13410 = vmatmul.mubr.bf16.gmra.mxu1 %v12202_v34  ;;  %v7032_v52 = vadd.f32 %v6917_v51, %v19159_v42  ;;  %v12178_v11 = vrot.slane %v9850_v2, 9  ;;  %v19161_v51 = vld [vmem:[#allocation40_spill] sm:$0xff]  ;;  %v19162_v42 = vld [vmem:[#allocation38_spill] sm:$0xff]  ;;  %v9985_v12 = vrot.slane %v19164_v17, 5  ;;  %v9989_v56 = vrot.slane %v19165_v49, 5 }
 0x36d   : > { %13413 = vmatprep.mubr.bf16.mxu1 %v12203_v38  ;;  %v17919_v8 = vpop.f32.mrf.mxu0  ;;  %v13124_v27 = vpop.f32.mrf.mxu1  ;;  %v9984_v38 = vrot.slane %v9982_v59, 4  ;;  %v6471_v45 = vadd.f32 %v19162_v42, %v19161_v51  ;;  %v17939_v30 = vsel %vm14066_vm7, %v12177_v33, %v9975_v20  ;;  %v17943_v2 = vsel %vm14066_vm7, %v9977_v57, %v9978_v23 }
 0x36e   : > { %v7035_v26 = vadd.f32 %v13124_v27, %v19163_v47  ;;  %v17947_v51 = vsel %vm14066_vm7, %v12178_v11, %v9982_v59  ;;  %v9852_v47 = vld [vmem:[#allocation2 + $0xb4] sm:$0xe]  ;;  %v19166_v27 = vld [vmem:[#allocation59_spill] sm:$0xff]  ;;  %v12179_v33 = vrot.slane %v9851_v22, 9  ;;  %v9991_v59 = vrot.slane %v9989_v56, 4  ;;  %v19167_v11 = vld [vmem:[#allocation56_spill] sm:$0xff] }
 0x36f   : > { %v17933_v34 = vpop.f32.mrf.mxu0  ;;  %v6920_v28 = vpop.f32.mrf.mxu1  ;;  %v9996_v42 = vrot.slane %v19166_v27, 5  ;;  %v17956_v20 = vsel %vm14066_vm7, %v9984_v38, %v9985_v12  ;;  %v9992_v4 = vrot.slane %v19167_v11, 5  ;;  %v19168_v27 = vld [vmem:[#allocation42_spill] sm:$0xff]  ;;  %v12180_v46 = vrot.slane %v9852_v47, 9  ;;  %v19172_v47 = vld [vmem:[#allocation43_spill] sm:$0xff] }
 0x370   : > { %v7033_v58 = vadd.f32 %v6920_v28, %v6471_v45  ;;  %v12210_v57 = vcombine.low %v17947_v51, %v17956_v20  ;;  %v9999_v49 = vrot.slane %v19169_v21, 5  ;;  %v19170_v38 = vcombine.low %v17849_v16, %v17859_v1  ;;  %v19189_v51 = vld [vmem:[#allocation62_spill] sm:$0xff] }
 0x371   : > { %v17950_v17 = vpop.f32.mrf.mxu0  ;;  %v13127_v23 = vpop.f32.mrf.mxu1  ;;  %v9998_v24 = vrot.slane %v9996_v42, 4  ;;  %v17970_v12 = vsel %vm14066_vm7, %v12179_v33, %v9989_v56  ;;  %v17974_v11 = vsel %vm14066_vm7, %v9991_v59, %v9992_v4  ;;  %v17986_v1 = vsel %vm14066_vm7, %v12180_v46, %v9996_v42 }
 0x372   : > { %v7038_v45 = vadd.f32 %v13127_v23, %v19168_v27  ;;  %v19171_v23 = vcombine.low %v17871_v37, %v17877_v25  ;;  %v12211_v16 = vcombine.low %v17970_v12, %v17974_v11  ;;  %v19173_v25 = vld [vmem:[#allocation45_spill] sm:$0xff]  ;;  %v18003_v46 = vadd.f32 %v17741_v48, %v17853_v40 }
 0x373   : > { %v17962_v28 = vpop.f32.mrf.mxu0  ;;  %v6933_v22 = vpop.f32.mrf.mxu1  ;;  %v17990_v56 = vsel %vm14066_vm7, %v9998_v24, %v9999_v49  ;;  %v18007_v24 = vadd.f32 %v17749_v39, %v17865_v18  ;;  %v18011_v49 = vadd.f32 %v17760_v55, %v17885_v60  ;;  %v18021_v48 = vadd.f32 %v17783_v5, %v7032_v52  ;;  %v19175_v18 = vld [vmem:[#allocation48_spill] sm:$0xff] }
 0x374   : > { %13414 = vmatmul.mubr.bf16.gmra.mxu1 %v19170_v38  ;;  %v7036_v27 = vadd.f32 %v6933_v22, %v19172_v47  ;;  %v12212_v37 = vcombine.low %v17986_v1, %v17990_v56  ;;  %v17999_v38 = vadd.f32 %v17730_v10, %v17839_v3  ;;  %v18015_v22 = vadd.f32 %v17774_v36, %v17899_v19 }
 0x375   : > { %13417 = vmatprep.mubr.bf16.mxu1 %v19171_v23  ;;  %v17980_v21 = vpop.f32.mrf.mxu0  ;;  %v13128_v4 = vpop.f32.mrf.mxu1  ;;  %v19174_v23 = vld [vmem:[#allocation46_spill] sm:$0xff]  ;;  %v18024_v47 = vadd.f32 %v17792_v7, %v7035_v26  ;;  %v18027_v39 = vadd.f32 %v17803_v62, %v7033_v58  ;;  %v18030_v55 = vadd.f32 %v17815_v32, %v7038_v45  ;;  %v19176_v7 = vcombine.low %v17881_v0, %v17893_v53 }
 0x376   : > { %v7039_v33 = vadd.f32 %v13128_v4, %v19173_v25  ;;  %v18036_v19 = vadd.f32 %v17829_v44, %v7036_v27  ;;  %v19177_v32 = vcombine.low %v17905_v63, %v17911_v35  ;;  %v19178_v26 = vld [vmem:[#allocation50_spill] sm:$0xff]  ;;  %v19180_v25 = vld [vmem:[#allocation57_spill] sm:$0xff]  ;;  %v10006_v20 = vrot.slane %v19189_v51, 5 }
 0x377   : > { %v17995_v59 = vpop.f32.mrf.mxu0  ;;  %v6936_v42 = vpop.f32.mrf.mxu1  ;;  %v19179_v27 = vld [vmem:[#allocation54_spill] sm:$0xff] }
 0x378   : > { %v7037_v10 = vadd.f32 %v6936_v42, %v19174_v23  ;;  %v18039_v5 = vadd.f32 %v17841_v54, %v7039_v33  ;;  %v19181_v23 = vld [vmem:[#allocation12_spill] sm:$0xff] }
 0x379   : > { %v18018_v3 = vpop.f32.mrf.mxu0 }
 0x37a   : > { %v13131_v40 = vpop.f32.mrf.mxu1  ;;  %v18042_v52 = vadd.f32 %v17855_v29, %v7037_v10 }
 0x37b   : > { %v7042_v36 = vadd.f32 %v13131_v40, %v19175_v18  ;;  %v18033_v60 = vpop.f32.mrf.mxu0 }
 0x37c   : > { %13418 = vmatmul.mubr.bf16.gmra.mxu1 %v19176_v7  ;;  %v6949_v62 = vpop.f32.mrf.mxu1  ;;  %v19184_v7 = vld [vmem:[#allocation3_spill] sm:$0xff] }
 0x37d   : > { %13421 = vmatprep.mubr.bf16.mxu1 %v19177_v32  ;;  %v7040_v58 = vadd.f32 %v6949_v62, %v19178_v26  ;;  %v18051_v45 = vpop.f32.mrf.mxu0  ;;  %v18054_v44 = vadd.f32 %v17867_v61, %v7042_v36  ;;  %v19183_v36 = vcombine.low %v17939_v30, %v17943_v2  ;;  %v10003_v2 = vrot.slane %v17709_v14, 5 }
 0x37e   : > { %v13132_v54 = vpop.f32.mrf.mxu1 }
 0x37f   : > { %v7043_v29 = vadd.f32 %v13132_v54, %v19179_v27  ;;  %v18057_v4 = vpop.f32.mrf.mxu0  ;;  %v18060_v0 = vadd.f32 %v17887_v13, %v7040_v58  ;;  %v19182_v13 = vcombine.low %v17915_v50, %v17925_v6  ;;  %v19185_v58 = vld [vmem:[#allocation58_spill] sm:$0xff]  ;;  %v19187_v27 = vld [vmem:[#allocation4_spill] sm:$0xff]  ;;  %v10005_v14 = vrot.slane %v10003_v2, 4 }
 0x380   : > { %v6952_v53 = vpop.f32.mrf.mxu1 }
 0x381   : > { %v7041_v33 = vadd.f32 %v6952_v53, %v19180_v25  ;;  %v18063_v63 = vpop.f32.mrf.mxu0  ;;  %v18066_v35 = vadd.f32 %v17901_v31, %v7043_v29 }
 0x382   : > { %v13135_v42 = vpop.f32.mrf.mxu1 }
 0x383   : > { %v7046_v61 = vadd.f32 %v13135_v42, %v19181_v23  ;;  %v18069_v10 = vpop.f32.mrf.mxu0  ;;  %v18072_v40 = vadd.f32 %v17919_v8, %v7041_v33  ;;  %v19186_v8 = vld [vmem:[#allocation44_spill] sm:$0xff]  ;;  %v19188_v42 = vld [vmem:[#allocation61_spill] sm:$0xff] }
 0x384   : > { %13422 = vmatmul.mubr.bf16.gmra.mxu1 %v19182_v13  ;;  %v6965_v18 = vpop.f32.mrf.mxu1  ;;  %v6519_v54 = vadd.f32 %v19186_v8, %v19185_v58  ;;  %v19191_v58 = vld [vmem:[#allocation52_spill] sm:$0xff] }
 0x385   : > { %13425 = vmatprep.mubr.bf16.mxu1 %v19183_v36  ;;  %v7044_v31 = vadd.f32 %v6965_v18, %v19184_v7  ;;  %v18081_v62 = vpop.f32.mrf.mxu0  ;;  %v18084_v32 = vadd.f32 %v17933_v34, %v7046_v61  ;;  %v9853_v18 = vld [vmem:[#allocation2 + $0xc0] sm:$0xe]  ;;  %v9854_v7 = vld [vmem:[#allocation2 + $0xcc] sm:$0xe] }
 0x386   : > { %v13136_v26 = vpop.f32.mrf.mxu1 }
 0x387   : > { %v7047_v29 = vadd.f32 %v13136_v26, %v19187_v27  ;;  %v18089_v50 = vpop.f32.mrf.mxu0  ;;  %v18092_v6 = vadd.f32 %v17950_v17, %v7044_v31  ;;  %v10010_v31 = vrot.slane %v17743_v41, 5  ;;  %v12181_v27 = vrot.slane %v9853_v18, 9 }
 0x388   : > { %v6968_v30 = vpop.f32.mrf.mxu1  ;;  %v10007_v41 = vsel %vm14066_vm7, %v10005_v14, %v10006_v20  ;;  %v19194_v14 = vld [vmem:[#allocation66_spill] sm:$0xff] }
 0x389   : > { %v7045_v53 = vadd.f32 %v6968_v30, %v6519_v54  ;;  %v18095_v25 = vpop.f32.mrf.mxu0  ;;  %v18098_v34 = vadd.f32 %v17962_v28, %v7047_v29  ;;  %v19192_v54 = vld [vmem:[#allocation63_spill] sm:$0xff]  ;;  %v12182_v29 = vrot.slane %v9854_v7, 9  ;;  %v10012_v30 = vrot.slane %v10010_v31, 4 }
 0x38a   : > { %v13139_v33 = vpop.f32.mrf.mxu1 }
 0x38b   : > { %v7050_v23 = vadd.f32 %v13139_v33, %v19188_v42  ;;  %v18101_v61 = vpop.f32.mrf.mxu0  ;;  %v18104_v13 = vadd.f32 %v17980_v21, %v7045_v53  ;;  %v10013_v53 = vrot.slane %v17758_v43, 5  ;;  %v10011_v7 = vsel %vm14066_vm7, %v12182_v29, %v10010_v31 }
 0x38c   : > { %13426 = vmatmul.mubr.bf16.gmra.mxu1 %v12210_v57  ;;  %v6981_v17 = vpop.f32.mrf.mxu1  ;;  %v19190_v57 = vld [vmem:[#allocation64_spill] sm:$0xff] }
 0x38d   : > { %13429 = vmatprep.mubr.bf16.mxu1 %v12211_v16  ;;  %v7048_v28 = vadd.f32 %v6981_v17, %v17728_v15  ;;  %v18113_v36 = vpop.f32.mrf.mxu0  ;;  %v18117_v21 = vadd.f32 %v17995_v59, %v7050_v23  ;;  %v6535_v8 = vadd.f32 %v19191_v58, %v19190_v57  ;;  %v10004_v17 = vsel %vm14066_vm7, %v12181_v27, %v10003_v2  ;;  %v19195_v58 = vld [vmem:[#allocation67_spill] sm:$0xff] }
 0x38e   : > { %v13140_v26 = vpop.f32.mrf.mxu1  ;;  %v10014_v2 = vsel %vm14066_vm7, %v10012_v30, %v10013_v53 }
 0x38f   : > { %v7051_v12 = vadd.f32 %v13140_v26, %v19192_v54  ;;  %v13263_v11 = vpop.f32.mrf.mxu0  ;;  %v18124_v15 = vadd.f32 %v18018_v3, %v7048_v28  ;;  %v19193_v3 = vld [vmem:[#allocation65_spill] sm:$0xff]  ;;  %v12213_v26 = vcombine.low %v10004_v17, %v10007_v41  ;;  %v12214_v54 = vcombine.low %v10011_v7, %v10014_v2 }
 0x390   : > { %v6984_v16 = vpop.f32.mrf.mxu1  ;;  %v19197_v41 = vld [vmem:[#allocation69_spill] sm:$0xff] }
 0x391   : > { %v7049_v59 = vadd.f32 %v6984_v16, %v6535_v8  ;;  %v8539_v33 = vpop.f32.mrf.mxu0  ;;  %v18130_v42 = vadd.f32 %v18033_v60, %v7051_v12  ;;  %v19196_v12 = vld [vmem:[#allocation68_spill] sm:$0xff] }
 0x392   : > { %v13143_v23 = vpop.f32.mrf.mxu1 }
 0x393   : > { %v7054_v28 = vadd.f32 %v13143_v23, %v19193_v3  ;;  %v13264_v18 = vpop.f32.mrf.mxu0  ;;  %v18136_v51 = vadd.f32 %v18051_v45, %v7049_v59  ;;  %v19199_v3 = vmov 0  }
 0x394   : > { %13430 = vmatmul.mubr.bf16.gmra.mxu1 %v12212_v37  ;;  %v6997_v43 = vpop.f32.mrf.mxu1 }
 0x395   : > { %13433 = vmatprep.mubr.bf16.mxu1 %v12213_v26  ;;  %v7052_v60 = vadd.f32 %v6997_v43, %v19194_v14  ;;  %v18146_v20 = vpop.f32.mrf.mxu0  ;;  %v18149_v57 = vadd.f32 %v18057_v4, %v7054_v28  ;;  %v19200_v28 = vld [vmem:[#allocation71_spill] sm:$0xff] }
 0x396   : > { %v13144_v45 = vpop.f32.mrf.mxu1 }
 0x397   : > { %v7055_v8 = vadd.f32 %v13144_v45, %v19195_v58  ;;  %v18153_v56 = vadd.f32 %v18063_v63, %v7052_v60  ;;  %v19198_v63 = vld [vmem:[#allocation70_spill] sm:$0xff]  ;;  %v19201_v60 = vld [vmem:[#allocation72_spill] sm:$0xff] }
 0x398   : > { %v13267_v1 = vpop.f32.mrf.mxu0  ;;  %v7000_v37 = vpop.f32.mrf.mxu1 }
 0x399   : > { %v7053_v16 = vadd.f32 %v7000_v37, %v19196_v12  ;;  %v18159_v9 = vadd.f32 %v18069_v10, %v7055_v8 }
 0x39a   : > { %v18156_v31 = vpop.f32.mrf.mxu0 }
 0x39b   : > { %v13147_v27 = vpop.f32.mrf.mxu1  ;;  %v18163_v59 = vadd.f32 %v18081_v62, %v7053_v16 }
 0x39c   : > { %v7058_v4 = vadd.f32 %v13147_v27, %v19197_v41  ;;  %v13268_v29 = vpop.f32.mrf.mxu0  ;;  %13434 = vmatmul.mubr.bf16.gmra.mxu1 %v12214_v54 }
 0x39d   : > { %v7013_v30 = vpop.f32.mrf.mxu1  ;;  %10979 = vmatprep.mubr.bf16.mxu1 %v19199_v3 }
 0x39e   : > { %v7056_v53 = vadd.f32 %v7013_v30, %v19198_v63  ;;  %v18166_v23 = vpop.f32.mrf.mxu0  ;;  %v18169_v17 = vadd.f32 %v18089_v50, %v7058_v4 }
 0x39f   : > { %v13148_v10 = vpop.f32.mrf.mxu1 }
 0x3a0   : > { %v7059_v26 = vadd.f32 %v13148_v10, %v19200_v28  ;;  %v13271_v43 = vpop.f32.mrf.mxu0  ;;  %v18174_v14 = vadd.f32 %v18095_v25, %v7056_v53 }
 0x3a1   : > { %v7016_v62 = vpop.f32.mrf.mxu1 }
 0x3a2   : > { %v7057_v7 = vadd.f32 %v7016_v62, %v19201_v60  ;;  %v18177_v2 = vpop.f32.mrf.mxu0  ;;  %v18180_v45 = vadd.f32 %v18101_v61, %v7059_v26 }
 0x3a3   : > { %v13215_v58 = vpop.f32.mrf.mxu1 }
 0x3a4   : > { %v8170_v50 = vadd.f32 %v13215_v58, %v17999_v38  ;;  %v13272_v8 = vpop.f32.mrf.mxu0  ;;  %v18184_v37 = vadd.f32 %v18113_v36, %v7057_v7 }
 0x3a5   : > { %v8041_v54 = vpop.f32.mrf.mxu1 }
 0x3a6   : > { %v8168_v12 = vadd.f32 %v8041_v54, %v18003_v46  ;;  %v18187_v25 = vpop.f32.mrf.mxu0  ;;  %v18189_v16 = vadd.f32 %v13263_v11, %v8170_v50 }
 0x3a7   : > { %v13216_v27 = vpop.f32.mrf.mxu1 }
 0x3a8   : > { %v8171_v41 = vadd.f32 %v13216_v27, %v18007_v24  ;;  %v13275_v4 = vpop.f32.mrf.mxu0  ;;  %v18192_v61 = vadd.f32 %v8539_v33, %v8168_v12 }
 0x3a9   : > { %v8044_v30 = vpop.f32.mrf.mxu1 }
 0x3aa   : > { %v18195_v38 = vadd.f32 %v8044_v30, %v18011_v49  ;;  %v18197_v63 = vpop.f32.mrf.mxu0  ;;  %v18199_v36 = vadd.f32 %v13264_v18, %v8171_v41 }
 0x3ab   : > { %v13219_v53 = vpop.f32.mrf.mxu1 }
 0x3ac   : > { %v8174_v46 = vadd.f32 %v13219_v53, %v18015_v22  ;;  %v13276_v10 = vpop.f32.mrf.mxu0 }
 0x3ad   : > { %v8057_v11 = vpop.f32.mrf.mxu1 }
 0x3ae   : > { %v18203_v28 = vadd.f32 %v8057_v11, %v18021_v48  ;;  %v18205_v24 = vpop.f32.mrf.mxu0  ;;  %v18207_v33 = vadd.f32 %v13267_v1, %v8174_v46 }
 0x3af   : > { %19202 = vst [vmem:[#allocation47_spill] sm:$0xff] %v18205_v24  ;;  %v13220_v26 = vpop.f32.mrf.mxu1 }
 0x3b0   : > { %v8175_v49 = vadd.f32 %v13220_v26, %v18024_v47  ;;  %v13279_v62 = vpop.f32.mrf.mxu0 }
 0x3b1   : > { %v8060_v60 = vpop.f32.mrf.mxu1 }
 0x3b2   : > { %v18211_v18 = vadd.f32 %v8060_v60, %v18027_v39  ;;  %v18213_v7 = vpop.f32.mrf.mxu0  ;;  %v18215_v22 = vadd.f32 %v13268_v29, %v8175_v49 }
 0x3b3   : > { %19203 = vst [vmem:[#allocation49_spill] sm:$0xff] %v18213_v7  ;;  %v13223_v58 = vpop.f32.mrf.mxu1  ;;  %v18466_v7 = vld [vmem:[%s18842_s5 + $0x1f0] sm:$0xff] }
 0x3b4   : > { %v8178_v48 = vadd.f32 %v13223_v58, %v18030_v55  ;;  %v13280_v50 = vpop.f32.mrf.mxu0  ;;  %19223 = vst [vmem:[#allocation3_spill] sm:$0xff] %v18466_v7 }
 0x3b5   : > { %v8073_v54 = vpop.f32.mrf.mxu1 }
 0x3b6   : > { %v18219_v1 = vadd.f32 %v8073_v54, %v18036_v19  ;;  %v18221_v12 = vpop.f32.mrf.mxu0  ;;  %v18223_v47 = vadd.f32 %v13271_v43, %v8178_v48 }
 0x3b7   : > { %19204 = vst [vmem:[#allocation39_spill] sm:$0xff] %v18221_v12  ;;  %v13224_v27 = vpop.f32.mrf.mxu1 }
 0x3b8   : > { %v8179_v39 = vadd.f32 %v13224_v27, %v18039_v5  ;;  %v13283_v41 = vpop.f32.mrf.mxu0 }
 0x3b9   : > { %v8076_v30 = vpop.f32.mrf.mxu1 }
 0x3ba   : > { %v18227_v29 = vadd.f32 %v8076_v30, %v18042_v52  ;;  %v18229_v53 = vpop.f32.mrf.mxu0  ;;  %v18231_v55 = vadd.f32 %v13272_v8, %v8179_v39 }
 0x3bb   : > { %19205 = vst [vmem:[#allocation51_spill] sm:$0xff] %v18229_v53  ;;  %v13227_v46 = vpop.f32.mrf.mxu1 }
 0x3bc   : > { %v8182_v19 = vadd.f32 %v13227_v46, %v18054_v44  ;;  %v13284_v26 = vpop.f32.mrf.mxu0 }
 0x3bd   : > { %v8089_v11 = vpop.f32.mrf.mxu1 }
 0x3be   : > { %v18235_v43 = vadd.f32 %v8089_v11, %v18060_v0  ;;  %v18237_v49 = vadd.f32 %v13275_v4, %v8182_v19  ;;  %v18240_v52 = vpop.f32.mrf.mxu0 }
 0x3bf   : > { %v13228_v5 = vpop.f32.mrf.mxu1  ;;  %19206 = vst [vmem:[#allocation40_spill] sm:$0xff] %v18240_v52 }
 0x3c0   : > { %v8183_v60 = vadd.f32 %v13228_v5, %v18066_v35  ;;  %v13287_v39 = vpop.f32.mrf.mxu0 }
 0x3c1   : > { %v8092_v58 = vpop.f32.mrf.mxu1 }
 0x3c2   : > { %v18243_v48 = vadd.f32 %v8092_v58, %v18072_v40  ;;  %v18245_v8 = vadd.f32 %v13276_v10, %v8183_v60  ;;  %v18254_v19 = vpop.f32.mrf.mxu0 }
 0x3c3   : > { %v13231_v54 = vpop.f32.mrf.mxu1  ;;  %19208 = vst [vmem:[#allocation41_spill] sm:$0xff] %v18254_v19  ;;  %v10492_v19 = vld [vmem:[%s18842_s5 + $0x60] sm:$0xff] }
 0x3c4   : > { %v8186_v44 = vadd.f32 %v13231_v54, %v18084_v32  ;;  %v10536_v32 = vld [vmem:[%s18842_s5 + $0x1c0] sm:$0xff]  ;;  %v13288_v58 = vpop.f32.mrf.mxu0 }
 0x3c5   : > { %v8105_v27 = vpop.f32.mrf.mxu1 }
 0x3c6   : > { %v18249_v0 = vadd.f32 %v8105_v27, %v18092_v6  ;;  %v18251_v4 = vadd.f32 %v13279_v62, %v8186_v44  ;;  %v10540_v6 = vld [vmem:[%s18842_s5 + $0x1e0] sm:$0xff] }
 0x3c7   : > { %v13232_v30 = vpop.f32.mrf.mxu1  ;;  %v12280_v5 = vcombine.low %v10536_v32, %v10540_v6 }
 0x3c8   : > { %19207 = vst [vmem:[#allocation38_spill] sm:$0xff] %v18249_v0  ;;  %v8187_v35 = vadd.f32 %v13232_v30, %v18098_v34  ;;  %v10537_v34 = vld [vmem:[%s18842_s5 + $0x1c8] sm:$0xff]  ;;  %v18471_v0 = vld [vmem:[%s18842_s5 + $0x1d8] sm:$0xff] }
 0x3c9   : > { %v8108_v46 = vpop.f32.mrf.mxu1  ;;  %19224 = vst [vmem:[#allocation58_spill] sm:$0xff] %v18471_v0 }
 0x3ca   : > { %v18257_v40 = vadd.f32 %v8108_v46, %v18104_v13  ;;  %v18259_v10 = vadd.f32 %v13280_v50, %v8187_v35  ;;  %v12281_v13 = vcombine.high %v10536_v32, %v10540_v6  ;;  %v10541_v50 = vld [vmem:[%s18842_s5 + $0x1e8] sm:$0xff]  ;;  %v18280_v46 = vpop.f32.mrf.mxu0 }
 0x3cb   : > { %v13235_v11 = vpop.f32.mrf.mxu1  ;;  %v12282_v54 = vcombine.low %v10537_v34, %v10541_v50  ;;  %v12283_v44 = vcombine.high %v10537_v34, %v10541_v50  ;;  %19211 = vst [vmem:[#allocation59_spill] sm:$0xff] %v18280_v46  ;;  %v10501_v46 = vld [vmem:[%s18842_s5 + $0xa8] sm:$0xff] }
 0x3cc   : > { %19209 = vst [vmem:[#allocation53_spill] sm:$0xff] %v18257_v40  ;;  %v8190_v62 = vadd.f32 %v13235_v11, %v18117_v21  ;;  %10906 = vmatprep.subr.bf16.mxu0 %v12281_v13  ;;  %v13291_v13 = vpop.f32.mrf.mxu0 }
 0x3cd   : > { %v8121_v60 = vpop.f32.mrf.mxu1  ;;  %10947 = vmatprep.subr.bf16.mxu1 %v12283_v44  ;;  %10907 = vmatpush1.bf16.msra.mxu0 %v12280_v5 }
 0x3ce   : > { %v18275_v27 = vadd.f32 %v8121_v60, %v18124_v15  ;;  %v18277_v30 = vadd.f32 %v13283_v41, %v8190_v62  ;;  %10948 = vmatpush1.bf16.msra.mxu1 %v12282_v54  ;;  %v10528_v15 = vld [vmem:[%s18842_s5 + $0x180] sm:$0xff] }
 0x3cf   : > { %v13236_v35 = vpop.f32.mrf.mxu1  ;;  %v10532_v41 = vld [vmem:[%s18842_s5 + $0x1a0] sm:$0xff] }
 0x3d0   : > { %19210 = vst [vmem:[#allocation55_spill] sm:$0xff] %v18275_v27  ;;  %v8191_v21 = vadd.f32 %v13236_v35, %v18130_v42  ;;  %v10529_v42 = vld [vmem:[%s18842_s5 + $0x188] sm:$0xff]  ;;  %v12272_v5 = vcombine.low %v10528_v15, %v10532_v41  ;;  %v10484_v27 = vld [vmem:[%s18842_s5 + $0x20] sm:$0xff] }
 0x3d1   : > { %v8124_v11 = vpop.f32.mrf.mxu1 }
 0x3d2   : > { %v18283_v32 = vadd.f32 %v8124_v11, %v18136_v51  ;;  %v18285_v6 = vadd.f32 %v13284_v26, %v8191_v21  ;;  %v12273_v51 = vcombine.high %v10528_v15, %v10532_v41  ;;  %v10533_v26 = vld [vmem:[%s18842_s5 + $0x1a8] sm:$0xff]  ;;  %v18306_v11 = vpop.f32.mrf.mxu0 }
 0x3d3   : > { %v13239_v34 = vpop.f32.mrf.mxu1  ;;  %v12274_v60 = vcombine.low %v10529_v42, %v10533_v26  ;;  %v12275_v54 = vcombine.high %v10529_v42, %v10533_v26  ;;  %19214 = vst [vmem:[#allocation60_spill] sm:$0xff] %v18306_v11  ;;  %v10496_v11 = vld [vmem:[%s18842_s5 + $0x80] sm:$0xff] }
 0x3d4   : > { %19212 = vst [vmem:[#allocation56_spill] sm:$0xff] %v18283_v32  ;;  %v8194_v62 = vadd.f32 %v13239_v34, %v18149_v57  ;;  %10908 = vmatprep.subr.bf16.mxu0 %v12273_v51 }
 0x3d5   : > { %v8137_v50 = vpop.f32.mrf.mxu1  ;;  %10949 = vmatprep.subr.bf16.mxu1 %v12275_v54  ;;  %10909 = vmatpush1.bf16.msra.mxu0 %v12272_v5 }
 0x3d6   : > { %v18301_v44 = vadd.f32 %v8137_v50, %v18153_v56  ;;  %v18303_v35 = vadd.f32 %v13287_v39, %v8194_v62  ;;  %10950 = vmatpush1.bf16.msra.mxu1 %v12274_v60  ;;  %v10520_v56 = vld [vmem:[%s18842_s5 + $0x140] sm:$0xff] }
 0x3d7   : > { %v13240_v21 = vpop.f32.mrf.mxu1  ;;  %v10524_v39 = vld [vmem:[%s18842_s5 + $0x160] sm:$0xff] }
 0x3d8   : > { %19213 = vst [vmem:[#allocation42_spill] sm:$0xff] %v18301_v44  ;;  %v8195_v57 = vadd.f32 %v13240_v21, %v18159_v9  ;;  %v10521_v9 = vld [vmem:[%s18842_s5 + $0x148] sm:$0xff]  ;;  %v12264_v42 = vcombine.low %v10520_v56, %v10524_v39  ;;  %v12265_v62 = vcombine.high %v10520_v56, %v10524_v39 }
 0x3d9   : > { %v8140_v34 = vpop.f32.mrf.mxu1 }
 0x3da   : > { %v18309_v15 = vadd.f32 %v8140_v34, %v18163_v59  ;;  %v18311_v41 = vadd.f32 %v13288_v58, %v8195_v57  ;;  %v10525_v59 = vld [vmem:[%s18842_s5 + $0x168] sm:$0xff]  ;;  %v13292_v58 = vpop.f32.mrf.mxu0  ;;  %10910 = vmatprep.subr.bf16.mxu0 %v12265_v62 }
 0x3db   : > { %v12266_v51 = vcombine.low %v10521_v9, %v10525_v59  ;;  %v12267_v26 = vcombine.high %v10521_v9, %v10525_v59  ;;  %10911 = vmatpush1.bf16.msra.mxu0 %v12264_v42  ;;  %v10516_v9 = vld [vmem:[%s18842_s5 + $0x120] sm:$0xff]  ;;  %v10517_v59 = vld [vmem:[%s18842_s5 + $0x128] sm:$0xff] }
 0x3dc   : > { %19215 = vst [vmem:[#allocation43_spill] sm:$0xff] %v18309_v15  ;;  %v13243_v5 = vpop.f32.mrf.mxu1  ;;  %v18331_v57 = vpop.f32.mrf.mxu0  ;;  %v10488_v15 = vld [vmem:[%s18842_s5 + $0x40] sm:$0xff] }
 0x3dd   : > { %v8198_v50 = vadd.f32 %v13243_v5, %v18169_v17  ;;  %10951 = vmatprep.subr.bf16.mxu1 %v12267_v26  ;;  %19217 = vst [vmem:[#allocation46_spill] sm:$0xff] %v18331_v57  ;;  %v10512_v17 = vld [vmem:[%s18842_s5 + $0x100] sm:$0xff] }
 0x3de   : > { %v8153_v60 = vpop.f32.mrf.mxu1  ;;  %10952 = vmatpush1.bf16.msra.mxu1 %v12266_v51  ;;  %v12256_v62 = vcombine.low %v10512_v17, %v10516_v9  ;;  %v18351_v5 = vpop.f32.mrf.mxu0 }
 0x3df   : > { %v18327_v54 = vadd.f32 %v8153_v60, %v18174_v14  ;;  %v18329_v21 = vadd.f32 %v13291_v13, %v8198_v50  ;;  %v10513_v14 = vld [vmem:[%s18842_s5 + $0x108] sm:$0xff] }
 0x3e0   : > { %v13244_v34 = vpop.f32.mrf.mxu1  ;;  %v12258_v26 = vcombine.low %v10513_v14, %v10517_v59  ;;  %v12259_v50 = vcombine.high %v10513_v14, %v10517_v59 }
 0x3e1   : > { %19216 = vst [vmem:[#allocation45_spill] sm:$0xff] %v18327_v54  ;;  %v8199_v56 = vadd.f32 %v13244_v34, %v18180_v45  ;;  %v12257_v45 = vcombine.high %v10512_v17, %v10516_v9  ;;  %v10508_v9 = vld [vmem:[%s18842_s5 + $0xe0] sm:$0xff] }
 0x3e2   : > { %v8156_v39 = vpop.f32.mrf.mxu1  ;;  %10953 = vmatprep.subr.bf16.mxu1 %v12259_v50 }
 0x3e3   : > { %v18344_v13 = vadd.f32 %v8156_v39, %v18184_v37  ;;  %v18346_v42 = vadd.f32 %v13292_v58, %v8199_v56  ;;  %10912 = vmatprep.subr.bf16.mxu0 %v12257_v45  ;;  %10954 = vmatpush1.bf16.msra.mxu1 %v12258_v26  ;;  %v18359_v58 = vpop.f32.mrf.mxu0 }
 0x3e4   : > { %v13311_v51 = vpop.f32.mrf.mxu1  ;;  %10913 = vmatpush1.bf16.msra.mxu0 %v12256_v62 }
 0x3e5   : > { %19218 = vst [vmem:[#allocation48_spill] sm:$0xff] %v18344_v13  ;;  %v18354_v60 = vadd.f32 %v13311_v51, %v18189_v16  ;;  %v10504_v16 = vld [vmem:[%s18842_s5 + $0xc0] sm:$0xff]  ;;  %v18378_v45 = vpop.f32.mrf.mxu0 }
 0x3e6   : > { %v8926_v34 = vpop.f32.mrf.mxu1  ;;  %v12248_v14 = vcombine.low %v10504_v16, %v10508_v9  ;;  %v12249_v62 = vcombine.high %v10504_v16, %v10508_v9 }
 0x3e7   : > { %v18357_v37 = vadd.f32 %v8926_v34, %v18192_v61  ;;  %v10505_v61 = vld [vmem:[%s18842_s5 + $0xc8] sm:$0xff] }
 0x3e8   : > { %v13312_v56 = vpop.f32.mrf.mxu1  ;;  %10914 = vmatprep.subr.bf16.mxu0 %v12249_v62 }
 0x3e9   : > { %v18362_v39 = vadd.f32 %v13312_v56, %v18199_v36  ;;  %v10509_v36 = vld [vmem:[%s18842_s5 + $0xe8] sm:$0xff]  ;;  %10915 = vmatpush1.bf16.msra.mxu0 %v12248_v14  ;;  %v18385_v56 = vpop.f32.mrf.mxu0 }
 0x3ea   : > { %v18364_v17 = vpop.f32.mrf.mxu1  ;;  %v12250_v51 = vcombine.low %v10505_v61, %v10509_v36  ;;  %v12251_v26 = vcombine.high %v10505_v61, %v10509_v36 }
 0x3eb   : > { %v18392_v57 = vpop.f32.mrf.mxu0 }
 0x3ec   : > { %v13315_v59 = vpop.f32.mrf.mxu1  ;;  %10955 = vmatprep.subr.bf16.mxu1 %v12251_v26 }
 0x3ed   : > { %v18381_v50 = vadd.f32 %v13315_v59, %v18207_v33  ;;  %10956 = vmatpush1.bf16.msra.mxu1 %v12250_v51  ;;  %v18399_v36 = vpop.f32.mrf.mxu0 }
 0x3ee   : > { %v18383_v34 = vpop.f32.mrf.mxu1 }
 0x3f0   : > { %v13316_v16 = vpop.f32.mrf.mxu1 }
 0x3f1   : > { %v18388_v9 = vadd.f32 %v13316_v16, %v18215_v22  ;;  %v18406_v22 = vpop.f32.mrf.mxu0 }
 0x3f2   : > { %v18390_v3 = vpop.f32.mrf.mxu1 }
 0x3f4   : > { %v13319_v61 = vpop.f32.mrf.mxu1 }
 0x3f5   : > { %v18395_v33 = vadd.f32 %v13319_v61, %v18223_v47  ;;  %v18413_v47 = vpop.f32.mrf.mxu0 }
 0x3f6   : > { %v18397_v62 = vpop.f32.mrf.mxu1 }
 0x3f7   : > { %v18456_v12 = vpop.f32.mrf.mxu0 }
 0x3f8   : > { %v13320_v14 = vpop.f32.mrf.mxu1 }
 0x3f9   : > { %v18402_v59 = vadd.f32 %v13320_v14, %v18231_v55  ;;  %v10500_v55 = vld [vmem:[%s18842_s5 + $0xa0] sm:$0xff]  ;;  %v10497_v14 = vld [vmem:[%s18842_s5 + $0x88] sm:$0xff] }
 0x3fa   : > { %v18404_v51 = vpop.f32.mrf.mxu1  ;;  %v12241_v54 = vcombine.high %v10496_v11, %v10500_v55  ;;  %v12242_v52 = vcombine.low %v10497_v14, %v10501_v46  ;;  %v12243_v32 = vcombine.high %v10497_v14, %v10501_v46  ;;  %v10481_v46 = vld [vmem:[%s18842_s5 + $0x8] sm:$0xff] }
 0x3fb   : > { %v10485_v14 = vld [vmem:[%s18842_s5 + $0x28] sm:$0xff] }
 0x3fc   : > { %v13323_v26 = vpop.f32.mrf.mxu1  ;;  %10916 = vmatprep.subr.bf16.mxu0 %v12241_v54  ;;  %10957 = vmatprep.subr.bf16.mxu1 %v12243_v32  ;;  %v18461_v54 = vld [vmem:[%s18842_s5 + $0x1d0] sm:$0xff] }
 0x3fd   : > { %v18409_v16 = vadd.f32 %v13323_v26, %v18237_v49  ;;  %v12240_v26 = vcombine.low %v10496_v11, %v10500_v55  ;;  %v10489_v11 = vld [vmem:[%s18842_s5 + $0x48] sm:$0xff]  ;;  %v10480_v55 = vld [vmem:[%s18842_s5] sm:$0xff]  ;;  %19222 = vst [vmem:[#allocation12_spill] sm:$0xff] %v18461_v54  ;;  %10958 = vmatpush1.bf16.msra.mxu1 %v12242_v52 }
 0x3fe   : > { %v18411_v13 = vpop.f32.mrf.mxu1  ;;  %v12225_v32 = vcombine.high %v10480_v55, %v10484_v27 }
 0x3ff   : > { %19219 = vst [vmem:[#allocation50_spill] sm:$0xff] %v18409_v16  ;;  %10917 = vmatpush1.bf16.msra.mxu0 %v12240_v26 }
 0x400   : > { %v13324_v61 = vpop.f32.mrf.mxu1 }
 0x401   : > { %v18425_v49 = vadd.f32 %v13324_v61, %v18245_v8  ;;  %v12233_v8 = vcombine.high %v10488_v15, %v10492_v19  ;;  %v10493_v61 = vld [vmem:[%s18842_s5 + $0x68] sm:$0xff] }
 0x402   : > { %v18436_v44 = vpop.f32.mrf.mxu1  ;;  %v12235_v53 = vcombine.high %v10489_v11, %v10493_v61 }
 0x403   : > { %19220 = vst [vmem:[#allocation54_spill] sm:$0xff] %v18425_v49  ;;  %19221 = vst [vmem:[#allocation57_spill] sm:$0xff] %v18436_v44  ;;  %v12232_v49 = vcombine.low %v10488_v15, %v10492_v19  ;;  %10918 = vmatprep.subr.bf16.mxu0 %v12233_v8  ;;  %v12234_v19 = vcombine.low %v10489_v11, %v10493_v61  ;;  %v18479_v15 = vld [vmem:[%s18842_s5 + $0x1f8] sm:$0xff]  ;;  %v12227_v44 = vcombine.high %v10481_v46, %v10485_v14 }
 0x404   : > { %v13327_v40 = vpop.f32.mrf.mxu1  ;;  %19226 = vst [vmem:[#allocation4_spill] sm:$0xff] %v18479_v15  ;;  %10959 = vmatprep.subr.bf16.mxu1 %v12235_v53  ;;  %v12224_v8 = vcombine.low %v10480_v55, %v10484_v27  ;;  %v12226_v61 = vcombine.low %v10481_v46, %v10485_v14  ;;  %v12285_v53 = vcombine.high %v18461_v54, %v18466_v7 }
 0x405   : > { %v18474_v16 = vadd.f32 %v13327_v40, %v18251_v4  ;;  %v18487_v40 = vpop.f32.mrf.mxu0  ;;  %10919 = vmatpush1.bf16.msra.mxu0 %v12232_v49  ;;  %10960 = vmatpush1.bf16.msra.mxu1 %v12234_v19  ;;  %v12287_v4 = vcombine.high %v18471_v0, %v18479_v15 }
 0x406   : > { %v18481_v26 = vpop.f32.mrf.mxu1  ;;  %10920 = vmatprep.subr.bf16.mxu0 %v12225_v32  ;;  %10961 = vmatprep.subr.bf16.mxu1 %v12227_v44 }
 0x407   : > { %19225 = vst [vmem:[#allocation44_spill] sm:$0xff] %v18474_v16  ;;  %19227 = vst [vmem:[#allocation61_spill] sm:$0xff] %v18481_v26  ;;  %v18498_v24 = vpop.f32.mrf.mxu0 }
 0x408   : > { %v13328_v52 = vpop.f32.mrf.mxu1 }
 0x409   : > { %v18490_v11 = vadd.f32 %v13328_v52, %v18259_v10  ;;  %10921 = vmatpush1.bf16.msra.mxu0 %v12224_v8  ;;  %10962 = vmatpush1.bf16.msra.mxu1 %v12226_v61  ;;  %v18505_v49 = vpop.f32.mrf.mxu0 }
 0x40a   : > { %v18494_v16 = vpop.f32.mrf.mxu1  ;;  %10988 = vmatprep.subr.bf16.mxu0 %v12285_v53  ;;  %11029 = vmatprep.subr.bf16.mxu1 %v12287_v4 }
 0x40b   : > { %v18512_v14 = vpop.f32.mrf.mxu0 }
 0x40c   : > { %v13331_v26 = vpop.f32.mrf.mxu1 }
 0x40d   : > { %v18501_v27 = vadd.f32 %v13331_v26, %v18277_v30  ;;  %v18519_v26 = vpop.f32.mrf.mxu0 }
 0x40e   : > { %v18503_v10 = vpop.f32.mrf.mxu1 }
 0x410   : > { %v13332_v55 = vpop.f32.mrf.mxu1 }
 0x411   : > { %v18508_v44 = vadd.f32 %v13332_v55, %v18285_v6  ;;  %v18526_v6 = vpop.f32.mrf.mxu0 }
 0x412   : > { %v18510_v46 = vpop.f32.mrf.mxu1 }
 0x414   : > { %v13335_v19 = vpop.f32.mrf.mxu1 }
 0x415   : > { %v18515_v32 = vadd.f32 %v13335_v19, %v18303_v35  ;;  %v18533_v35 = vpop.f32.mrf.mxu0 }
 0x416   : > { %v18517_v30 = vpop.f32.mrf.mxu1 }
 0x418   : > { %v13336_v52 = vpop.f32.mrf.mxu1 }
 0x419   : > { %v18522_v4 = vadd.f32 %v13336_v52, %v18311_v41  ;;  %v8667_v41 = vadd.f32 %v18146_v20, %v18195_v38  ;;  %v18542_v52 = vpop.f32.mrf.mxu0  ;;  %v9810_v20 = vadd.f32 %v18378_v45, %v18362_v39  ;;  %v8671_v39 = vadd.f32 %v18166_v23, %v18211_v18  ;;  %v19232_v18 = vld [vmem:[#allocation7_spill] sm:$0xff] }
 0x41a   : > { %v18524_v8 = vpop.f32.mrf.mxu1 }
 0x41b   : > { %v9054_v54 = vadd.f32 %v18364_v17, %v8667_v41  ;;  %v18553_v38 = vpop.f32.mrf.mxu0  ;;  %v18558_v17 = vld [vmem:[%s18841_s4] ss:$0 sm:$0xff] }
 0x41c   : > { %v13339_v61 = vpop.f32.mrf.mxu1 }
 0x41d   : > { %v18529_v53 = vadd.f32 %v13339_v61, %v18329_v21  ;;  %v9809_v21 = vadd.f32 %v18351_v5, %v18354_v60  ;;  %v9807_v61 = vadd.f32 %v18359_v58, %v18357_v37  ;;  %v18566_v45 = vpop.f32.mrf.mxu0 }
 0x41e   : > { %v18531_v55 = vpop.f32.mrf.mxu1 }
 0x41f   : > { %19228 = vst [vmem:[#allocation62_spill] sm:$0xff] %v18529_v53 }
 0x420   : > { %v13340_v19 = vpop.f32.mrf.mxu1 }
 0x421   : > { %v18536_v15 = vadd.f32 %v13340_v19, %v18346_v42  ;;  %v8670_v42 = vadd.f32 %v18156_v31, %v18203_v28  ;;  %v9808_v31 = vadd.f32 %v18385_v56, %v9054_v54  ;;  %v9058_v56 = vadd.f32 %v18390_v3, %v8671_v39 }
 0x422   : > { %v18538_v0 = vpop.f32.mrf.mxu1  ;;  %v8674_v54 = vadd.f32 %v18177_v2, %v18219_v1  ;;  %v9814_v3 = vadd.f32 %v18406_v22, %v18388_v9  ;;  %v19234_v2 = vld [vmem:[#allocation14_spill] sm:$0xff] }
 0x423   : > { %19229 = vst [vmem:[#allocation64_spill] sm:$0xff] %v18536_v15  ;;  %19230 = vst [vmem:[#allocation52_spill] sm:$0xff] %v18538_v0  ;;  %v9057_v60 = vadd.f32 %v18383_v34, %v8670_v42  ;;  %v9813_v42 = vadd.f32 %v18392_v57, %v18381_v50 }
 0x424   : > { %v13407_v7 = vpop.f32.mrf.mxu1 }
 0x425   : > { %v10307_v19 = vadd.f32 %v13407_v7, %v9809_v21  ;;  %v19231_v21 = vld [vmem:[#allocation21_spill] sm:$0xff] }
 0x426   : > { %v10178_v53 = vpop.f32.mrf.mxu1 }
 0x427   : > { %v10305_v15 = vadd.f32 %v10178_v53, %v9807_v61  ;;  %v10346_v7 = vadd.f32 %v18558_v17, %v10307_v19 }
 0x428   : > { %v13408_v5 = vpop.f32.mrf.mxu1 }
 0x429   : > { %v10344_v37 = vadd.f32 %v18558_v17, %v10305_v15  ;;  %v10308_v58 = vadd.f32 %v13408_v5, %v9810_v20  ;;  %v9811_v15 = vadd.f32 %v18399_v36, %v9057_v60  ;;  %v10378_v19 = vadd.f32 %v10346_v7, %v19232_v18  ;;  %v19233_v20 = vld [vmem:[#allocation27_spill] sm:$0xff] }
 0x42a   : > { %v10181_v28 = vpop.f32.mrf.mxu1  ;;  %v9812_v7 = vadd.f32 %v18413_v47, %v9058_v56 }
 0x42b   : > { %v10306_v53 = vadd.f32 %v10181_v28, %v9808_v31  ;;  %v10376_v61 = vadd.f32 %v10344_v37, %v19231_v21  ;;  %v10347_v0 = vadd.f32 %v18558_v17, %v10308_v58  ;;  %v9061_v58 = vadd.f32 %v18397_v62, %v8674_v54  ;;  %v18580_v31 = vpop.f32.mrf.mxu0 }
 0x42c   : > { %v13411_v41 = vpop.f32.mrf.mxu1  ;;  %v8675_v62 = vadd.f32 %v18187_v25, %v18227_v29  ;;  %v10410_v21 = vmax.f32 %v10378_v19, 0.0  ;;  %v9817_v29 = vadd.f32 %v18456_v12, %v18395_v33  ;;  %v8678_v19 = vadd.f32 %v18197_v63, %v18235_v43  ;;  %v19238_v43 = vld [vmem:[#allocation29_spill] sm:$0xff] }
 0x42d   : > { %v10345_v34 = vadd.f32 %v18558_v17, %v10306_v53  ;;  %v10311_v28 = vadd.f32 %v13411_v41, %v9813_v42  ;;  %v10408_v60 = vmax.f32 %v10376_v61, 0.0  ;;  %v10379_v1 = vadd.f32 %v10347_v0, %v19234_v2  ;;  %v19235_v41 = vld [vmem:[#allocation28_spill] sm:$0xff]  ;;  %v18590_v54 = vpop.f32.mrf.mxu0 }
 0x42e   : > { %v10194_v23 = vpop.f32.mrf.mxu1  ;;  %v9062_v61 = vadd.f32 %v18404_v51, %v8675_v62  ;;  %v9815_v47 = vadd.f32 %v18487_v40, %v9061_v58  ;;  %v19236_v51 = vld [vmem:[#allocation23_spill] sm:$0xff]  ;;  %v9065_v12 = vadd.f32 %v18411_v13, %v8678_v19 }
 0x42f   : > { %v10377_v5 = vadd.f32 %v10345_v34, %v19233_v20  ;;  %v10309_v37 = vadd.f32 %v10194_v23, %v9811_v15  ;;  %v10350_v9 = vadd.f32 %v18558_v17, %v10311_v28  ;;  %v10411_v42 = vmax.f32 %v10379_v1, 0.0  ;;  %v18601_v28 = vpop.f32.mrf.mxu0 }
 0x430   : > { %v13412_v36 = vpop.f32.mrf.mxu1  ;;  %v9816_v63 = vadd.f32 %v18505_v49, %v9062_v61  ;;  %v9819_v61 = vadd.f32 %v18519_v26, %v9065_v12  ;;  %v19247_v26 = vld [vmem:[#allocation15_spill] sm:$0xff] }
 0x431   : > { %v10409_v53 = vmax.f32 %v10377_v5, 0.0  ;;  %v10348_v57 = vadd.f32 %v18558_v17, %v10309_v37  ;;  %v10312_v50 = vadd.f32 %v13412_v36, %v9814_v3  ;;  %v10382_v3 = vadd.f32 %v10350_v9, %v19236_v51  ;;  %v19237_v36 = vld [vmem:[#allocation5_spill] sm:$0xff]  ;;  %v19246_v51 = vld [vmem:[#allocation54_spill] sm:$0xff] }
 0x432   : > { %v10197_v39 = vpop.f32.mrf.mxu1 }
 0x433   : > { %v10440_v34 = vadd.f32 %v10409_v53, %v10408_v60  ;;  %v10380_v15 = vadd.f32 %v10348_v57, %v19235_v41  ;;  %v10310_v22 = vadd.f32 %v10197_v39, %v9812_v7  ;;  %v10351_v56 = vadd.f32 %v18558_v17, %v10312_v50  ;;  %v19239_v39 = vld [vmem:[#allocation47_spill] sm:$0xff]  ;;  %v19240_v41 = vld [vmem:[#allocation9_spill] sm:$0xff] }
 0x434   : > { %v13415_v0 = vpop.f32.mrf.mxu1  ;;  %v9818_v60 = vadd.f32 %v18498_v24, %v18402_v59  ;;  %v8679_v62 = vadd.f32 %v19239_v39, %v18243_v48  ;;  %v10414_v24 = vmax.f32 %v10382_v3, 0.0  ;;  %v9822_v3 = vadd.f32 %v18526_v6, %v19246_v51  ;;  %v19250_v39 = vld [vmem:[#allocation53_spill] sm:$0xff] }
 0x435   : > { %v10441_v23 = vadd.f32 %v10440_v34, %v10410_v21  ;;  %v10349_v25 = vadd.f32 %v18558_v17, %v10310_v22  ;;  %v10412_v20 = vmax.f32 %v10380_v15, 0.0  ;;  %v10315_v58 = vadd.f32 %v13415_v0, %v9817_v29  ;;  %v18613_v34 = vpop.f32.mrf.mxu0  ;;  %v19241_v22 = vld [vmem:[#allocation57_spill] sm:$0xff]  ;;  %v19243_v29 = vld [vmem:[#allocation38_spill] sm:$0xff] }
 0x436   : > { %v10210_v18 = vpop.f32.mrf.mxu1  ;;  %v10383_v53 = vadd.f32 %v10351_v56, %v19238_v43  ;;  %v9066_v49 = vadd.f32 %v19241_v22, %v8679_v62  ;;  %v19251_v62 = vld [vmem:[#allocation39_spill] sm:$0xff] }
 0x437   : > { %v10442_v5 = vadd.f32 %v10441_v23, %v10411_v42  ;;  %v10313_v37 = vadd.f32 %v10210_v18, %v9815_v47  ;;  %v10381_v40 = vadd.f32 %v10349_v25, %v19237_v36  ;;  %v10354_v13 = vadd.f32 %v18558_v17, %v10315_v58  ;;  %v19242_v47 = vld [vmem:[#allocation50_spill] sm:$0xff]  ;;  %v19244_v18 = vld [vmem:[#allocation49_spill] sm:$0xff]  ;;  %v18628_v36 = vpop.f32.mrf.mxu0 }
 0x438   : > { %v13416_v2 = vpop.f32.mrf.mxu1  ;;  %v10415_v42 = vmax.f32 %v10383_v53, 0.0  ;;  %v9821_v56 = vadd.f32 %v18512_v14, %v19242_v47  ;;  %v8682_v19 = vadd.f32 %v19244_v18, %v19243_v29  ;;  %v9820_v43 = vadd.f32 %v18533_v35, %v9066_v49  ;;  %v19253_v47 = vld [vmem:[#allocation44_spill] sm:$0xff]  ;;  %v19254_v29 = vld [vmem:[#allocation55_spill] sm:$0xff] }
 0x439   : > { %v10443_v33 = vadd.f32 %v10442_v5, %v10412_v20  ;;  %v10352_v1 = vadd.f32 %v18558_v17, %v10313_v37  ;;  %v10413_v57 = vmax.f32 %v10381_v40, 0.0  ;;  %v10316_v50 = vadd.f32 %v13416_v2, %v9818_v60  ;;  %v19245_v20 = vld [vmem:[#allocation20_spill] sm:$0xff]  ;;  %v19255_v18 = vld [vmem:[#allocation51_spill] sm:$0xff] }
 0x43a   : > { %v10213_v7 = vpop.f32.mrf.mxu1  ;;  %v10386_v40 = vadd.f32 %v10354_v13, %v19247_v26 }
 0x43b   : > { %v10314_v21 = vadd.f32 %v10213_v7, %v9816_v63  ;;  %v10444_v59 = vadd.f32 %v10443_v33, %v10413_v57  ;;  %v10384_v15 = vadd.f32 %v10352_v1, %v19240_v41  ;;  %v10355_v48 = vadd.f32 %v18558_v17, %v10316_v50  ;;  %v19248_v33 = vld [vmem:[#allocation61_spill] sm:$0xff]  ;;  %v19249_v57 = vld [vmem:[#allocation6_spill] sm:$0xff] }
 0x43c   : > { %v13419_v9 = vpop.f32.mrf.mxu1  ;;  %v9069_v14 = vadd.f32 %v19248_v33, %v8682_v19  ;;  %v10418_v13 = vmax.f32 %v10386_v40, 0.0  ;;  %v8686_v19 = vadd.f32 %v19255_v18, %v19254_v29 }
 0x43d   : > { %v10353_v0 = vadd.f32 %v18558_v17, %v10314_v21  ;;  %v10445_v23 = vadd.f32 %v10444_v59, %v10414_v24  ;;  %v10416_v58 = vmax.f32 %v10384_v15, 0.0  ;;  %v10319_v2 = vadd.f32 %v13419_v9, %v9821_v56  ;;  %v18637_v59 = vpop.f32.mrf.mxu0  ;;  %v19252_v9 = vld [vmem:[#allocation22_spill] sm:$0xff] }
 0x43e   : > { %v10226_v25 = vpop.f32.mrf.mxu1  ;;  %v10387_v50 = vadd.f32 %v10355_v48, %v19249_v57  ;;  %v8683_v21 = vadd.f32 %v19251_v62, %v19250_v39  ;;  %v9825_v56 = vadd.f32 %v18542_v52, %v19253_v47 }
 0x43f   : > { %v10385_v5 = vadd.f32 %v10353_v0, %v19245_v20  ;;  %v10317_v37 = vadd.f32 %v10226_v25, %v9819_v61  ;;  %v10446_v60 = vadd.f32 %v10445_v23, %v10415_v42  ;;  %v10358_v15 = vadd.f32 %v18558_v17, %v10319_v2  ;;  %v19256_v20 = vld [vmem:[#allocation8_spill] sm:$0xff]  ;;  %v9776_v51 = vpop.f32.mrf.mxu0 }
 0x440   : > { %v13420_v12 = vpop.f32.mrf.mxu1  ;;  %v9070_v35 = vadd.f32 %v18494_v16, %v8683_v21  ;;  %v9823_v61 = vadd.f32 %v18553_v38, %v9069_v14  ;;  %v10419_v42 = vmax.f32 %v10387_v50, 0.0  ;;  %v9826_v16 = vadd.f32 %v18566_v45, %v18490_v11  ;;  %v19259_v11 = vld [vmem:[#allocation56_spill] sm:$0xff] }
 0x441   : > { %v10417_v1 = vmax.f32 %v10385_v5, 0.0  ;;  %v10356_v63 = vadd.f32 %v18558_v17, %v10317_v37  ;;  %v10447_v53 = vadd.f32 %v10446_v60, %v10416_v58  ;;  %v10320_v7 = vadd.f32 %v13420_v12, %v9822_v3  ;;  %v19257_v3 = vld [vmem:[#allocation13_spill] sm:$0xff]  ;;  %v19260_v45 = vld [vmem:[#allocation40_spill] sm:$0xff] }
 0x442   : > { %v10229_v6 = vpop.f32.mrf.mxu1  ;;  %v10390_v38 = vadd.f32 %v10358_v15, %v19257_v3  ;;  %v9073_v2 = vadd.f32 %v18503_v10, %v8686_v19  ;;  %v9824_v33 = vadd.f32 %v18580_v31, %v9070_v35  ;;  %v8687_v57 = vadd.f32 %v19260_v45, %v19259_v11  ;;  %v19261_v10 = vld [vmem:[#allocation24_spill] sm:$0xff] }
 0x443   : > { %v10318_v24 = vadd.f32 %v10229_v6, %v9820_v43  ;;  %v10448_v41 = vadd.f32 %v10447_v53, %v10417_v1  ;;  %v10388_v22 = vadd.f32 %v10356_v63, %v19252_v9  ;;  %v10359_v48 = vadd.f32 %v18558_v17, %v10320_v7  ;;  %v19258_v1 = vld [vmem:[#allocation11_spill] sm:$0xff]  ;;  %v13384_v7 = vpop.f32.mrf.mxu0 }
 0x444   : > { %v13423_v0 = vpop.f32.mrf.mxu1  ;;  %v10422_v6 = vmax.f32 %v10390_v38, 0.0  ;;  %v19266_v38 = vld [vmem:[#allocation10_spill] sm:$0xff] }
 0x445   : > { %v10357_v49 = vadd.f32 %v18558_v17, %v10318_v24  ;;  %v10449_v23 = vadd.f32 %v10448_v41, %v10418_v13  ;;  %v10420_v26 = vmax.f32 %v10388_v22, 0.0  ;;  %v10323_v58 = vadd.f32 %v13423_v0, %v9825_v56  ;;  %v9779_v56 = vpop.f32.mrf.mxu0 }
 0x446   : > { %v10242_v25 = vpop.f32.mrf.mxu1  ;;  %v10391_v63 = vadd.f32 %v10359_v48, %v19258_v1  ;;  %v9074_v13 = vadd.f32 %v18510_v46, %v8687_v57  ;;  %v9827_v41 = vadd.f32 %v18601_v28, %v9073_v2  ;;  %v9829_v0 = vadd.f32 %v18590_v54, %v18501_v27 }
 0x447   : > { %v10389_v5 = vadd.f32 %v10357_v49, %v19256_v20  ;;  %v10321_v37 = vadd.f32 %v10242_v25, %v9823_v61  ;;  %v10450_v40 = vadd.f32 %v10449_v23, %v10419_v42  ;;  %v10362_v62 = vadd.f32 %v18558_v17, %v10323_v58  ;;  %v19262_v49 = vld [vmem:[#allocation42_spill] sm:$0xff]  ;;  %v19263_v61 = vld [vmem:[#allocation41_spill] sm:$0xff]  ;;  %v19268_v58 = vld [vmem:[#allocation59_spill] sm:$0xff] }
 0x448   : > { %v13424_v60 = vpop.f32.mrf.mxu1  ;;  %v10423_v15 = vmax.f32 %v10391_v63, 0.0  ;;  %v8690_v42 = vadd.f32 %v19263_v61, %v19262_v49  ;;  %v19264_v23 = vld [vmem:[#allocation26_spill] sm:$0xff]  ;;  %v9830_v46 = vadd.f32 %v18613_v34, %v18508_v44  ;;  %v19267_v34 = vld [vmem:[#allocation43_spill] sm:$0xff] }
 0x449   : > { %v10421_v52 = vmax.f32 %v10389_v5, 0.0  ;;  %v10360_v12 = vadd.f32 %v18558_v17, %v10321_v37  ;;  %v10451_v14 = vadd.f32 %v10450_v40, %v10420_v26  ;;  %v10324_v43 = vadd.f32 %v13424_v60, %v9826_v16  ;;  %v19265_v25 = vld [vmem:[#allocation18_spill] sm:$0xff]  ;;  %v13387_v16 = vpop.f32.mrf.mxu0 }
 0x44a   : > { %v10245_v53 = vpop.f32.mrf.mxu1  ;;  %v10394_v28 = vadd.f32 %v10362_v62, %v19265_v25  ;;  %v9077_v5 = vadd.f32 %v18517_v30, %v8690_v42  ;;  %v9828_v37 = vadd.f32 %v18628_v36, %v9074_v13  ;;  %v8691_v60 = vadd.f32 %v19268_v58, %v19267_v34  ;;  %v19269_v30 = vld [vmem:[#allocation17_spill] sm:$0xff]  ;;  %v19271_v62 = vld [vmem:[#allocation60_spill] sm:$0xff] }
 0x44b   : > { %v10322_v50 = vadd.f32 %v10245_v53, %v9824_v33  ;;  %v10452_v39 = vadd.f32 %v10451_v14, %v10421_v52  ;;  %v10392_v21 = vadd.f32 %v10360_v12, %v19261_v10  ;;  %v10363_v22 = vadd.f32 %v18558_v17, %v10324_v43  ;;  %v9792_v53 = vpop.f32.mrf.mxu0  ;;  %v19274_v42 = vld [vmem:[#allocation16_spill] sm:$0xff] }
 0x44c   : > { %v13427_v24 = vpop.f32.mrf.mxu1  ;;  %v10426_v52 = vmax.f32 %v10394_v28, 0.0  ;;  %v9078_v63 = vadd.f32 %v18524_v8, %v8691_v60  ;;  %v9831_v43 = vadd.f32 %v9776_v51, %v9077_v5  ;;  %v9834_v8 = vadd.f32 %v13384_v7, %v18522_v4  ;;  %v19276_v4 = vld [vmem:[#allocation46_spill] sm:$0xff]  ;;  %v19280_v58 = vld [vmem:[#allocation64_spill] sm:$0xff] }
 0x44d   : > { %v10361_v31 = vadd.f32 %v18558_v17, %v10322_v50  ;;  %v10453_v9 = vadd.f32 %v10452_v39, %v10422_v6  ;;  %v10424_v29 = vmax.f32 %v10392_v21, 0.0  ;;  %v10327_v19 = vadd.f32 %v13427_v24, %v9829_v0  ;;  %v19270_v39 = vld [vmem:[#allocation45_spill] sm:$0xff]  ;;  %v19272_v21 = vld [vmem:[#allocation19_spill] sm:$0xff]  ;;  %v13388_v49 = vpop.f32.mrf.mxu0 }
 0x44e   : > { %v10258_v35 = vpop.f32.mrf.mxu1  ;;  %v10395_v26 = vadd.f32 %v10363_v22, %v19266_v38  ;;  %v9833_v50 = vadd.f32 %v18637_v59, %v18515_v32  ;;  %v8694_v10 = vadd.f32 %v19271_v62, %v19270_v39  ;;  %v9832_v59 = vadd.f32 %v9779_v56, %v9078_v63 }
 0x44f   : > { %v10393_v48 = vadd.f32 %v10361_v31, %v19264_v23  ;;  %v10325_v47 = vadd.f32 %v10258_v35, %v9827_v41  ;;  %v10454_v18 = vadd.f32 %v10453_v9, %v10423_v15  ;;  %v10366_v33 = vadd.f32 %v18558_v17, %v10327_v19  ;;  %v19273_v31 = vld [vmem:[#allocation31_spill] sm:$0xff]  ;;  %v19277_v19 = vld [vmem:[#allocation30_spill] sm:$0xff]  ;;  %v9795_v38 = vpop.f32.mrf.mxu0 }
 0x450   : > { %v13428_v20 = vpop.f32.mrf.mxu1  ;;  %v10427_v11 = vmax.f32 %v10395_v26, 0.0  ;;  %v9081_v0 = vadd.f32 %v18531_v55, %v8694_v10  ;;  %v9838_v60 = vadd.f32 %v13388_v49, %v19280_v58 }
 0x451   : > { %v10425_v27 = vmax.f32 %v10393_v48, 0.0  ;;  %v10364_v54 = vadd.f32 %v18558_v17, %v10325_v47  ;;  %v10455_v3 = vadd.f32 %v10454_v18, %v10424_v29  ;;  %v10328_v40 = vadd.f32 %v13428_v20, %v9830_v46  ;;  %v19275_v46 = vld [vmem:[#allocation48_spill] sm:$0xff] }
 0x452   : > { %v10261_v44 = vpop.f32.mrf.mxu1  ;;  %v10398_v41 = vadd.f32 %v10366_v33, %v19273_v31  ;;  %v8695_v7 = vadd.f32 %v19276_v4, %v19275_v46  ;;  %v9835_v5 = vadd.f32 %v9792_v53, %v9081_v0  ;;  %v19282_v33 = vld [vmem:[#allocation25_spill] sm:$0xff] }
 0x453   : > { %v10326_v2 = vadd.f32 %v10261_v44, %v9828_v37  ;;  %v10456_v12 = vadd.f32 %v10455_v3, %v10425_v27  ;;  %v10396_v14 = vadd.f32 %v10364_v54, %v19269_v30  ;;  %v10367_v57 = vadd.f32 %v18558_v17, %v10328_v40  ;;  %v19278_v27 = vld [vmem:[#allocation52_spill] sm:$0xff]  ;;  %v19279_v37 = vld [vmem:[#allocation62_spill] sm:$0xff] }
 0x454   : > { %v13431_v1 = vpop.f32.mrf.mxu1  ;;  %v10430_v28 = vmax.f32 %v10398_v41, 0.0  ;;  %v9082_v56 = vadd.f32 %v19278_v27, %v8695_v7  ;;  %v9837_v3 = vadd.f32 %v13387_v16, %v19279_v37 }
 0x455   : > { %v10365_v36 = vadd.f32 %v18558_v17, %v10326_v2  ;;  %v10457_v45 = vadd.f32 %v10456_v12, %v10426_v52  ;;  %v10428_v51 = vmax.f32 %v10396_v14, 0.0  ;;  %v10331_v9 = vadd.f32 %v13431_v1, %v9833_v50  ;;  %v19281_v2 = vld [vmem:[#allocation33_spill] sm:$0xff] }
 0x456   : > { %v10274_v6 = vpop.f32.mrf.mxu1  ;;  %v10399_v23 = vadd.f32 %v10367_v57, %v19274_v42 }
 0x457   : > { %v10397_v24 = vadd.f32 %v10365_v36, %v19272_v21  ;;  %v10329_v13 = vadd.f32 %v10274_v6, %v9831_v43  ;;  %v10458_v15 = vadd.f32 %v10457_v45, %v10427_v11  ;;  %v10370_v18 = vadd.f32 %v18558_v17, %v10331_v9  ;;  %v19283_v45 = vld [vmem:[#allocation32_spill] sm:$0xff] }
 0x458   : > { %v13432_v22 = vpop.f32.mrf.mxu1  ;;  %v10431_v26 = vmax.f32 %v10399_v23, 0.0  ;;  %v9836_v43 = vadd.f32 %v9795_v38, %v9082_v56  ;;  %v10526_v38 = vld [vmem:[%s18842_s5 + $0x170] sm:$0xff] }
 0x459   : > { %v10429_v35 = vmax.f32 %v10397_v24, 0.0  ;;  %v10368_v32 = vadd.f32 %v18558_v17, %v10329_v13  ;;  %v10459_v61 = vadd.f32 %v10458_v15, %v10428_v51  ;;  %v10332_v48 = vadd.f32 %v13432_v22, %v9834_v8  ;;  %v19284_v24 = vld [vmem:[#allocation35_spill] sm:$0xff]  ;;  %v19285_v15 = vld [vmem:[#allocation36_spill] sm:$0xff]  ;;  %v19286_v22 = vld [vmem:[#allocation34_spill] sm:$0xff] }
 0x45a   : > { %v10277_v47 = vpop.f32.mrf.mxu1  ;;  %v10402_v30 = vadd.f32 %v10370_v18, %v19282_v33 }
 0x45b   : > { %v10330_v25 = vadd.f32 %v10277_v47, %v9832_v59  ;;  %v10460_v29 = vadd.f32 %v10459_v61, %v10429_v35  ;;  %v10400_v55 = vadd.f32 %v10368_v32, %v19277_v19  ;;  %v10371_v44 = vadd.f32 %v18558_v17, %v10332_v48  ;;  %v19287_v61 = vld [vmem:[#allocation37_spill] sm:$0xff]  ;;  %v10530_v19 = vld [vmem:[%s18842_s5 + $0x190] sm:$0xff] }
 0x45c   : > { %v13435_v20 = vpop.f32.mrf.mxu1  ;;  %v10434_v62 = vmax.f32 %v10402_v30, 0.0 }
 0x45d   : > { %v10369_v54 = vadd.f32 %v18558_v17, %v10330_v25  ;;  %v10461_v40 = vadd.f32 %v10460_v29, %v10430_v28  ;;  %v10432_v14 = vmax.f32 %v10400_v55, 0.0  ;;  %v10335_v63 = vadd.f32 %v13435_v20, %v9837_v3  ;;  %v10534_v55 = vld [vmem:[%s18842_s5 + $0x1b0] sm:$0xff]  ;;  %v10531_v20 = vld [vmem:[%s18842_s5 + $0x198] sm:$0xff] }
 0x45e   : > { %v10290_v34 = vpop.f32.mrf.mxu1  ;;  %v10403_v57 = vadd.f32 %v10371_v44, %v19283_v45  ;;  %v10522_v3 = vld [vmem:[%s18842_s5 + $0x150] sm:$0xff]  ;;  %v19288_v44 = vld [vmem:[#allocation12_spill] sm:$0xff] }
 0x45f   : > { %v10401_v52 = vadd.f32 %v10369_v54, %v19281_v2  ;;  %v10333_v12 = vadd.f32 %v10290_v34, %v9835_v5  ;;  %v10462_v1 = vadd.f32 %v10461_v40, %v10431_v26  ;;  %v10374_v21 = vadd.f32 %v18558_v17, %v10335_v63  ;;  %v10535_v5 = vld [vmem:[%s18842_s5 + $0x1b8] sm:$0xff]  ;;  %v19292_v2 = vld [vmem:[#allocation4_spill] sm:$0xff]  ;;  %v10518_v63 = vld [vmem:[%s18842_s5 + $0x130] sm:$0xff] }
 0x460   : > { %v13436_v36 = vpop.f32.mrf.mxu1  ;;  %v10435_v31 = vmax.f32 %v10403_v57, 0.0  ;;  %v12277_v54 = vcombine.high %v10530_v19, %v10534_v55  ;;  %v12279_v37 = vcombine.high %v10531_v20, %v10535_v5  ;;  %v10523_v26 = vld [vmem:[%s18842_s5 + $0x158] sm:$0xff]  ;;  %v12278_v33 = vcombine.low %v10531_v20, %v10535_v5 }
 0x461   : > { %v10433_v53 = vmax.f32 %v10401_v52, 0.0  ;;  %v10372_v16 = vadd.f32 %v18558_v17, %v10333_v12  ;;  %v10463_v11 = vadd.f32 %v10462_v1, %v10432_v14  ;;  %v10336_v50 = vadd.f32 %v13436_v36, %v9838_v60  ;;  %v10527_v40 = vld [vmem:[%s18842_s5 + $0x178] sm:$0xff]  ;;  %v19291_v60 = vld [vmem:[#allocation58_spill] sm:$0xff] }
 0x462   : > { %v10293_v6 = vpop.f32.mrf.mxu1  ;;  %v10406_v0 = vadd.f32 %v10374_v21, %v19286_v22  ;;  %v19289_v34 = vld [vmem:[#allocation3_spill] sm:$0xff]  ;;  %v19293_v52 = vcombine.low %v19291_v60, %v19292_v2  ;;  %v12276_v12 = vcombine.low %v10530_v19, %v10534_v55  ;;  %v12269_v30 = vcombine.high %v10522_v3, %v10526_v38  ;;  %v10514_v1 = vld [vmem:[%s18842_s5 + $0x110] sm:$0xff] }
 0x463   : > { %v10334_v39 = vadd.f32 %v10293_v6, %v9836_v43  ;;  %v10464_v10 = vadd.f32 %v10463_v11, %v10433_v53  ;;  %v10404_v13 = vadd.f32 %v10372_v16, %v19284_v24  ;;  %v10375_v51 = vadd.f32 %v18558_v17, %v10336_v50  ;;  %v10515_v36 = vld [vmem:[%s18842_s5 + $0x118] sm:$0xff]  ;;  %v10506_v50 = vld [vmem:[%s18842_s5 + $0xd0] sm:$0xff] }
 0x464   : > { %v10438_v23 = vmax.f32 %v10406_v0, 0.0  ;;  %v19290_v58 = vcombine.low %v19288_v44, %v19289_v34  ;;  %v12271_v14 = vcombine.high %v10523_v26, %v10527_v40  ;;  %v10519_v43 = vld [vmem:[%s18842_s5 + $0x138] sm:$0xff]  ;;  %v19294_v53 = vmov 0   ;;  %v10510_v6 = vld [vmem:[%s18842_s5 + $0xf0] sm:$0xff] }
 0x465   : > { %v10373_v8 = vadd.f32 %v18558_v17, %v10334_v39  ;;  %v10465_v41 = vadd.f32 %v10464_v10, %v10434_v62  ;;  %v10436_v35 = vmax.f32 %v10404_v13, 0.0  ;;  %v10407_v42 = vadd.f32 %v10375_v51, %v19287_v61  ;;  %v10507_v39 = vld [vmem:[%s18842_s5 + $0xd8] sm:$0xff] }
 0x466   : > { %v12268_v16 = vcombine.low %v10522_v3, %v10526_v38  ;;  %v12270_v11 = vcombine.low %v10523_v26, %v10527_v40  ;;  %v12261_v45 = vcombine.high %v10514_v1, %v10518_v63  ;;  %v12263_v57 = vcombine.high %v10515_v36, %v10519_v43  ;;  %v10511_v62 = vld [vmem:[%s18842_s5 + $0xf8] sm:$0xff] }
 0x467   : > { %v10405_v9 = vadd.f32 %v10373_v8, %v19285_v15  ;;  %v10466_v32 = vadd.f32 %v10465_v41, %v10435_v31  ;;  %v10439_v47 = vmax.f32 %v10407_v42, 0.0  ;;  %v12260_v10 = vcombine.low %v10514_v1, %v10518_v63  ;;  %v10498_v8 = vld [vmem:[%s18842_s5 + $0x90] sm:$0xff]  ;;  %v10499_v41 = vld [vmem:[%s18842_s5 + $0x98] sm:$0xff] }
 0x468   : > { %v12262_v21 = vcombine.low %v10515_v36, %v10519_v43  ;;  %v12253_v24 = vcombine.high %v10506_v50, %v10510_v6  ;;  %v12255_v13 = vcombine.high %v10507_v39, %v10511_v62  ;;  %v10502_v31 = vld [vmem:[%s18842_s5 + $0xb0] sm:$0xff]  ;;  %v10503_v51 = vld [vmem:[%s18842_s5 + $0xb8] sm:$0xff]  ;;  %v12252_v15 = vcombine.low %v10506_v50, %v10510_v6 }
 0x469   : > { %v10437_v59 = vmax.f32 %v10405_v9, 0.0  ;;  %v10467_v49 = vadd.f32 %v10466_v32, %v10436_v35  ;;  %v12254_v9 = vcombine.low %v10507_v39, %v10511_v62  ;;  %v12245_v22 = vcombine.high %v10498_v8, %v10502_v31  ;;  %v10490_v35 = vld [vmem:[%s18842_s5 + $0x50] sm:$0xff] }
 0x46a   : > { %v12247_v0 = vcombine.high %v10499_v41, %v10503_v51  ;;  %v10494_v32 = vld [vmem:[%s18842_s5 + $0x70] sm:$0xff]  ;;  %v12244_v61 = vcombine.low %v10498_v8, %v10502_v31  ;;  %v12246_v42 = vcombine.low %v10499_v41, %v10503_v51  ;;  %v10866_v3 = vlaneseq }
 0x46b   : > { %v10468_v48 = vadd.f32 %v10467_v49, %v10437_v59  ;;  %v10491_v59 = vld [vmem:[%s18842_s5 + $0x58] sm:$0xff] }
 0x46c   : > { %v10495_v49 = vld [vmem:[%s18842_s5 + $0x78] sm:$0xff]  ;;  %v18816_v40 = vshrl.u32 %v10866_v3, 7 }
 0x46d   : > { %v10469_v46 = vadd.f32 %v10468_v48, %v10438_v23  ;;  %v12237_v23 = vcombine.high %v10490_v35, %v10494_v32  ;;  %v12239_v48 = vcombine.high %v10491_v59, %v10495_v49 }
 0x46e   : > { %v10872_v44 = vsub.s32 1, %v18816_v40  ;;  %v10880_v34 = vsub.s32 3, %v18816_v40  ;;  %v10876_v60 = vsub.s32 2, %v18816_v40  ;;  %v10896_v50 = vsub.s32 7, %v18816_v40 }
 0x46f   : > { %v10470_v4 = vadd.f32 %v10469_v46, %v10439_v47  ;;  %v10482_v47 = vld [vmem:[%s18842_s5 + $0x10] sm:$0xff] }
 0x470   : > { %v10486_v46 = vld [vmem:[%s18842_s5 + $0x30] sm:$0xff] }
 0x471   : > { %v10471_v7 = vrot.slane %v10470_v4, 4 }
 0x473   : > { %v10472_v25 = vadd.f32 %v10471_v7, %v10470_v4  ;;  %v10483_v4 = vld [vmem:[%s18842_s5 + $0x18] sm:$0xff] }
 0x474   : > { %v10487_v7 = vld [vmem:[%s18842_s5 + $0x38] sm:$0xff] }
 0x475   : > { %v10473_v28 = vrot.slane %v10472_v25, 2  ;;  %v12230_v19 = vcombine.low %v10483_v4, %v10487_v7 }
 0x477   : > { %v10474_v17 = vadd.f32 %v10473_v28, %v10472_v25  ;;  %v12236_v25 = vcombine.low %v10490_v35, %v10494_v32  ;;  %v12238_v28 = vcombine.low %v10491_v59, %v10495_v49 }
 0x479   : > { %v10475_v29 = vrot.slane %v10474_v17, 1 }
 0x47b   : > { %v10476_v18 = vadd.f32 %v10475_v29, %v10474_v17  ;;  %v12229_v17 = vcombine.high %v10482_v47, %v10486_v46  ;;  %v12231_v29 = vcombine.high %v10483_v4, %v10487_v7 }
 0x47d   : > { %v10477_v27 = vmul.f32 0.00390625, %v10476_v18  ;;  %v12228_v18 = vcombine.low %v10482_v47, %v10486_v46 }
 0x47f   : > { %10478 = vst [vmem:[%s308_s17] sm:$0x1] %v10477_v27  ;;  %v18730_v56 = vpack.c.bf16 %v10477_v27, %v10477_v27  ;;  %s312_s17 = scalar_lea.vmem %s18845_s8, %s11261_s14 }
 0x481   : > { %10939 = vmatmul.mubr.bf16.vlgmr.msra.gmra.mxu0 %v18730_v56  ;;  %10980 = vmatmul.mubr.bf16.vlgmr.msra.gmra.mxu1 %v18730_v56 }
 0x482   : > { %10989 = vmatpush1.bf16.msra.mxu0 %v19290_v58  ;;  %11030 = vmatpush1.bf16.msra.mxu1 %v19293_v52  ;;  %v10868_v58 = vsub.s32 0, %v18816_v40 }
 0x483   : > { %10990 = vmatprep.subr.bf16.mxu0 %v12277_v54  ;;  %11031 = vmatprep.subr.bf16.mxu1 %v12279_v37 }
 0x484   : > { %11020 = vmatprep.mubr.bf16.mxu0 %v19294_v53  ;;  %11061 = vmatprep.mubr.bf16.mxu1 %v19294_v53 }
 0x486   : > { %10991 = vmatpush1.bf16.msra.mxu0 %v12276_v12  ;;  %11032 = vmatpush1.bf16.msra.mxu1 %v12278_v33 }
 0x487   : > { %10992 = vmatprep.subr.bf16.mxu0 %v12269_v30  ;;  %11033 = vmatprep.subr.bf16.mxu1 %v12271_v14 }
 0x48a   : > { %10993 = vmatpush1.bf16.msra.mxu0 %v12268_v16  ;;  %11034 = vmatpush1.bf16.msra.mxu1 %v12270_v11  ;;  %v10884_v16 = vsub.s32 4, %v18816_v40  ;;  %v10892_v11 = vsub.s32 6, %v18816_v40 }
 0x48b   : > { %10994 = vmatprep.subr.bf16.mxu0 %v12261_v45  ;;  %11035 = vmatprep.subr.bf16.mxu1 %v12263_v57  ;;  %v10888_v57 = vsub.s32 5, %v18816_v40 }
 0x48e   : > { %10995 = vmatpush1.bf16.msra.mxu0 %v12260_v10  ;;  %11036 = vmatpush1.bf16.msra.mxu1 %v12262_v21 }
 0x48f   : > { %10996 = vmatprep.subr.bf16.mxu0 %v12253_v24  ;;  %11037 = vmatprep.subr.bf16.mxu1 %v12255_v13 }
 0x492   : > { %10997 = vmatpush1.bf16.msra.mxu0 %v12252_v15  ;;  %11038 = vmatpush1.bf16.msra.mxu1 %v12254_v9 }
 0x493   : > { %10998 = vmatprep.subr.bf16.mxu0 %v12245_v22  ;;  %11039 = vmatprep.subr.bf16.mxu1 %v12247_v0 }
 0x496   : > { %10999 = vmatpush1.bf16.msra.mxu0 %v12244_v61  ;;  %11040 = vmatpush1.bf16.msra.mxu1 %v12246_v42 }
 0x497   : > { %11000 = vmatprep.subr.bf16.mxu0 %v12237_v23  ;;  %11041 = vmatprep.subr.bf16.mxu1 %v12239_v48 }
 0x49a   : > { %11001 = vmatpush1.bf16.msra.mxu0 %v12236_v25  ;;  %11042 = vmatpush1.bf16.msra.mxu1 %v12238_v28 }
 0x49b   : > { %11002 = vmatprep.subr.bf16.mxu0 %v12229_v17  ;;  %11043 = vmatprep.subr.bf16.mxu1 %v12231_v29 }
 0x49e   : > { %11003 = vmatpush1.bf16.msra.mxu0 %v12228_v18  ;;  %11044 = vmatpush1.bf16.msra.mxu1 %v12230_v19 }
 0x4a1   : > { %11021 = vmatmul.mubr.bf16.vlgmr.msra.gmra.mxu0 %v18730_v56  ;;  %11062 = vmatmul.mubr.bf16.vlgmr.msra.gmra.mxu1 %v18730_v56  ;;  %v10544_v56 = vld [vmem:[%s18843_s6] sm:$0xff] }
 0x4a2   : > { %v10873_v2 = vrot.slane %v10544_v56, %v10872_v44  ;;  %v10881_v52 = vrot.slane %v10544_v56, %v10880_v34  ;;  %v10869_v12 = vrot.slane %v10544_v56, %v10868_v58  ;;  %v10877_v33 = vrot.slane %v10544_v56, %v10876_v60 }
 0x4a3   : > { %v10885_v6 = vrot.slane %v10544_v56, %v10884_v16  ;;  %v10893_v39 = vrot.slane %v10544_v56, %v10892_v11  ;;  %v10889_v62 = vrot.slane %v10544_v56, %v10888_v57  ;;  %v10897_v10 = vrot.slane %v10544_v56, %v10896_v50 }
 0x541   : > { %v10940_v55 = vpop.f32.mrf.mxu0  ;;  %v10981_v20 = vpop.f32.mrf.mxu1 }
 0x542   : > { %v10941_v1 = vadd.f32 %v10940_v55, %v10869_v12  ;;  %v10982_v63 = vadd.f32 %v10981_v20, %v10877_v33 }
 0x543   : > { %v10942_v5 = vpop.f32.mrf.mxu0  ;;  %v10983_v27 = vpop.f32.mrf.mxu1 }
 0x544   : > { %v10943_v30 = vadd.f32 %v10942_v5, %v10873_v2  ;;  %v10984_v14 = vadd.f32 %v10983_v27, %v10881_v52  ;;  %v12288_v53 = vmul.f32 -1.442695, %v10941_v1  ;;  %v12290_v45 = vmul.f32 -1.442695, %v10982_v63 }
 0x545   : > { %v10944_v54 = vpop.f32.mrf.mxu0  ;;  %v10985_v37 = vpop.f32.mrf.mxu1  ;;  %v13685_v27 = vmov 1966171168  }
 0x546   : > { %v12289_v36 = vmul.f32 -1.442695, %v10943_v30  ;;  %v12291_v43 = vmul.f32 -1.442695, %v10984_v14  ;;  %v11131_v54 = vunpack.c.l.s4 %v13685_v27 }
 0x547   : > { %v10945_v38 = vpop.f32.mrf.mxu0  ;;  %v10986_v26 = vpop.f32.mrf.mxu1 }
 0x548   : > { %13625 = vpow2.f32 %v12289_v36  ;;  %v11132_v3 = vunpack.c.0.s8 %v11131_v54 }
 0x549   : > { %13627 = vpow2.f32 %v12291_v43 }
 0x54a   : > { %13629 = vpow2.f32 %v12288_v53  ;;  %v11135_v58 = vsub.s32 %v11132_v3, %v18816_v40 }
 0x54b   : > { %13631 = vpow2.f32 %v12290_v45 }
 0x555   : > { %v13626_v42 = vpop.eup %13625 }
 0x556   : > { %v13628_v23 = vpop.eup %13627  ;;  %v11095_v46 = vadd.f32 1.0, %v13626_v42 }
 0x557   : > { %v13630_v48 = vpop.eup %13629  ;;  %v11097_v4 = vadd.f32 1.0, %v13628_v23 }
 0x558   : > { %v13632_v47 = vpop.eup %13631  ;;  %v11094_v7 = vadd.f32 1.0, %v13630_v48 }
 0x559   : > { %v11096_v25 = vadd.f32 1.0, %v13632_v47 }
 0x561   : > { %v11022_v21 = vpop.f32.mrf.mxu0  ;;  %v11063_v24 = vpop.f32.mrf.mxu1 }
 0x562   : > { %v11023_v13 = vadd.f32 %v11022_v21, %v10885_v6  ;;  %v11064_v8 = vadd.f32 %v11063_v24, %v10893_v39 }
 0x563   : > { %v11024_v31 = vpop.f32.mrf.mxu0  ;;  %v11065_v41 = vpop.f32.mrf.mxu1 }
 0x564   : > { %v12292_v51 = vmul.f32 -1.442695, %v11023_v13  ;;  %v12294_v15 = vmul.f32 -1.442695, %v11064_v8  ;;  %v11025_v9 = vadd.f32 %v11024_v31, %v10889_v62  ;;  %v11066_v22 = vadd.f32 %v11065_v41, %v10897_v10 }
 0x565   : > { %v11026_v0 = vpop.f32.mrf.mxu0  ;;  %v11067_v35 = vpop.f32.mrf.mxu1 }
 0x566   : > { %13633 = vpow2.f32 %v12292_v51  ;;  %v12293_v32 = vmul.f32 -1.442695, %v11025_v9  ;;  %v12295_v59 = vmul.f32 -1.442695, %v11066_v22 }
 0x567   : > { %13635 = vpow2.f32 %v12294_v15  ;;  %v11027_v49 = vpop.f32.mrf.mxu0  ;;  %v11068_v61 = vpop.f32.mrf.mxu1 }
 0x568   : > { %13637 = vpow2.f32 %v12293_v32 }
 0x569   : > { %13639 = vpow2.f32 %v12295_v59 }
 0x56a   : > { %13641 = vrcp.f32 %v11095_v46 }
 0x56b   : > { %13643 = vrcp.f32 %v11097_v4 }
 0x56c   : > { %13645 = vrcp.f32 %v11094_v7 }
 0x56d   : > { %13647 = vrcp.f32 %v11096_v25 }
 0x573   : > { %v13634_v28 = vpop.eup %13633 }
 0x574   : > { %v13636_v17 = vpop.eup %13635  ;;  %v11098_v29 = vadd.f32 1.0, %v13634_v28 }
 0x575   : > { %v13638_v18 = vpop.eup %13637  ;;  %v11100_v19 = vadd.f32 1.0, %v13636_v17 }
 0x576   : > { %v13640_v55 = vpop.eup %13639  ;;  %13649 = vrcp.f32 %v11098_v29  ;;  %v11099_v20 = vadd.f32 1.0, %v13638_v18 }
 0x577   : > { %13651 = vrcp.f32 %v11100_v19  ;;  %v11101_v5 = vadd.f32 1.0, %v13640_v55  ;;  %v13642_v37 = vpop.eup %13641 }
 0x578   : > { %13653 = vrcp.f32 %v11099_v20  ;;  %v13644_v38 = vpop.eup %13643 }
 0x579   : > { %13655 = vrcp.f32 %v11101_v5  ;;  %v13646_v26 = vpop.eup %13645 }
 0x57a   : > { %v13648_v44 = vpop.eup %13647  ;;  %v11126_v34 = vcombine.low %v13646_v26, %v13642_v37 }
 0x57b   : > { %v11127_v56 = vcombine.low %v13648_v44, %v13644_v38 }
 0x57c   : > { %v11136_v12 = vrot.slane %v11126_v34, %v11135_v58 }
 0x57d   : > { %v11143_v33 = vrot.slane %v11127_v56, %v11135_v58 }
 0x57f   : > { %v11158_v36 = vcombine.low %v11136_v12, %v11143_v33 }
 0x581   : > { %v11166_v16 = vrot.slane %v11158_v36, %v11135_v58 }
 0x583   : > { %v13650_v60 = vpop.eup %13649 }
 0x584   : > { %v13652_v2 = vpop.eup %13651 }
 0x585   : > { %v13654_v52 = vpop.eup %13653 }
 0x586   : > { %v13656_v30 = vpop.eup %13655  ;;  %v11128_v14 = vcombine.low %v13650_v60, %v13654_v52 }
 0x587   : > { %v11129_v1 = vcombine.low %v13652_v2, %v13656_v30 }
 0x588   : > { %v11150_v63 = vrot.slane %v11128_v14, %v11135_v58 }
 0x589   : > { %v11157_v43 = vrot.slane %v11129_v1, %v11135_v58 }
 0x58b   : > { %v11159_v53 = vcombine.low %v11150_v63, %v11157_v43 }
 0x58d   : > { %v11173_v11 = vrot.slane %v11159_v53, %v11135_v58 }
 0x58f   : > { %v11174_v40 = vcombine.low %v11166_v16, %v11173_v11 }
 0x591   : > { %11176 = vst [vmem:[%s312_s17] sm:$0xff] %v11174_v40 }
 0x592 PF: > { %s19_s27 = sadd.s32 1, %s13682_s27  }
 0x593   : > { %p16_p4 = scmp.ge.s32.totalorder %s19_s27, 4  }
 0x595   :  { %18 = sbr.rel (!%p16_p4) target bundleno = 1 (0x1), region = 110 }

</bundles_post_ra>
